<compile_context>
chip_gen: v6e
topology: v6e:2x2x1
jax: 0.10.0
libtpu: 0.0.40
codegen_flags: <defaults>
</compile_context>

<pallas_src>
import functools

import jax
import jax.numpy as jnp
from jax import lax
from jax.experimental import pallas as pl
from jax.experimental.pallas import tpu as pltpu


def _tap_mask(H, W, KH, KW, C):
    """0/1 mask (KH*KW*C, H*W): 'same' zero-padding validity per tap, per channel."""
    p = jnp.arange(H * W)
    yy, xx = p // W, p % W
    rows = []
    for kh in range(KH):
        for kw in range(KW):
            dh, dw = kh - KH // 2, kw - KW // 2
            valid = ((yy + dh >= 0) & (yy + dh < H) &
                     (xx + dw >= 0) & (xx + dw < W)).astype(jnp.float32)
            rows.append(jnp.broadcast_to(valid[None, :], (C, H * W)))
    return jnp.concatenate(rows, axis=0)


def _fused_convlstm_kernel(accx_ref, *refs, T, H, W, KH, KW, Chids):
    """Fused multi-layer ConvLSTM recurrence for one batch element (whole T in-kernel).

    accx_ref : (1, T, 4*C0, HW)   precomputed x-half of layer-0 gate pre-activations
    per layer l (5 refs, in order):
      w_ref    (4*C, 9*Ctot) bf16 recurrent conv as GEMM (l=0: h-only, l>0: [x|h])
      b_ref    (4*C, HW)          conv bias, pre-broadcast over lanes
      bns_ref  (2*C, HW)          eval-BN scale for packed [h; c], pre-broadcast
      bnb_ref  (2*C, HW)          eval-BN shift for packed [h; c], pre-broadcast
      mask_ref (9*Ctot, HW)       0/1 'same'-padding boundary mask per im2col row
    then: hout_ref (1, T, C_last, HW) output, and one (2*C, HW) VMEM state scratch
    per layer (rows [:C]=h, [C:]=c, raw / pre-BN, persists across the time loop).
    """
    num_layers = len(Chids)
    HW = H * W
    params = [refs[5 * l: 5 * l + 5] for l in range(num_layers)]
    hout_ref = refs[5 * num_layers]
    state_refs = refs[5 * num_layers + 1:]

    # h_0 = c_0 = 0 for every layer at the start of this sequence.
    for st in state_refs:
        st[...] = jnp.zeros_like(st)

    def step(t, carry):
        x_in = None
        for l in range(num_layers):
            w_ref, b_ref, bns_ref, bnb_ref, mask_ref = params[l]
            st = state_refs[l]
            C = Chids[l]

            # Eval-mode BatchNorm2d as a per-channel affine on the packed [h; c]
            # state (Dropout = identity).  Broadcasts were hoisted to the wrapper.
            state_bn = st[...] * bns_ref[...] + bnb_ref[...]
            h_cur = state_bn[:C]          # (C, HW)
            c_cur = state_bn[C:]          # (C, HW)

            # Layer 0: the x-half of the conv was precomputed (accx); only h goes
            # through im2col here.  Deeper layers use the combined [x_in | h].
            src = h_cur if l == 0 else jnp.concatenate([x_in, h_cur], axis=0)

            # im2col via lane rolls of the flattened spatial axis; out-of-image
            # neighbours are zeroed by the precomputed boundary mask, so roll
            # wrap-around only ever lands on masked positions.
            taps = []
            for kh in range(KH):
                for kw in range(KW):
                    d = (kh - KH // 2) * W + (kw - KW // 2)
                    taps.append(src if d == 0 else jnp.roll(src, shift=-d, axis=1))
            patches = jnp.concatenate(taps, axis=0) * mask_ref[...]   # (9*Ctot, HW)

            # Single recurrent GEMM per layer-step, bf16 operands, f32 accumulate.
            acc = jnp.dot(w_ref[...], patches.astype(jnp.bfloat16),
                          preferred_element_type=jnp.float32)
            acc = acc + b_ref[...]
            if l == 0:
                acc = acc + accx_ref[0, t]                            # (4*C, HW)

            # Gates: i|f|o share one contiguous sigmoid slab, g is tanh.
            sig = jax.nn.sigmoid(acc[:3 * C])
            i_g, f_g, o_g = sig[:C], sig[C:2 * C], sig[2 * C:3 * C]
            g_g = jnp.tanh(acc[3 * C:])

            c_next = f_g * c_cur + i_g * g_g
            h_next = o_g * jnp.tanh(c_next)

            # Raw (pre-BN) state carried to the next step; two slice stores.
            st[0:C, :] = h_next
            st[C:2 * C, :] = c_next
            x_in = h_next

        hout_ref[0, t] = x_in.astype(hout_ref.dtype)
        return carry

    lax.fori_loop(0, T, step, 0, unroll=True)


def convlstm_forward(x, params, *, hidden_dim, kernel_size, num_layers,
                     output_size, output_channel, batch_first=False):
    """x: (t, b, c, h, w) if not batch_first, else (b, t, c, h, w)."""
    if not batch_first:
        x = jnp.transpose(x, (1, 0, 2, 3, 4))            # (B, T, C, H, W)
    B, T, Cin, H, W = x.shape
    HW = H * W
    KH, KW = kernel_size[0]
    for ks in kernel_size:
        assert tuple(ks) == (KH, KW), "fused kernel assumes one kernel size for all layers"
    # Reference module applies BatchNorm2d(cur_input_dim) to hidden_dim-channel
    # tensors; this only type-checks when the channel counts agree.
    dims_in = [Cin] + list(hidden_dim[:-1])
    for ci, hd in zip(dims_in, hidden_dim):
        assert ci == hd, "reference semantics require cur_input_dim == hidden_dim"

    # ---- Layer-0 input projection (review P2): one big conv over all B*T frames,
    # outside the recurrence, so the in-loop GEMM only carries the hidden half. ----
    hid0 = hidden_dim[0]
    w_x = params[0]["w"][:, :Cin]                        # (4*hid0, Cin, KH, KW)
    accx = lax.conv_general_dilated(
        x.reshape(B * T, Cin, H, W), w_x, window_strides=(1, 1), padding="SAME",
        dimension_numbers=("NCHW", "OIHW", "NCHW"))
    accx = accx.reshape(B, T, 4 * hid0, HW)              # bias added in-kernel

    # ---- Kernel operands: weights flattened to the im2col GEMM layout (K index =
    # (kh*KW+kw)*Ctot + cin), bias / BN affines pre-broadcast to (., HW) so nothing
    # is re-broadcast per step, boundary masks precomputed per layer. ----
    ops = [accx]
    in_specs = [pl.BlockSpec((1, T, 4 * hid0, HW), lambda b: (b, 0, 0, 0))]
    scratch = []
    for l in range(num_layers):
        p = params[l]
        hid = hidden_dim[l]
        if l == 0:
            w_rec, ctot = p["w"][:, Cin:], hid           # hidden half only
        else:
            w_rec, ctot = p["w"], dims_in[l] + hid       # combined [x|h] conv
        w_mat = jnp.transpose(w_rec, (0, 2, 3, 1)).reshape(4 * hid, KH * KW * ctot)
        w_mat = w_mat.astype(jnp.bfloat16)
        b_b = jnp.broadcast_to(p["b"][:, None], (4 * hid, HW))
        bns = jnp.broadcast_to(
            jnp.concatenate([p["bn1_scale"], p["bn2_scale"]])[:, None], (2 * hid, HW))
        bnb = jnp.broadcast_to(
            jnp.concatenate([p["bn1_shift"], p["bn2_shift"]])[:, None], (2 * hid, HW))
        mask = _tap_mask(H, W, KH, KW, ctot)
        for a in (w_mat, b_b, bns, bnb, mask):
            ops.append(a)
            in_specs.append(pl.BlockSpec(a.shape, lambda b: (0, 0)))   # VMEM-resident
        scratch.append(pltpu.VMEM((2 * hid, HW), jnp.float32))

    kernel = functools.partial(_fused_convlstm_kernel, T=T, H=H, W=W, KH=KH, KW=KW,
                               Chids=tuple(hidden_dim))
    hid_last = hidden_dim[-1]
    h_seq = pl.pallas_call(
        kernel,
        out_shape=jax.ShapeDtypeStruct((B, T, hid_last, HW), jnp.float32),
        grid=(B,),
        in_specs=in_specs,
        out_specs=pl.BlockSpec((1, T, hid_last, HW), lambda b: (b, 0, 0, 0)),
        scratch_shapes=scratch,
        compiler_params=pltpu.CompilerParams(dimension_semantics=("parallel",)),
    )(*ops)

    # return_all_layers=False -> last layer only; residual last input frame.
    out = h_seq[:, :output_size, output_channel].reshape(B, output_size, H, W)
    last_x = x[:, -1, output_channel]                    # (B, H, W)
    return out + last_x[:, None]


def _reference_forward(x, params, *, hidden_dim, kernel_size, num_layers,
                       output_size, output_channel, batch_first=False):
    """Pure-JAX (XLA) port of the PyTorch module, for numerical verification."""
    if not batch_first:
        x = jnp.transpose(x, (1, 0, 2, 3, 4))
    B, T, _, H, W = x.shape
    cur = x
    for l in range(num_layers):
        p = params[l]
        hid = hidden_dim[l]
        s1 = p["bn1_scale"][None, :, None, None]
        sh1 = p["bn1_shift"][None, :, None, None]
        s2 = p["bn2_scale"][None, :, None, None]
        sh2 = p["bn2_shift"][None, :, None, None]
        h = jnp.zeros((B, hid, H, W), jnp.float32)
        c = jnp.zeros((B, hid, H, W), jnp.float32)
        outs = []
        for t in range(T):
            h = h * s1 + sh1
            c = c * s2 + sh2
            comb = jnp.concatenate([cur[:, t], h], axis=1)
            conv = lax.conv_general_dilated(
                comb, p["w"], (1, 1), "SAME",
                dimension_numbers=("NCHW", "OIHW", "NCHW"))
            conv = conv + p["b"][None, :, None, None]
            i = jax.nn.sigmoid(conv[:, :hid])
            f = jax.nn.sigmoid(conv[:, hid:2 * hid])
            o = jax.nn.sigmoid(conv[:, 2 * hid:3 * hid])
            g = jnp.tanh(conv[:, 3 * hid:])
            c = f * c + i * g
            h = o * jnp.tanh(c)
            outs.append(h)
        cur = jnp.stack(outs, axis=1)
    out = cur[:, :output_size, output_channel]
    return out + x[:, -1, output_channel][:, None]


def init_params(key, input_dim, hidden_dim, kernel_size, num_layers):
    """Deterministic synthetic parameters mirroring the nn.Module shapes (eval mode)."""
    eps = 1e-5
    params = []
    for li in range(num_layers):
        cur_in = input_dim if li == 0 else hidden_dim[li - 1]
        hid = hidden_dim[li]
        KH, KW = kernel_size[li]
        ctot = cur_in + hid
        key, kw_, kb_, kg1, kbe1, km1, kv1, kg2, kbe2, km2, kv2 = jax.random.split(key, 11)
        fan_in = ctot * KH * KW
        bound = 1.0 / (fan_in ** 0.5)
        # PyTorch Conv2d layout (4*hid, ctot, KH, KW); gate order [i|f|o|g];
        # input-channel order [x channels, h channels].
        w = jax.random.uniform(kw_, (4 * hid, ctot, KH, KW), jnp.float32, -bound, bound)
        b = jax.random.uniform(kb_, (4 * hid,), jnp.float32, -bound, bound)

        def bn_affine(kg, kb2, km, kv, n):
            gamma = jax.random.uniform(kg, (n,), jnp.float32, 0.5, 1.5)
            beta = jax.random.uniform(kb2, (n,), jnp.float32, -0.5, 0.5)
            mean = jax.random.uniform(km, (n,), jnp.float32, -0.5, 0.5)
            var = jax.random.uniform(kv, (n,), jnp.float32, 0.5, 1.5)
            scale = gamma / jnp.sqrt(var + eps)
            return scale, beta - mean * scale

        s1, sh1 = bn_affine(kg1, kbe1, km1, kv1, cur_in)   # bn1 -> h
        s2, sh2 = bn_affine(kg2, kbe2, km2, kv2, cur_in)   # bn2 -> c
        params.append(dict(w=w, b=b, bn1_scale=s1, bn1_shift=sh1,
                           bn2_scale=s2, bn2_shift=sh2))
    return params


if __name__ == "__main__":
    # Small config; input_dim == hidden_dim is required (see BN note above).
    input_dim = 4
    num_layers = 2
    hidden_dim = [4, 4]
    kernel_size = [(3, 3), (3, 3)]
    output_size = 6
    output_channel = 1
    B, T, H, W = 2, 8, 16, 16

    key = jax.random.PRNGKey(0)
    key, kx, kp = jax.random.split(key, 3)
    # batch_first=False -> input is (t, b, c, h, w)
    x = jax.random.normal(kx, (T, B, input_dim, H, W), jnp.float32)
    params = init_params(kp, input_dim, hidden_dim, kernel_size, num_layers)

    cfg = dict(hidden_dim=hidden_dim, kernel_size=kernel_size, num_layers=num_layers,
               output_size=output_size, output_channel=output_channel, batch_first=False)
    fwd = jax.jit(functools.partial(convlstm_forward, **cfg))
    ref = jax.jit(functools.partial(_reference_forward, **cfg))

    out = fwd(x, params)
    jax.block_until_ready(out)
    assert out.shape == (B, output_size, H, W), out.shape
    assert bool(jnp.all(jnp.isfinite(out)))

    expected = ref(x, params)
    max_err = float(jnp.max(jnp.abs(out - expected)))
    assert max_err < 5e-2, f"mismatch vs reference: max abs err {max_err}"

    print("KERNEL_OK")
</pallas_src>

<mosaic_0001>
module attributes {stable_mosaic.version = 11 : i64} {
  func.func @_fused_convlstm_kernel(%arg0: i32, %arg1: memref<1x8x16x256xf32, #tpu.memory_space<vmem>>, %arg2: memref<16x36xbf16, #tpu.memory_space<vmem>>, %arg3: memref<16x256xf32, #tpu.memory_space<vmem>>, %arg4: memref<8x256xf32, #tpu.memory_space<vmem>>, %arg5: memref<8x256xf32, #tpu.memory_space<vmem>>, %arg6: memref<36x256xf32, #tpu.memory_space<vmem>>, %arg7: memref<16x72xbf16, #tpu.memory_space<vmem>>, %arg8: memref<16x256xf32, #tpu.memory_space<vmem>>, %arg9: memref<8x256xf32, #tpu.memory_space<vmem>>, %arg10: memref<8x256xf32, #tpu.memory_space<vmem>>, %arg11: memref<72x256xf32, #tpu.memory_space<vmem>>, %arg12: memref<1x8x4x256xf32, #tpu.memory_space<vmem>>, %arg13: memref<8x256xf32, #tpu.memory_space<vmem>>, %arg14: memref<8x256xf32, #tpu.memory_space<vmem>>) attributes {dimension_semantics = [#tpu.dimension_semantics<parallel>], iteration_bounds = array<i64: 2>, scalar_prefetch = 0 : i64, scratch_operands = 2 : i64, tpu.core_type = #tpu.core_type<tc>, window_params = [{transform_indices = @transform_0, window_bounds = array<i64: 1, 8, 16, 256>}, {pipeline_mode = #tpu.pipeline_mode<synchronous>, transform_indices = @transform_1, window_bounds = array<i64: 16, 36>}, {pipeline_mode = #tpu.pipeline_mode<synchronous>, transform_indices = @transform_2, window_bounds = array<i64: 16, 256>}, {pipeline_mode = #tpu.pipeline_mode<synchronous>, transform_indices = @transform_3, window_bounds = array<i64: 8, 256>}, {pipeline_mode = #tpu.pipeline_mode<synchronous>, transform_indices = @transform_4, window_bounds = array<i64: 8, 256>}, {pipeline_mode = #tpu.pipeline_mode<synchronous>, transform_indices = @transform_5, window_bounds = array<i64: 36, 256>}, {pipeline_mode = #tpu.pipeline_mode<synchronous>, transform_indices = @transform_6, window_bounds = array<i64: 16, 72>}, {pipeline_mode = #tpu.pipeline_mode<synchronous>, transform_indices = @transform_7, window_bounds = array<i64: 16, 256>}, {pipeline_mode = #tpu.pipeline_mode<synchronous>, transform_indices = @transform_8, window_bounds = array<i64: 8, 256>}, {pipeline_mode = #tpu.pipeline_mode<synchronous>, transform_indices = @transform_9, window_bounds = array<i64: 8, 256>}, {pipeline_mode = #tpu.pipeline_mode<synchronous>, transform_indices = @transform_10, window_bounds = array<i64: 72, 256>}, {transform_indices = @transform_11, window_bounds = array<i64: 1, 8, 4, 256>}]} {
    %cst = arith.constant 0.000000e+00 : f32
    %0 = vector.broadcast %cst : f32 to vector<8x256xf32>
    %c0 = arith.constant 0 : index
    %c0_0 = arith.constant 0 : index
    %1 = vector.load %arg13[%c0, %c0_0] : memref<8x256xf32, #tpu.memory_space<vmem>>, vector<8x256xf32>
    tpu.vector_store %arg13[%c0, %c0_0], %0 {strides = array<i32>} : memref<8x256xf32, #tpu.memory_space<vmem>>, vector<8x256xf32>,
    %cst_1 = arith.constant 0.000000e+00 : f32
    %2 = vector.broadcast %cst_1 : f32 to vector<8x256xf32>
    %c0_2 = arith.constant 0 : index
    %c0_3 = arith.constant 0 : index
    %3 = vector.load %arg14[%c0_2, %c0_3] : memref<8x256xf32, #tpu.memory_space<vmem>>, vector<8x256xf32>
    tpu.vector_store %arg14[%c0_2, %c0_3], %2 {strides = array<i32>} : memref<8x256xf32, #tpu.memory_space<vmem>>, vector<8x256xf32>,
    %c0_i32 = arith.constant 0 : i32
    %c0_4 = arith.constant 0 : index
    %c0_5 = arith.constant 0 : index
    %4 = vector.load %arg13[%c0_4, %c0_5] : memref<8x256xf32, #tpu.memory_space<vmem>>, vector<8x256xf32>
    %c0_6 = arith.constant 0 : index
    %c0_7 = arith.constant 0 : index
    %5 = vector.load %arg4[%c0_6, %c0_7] : memref<8x256xf32, #tpu.memory_space<vmem>>, vector<8x256xf32>
    %6 = arith.mulf %4, %5 : vector<8x256xf32>
    %c0_8 = arith.constant 0 : index
    %c0_9 = arith.constant 0 : index
    %7 = vector.load %arg5[%c0_8, %c0_9] : memref<8x256xf32, #tpu.memory_space<vmem>>, vector<8x256xf32>
    %8 = arith.addf %6, %7 : vector<8x256xf32>
    %9 = vector.extract_strided_slice %8 {offsets = [0, 0], sizes = [4, 256], strides = [1, 1]} : vector<8x256xf32> to vector<4x256xf32>
    %10 = vector.extract_strided_slice %8 {offsets = [4, 0], sizes = [4, 256], strides = [1, 1]} : vector<8x256xf32> to vector<4x256xf32>
    %11 = vector.extract_strided_slice %9 {offsets = [0, 239], sizes = [4, 17], strides = [1, 1]} : vector<4x256xf32> to vector<4x17xf32>
    %12 = vector.extract_strided_slice %9 {offsets = [0, 0], sizes = [4, 239], strides = [1, 1]} : vector<4x256xf32> to vector<4x239xf32>
    %13 = tpu.concatenate %11, %12 in 1 : vector<4x17xf32>, vector<4x239xf32> -> vector<4x256xf32>
    %14 = vector.extract_strided_slice %9 {offsets = [0, 240], sizes = [4, 16], strides = [1, 1]} : vector<4x256xf32> to vector<4x16xf32>
    %15 = vector.extract_strided_slice %9 {offsets = [0, 0], sizes = [4, 240], strides = [1, 1]} : vector<4x256xf32> to vector<4x240xf32>
    %16 = tpu.concatenate %14, %15 in 1 : vector<4x16xf32>, vector<4x240xf32> -> vector<4x256xf32>
    %17 = vector.extract_strided_slice %9 {offsets = [0, 241], sizes = [4, 15], strides = [1, 1]} : vector<4x256xf32> to vector<4x15xf32>
    %18 = vector.extract_strided_slice %9 {offsets = [0, 0], sizes = [4, 241], strides = [1, 1]} : vector<4x256xf32> to vector<4x241xf32>
    %19 = tpu.concatenate %17, %18 in 1 : vector<4x15xf32>, vector<4x241xf32> -> vector<4x256xf32>
    %20 = vector.extract_strided_slice %9 {offsets = [0, 255], sizes = [4, 1], strides = [1, 1]} : vector<4x256xf32> to vector<4x1xf32>
    %21 = vector.extract_strided_slice %9 {offsets = [0, 0], sizes = [4, 255], strides = [1, 1]} : vector<4x256xf32> to vector<4x255xf32>
    %22 = tpu.concatenate %20, %21 in 1 : vector<4x1xf32>, vector<4x255xf32> -> vector<4x256xf32>
    %23 = vector.extract_strided_slice %9 {offsets = [0, 1], sizes = [4, 255], strides = [1, 1]} : vector<4x256xf32> to vector<4x255xf32>
    %24 = vector.extract_strided_slice %9 {offsets = [0, 0], sizes = [4, 1], strides = [1, 1]} : vector<4x256xf32> to vector<4x1xf32>
    %25 = tpu.concatenate %23, %24 in 1 : vector<4x255xf32>, vector<4x1xf32> -> vector<4x256xf32>
    %26 = vector.extract_strided_slice %9 {offsets = [0, 15], sizes = [4, 241], strides = [1, 1]} : vector<4x256xf32> to vector<4x241xf32>
    %27 = vector.extract_strided_slice %9 {offsets = [0, 0], sizes = [4, 15], strides = [1, 1]} : vector<4x256xf32> to vector<4x15xf32>
    %28 = tpu.concatenate %26, %27 in 1 : vector<4x241xf32>, vector<4x15xf32> -> vector<4x256xf32>
    %29 = vector.extract_strided_slice %9 {offsets = [0, 16], sizes = [4, 240], strides = [1, 1]} : vector<4x256xf32> to vector<4x240xf32>
    %30 = vector.extract_strided_slice %9 {offsets = [0, 0], sizes = [4, 16], strides = [1, 1]} : vector<4x256xf32> to vector<4x16xf32>
    %31 = tpu.concatenate %29, %30 in 1 : vector<4x240xf32>, vector<4x16xf32> -> vector<4x256xf32>
    %32 = vector.extract_strided_slice %9 {offsets = [0, 17], sizes = [4, 239], strides = [1, 1]} : vector<4x256xf32> to vector<4x239xf32>
    %33 = vector.extract_strided_slice %9 {offsets = [0, 0], sizes = [4, 17], strides = [1, 1]} : vector<4x256xf32> to vector<4x17xf32>
    %34 = tpu.concatenate %32, %33 in 1 : vector<4x239xf32>, vector<4x17xf32> -> vector<4x256xf32>
    %35 = tpu.concatenate %13, %16, %19, %22, %9, %25, %28, %31, %34 in 0 : vector<4x256xf32>, vector<4x256xf32>, vector<4x256xf32>, vector<4x256xf32>, vector<4x256xf32>, vector<4x256xf32>, vector<4x256xf32>, vector<4x256xf32>, vector<4x256xf32> -> vector<36x256xf32>
    %c0_10 = arith.constant 0 : index
    %c0_11 = arith.constant 0 : index
    %36 = vector.load %arg6[%c0_10, %c0_11] : memref<36x256xf32, #tpu.memory_space<vmem>>, vector<36x256xf32>
    %37 = arith.mulf %35, %36 : vector<36x256xf32>
    %c0_12 = arith.constant 0 : index
    %c0_13 = arith.constant 0 : index
    %38 = vector.load %arg2[%c0_12, %c0_13] : memref<16x36xbf16, #tpu.memory_space<vmem>>, vector<16x36xbf16>
    %39 = arith.truncf %37 : vector<36x256xf32> to vector<36x256xbf16>
    %cst_14 = arith.constant dense<0.000000e+00> : vector<16x256xf32>
    %40 = tpu.matmul %38, %39, %cst_14 {dimension_numbers = #tpu.dot_dimension_numbers<[1], [0], [0], [1], [0, 0, 1, 1], [], []>} : vector<16x36xbf16>, vector<36x256xbf16>, vector<16x256xf32> -> vector<16x256xf32>
    %c0_15 = arith.constant 0 : index
    %c0_16 = arith.constant 0 : index
    %41 = vector.load %arg3[%c0_15, %c0_16] : memref<16x256xf32, #tpu.memory_space<vmem>>, vector<16x256xf32>
    %42 = arith.addf %40, %41 : vector<16x256xf32>
    %c0_17 = arith.constant 0 : index
    %43 = arith.index_cast %c0_i32 : i32 to index
    %c0_18 = arith.constant 0 : index
    %c0_19 = arith.constant 0 : index
    %44 = vector.load %arg1[%c0_17, %43, %c0_18, %c0_19] : memref<1x8x16x256xf32, #tpu.memory_space<vmem>>, vector<1x1x16x256xf32>
    %45 = vector.shape_cast %44 : vector<1x1x16x256xf32> to vector<16x256xf32>
    %46 = arith.addf %42, %45 : vector<16x256xf32>
    %47 = vector.extract_strided_slice %46 {offsets = [0, 0], sizes = [12, 256], strides = [1, 1]} : vector<16x256xf32> to vector<12x256xf32>
    %48 = arith.negf %47 : vector<12x256xf32>
    %49 = math.exp %48 : vector<12x256xf32>
    %cst_20 = arith.constant 1.000000e+00 : f32
    %50 = vector.broadcast %cst_20 : f32 to vector<12x256xf32>
    %51 = arith.addf %50, %49 : vector<12x256xf32>
    %52 = arith.divf %50, %51 : vector<12x256xf32>
    %53 = vector.extract_strided_slice %52 {offsets = [0, 0], sizes = [4, 256], strides = [1, 1]} : vector<12x256xf32> to vector<4x256xf32>
    %54 = vector.extract_strided_slice %52 {offsets = [4, 0], sizes = [4, 256], strides = [1, 1]} : vector<12x256xf32> to vector<4x256xf32>
    %55 = vector.extract_strided_slice %52 {offsets = [8, 0], sizes = [4, 256], strides = [1, 1]} : vector<12x256xf32> to vector<4x256xf32>
    %56 = vector.extract_strided_slice %46 {offsets = [12, 0], sizes = [4, 256], strides = [1, 1]} : vector<16x256xf32> to vector<4x256xf32>
    %57 = math.tanh %56 : vector<4x256xf32>
    %58 = arith.mulf %54, %10 : vector<4x256xf32>
    %59 = arith.mulf %53, %57 : vector<4x256xf32>
    %60 = arith.addf %58, %59 : vector<4x256xf32>
    %61 = math.tanh %60 : vector<4x256xf32>
    %62 = arith.mulf %55, %61 : vector<4x256xf32>
    %c0_21 = arith.constant 0 : index
    %c0_22 = arith.constant 0 : index
    %63 = vector.load %arg13[%c0_21, %c0_22] : memref<8x256xf32, #tpu.memory_space<vmem>>, vector<4x256xf32>
    tpu.vector_store %arg13[%c0_21, %c0_22], %62 {strides = array<i32>} : memref<8x256xf32, #tpu.memory_space<vmem>>, vector<4x256xf32>,
    %c4 = arith.constant 4 : index
    %c0_23 = arith.constant 0 : index
    %64 = vector.load %arg13[%c4, %c0_23] : memref<8x256xf32, #tpu.memory_space<vmem>>, vector<4x256xf32>
    tpu.vector_store %arg13[%c4, %c0_23], %60 {strides = array<i32>} : memref<8x256xf32, #tpu.memory_space<vmem>>, vector<4x256xf32>,
    %c0_24 = arith.constant 0 : index
    %c0_25 = arith.constant 0 : index
    %65 = vector.load %arg14[%c0_24, %c0_25] : memref<8x256xf32, #tpu.memory_space<vmem>>, vector<8x256xf32>
    %c0_26 = arith.constant 0 : index
    %c0_27 = arith.constant 0 : index
    %66 = vector.load %arg9[%c0_26, %c0_27] : memref<8x256xf32, #tpu.memory_space<vmem>>, vector<8x256xf32>
    %67 = arith.mulf %65, %66 : vector<8x256xf32>
    %c0_28 = arith.constant 0 : index
    %c0_29 = arith.constant 0 : index
    %68 = vector.load %arg10[%c0_28, %c0_29] : memref<8x256xf32, #tpu.memory_space<vmem>>, vector<8x256xf32>
    %69 = arith.addf %67, %68 : vector<8x256xf32>
    %70 = vector.extract_strided_slice %69 {offsets = [0, 0], sizes = [4, 256], strides = [1, 1]} : vector<8x256xf32> to vector<4x256xf32>
    %71 = vector.extract_strided_slice %69 {offsets = [4, 0], sizes = [4, 256], strides = [1, 1]} : vector<8x256xf32> to vector<4x256xf32>
    %72 = tpu.concatenate %62, %70 in 0 : vector<4x256xf32>, vector<4x256xf32> -> vector<8x256xf32>
    %73 = vector.extract_strided_slice %72 {offsets = [0, 239], sizes = [8, 17], strides = [1, 1]} : vector<8x256xf32> to vector<8x17xf32>
    %74 = vector.extract_strided_slice %72 {offsets = [0, 0], sizes = [8, 239], strides = [1, 1]} : vector<8x256xf32> to vector<8x239xf32>
    %75 = tpu.concatenate %73, %74 in 1 : vector<8x17xf32>, vector<8x239xf32> -> vector<8x256xf32>
    %76 = vector.extract_strided_slice %72 {offsets = [0, 240], sizes = [8, 16], strides = [1, 1]} : vector<8x256xf32> to vector<8x16xf32>
    %77 = vector.extract_strided_slice %72 {offsets = [0, 0], sizes = [8, 240], strides = [1, 1]} : vector<8x256xf32> to vector<8x240xf32>
    %78 = tpu.concatenate %76, %77 in 1 : vector<8x16xf32>, vector<8x240xf32> -> vector<8x256xf32>
    %79 = vector.extract_strided_slice %72 {offsets = [0, 241], sizes = [8, 15], strides = [1, 1]} : vector<8x256xf32> to vector<8x15xf32>
    %80 = vector.extract_strided_slice %72 {offsets = [0, 0], sizes = [8, 241], strides = [1, 1]} : vector<8x256xf32> to vector<8x241xf32>
    %81 = tpu.concatenate %79, %80 in 1 : vector<8x15xf32>, vector<8x241xf32> -> vector<8x256xf32>
    %82 = vector.extract_strided_slice %72 {offsets = [0, 255], sizes = [8, 1], strides = [1, 1]} : vector<8x256xf32> to vector<8x1xf32>
    %83 = vector.extract_strided_slice %72 {offsets = [0, 0], sizes = [8, 255], strides = [1, 1]} : vector<8x256xf32> to vector<8x255xf32>
    %84 = tpu.concatenate %82, %83 in 1 : vector<8x1xf32>, vector<8x255xf32> -> vector<8x256xf32>
    %85 = vector.extract_strided_slice %72 {offsets = [0, 1], sizes = [8, 255], strides = [1, 1]} : vector<8x256xf32> to vector<8x255xf32>
    %86 = vector.extract_strided_slice %72 {offsets = [0, 0], sizes = [8, 1], strides = [1, 1]} : vector<8x256xf32> to vector<8x1xf32>
    %87 = tpu.concatenate %85, %86 in 1 : vector<8x255xf32>, vector<8x1xf32> -> vector<8x256xf32>
    %88 = vector.extract_strided_slice %72 {offsets = [0, 15], sizes = [8, 241], strides = [1, 1]} : vector<8x256xf32> to vector<8x241xf32>
    %89 = vector.extract_strided_slice %72 {offsets = [0, 0], sizes = [8, 15], strides = [1, 1]} : vector<8x256xf32> to vector<8x15xf32>
    %90 = tpu.concatenate %88, %89 in 1 : vector<8x241xf32>, vector<8x15xf32> -> vector<8x256xf32>
    %91 = vector.extract_strided_slice %72 {offsets = [0, 16], sizes = [8, 240], strides = [1, 1]} : vector<8x256xf32> to vector<8x240xf32>
    %92 = vector.extract_strided_slice %72 {offsets = [0, 0], sizes = [8, 16], strides = [1, 1]} : vector<8x256xf32> to vector<8x16xf32>
    %93 = tpu.concatenate %91, %92 in 1 : vector<8x240xf32>, vector<8x16xf32> -> vector<8x256xf32>
    %94 = vector.extract_strided_slice %72 {offsets = [0, 17], sizes = [8, 239], strides = [1, 1]} : vector<8x256xf32> to vector<8x239xf32>
    %95 = vector.extract_strided_slice %72 {offsets = [0, 0], sizes = [8, 17], strides = [1, 1]} : vector<8x256xf32> to vector<8x17xf32>
    %96 = tpu.concatenate %94, %95 in 1 : vector<8x239xf32>, vector<8x17xf32> -> vector<8x256xf32>
    %97 = tpu.concatenate %75, %78, %81, %84, %72, %87, %90, %93, %96 in 0 : vector<8x256xf32>, vector<8x256xf32>, vector<8x256xf32>, vector<8x256xf32>, vector<8x256xf32>, vector<8x256xf32>, vector<8x256xf32>, vector<8x256xf32>, vector<8x256xf32> -> vector<72x256xf32>
    %c0_30 = arith.constant 0 : index
    %c0_31 = arith.constant 0 : index
    %98 = vector.load %arg11[%c0_30, %c0_31] : memref<72x256xf32, #tpu.memory_space<vmem>>, vector<72x256xf32>
    %99 = arith.mulf %97, %98 : vector<72x256xf32>
    %c0_32 = arith.constant 0 : index
    %c0_33 = arith.constant 0 : index
    %100 = vector.load %arg7[%c0_32, %c0_33] : memref<16x72xbf16, #tpu.memory_space<vmem>>, vector<16x72xbf16>
    %101 = arith.truncf %99 : vector<72x256xf32> to vector<72x256xbf16>
    %cst_34 = arith.constant dense<0.000000e+00> : vector<16x256xf32>
    %102 = tpu.matmul %100, %101, %cst_34 {dimension_numbers = #tpu.dot_dimension_numbers<[1], [0], [0], [1], [0, 0, 1, 1], [], []>} : vector<16x72xbf16>, vector<72x256xbf16>, vector<16x256xf32> -> vector<16x256xf32>
    %c0_35 = arith.constant 0 : index
    %c0_36 = arith.constant 0 : index
    %103 = vector.load %arg8[%c0_35, %c0_36] : memref<16x256xf32, #tpu.memory_space<vmem>>, vector<16x256xf32>
    %104 = arith.addf %102, %103 : vector<16x256xf32>
    %105 = vector.extract_strided_slice %104 {offsets = [0, 0], sizes = [12, 256], strides = [1, 1]} : vector<16x256xf32> to vector<12x256xf32>
    %106 = arith.negf %105 : vector<12x256xf32>
    %107 = math.exp %106 : vector<12x256xf32>
    %cst_37 = arith.constant 1.000000e+00 : f32
    %108 = vector.broadcast %cst_37 : f32 to vector<12x256xf32>
    %109 = arith.addf %108, %107 : vector<12x256xf32>
    %110 = arith.divf %108, %109 : vector<12x256xf32>
    %111 = vector.extract_strided_slice %110 {offsets = [0, 0], sizes = [4, 256], strides = [1, 1]} : vector<12x256xf32> to vector<4x256xf32>
    %112 = vector.extract_strided_slice %110 {offsets = [4, 0], sizes = [4, 256], strides = [1, 1]} : vector<12x256xf32> to vector<4x256xf32>
    %113 = vector.extract_strided_slice %110 {offsets = [8, 0], sizes = [4, 256], strides = [1, 1]} : vector<12x256xf32> to vector<4x256xf32>
    %114 = vector.extract_strided_slice %104 {offsets = [12, 0], sizes = [4, 256], strides = [1, 1]} : vector<16x256xf32> to vector<4x256xf32>
    %115 = math.tanh %114 : vector<4x256xf32>
    %116 = arith.mulf %112, %71 : vector<4x256xf32>
    %117 = arith.mulf %111, %115 : vector<4x256xf32>
    %118 = arith.addf %116, %117 : vector<4x256xf32>
    %119 = math.tanh %118 : vector<4x256xf32>
    %120 = arith.mulf %113, %119 : vector<4x256xf32>
    %c0_38 = arith.constant 0 : index
    %c0_39 = arith.constant 0 : index
    %121 = vector.load %arg14[%c0_38, %c0_39] : memref<8x256xf32, #tpu.memory_space<vmem>>, vector<4x256xf32>
    tpu.vector_store %arg14[%c0_38, %c0_39], %120 {strides = array<i32>} : memref<8x256xf32, #tpu.memory_space<vmem>>, vector<4x256xf32>,
    %c4_40 = arith.constant 4 : index
    %c0_41 = arith.constant 0 : index
    %122 = vector.load %arg14[%c4_40, %c0_41] : memref<8x256xf32, #tpu.memory_space<vmem>>, vector<4x256xf32>
    tpu.vector_store %arg14[%c4_40, %c0_41], %118 {strides = array<i32>} : memref<8x256xf32, #tpu.memory_space<vmem>>, vector<4x256xf32>,
    %c0_42 = arith.constant 0 : index
    %123 = arith.index_cast %c0_i32 : i32 to index
    %c0_43 = arith.constant 0 : index
    %c0_44 = arith.constant 0 : index
    %124 = vector.load %arg12[%c0_42, %123, %c0_43, %c0_44] : memref<1x8x4x256xf32, #tpu.memory_space<vmem>>, vector<1x1x4x256xf32>
    %125 = vector.shape_cast %124 : vector<1x1x4x256xf32> to vector<4x256xf32>
    %126 = vector.shape_cast %120 : vector<4x256xf32> to vector<1x1x4x256xf32>
    tpu.vector_store %arg12[%c0_42, %123, %c0_43, %c0_44], %126 {strides = array<i32>} : memref<1x8x4x256xf32, #tpu.memory_space<vmem>>, vector<1x1x4x256xf32>,
    %c1_i32 = arith.constant 1 : i32
    %c0_45 = arith.constant 0 : index
    %c0_46 = arith.constant 0 : index
    %127 = vector.load %arg13[%c0_45, %c0_46] : memref<8x256xf32, #tpu.memory_space<vmem>>, vector<8x256xf32>
    %c0_47 = arith.constant 0 : index
    %c0_48 = arith.constant 0 : index
    %128 = vector.load %arg4[%c0_47, %c0_48] : memref<8x256xf32, #tpu.memory_space<vmem>>, vector<8x256xf32>
    %129 = arith.mulf %127, %128 : vector<8x256xf32>
    %c0_49 = arith.constant 0 : index
    %c0_50 = arith.constant 0 : index
    %130 = vector.load %arg5[%c0_49, %c0_50] : memref<8x256xf32, #tpu.memory_space<vmem>>, vector<8x256xf32>
    %131 = arith.addf %129, %130 : vector<8x256xf32>
    %132 = vector.extract_strided_slice %131 {offsets = [0, 0], sizes = [4, 256], strides = [1, 1]} : vector<8x256xf32> to vector<4x256xf32>
    %133 = vector.extract_strided_slice %131 {offsets = [4, 0], sizes = [4, 256], strides = [1, 1]} : vector<8x256xf32> to vector<4x256xf32>
    %134 = vector.extract_strided_slice %132 {offsets = [0, 239], sizes = [4, 17], strides = [1, 1]} : vector<4x256xf32> to vector<4x17xf32>
    %135 = vector.extract_strided_slice %132 {offsets = [0, 0], sizes = [4, 239], strides = [1, 1]} : vector<4x256xf32> to vector<4x239xf32>
    %136 = tpu.concatenate %134, %135 in 1 : vector<4x17xf32>, vector<4x239xf32> -> vector<4x256xf32>
    %137 = vector.extract_strided_slice %132 {offsets = [0, 240], sizes = [4, 16], strides = [1, 1]} : vector<4x256xf32> to vector<4x16xf32>
    %138 = vector.extract_strided_slice %132 {offsets = [0, 0], sizes = [4, 240], strides = [1, 1]} : vector<4x256xf32> to vector<4x240xf32>
    %139 = tpu.concatenate %137, %138 in 1 : vector<4x16xf32>, vector<4x240xf32> -> vector<4x256xf32>
    %140 = vector.extract_strided_slice %132 {offsets = [0, 241], sizes = [4, 15], strides = [1, 1]} : vector<4x256xf32> to vector<4x15xf32>
    %141 = vector.extract_strided_slice %132 {offsets = [0, 0], sizes = [4, 241], strides = [1, 1]} : vector<4x256xf32> to vector<4x241xf32>
    %142 = tpu.concatenate %140, %141 in 1 : vector<4x15xf32>, vector<4x241xf32> -> vector<4x256xf32>
    %143 = vector.extract_strided_slice %132 {offsets = [0, 255], sizes = [4, 1], strides = [1, 1]} : vector<4x256xf32> to vector<4x1xf32>
    %144 = vector.extract_strided_slice %132 {offsets = [0, 0], sizes = [4, 255], strides = [1, 1]} : vector<4x256xf32> to vector<4x255xf32>
    %145 = tpu.concatenate %143, %144 in 1 : vector<4x1xf32>, vector<4x255xf32> -> vector<4x256xf32>
    %146 = vector.extract_strided_slice %132 {offsets = [0, 1], sizes = [4, 255], strides = [1, 1]} : vector<4x256xf32> to vector<4x255xf32>
    %147 = vector.extract_strided_slice %132 {offsets = [0, 0], sizes = [4, 1], strides = [1, 1]} : vector<4x256xf32> to vector<4x1xf32>
    %148 = tpu.concatenate %146, %147 in 1 : vector<4x255xf32>, vector<4x1xf32> -> vector<4x256xf32>
    %149 = vector.extract_strided_slice %132 {offsets = [0, 15], sizes = [4, 241], strides = [1, 1]} : vector<4x256xf32> to vector<4x241xf32>
    %150 = vector.extract_strided_slice %132 {offsets = [0, 0], sizes = [4, 15], strides = [1, 1]} : vector<4x256xf32> to vector<4x15xf32>
    %151 = tpu.concatenate %149, %150 in 1 : vector<4x241xf32>, vector<4x15xf32> -> vector<4x256xf32>
    %152 = vector.extract_strided_slice %132 {offsets = [0, 16], sizes = [4, 240], strides = [1, 1]} : vector<4x256xf32> to vector<4x240xf32>
    %153 = vector.extract_strided_slice %132 {offsets = [0, 0], sizes = [4, 16], strides = [1, 1]} : vector<4x256xf32> to vector<4x16xf32>
    %154 = tpu.concatenate %152, %153 in 1 : vector<4x240xf32>, vector<4x16xf32> -> vector<4x256xf32>
    %155 = vector.extract_strided_slice %132 {offsets = [0, 17], sizes = [4, 239], strides = [1, 1]} : vector<4x256xf32> to vector<4x239xf32>
    %156 = vector.extract_strided_slice %132 {offsets = [0, 0], sizes = [4, 17], strides = [1, 1]} : vector<4x256xf32> to vector<4x17xf32>
    %157 = tpu.concatenate %155, %156 in 1 : vector<4x239xf32>, vector<4x17xf32> -> vector<4x256xf32>
    %158 = tpu.concatenate %136, %139, %142, %145, %132, %148, %151, %154, %157 in 0 : vector<4x256xf32>, vector<4x256xf32>, vector<4x256xf32>, vector<4x256xf32>, vector<4x256xf32>, vector<4x256xf32>, vector<4x256xf32>, vector<4x256xf32>, vector<4x256xf32> -> vector<36x256xf32>
    %c0_51 = arith.constant 0 : index
    %c0_52 = arith.constant 0 : index
    %159 = vector.load %arg6[%c0_51, %c0_52] : memref<36x256xf32, #tpu.memory_space<vmem>>, vector<36x256xf32>
    %160 = arith.mulf %158, %159 : vector<36x256xf32>
    %c0_53 = arith.constant 0 : index
    %c0_54 = arith.constant 0 : index
    %161 = vector.load %arg2[%c0_53, %c0_54] : memref<16x36xbf16, #tpu.memory_space<vmem>>, vector<16x36xbf16>
    %162 = arith.truncf %160 : vector<36x256xf32> to vector<36x256xbf16>
    %cst_55 = arith.constant dense<0.000000e+00> : vector<16x256xf32>
    %163 = tpu.matmul %161, %162, %cst_55 {dimension_numbers = #tpu.dot_dimension_numbers<[1], [0], [0], [1], [0, 0, 1, 1], [], []>} : vector<16x36xbf16>, vector<36x256xbf16>, vector<16x256xf32> -> vector<16x256xf32>
    %c0_56 = arith.constant 0 : index
    %c0_57 = arith.constant 0 : index
    %164 = vector.load %arg3[%c0_56, %c0_57] : memref<16x256xf32, #tpu.memory_space<vmem>>, vector<16x256xf32>
    %165 = arith.addf %163, %164 : vector<16x256xf32>
    %c0_58 = arith.constant 0 : index
    %166 = arith.index_cast %c1_i32 : i32 to index
    %c0_59 = arith.constant 0 : index
    %c0_60 = arith.constant 0 : index
    %167 = vector.load %arg1[%c0_58, %166, %c0_59, %c0_60] : memref<1x8x16x256xf32, #tpu.memory_space<vmem>>, vector<1x1x16x256xf32>
    %168 = vector.shape_cast %167 : vector<1x1x16x256xf32> to vector<16x256xf32>
    %169 = arith.addf %165, %168 : vector<16x256xf32>
    %170 = vector.extract_strided_slice %169 {offsets = [0, 0], sizes = [12, 256], strides = [1, 1]} : vector<16x256xf32> to vector<12x256xf32>
    %171 = arith.negf %170 : vector<12x256xf32>
    %172 = math.exp %171 : vector<12x256xf32>
    %cst_61 = arith.constant 1.000000e+00 : f32
    %173 = vector.broadcast %cst_61 : f32 to vector<12x256xf32>
    %174 = arith.addf %173, %172 : vector<12x256xf32>
    %175 = arith.divf %173, %174 : vector<12x256xf32>
    %176 = vector.extract_strided_slice %175 {offsets = [0, 0], sizes = [4, 256], strides = [1, 1]} : vector<12x256xf32> to vector<4x256xf32>
    %177 = vector.extract_strided_slice %175 {offsets = [4, 0], sizes = [4, 256], strides = [1, 1]} : vector<12x256xf32> to vector<4x256xf32>
    %178 = vector.extract_strided_slice %175 {offsets = [8, 0], sizes = [4, 256], strides = [1, 1]} : vector<12x256xf32> to vector<4x256xf32>
    %179 = vector.extract_strided_slice %169 {offsets = [12, 0], sizes = [4, 256], strides = [1, 1]} : vector<16x256xf32> to vector<4x256xf32>
    %180 = math.tanh %179 : vector<4x256xf32>
    %181 = arith.mulf %177, %133 : vector<4x256xf32>
    %182 = arith.mulf %176, %180 : vector<4x256xf32>
    %183 = arith.addf %181, %182 : vector<4x256xf32>
    %184 = math.tanh %183 : vector<4x256xf32>
    %185 = arith.mulf %178, %184 : vector<4x256xf32>
    %c0_62 = arith.constant 0 : index
    %c0_63 = arith.constant 0 : index
    %186 = vector.load %arg13[%c0_62, %c0_63] : memref<8x256xf32, #tpu.memory_space<vmem>>, vector<4x256xf32>
    tpu.vector_store %arg13[%c0_62, %c0_63], %185 {strides = array<i32>} : memref<8x256xf32, #tpu.memory_space<vmem>>, vector<4x256xf32>,
    %c4_64 = arith.constant 4 : index
    %c0_65 = arith.constant 0 : index
    %187 = vector.load %arg13[%c4_64, %c0_65] : memref<8x256xf32, #tpu.memory_space<vmem>>, vector<4x256xf32>
    tpu.vector_store %arg13[%c4_64, %c0_65], %183 {strides = array<i32>} : memref<8x256xf32, #tpu.memory_space<vmem>>, vector<4x256xf32>,
    %c0_66 = arith.constant 0 : index
    %c0_67 = arith.constant 0 : index
    %188 = vector.load %arg14[%c0_66, %c0_67] : memref<8x256xf32, #tpu.memory_space<vmem>>, vector<8x256xf32>
    %c0_68 = arith.constant 0 : index
    %c0_69 = arith.constant 0 : index
    %189 = vector.load %arg9[%c0_68, %c0_69] : memref<8x256xf32, #tpu.memory_space<vmem>>, vector<8x256xf32>
    %190 = arith.mulf %188, %189 : vector<8x256xf32>
    %c0_70 = arith.constant 0 : index
    %c0_71 = arith.constant 0 : index
    %191 = vector.load %arg10[%c0_70, %c0_71] : memref<8x256xf32, #tpu.memory_space<vmem>>, vector<8x256xf32>
    %192 = arith.addf %190, %191 : vector<8x256xf32>
    %193 = vector.extract_strided_slice %192 {offsets = [0, 0], sizes = [4, 256], strides = [1, 1]} : vector<8x256xf32> to vector<4x256xf32>
    %194 = vector.extract_strided_slice %192 {offsets = [4, 0], sizes = [4, 256], strides = [1, 1]} : vector<8x256xf32> to vector<4x256xf32>
    %195 = tpu.concatenate %185, %193 in 0 : vector<4x256xf32>, vector<4x256xf32> -> vector<8x256xf32>
    %196 = vector.extract_strided_slice %195 {offsets = [0, 239], sizes = [8, 17], strides = [1, 1]} : vector<8x256xf32> to vector<8x17xf32>
    %197 = vector.extract_strided_slice %195 {offsets = [0, 0], sizes = [8, 239], strides = [1, 1]} : vector<8x256xf32> to vector<8x239xf32>
    %198 = tpu.concatenate %196, %197 in 1 : vector<8x17xf32>, vector<8x239xf32> -> vector<8x256xf32>
    %199 = vector.extract_strided_slice %195 {offsets = [0, 240], sizes = [8, 16], strides = [1, 1]} : vector<8x256xf32> to vector<8x16xf32>
    %200 = vector.extract_strided_slice %195 {offsets = [0, 0], sizes = [8, 240], strides = [1, 1]} : vector<8x256xf32> to vector<8x240xf32>
    %201 = tpu.concatenate %199, %200 in 1 : vector<8x16xf32>, vector<8x240xf32> -> vector<8x256xf32>
    %202 = vector.extract_strided_slice %195 {offsets = [0, 241], sizes = [8, 15], strides = [1, 1]} : vector<8x256xf32> to vector<8x15xf32>
    %203 = vector.extract_strided_slice %195 {offsets = [0, 0], sizes = [8, 241], strides = [1, 1]} : vector<8x256xf32> to vector<8x241xf32>
    %204 = tpu.concatenate %202, %203 in 1 : vector<8x15xf32>, vector<8x241xf32> -> vector<8x256xf32>
    %205 = vector.extract_strided_slice %195 {offsets = [0, 255], sizes = [8, 1], strides = [1, 1]} : vector<8x256xf32> to vector<8x1xf32>
    %206 = vector.extract_strided_slice %195 {offsets = [0, 0], sizes = [8, 255], strides = [1, 1]} : vector<8x256xf32> to vector<8x255xf32>
    %207 = tpu.concatenate %205, %206 in 1 : vector<8x1xf32>, vector<8x255xf32> -> vector<8x256xf32>
    %208 = vector.extract_strided_slice %195 {offsets = [0, 1], sizes = [8, 255], strides = [1, 1]} : vector<8x256xf32> to vector<8x255xf32>
    %209 = vector.extract_strided_slice %195 {offsets = [0, 0], sizes = [8, 1], strides = [1, 1]} : vector<8x256xf32> to vector<8x1xf32>
    %210 = tpu.concatenate %208, %209 in 1 : vector<8x255xf32>, vector<8x1xf32> -> vector<8x256xf32>
    %211 = vector.extract_strided_slice %195 {offsets = [0, 15], sizes = [8, 241], strides = [1, 1]} : vector<8x256xf32> to vector<8x241xf32>
    %212 = vector.extract_strided_slice %195 {offsets = [0, 0], sizes = [8, 15], strides = [1, 1]} : vector<8x256xf32> to vector<8x15xf32>
    %213 = tpu.concatenate %211, %212 in 1 : vector<8x241xf32>, vector<8x15xf32> -> vector<8x256xf32>
    %214 = vector.extract_strided_slice %195 {offsets = [0, 16], sizes = [8, 240], strides = [1, 1]} : vector<8x256xf32> to vector<8x240xf32>
    %215 = vector.extract_strided_slice %195 {offsets = [0, 0], sizes = [8, 16], strides = [1, 1]} : vector<8x256xf32> to vector<8x16xf32>
    %216 = tpu.concatenate %214, %215 in 1 : vector<8x240xf32>, vector<8x16xf32> -> vector<8x256xf32>
    %217 = vector.extract_strided_slice %195 {offsets = [0, 17], sizes = [8, 239], strides = [1, 1]} : vector<8x256xf32> to vector<8x239xf32>
    %218 = vector.extract_strided_slice %195 {offsets = [0, 0], sizes = [8, 17], strides = [1, 1]} : vector<8x256xf32> to vector<8x17xf32>
    %219 = tpu.concatenate %217, %218 in 1 : vector<8x239xf32>, vector<8x17xf32> -> vector<8x256xf32>
    %220 = tpu.concatenate %198, %201, %204, %207, %195, %210, %213, %216, %219 in 0 : vector<8x256xf32>, vector<8x256xf32>, vector<8x256xf32>, vector<8x256xf32>, vector<8x256xf32>, vector<8x256xf32>, vector<8x256xf32>, vector<8x256xf32>, vector<8x256xf32> -> vector<72x256xf32>
    %c0_72 = arith.constant 0 : index
    %c0_73 = arith.constant 0 : index
    %221 = vector.load %arg11[%c0_72, %c0_73] : memref<72x256xf32, #tpu.memory_space<vmem>>, vector<72x256xf32>
    %222 = arith.mulf %220, %221 : vector<72x256xf32>
    %c0_74 = arith.constant 0 : index
    %c0_75 = arith.constant 0 : index
    %223 = vector.load %arg7[%c0_74, %c0_75] : memref<16x72xbf16, #tpu.memory_space<vmem>>, vector<16x72xbf16>
    %224 = arith.truncf %222 : vector<72x256xf32> to vector<72x256xbf16>
    %cst_76 = arith.constant dense<0.000000e+00> : vector<16x256xf32>
    %225 = tpu.matmul %223, %224, %cst_76 {dimension_numbers = #tpu.dot_dimension_numbers<[1], [0], [0], [1], [0, 0, 1, 1], [], []>} : vector<16x72xbf16>, vector<72x256xbf16>, vector<16x256xf32> -> vector<16x256xf32>
    %c0_77 = arith.constant 0 : index
    %c0_78 = arith.constant 0 : index
    %226 = vector.load %arg8[%c0_77, %c0_78] : memref<16x256xf32, #tpu.memory_space<vmem>>, vector<16x256xf32>
    %227 = arith.addf %225, %226 : vector<16x256xf32>
    %228 = vector.extract_strided_slice %227 {offsets = [0, 0], sizes = [12, 256], strides = [1, 1]} : vector<16x256xf32> to vector<12x256xf32>
    %229 = arith.negf %228 : vector<12x256xf32>
    %230 = math.exp %229 : vector<12x256xf32>
    %cst_79 = arith.constant 1.000000e+00 : f32
    %231 = vector.broadcast %cst_79 : f32 to vector<12x256xf32>
    %232 = arith.addf %231, %230 : vector<12x256xf32>
    %233 = arith.divf %231, %232 : vector<12x256xf32>
    %234 = vector.extract_strided_slice %233 {offsets = [0, 0], sizes = [4, 256], strides = [1, 1]} : vector<12x256xf32> to vector<4x256xf32>
    %235 = vector.extract_strided_slice %233 {offsets = [4, 0], sizes = [4, 256], strides = [1, 1]} : vector<12x256xf32> to vector<4x256xf32>
    %236 = vector.extract_strided_slice %233 {offsets = [8, 0], sizes = [4, 256], strides = [1, 1]} : vector<12x256xf32> to vector<4x256xf32>
    %237 = vector.extract_strided_slice %227 {offsets = [12, 0], sizes = [4, 256], strides = [1, 1]} : vector<16x256xf32> to vector<4x256xf32>
    %238 = math.tanh %237 : vector<4x256xf32>
    %239 = arith.mulf %235, %194 : vector<4x256xf32>
    %240 = arith.mulf %234, %238 : vector<4x256xf32>
    %241 = arith.addf %239, %240 : vector<4x256xf32>
    %242 = math.tanh %241 : vector<4x256xf32>
    %243 = arith.mulf %236, %242 : vector<4x256xf32>
    %c0_80 = arith.constant 0 : index
    %c0_81 = arith.constant 0 : index
    %244 = vector.load %arg14[%c0_80, %c0_81] : memref<8x256xf32, #tpu.memory_space<vmem>>, vector<4x256xf32>
    tpu.vector_store %arg14[%c0_80, %c0_81], %243 {strides = array<i32>} : memref<8x256xf32, #tpu.memory_space<vmem>>, vector<4x256xf32>,
    %c4_82 = arith.constant 4 : index
    %c0_83 = arith.constant 0 : index
    %245 = vector.load %arg14[%c4_82, %c0_83] : memref<8x256xf32, #tpu.memory_space<vmem>>, vector<4x256xf32>
    tpu.vector_store %arg14[%c4_82, %c0_83], %241 {strides = array<i32>} : memref<8x256xf32, #tpu.memory_space<vmem>>, vector<4x256xf32>,
    %c0_84 = arith.constant 0 : index
    %246 = arith.index_cast %c1_i32 : i32 to index
    %c0_85 = arith.constant 0 : index
    %c0_86 = arith.constant 0 : index
    %247 = vector.load %arg12[%c0_84, %246, %c0_85, %c0_86] : memref<1x8x4x256xf32, #tpu.memory_space<vmem>>, vector<1x1x4x256xf32>
    %248 = vector.shape_cast %247 : vector<1x1x4x256xf32> to vector<4x256xf32>
    %249 = vector.shape_cast %243 : vector<4x256xf32> to vector<1x1x4x256xf32>
    tpu.vector_store %arg12[%c0_84, %246, %c0_85, %c0_86], %249 {strides = array<i32>} : memref<1x8x4x256xf32, #tpu.memory_space<vmem>>, vector<1x1x4x256xf32>,
    %c2_i32 = arith.constant 2 : i32
    %c0_87 = arith.constant 0 : index
    %c0_88 = arith.constant 0 : index
    %250 = vector.load %arg13[%c0_87, %c0_88] : memref<8x256xf32, #tpu.memory_space<vmem>>, vector<8x256xf32>
    %c0_89 = arith.constant 0 : index
    %c0_90 = arith.constant 0 : index
    %251 = vector.load %arg4[%c0_89, %c0_90] : memref<8x256xf32, #tpu.memory_space<vmem>>, vector<8x256xf32>
    %252 = arith.mulf %250, %251 : vector<8x256xf32>
    %c0_91 = arith.constant 0 : index
    %c0_92 = arith.constant 0 : index
    %253 = vector.load %arg5[%c0_91, %c0_92] : memref<8x256xf32, #tpu.memory_space<vmem>>, vector<8x256xf32>
    %254 = arith.addf %252, %253 : vector<8x256xf32>
    %255 = vector.extract_strided_slice %254 {offsets = [0, 0], sizes = [4, 256], strides = [1, 1]} : vector<8x256xf32> to vector<4x256xf32>
    %256 = vector.extract_strided_slice %254 {offsets = [4, 0], sizes = [4, 256], strides = [1, 1]} : vector<8x256xf32> to vector<4x256xf32>
    %257 = vector.extract_strided_slice %255 {offsets = [0, 239], sizes = [4, 17], strides = [1, 1]} : vector<4x256xf32> to vector<4x17xf32>
    %258 = vector.extract_strided_slice %255 {offsets = [0, 0], sizes = [4, 239], strides = [1, 1]} : vector<4x256xf32> to vector<4x239xf32>
    %259 = tpu.concatenate %257, %258 in 1 : vector<4x17xf32>, vector<4x239xf32> -> vector<4x256xf32>
    %260 = vector.extract_strided_slice %255 {offsets = [0, 240], sizes = [4, 16], strides = [1, 1]} : vector<4x256xf32> to vector<4x16xf32>
    %261 = vector.extract_strided_slice %255 {offsets = [0, 0], sizes = [4, 240], strides = [1, 1]} : vector<4x256xf32> to vector<4x240xf32>
    %262 = tpu.concatenate %260, %261 in 1 : vector<4x16xf32>, vector<4x240xf32> -> vector<4x256xf32>
    %263 = vector.extract_strided_slice %255 {offsets = [0, 241], sizes = [4, 15], strides = [1, 1]} : vector<4x256xf32> to vector<4x15xf32>
    %264 = vector.extract_strided_slice %255 {offsets = [0, 0], sizes = [4, 241], strides = [1, 1]} : vector<4x256xf32> to vector<4x241xf32>
    %265 = tpu.concatenate %263, %264 in 1 : vector<4x15xf32>, vector<4x241xf32> -> vector<4x256xf32>
    %266 = vector.extract_strided_slice %255 {offsets = [0, 255], sizes = [4, 1], strides = [1, 1]} : vector<4x256xf32> to vector<4x1xf32>
    %267 = vector.extract_strided_slice %255 {offsets = [0, 0], sizes = [4, 255], strides = [1, 1]} : vector<4x256xf32> to vector<4x255xf32>
    %268 = tpu.concatenate %266, %267 in 1 : vector<4x1xf32>, vector<4x255xf32> -> vector<4x256xf32>
    %269 = vector.extract_strided_slice %255 {offsets = [0, 1], sizes = [4, 255], strides = [1, 1]} : vector<4x256xf32> to vector<4x255xf32>
    %270 = vector.extract_strided_slice %255 {offsets = [0, 0], sizes = [4, 1], strides = [1, 1]} : vector<4x256xf32> to vector<4x1xf32>
    %271 = tpu.concatenate %269, %270 in 1 : vector<4x255xf32>, vector<4x1xf32> -> vector<4x256xf32>
    %272 = vector.extract_strided_slice %255 {offsets = [0, 15], sizes = [4, 241], strides = [1, 1]} : vector<4x256xf32> to vector<4x241xf32>
    %273 = vector.extract_strided_slice %255 {offsets = [0, 0], sizes = [4, 15], strides = [1, 1]} : vector<4x256xf32> to vector<4x15xf32>
    %274 = tpu.concatenate %272, %273 in 1 : vector<4x241xf32>, vector<4x15xf32> -> vector<4x256xf32>
    %275 = vector.extract_strided_slice %255 {offsets = [0, 16], sizes = [4, 240], strides = [1, 1]} : vector<4x256xf32> to vector<4x240xf32>
    %276 = vector.extract_strided_slice %255 {offsets = [0, 0], sizes = [4, 16], strides = [1, 1]} : vector<4x256xf32> to vector<4x16xf32>
    %277 = tpu.concatenate %275, %276 in 1 : vector<4x240xf32>, vector<4x16xf32> -> vector<4x256xf32>
    %278 = vector.extract_strided_slice %255 {offsets = [0, 17], sizes = [4, 239], strides = [1, 1]} : vector<4x256xf32> to vector<4x239xf32>
    %279 = vector.extract_strided_slice %255 {offsets = [0, 0], sizes = [4, 17], strides = [1, 1]} : vector<4x256xf32> to vector<4x17xf32>
    %280 = tpu.concatenate %278, %279 in 1 : vector<4x239xf32>, vector<4x17xf32> -> vector<4x256xf32>
    %281 = tpu.concatenate %259, %262, %265, %268, %255, %271, %274, %277, %280 in 0 : vector<4x256xf32>, vector<4x256xf32>, vector<4x256xf32>, vector<4x256xf32>, vector<4x256xf32>, vector<4x256xf32>, vector<4x256xf32>, vector<4x256xf32>, vector<4x256xf32> -> vector<36x256xf32>
    %c0_93 = arith.constant 0 : index
    %c0_94 = arith.constant 0 : index
    %282 = vector.load %arg6[%c0_93, %c0_94] : memref<36x256xf32, #tpu.memory_space<vmem>>, vector<36x256xf32>
    %283 = arith.mulf %281, %282 : vector<36x256xf32>
    %c0_95 = arith.constant 0 : index
    %c0_96 = arith.constant 0 : index
    %284 = vector.load %arg2[%c0_95, %c0_96] : memref<16x36xbf16, #tpu.memory_space<vmem>>, vector<16x36xbf16>
    %285 = arith.truncf %283 : vector<36x256xf32> to vector<36x256xbf16>
    %cst_97 = arith.constant dense<0.000000e+00> : vector<16x256xf32>
    %286 = tpu.matmul %284, %285, %cst_97 {dimension_numbers = #tpu.dot_dimension_numbers<[1], [0], [0], [1], [0, 0, 1, 1], [], []>} : vector<16x36xbf16>, vector<36x256xbf16>, vector<16x256xf32> -> vector<16x256xf32>
    %c0_98 = arith.constant 0 : index
    %c0_99 = arith.constant 0 : index
    %287 = vector.load %arg3[%c0_98, %c0_99] : memref<16x256xf32, #tpu.memory_space<vmem>>, vector<16x256xf32>
    %288 = arith.addf %286, %287 : vector<16x256xf32>
    %c0_100 = arith.constant 0 : index
    %289 = arith.index_cast %c2_i32 : i32 to index
    %c0_101 = arith.constant 0 : index
    %c0_102 = arith.constant 0 : index
    %290 = vector.load %arg1[%c0_100, %289, %c0_101, %c0_102] : memref<1x8x16x256xf32, #tpu.memory_space<vmem>>, vector<1x1x16x256xf32>
    %291 = vector.shape_cast %290 : vector<1x1x16x256xf32> to vector<16x256xf32>
    %292 = arith.addf %288, %291 : vector<16x256xf32>
    %293 = vector.extract_strided_slice %292 {offsets = [0, 0], sizes = [12, 256], strides = [1, 1]} : vector<16x256xf32> to vector<12x256xf32>
    %294 = arith.negf %293 : vector<12x256xf32>
    %295 = math.exp %294 : vector<12x256xf32>
    %cst_103 = arith.constant 1.000000e+00 : f32
    %296 = vector.broadcast %cst_103 : f32 to vector<12x256xf32>
    %297 = arith.addf %296, %295 : vector<12x256xf32>
    %298 = arith.divf %296, %297 : vector<12x256xf32>
    %299 = vector.extract_strided_slice %298 {offsets = [0, 0], sizes = [4, 256], strides = [1, 1]} : vector<12x256xf32> to vector<4x256xf32>
    %300 = vector.extract_strided_slice %298 {offsets = [4, 0], sizes = [4, 256], strides = [1, 1]} : vector<12x256xf32> to vector<4x256xf32>
    %301 = vector.extract_strided_slice %298 {offsets = [8, 0], sizes = [4, 256], strides = [1, 1]} : vector<12x256xf32> to vector<4x256xf32>
    %302 = vector.extract_strided_slice %292 {offsets = [12, 0], sizes = [4, 256], strides = [1, 1]} : vector<16x256xf32> to vector<4x256xf32>
    %303 = math.tanh %302 : vector<4x256xf32>
    %304 = arith.mulf %300, %256 : vector<4x256xf32>
    %305 = arith.mulf %299, %303 : vector<4x256xf32>
    %306 = arith.addf %304, %305 : vector<4x256xf32>
    %307 = math.tanh %306 : vector<4x256xf32>
    %308 = arith.mulf %301, %307 : vector<4x256xf32>
    %c0_104 = arith.constant 0 : index
    %c0_105 = arith.constant 0 : index
    %309 = vector.load %arg13[%c0_104, %c0_105] : memref<8x256xf32, #tpu.memory_space<vmem>>, vector<4x256xf32>
    tpu.vector_store %arg13[%c0_104, %c0_105], %308 {strides = array<i32>} : memref<8x256xf32, #tpu.memory_space<vmem>>, vector<4x256xf32>,
    %c4_106 = arith.constant 4 : index
    %c0_107 = arith.constant 0 : index
    %310 = vector.load %arg13[%c4_106, %c0_107] : memref<8x256xf32, #tpu.memory_space<vmem>>, vector<4x256xf32>
    tpu.vector_store %arg13[%c4_106, %c0_107], %306 {strides = array<i32>} : memref<8x256xf32, #tpu.memory_space<vmem>>, vector<4x256xf32>,
    %c0_108 = arith.constant 0 : index
    %c0_109 = arith.constant 0 : index
    %311 = vector.load %arg14[%c0_108, %c0_109] : memref<8x256xf32, #tpu.memory_space<vmem>>, vector<8x256xf32>
    %c0_110 = arith.constant 0 : index
    %c0_111 = arith.constant 0 : index
    %312 = vector.load %arg9[%c0_110, %c0_111] : memref<8x256xf32, #tpu.memory_space<vmem>>, vector<8x256xf32>
    %313 = arith.mulf %311, %312 : vector<8x256xf32>
    %c0_112 = arith.constant 0 : index
    %c0_113 = arith.constant 0 : index
    %314 = vector.load %arg10[%c0_112, %c0_113] : memref<8x256xf32, #tpu.memory_space<vmem>>, vector<8x256xf32>
    %315 = arith.addf %313, %314 : vector<8x256xf32>
    %316 = vector.extract_strided_slice %315 {offsets = [0, 0], sizes = [4, 256], strides = [1, 1]} : vector<8x256xf32> to vector<4x256xf32>
    %317 = vector.extract_strided_slice %315 {offsets = [4, 0], sizes = [4, 256], strides = [1, 1]} : vector<8x256xf32> to vector<4x256xf32>
    %318 = tpu.concatenate %308, %316 in 0 : vector<4x256xf32>, vector<4x256xf32> -> vector<8x256xf32>
    %319 = vector.extract_strided_slice %318 {offsets = [0, 239], sizes = [8, 17], strides = [1, 1]} : vector<8x256xf32> to vector<8x17xf32>
    %320 = vector.extract_strided_slice %318 {offsets = [0, 0], sizes = [8, 239], strides = [1, 1]} : vector<8x256xf32> to vector<8x239xf32>
    %321 = tpu.concatenate %319, %320 in 1 : vector<8x17xf32>, vector<8x239xf32> -> vector<8x256xf32>
    %322 = vector.extract_strided_slice %318 {offsets = [0, 240], sizes = [8, 16], strides = [1, 1]} : vector<8x256xf32> to vector<8x16xf32>
    %323 = vector.extract_strided_slice %318 {offsets = [0, 0], sizes = [8, 240], strides = [1, 1]} : vector<8x256xf32> to vector<8x240xf32>
    %324 = tpu.concatenate %322, %323 in 1 : vector<8x16xf32>, vector<8x240xf32> -> vector<8x256xf32>
    %325 = vector.extract_strided_slice %318 {offsets = [0, 241], sizes = [8, 15], strides = [1, 1]} : vector<8x256xf32> to vector<8x15xf32>
    %326 = vector.extract_strided_slice %318 {offsets = [0, 0], sizes = [8, 241], strides = [1, 1]} : vector<8x256xf32> to vector<8x241xf32>
    %327 = tpu.concatenate %325, %326 in 1 : vector<8x15xf32>, vector<8x241xf32> -> vector<8x256xf32>
    %328 = vector.extract_strided_slice %318 {offsets = [0, 255], sizes = [8, 1], strides = [1, 1]} : vector<8x256xf32> to vector<8x1xf32>
    %329 = vector.extract_strided_slice %318 {offsets = [0, 0], sizes = [8, 255], strides = [1, 1]} : vector<8x256xf32> to vector<8x255xf32>
    %330 = tpu.concatenate %328, %329 in 1 : vector<8x1xf32>, vector<8x255xf32> -> vector<8x256xf32>
    %331 = vector.extract_strided_slice %318 {offsets = [0, 1], sizes = [8, 255], strides = [1, 1]} : vector<8x256xf32> to vector<8x255xf32>
    %332 = vector.extract_strided_slice %318 {offsets = [0, 0], sizes = [8, 1], strides = [1, 1]} : vector<8x256xf32> to vector<8x1xf32>
    %333 = tpu.concatenate %331, %332 in 1 : vector<8x255xf32>, vector<8x1xf32> -> vector<8x256xf32>
    %334 = vector.extract_strided_slice %318 {offsets = [0, 15], sizes = [8, 241], strides = [1, 1]} : vector<8x256xf32> to vector<8x241xf32>
    %335 = vector.extract_strided_slice %318 {offsets = [0, 0], sizes = [8, 15], strides = [1, 1]} : vector<8x256xf32> to vector<8x15xf32>
    %336 = tpu.concatenate %334, %335 in 1 : vector<8x241xf32>, vector<8x15xf32> -> vector<8x256xf32>
    %337 = vector.extract_strided_slice %318 {offsets = [0, 16], sizes = [8, 240], strides = [1, 1]} : vector<8x256xf32> to vector<8x240xf32>
    %338 = vector.extract_strided_slice %318 {offsets = [0, 0], sizes = [8, 16], strides = [1, 1]} : vector<8x256xf32> to vector<8x16xf32>
    %339 = tpu.concatenate %337, %338 in 1 : vector<8x240xf32>, vector<8x16xf32> -> vector<8x256xf32>
    %340 = vector.extract_strided_slice %318 {offsets = [0, 17], sizes = [8, 239], strides = [1, 1]} : vector<8x256xf32> to vector<8x239xf32>
    %341 = vector.extract_strided_slice %318 {offsets = [0, 0], sizes = [8, 17], strides = [1, 1]} : vector<8x256xf32> to vector<8x17xf32>
    %342 = tpu.concatenate %340, %341 in 1 : vector<8x239xf32>, vector<8x17xf32> -> vector<8x256xf32>
    %343 = tpu.concatenate %321, %324, %327, %330, %318, %333, %336, %339, %342 in 0 : vector<8x256xf32>, vector<8x256xf32>, vector<8x256xf32>, vector<8x256xf32>, vector<8x256xf32>, vector<8x256xf32>, vector<8x256xf32>, vector<8x256xf32>, vector<8x256xf32> -> vector<72x256xf32>
    %c0_114 = arith.constant 0 : index
    %c0_115 = arith.constant 0 : index
    %344 = vector.load %arg11[%c0_114, %c0_115] : memref<72x256xf32, #tpu.memory_space<vmem>>, vector<72x256xf32>
    %345 = arith.mulf %343, %344 : vector<72x256xf32>
    %c0_116 = arith.constant 0 : index
    %c0_117 = arith.constant 0 : index
    %346 = vector.load %arg7[%c0_116, %c0_117] : memref<16x72xbf16, #tpu.memory_space<vmem>>, vector<16x72xbf16>
    %347 = arith.truncf %345 : vector<72x256xf32> to vector<72x256xbf16>
    %cst_118 = arith.constant dense<0.000000e+00> : vector<16x256xf32>
    %348 = tpu.matmul %346, %347, %cst_118 {dimension_numbers = #tpu.dot_dimension_numbers<[1], [0], [0], [1], [0, 0, 1, 1], [], []>} : vector<16x72xbf16>, vector<72x256xbf16>, vector<16x256xf32> -> vector<16x256xf32>
    %c0_119 = arith.constant 0 : index
    %c0_120 = arith.constant 0 : index
    %349 = vector.load %arg8[%c0_119, %c0_120] : memref<16x256xf32, #tpu.memory_space<vmem>>, vector<16x256xf32>
    %350 = arith.addf %348, %349 : vector<16x256xf32>
    %351 = vector.extract_strided_slice %350 {offsets = [0, 0], sizes = [12, 256], strides = [1, 1]} : vector<16x256xf32> to vector<12x256xf32>
    %352 = arith.negf %351 : vector<12x256xf32>
    %353 = math.exp %352 : vector<12x256xf32>
    %cst_121 = arith.constant 1.000000e+00 : f32
    %354 = vector.broadcast %cst_121 : f32 to vector<12x256xf32>
    %355 = arith.addf %354, %353 : vector<12x256xf32>
    %356 = arith.divf %354, %355 : vector<12x256xf32>
    %357 = vector.extract_strided_slice %356 {offsets = [0, 0], sizes = [4, 256], strides = [1, 1]} : vector<12x256xf32> to vector<4x256xf32>
    %358 = vector.extract_strided_slice %356 {offsets = [4, 0], sizes = [4, 256], strides = [1, 1]} : vector<12x256xf32> to vector<4x256xf32>
    %359 = vector.extract_strided_slice %356 {offsets = [8, 0], sizes = [4, 256], strides = [1, 1]} : vector<12x256xf32> to vector<4x256xf32>
    %360 = vector.extract_strided_slice %350 {offsets = [12, 0], sizes = [4, 256], strides = [1, 1]} : vector<16x256xf32> to vector<4x256xf32>
    %361 = math.tanh %360 : vector<4x256xf32>
    %362 = arith.mulf %358, %317 : vector<4x256xf32>
    %363 = arith.mulf %357, %361 : vector<4x256xf32>
    %364 = arith.addf %362, %363 : vector<4x256xf32>
    %365 = math.tanh %364 : vector<4x256xf32>
    %366 = arith.mulf %359, %365 : vector<4x256xf32>
    %c0_122 = arith.constant 0 : index
    %c0_123 = arith.constant 0 : index
    %367 = vector.load %arg14[%c0_122, %c0_123] : memref<8x256xf32, #tpu.memory_space<vmem>>, vector<4x256xf32>
    tpu.vector_store %arg14[%c0_122, %c0_123], %366 {strides = array<i32>} : memref<8x256xf32, #tpu.memory_space<vmem>>, vector<4x256xf32>,
    %c4_124 = arith.constant 4 : index
    %c0_125 = arith.constant 0 : index
    %368 = vector.load %arg14[%c4_124, %c0_125] : memref<8x256xf32, #tpu.memory_space<vmem>>, vector<4x256xf32>
    tpu.vector_store %arg14[%c4_124, %c0_125], %364 {strides = array<i32>} : memref<8x256xf32, #tpu.memory_space<vmem>>, vector<4x256xf32>,
    %c0_126 = arith.constant 0 : index
    %369 = arith.index_cast %c2_i32 : i32 to index
    %c0_127 = arith.constant 0 : index
    %c0_128 = arith.constant 0 : index
    %370 = vector.load %arg12[%c0_126, %369, %c0_127, %c0_128] : memref<1x8x4x256xf32, #tpu.memory_space<vmem>>, vector<1x1x4x256xf32>
    %371 = vector.shape_cast %370 : vector<1x1x4x256xf32> to vector<4x256xf32>
    %372 = vector.shape_cast %366 : vector<4x256xf32> to vector<1x1x4x256xf32>
    tpu.vector_store %arg12[%c0_126, %369, %c0_127, %c0_128], %372 {strides = array<i32>} : memref<1x8x4x256xf32, #tpu.memory_space<vmem>>, vector<1x1x4x256xf32>,
    %c3_i32 = arith.constant 3 : i32
    %c0_129 = arith.constant 0 : index
    %c0_130 = arith.constant 0 : index
    %373 = vector.load %arg13[%c0_129, %c0_130] : memref<8x256xf32, #tpu.memory_space<vmem>>, vector<8x256xf32>
    %c0_131 = arith.constant 0 : index
    %c0_132 = arith.constant 0 : index
    %374 = vector.load %arg4[%c0_131, %c0_132] : memref<8x256xf32, #tpu.memory_space<vmem>>, vector<8x256xf32>
    %375 = arith.mulf %373, %374 : vector<8x256xf32>
    %c0_133 = arith.constant 0 : index
    %c0_134 = arith.constant 0 : index
    %376 = vector.load %arg5[%c0_133, %c0_134] : memref<8x256xf32, #tpu.memory_space<vmem>>, vector<8x256xf32>
    %377 = arith.addf %375, %376 : vector<8x256xf32>
    %378 = vector.extract_strided_slice %377 {offsets = [0, 0], sizes = [4, 256], strides = [1, 1]} : vector<8x256xf32> to vector<4x256xf32>
    %379 = vector.extract_strided_slice %377 {offsets = [4, 0], sizes = [4, 256], strides = [1, 1]} : vector<8x256xf32> to vector<4x256xf32>
    %380 = vector.extract_strided_slice %378 {offsets = [0, 239], sizes = [4, 17], strides = [1, 1]} : vector<4x256xf32> to vector<4x17xf32>
    %381 = vector.extract_strided_slice %378 {offsets = [0, 0], sizes = [4, 239], strides = [1, 1]} : vector<4x256xf32> to vector<4x239xf32>
    %382 = tpu.concatenate %380, %381 in 1 : vector<4x17xf32>, vector<4x239xf32> -> vector<4x256xf32>
    %383 = vector.extract_strided_slice %378 {offsets = [0, 240], sizes = [4, 16], strides = [1, 1]} : vector<4x256xf32> to vector<4x16xf32>
    %384 = vector.extract_strided_slice %378 {offsets = [0, 0], sizes = [4, 240], strides = [1, 1]} : vector<4x256xf32> to vector<4x240xf32>
    %385 = tpu.concatenate %383, %384 in 1 : vector<4x16xf32>, vector<4x240xf32> -> vector<4x256xf32>
    %386 = vector.extract_strided_slice %378 {offsets = [0, 241], sizes = [4, 15], strides = [1, 1]} : vector<4x256xf32> to vector<4x15xf32>
    %387 = vector.extract_strided_slice %378 {offsets = [0, 0], sizes = [4, 241], strides = [1, 1]} : vector<4x256xf32> to vector<4x241xf32>
    %388 = tpu.concatenate %386, %387 in 1 : vector<4x15xf32>, vector<4x241xf32> -> vector<4x256xf32>
    %389 = vector.extract_strided_slice %378 {offsets = [0, 255], sizes = [4, 1], strides = [1, 1]} : vector<4x256xf32> to vector<4x1xf32>
    %390 = vector.extract_strided_slice %378 {offsets = [0, 0], sizes = [4, 255], strides = [1, 1]} : vector<4x256xf32> to vector<4x255xf32>
    %391 = tpu.concatenate %389, %390 in 1 : vector<4x1xf32>, vector<4x255xf32> -> vector<4x256xf32>
    %392 = vector.extract_strided_slice %378 {offsets = [0, 1], sizes = [4, 255], strides = [1, 1]} : vector<4x256xf32> to vector<4x255xf32>
    %393 = vector.extract_strided_slice %378 {offsets = [0, 0], sizes = [4, 1], strides = [1, 1]} : vector<4x256xf32> to vector<4x1xf32>
    %394 = tpu.concatenate %392, %393 in 1 : vector<4x255xf32>, vector<4x1xf32> -> vector<4x256xf32>
    %395 = vector.extract_strided_slice %378 {offsets = [0, 15], sizes = [4, 241], strides = [1, 1]} : vector<4x256xf32> to vector<4x241xf32>
    %396 = vector.extract_strided_slice %378 {offsets = [0, 0], sizes = [4, 15], strides = [1, 1]} : vector<4x256xf32> to vector<4x15xf32>
    %397 = tpu.concatenate %395, %396 in 1 : vector<4x241xf32>, vector<4x15xf32> -> vector<4x256xf32>
    %398 = vector.extract_strided_slice %378 {offsets = [0, 16], sizes = [4, 240], strides = [1, 1]} : vector<4x256xf32> to vector<4x240xf32>
    %399 = vector.extract_strided_slice %378 {offsets = [0, 0], sizes = [4, 16], strides = [1, 1]} : vector<4x256xf32> to vector<4x16xf32>
    %400 = tpu.concatenate %398, %399 in 1 : vector<4x240xf32>, vector<4x16xf32> -> vector<4x256xf32>
    %401 = vector.extract_strided_slice %378 {offsets = [0, 17], sizes = [4, 239], strides = [1, 1]} : vector<4x256xf32> to vector<4x239xf32>
    %402 = vector.extract_strided_slice %378 {offsets = [0, 0], sizes = [4, 17], strides = [1, 1]} : vector<4x256xf32> to vector<4x17xf32>
    %403 = tpu.concatenate %401, %402 in 1 : vector<4x239xf32>, vector<4x17xf32> -> vector<4x256xf32>
    %404 = tpu.concatenate %382, %385, %388, %391, %378, %394, %397, %400, %403 in 0 : vector<4x256xf32>, vector<4x256xf32>, vector<4x256xf32>, vector<4x256xf32>, vector<4x256xf32>, vector<4x256xf32>, vector<4x256xf32>, vector<4x256xf32>, vector<4x256xf32> -> vector<36x256xf32>
    %c0_135 = arith.constant 0 : index
    %c0_136 = arith.constant 0 : index
    %405 = vector.load %arg6[%c0_135, %c0_136] : memref<36x256xf32, #tpu.memory_space<vmem>>, vector<36x256xf32>
    %406 = arith.mulf %404, %405 : vector<36x256xf32>
    %c0_137 = arith.constant 0 : index
    %c0_138 = arith.constant 0 : index
    %407 = vector.load %arg2[%c0_137, %c0_138] : memref<16x36xbf16, #tpu.memory_space<vmem>>, vector<16x36xbf16>
    %408 = arith.truncf %406 : vector<36x256xf32> to vector<36x256xbf16>
    %cst_139 = arith.constant dense<0.000000e+00> : vector<16x256xf32>
    %409 = tpu.matmul %407, %408, %cst_139 {dimension_numbers = #tpu.dot_dimension_numbers<[1], [0], [0], [1], [0, 0, 1, 1], [], []>} : vector<16x36xbf16>, vector<36x256xbf16>, vector<16x256xf32> -> vector<16x256xf32>
    %c0_140 = arith.constant 0 : index
    %c0_141 = arith.constant 0 : index
    %410 = vector.load %arg3[%c0_140, %c0_141] : memref<16x256xf32, #tpu.memory_space<vmem>>, vector<16x256xf32>
    %411 = arith.addf %409, %410 : vector<16x256xf32>
    %c0_142 = arith.constant 0 : index
    %412 = arith.index_cast %c3_i32 : i32 to index
    %c0_143 = arith.constant 0 : index
    %c0_144 = arith.constant 0 : index
    %413 = vector.load %arg1[%c0_142, %412, %c0_143, %c0_144] : memref<1x8x16x256xf32, #tpu.memory_space<vmem>>, vector<1x1x16x256xf32>
    %414 = vector.shape_cast %413 : vector<1x1x16x256xf32> to vector<16x256xf32>
    %415 = arith.addf %411, %414 : vector<16x256xf32>
    %416 = vector.extract_strided_slice %415 {offsets = [0, 0], sizes = [12, 256], strides = [1, 1]} : vector<16x256xf32> to vector<12x256xf32>
    %417 = arith.negf %416 : vector<12x256xf32>
    %418 = math.exp %417 : vector<12x256xf32>
    %cst_145 = arith.constant 1.000000e+00 : f32
    %419 = vector.broadcast %cst_145 : f32 to vector<12x256xf32>
    %420 = arith.addf %419, %418 : vector<12x256xf32>
    %421 = arith.divf %419, %420 : vector<12x256xf32>
    %422 = vector.extract_strided_slice %421 {offsets = [0, 0], sizes = [4, 256], strides = [1, 1]} : vector<12x256xf32> to vector<4x256xf32>
    %423 = vector.extract_strided_slice %421 {offsets = [4, 0], sizes = [4, 256], strides = [1, 1]} : vector<12x256xf32> to vector<4x256xf32>
    %424 = vector.extract_strided_slice %421 {offsets = [8, 0], sizes = [4, 256], strides = [1, 1]} : vector<12x256xf32> to vector<4x256xf32>
    %425 = vector.extract_strided_slice %415 {offsets = [12, 0], sizes = [4, 256], strides = [1, 1]} : vector<16x256xf32> to vector<4x256xf32>
    %426 = math.tanh %425 : vector<4x256xf32>
    %427 = arith.mulf %423, %379 : vector<4x256xf32>
    %428 = arith.mulf %422, %426 : vector<4x256xf32>
    %429 = arith.addf %427, %428 : vector<4x256xf32>
    %430 = math.tanh %429 : vector<4x256xf32>
    %431 = arith.mulf %424, %430 : vector<4x256xf32>
    %c0_146 = arith.constant 0 : index
    %c0_147 = arith.constant 0 : index
    %432 = vector.load %arg13[%c0_146, %c0_147] : memref<8x256xf32, #tpu.memory_space<vmem>>, vector<4x256xf32>
    tpu.vector_store %arg13[%c0_146, %c0_147], %431 {strides = array<i32>} : memref<8x256xf32, #tpu.memory_space<vmem>>, vector<4x256xf32>,
    %c4_148 = arith.constant 4 : index
    %c0_149 = arith.constant 0 : index
    %433 = vector.load %arg13[%c4_148, %c0_149] : memref<8x256xf32, #tpu.memory_space<vmem>>, vector<4x256xf32>
    tpu.vector_store %arg13[%c4_148, %c0_149], %429 {strides = array<i32>} : memref<8x256xf32, #tpu.memory_space<vmem>>, vector<4x256xf32>,
    %c0_150 = arith.constant 0 : index
    %c0_151 = arith.constant 0 : index
    %434 = vector.load %arg14[%c0_150, %c0_151] : memref<8x256xf32, #tpu.memory_space<vmem>>, vector<8x256xf32>
    %c0_152 = arith.constant 0 : index
    %c0_153 = arith.constant 0 : index
    %435 = vector.load %arg9[%c0_152, %c0_153] : memref<8x256xf32, #tpu.memory_space<vmem>>, vector<8x256xf32>
    %436 = arith.mulf %434, %435 : vector<8x256xf32>
    %c0_154 = arith.constant 0 : index
    %c0_155 = arith.constant 0 : index
    %437 = vector.load %arg10[%c0_154, %c0_155] : memref<8x256xf32, #tpu.memory_space<vmem>>, vector<8x256xf32>
    %438 = arith.addf %436, %437 : vector<8x256xf32>
    %439 = vector.extract_strided_slice %438 {offsets = [0, 0], sizes = [4, 256], strides = [1, 1]} : vector<8x256xf32> to vector<4x256xf32>
    %440 = vector.extract_strided_slice %438 {offsets = [4, 0], sizes = [4, 256], strides = [1, 1]} : vector<8x256xf32> to vector<4x256xf32>
    %441 = tpu.concatenate %431, %439 in 0 : vector<4x256xf32>, vector<4x256xf32> -> vector<8x256xf32>
    %442 = vector.extract_strided_slice %441 {offsets = [0, 239], sizes = [8, 17], strides = [1, 1]} : vector<8x256xf32> to vector<8x17xf32>
    %443 = vector.extract_strided_slice %441 {offsets = [0, 0], sizes = [8, 239], strides = [1, 1]} : vector<8x256xf32> to vector<8x239xf32>
    %444 = tpu.concatenate %442, %443 in 1 : vector<8x17xf32>, vector<8x239xf32> -> vector<8x256xf32>
    %445 = vector.extract_strided_slice %441 {offsets = [0, 240], sizes = [8, 16], strides = [1, 1]} : vector<8x256xf32> to vector<8x16xf32>
    %446 = vector.extract_strided_slice %441 {offsets = [0, 0], sizes = [8, 240], strides = [1, 1]} : vector<8x256xf32> to vector<8x240xf32>
    %447 = tpu.concatenate %445, %446 in 1 : vector<8x16xf32>, vector<8x240xf32> -> vector<8x256xf32>
    %448 = vector.extract_strided_slice %441 {offsets = [0, 241], sizes = [8, 15], strides = [1, 1]} : vector<8x256xf32> to vector<8x15xf32>
    %449 = vector.extract_strided_slice %441 {offsets = [0, 0], sizes = [8, 241], strides = [1, 1]} : vector<8x256xf32> to vector<8x241xf32>
    %450 = tpu.concatenate %448, %449 in 1 : vector<8x15xf32>, vector<8x241xf32> -> vector<8x256xf32>
    %451 = vector.extract_strided_slice %441 {offsets = [0, 255], sizes = [8, 1], strides = [1, 1]} : vector<8x256xf32> to vector<8x1xf32>
    %452 = vector.extract_strided_slice %441 {offsets = [0, 0], sizes = [8, 255], strides = [1, 1]} : vector<8x256xf32> to vector<8x255xf32>
    %453 = tpu.concatenate %451, %452 in 1 : vector<8x1xf32>, vector<8x255xf32> -> vector<8x256xf32>
    %454 = vector.extract_strided_slice %441 {offsets = [0, 1], sizes = [8, 255], strides = [1, 1]} : vector<8x256xf32> to vector<8x255xf32>
    %455 = vector.extract_strided_slice %441 {offsets = [0, 0], sizes = [8, 1], strides = [1, 1]} : vector<8x256xf32> to vector<8x1xf32>
    %456 = tpu.concatenate %454, %455 in 1 : vector<8x255xf32>, vector<8x1xf32> -> vector<8x256xf32>
    %457 = vector.extract_strided_slice %441 {offsets = [0, 15], sizes = [8, 241], strides = [1, 1]} : vector<8x256xf32> to vector<8x241xf32>
    %458 = vector.extract_strided_slice %441 {offsets = [0, 0], sizes = [8, 15], strides = [1, 1]} : vector<8x256xf32> to vector<8x15xf32>
    %459 = tpu.concatenate %457, %458 in 1 : vector<8x241xf32>, vector<8x15xf32> -> vector<8x256xf32>
    %460 = vector.extract_strided_slice %441 {offsets = [0, 16], sizes = [8, 240], strides = [1, 1]} : vector<8x256xf32> to vector<8x240xf32>
    %461 = vector.extract_strided_slice %441 {offsets = [0, 0], sizes = [8, 16], strides = [1, 1]} : vector<8x256xf32> to vector<8x16xf32>
    %462 = tpu.concatenate %460, %461 in 1 : vector<8x240xf32>, vector<8x16xf32> -> vector<8x256xf32>
    %463 = vector.extract_strided_slice %441 {offsets = [0, 17], sizes = [8, 239], strides = [1, 1]} : vector<8x256xf32> to vector<8x239xf32>
    %464 = vector.extract_strided_slice %441 {offsets = [0, 0], sizes = [8, 17], strides = [1, 1]} : vector<8x256xf32> to vector<8x17xf32>
    %465 = tpu.concatenate %463, %464 in 1 : vector<8x239xf32>, vector<8x17xf32> -> vector<8x256xf32>
    %466 = tpu.concatenate %444, %447, %450, %453, %441, %456, %459, %462, %465 in 0 : vector<8x256xf32>, vector<8x256xf32>, vector<8x256xf32>, vector<8x256xf32>, vector<8x256xf32>, vector<8x256xf32>, vector<8x256xf32>, vector<8x256xf32>, vector<8x256xf32> -> vector<72x256xf32>
    %c0_156 = arith.constant 0 : index
    %c0_157 = arith.constant 0 : index
    %467 = vector.load %arg11[%c0_156, %c0_157] : memref<72x256xf32, #tpu.memory_space<vmem>>, vector<72x256xf32>
    %468 = arith.mulf %466, %467 : vector<72x256xf32>
    %c0_158 = arith.constant 0 : index
    %c0_159 = arith.constant 0 : index
    %469 = vector.load %arg7[%c0_158, %c0_159] : memref<16x72xbf16, #tpu.memory_space<vmem>>, vector<16x72xbf16>
    %470 = arith.truncf %468 : vector<72x256xf32> to vector<72x256xbf16>
    %cst_160 = arith.constant dense<0.000000e+00> : vector<16x256xf32>
    %471 = tpu.matmul %469, %470, %cst_160 {dimension_numbers = #tpu.dot_dimension_numbers<[1], [0], [0], [1], [0, 0, 1, 1], [], []>} : vector<16x72xbf16>, vector<72x256xbf16>, vector<16x256xf32> -> vector<16x256xf32>
    %c0_161 = arith.constant 0 : index
    %c0_162 = arith.constant 0 : index
    %472 = vector.load %arg8[%c0_161, %c0_162] : memref<16x256xf32, #tpu.memory_space<vmem>>, vector<16x256xf32>
    %473 = arith.addf %471, %472 : vector<16x256xf32>
    %474 = vector.extract_strided_slice %473 {offsets = [0, 0], sizes = [12, 256], strides = [1, 1]} : vector<16x256xf32> to vector<12x256xf32>
    %475 = arith.negf %474 : vector<12x256xf32>
    %476 = math.exp %475 : vector<12x256xf32>
    %cst_163 = arith.constant 1.000000e+00 : f32
    %477 = vector.broadcast %cst_163 : f32 to vector<12x256xf32>
    %478 = arith.addf %477, %476 : vector<12x256xf32>
    %479 = arith.divf %477, %478 : vector<12x256xf32>
    %480 = vector.extract_strided_slice %479 {offsets = [0, 0], sizes = [4, 256], strides = [1, 1]} : vector<12x256xf32> to vector<4x256xf32>
    %481 = vector.extract_strided_slice %479 {offsets = [4, 0], sizes = [4, 256], strides = [1, 1]} : vector<12x256xf32> to vector<4x256xf32>
    %482 = vector.extract_strided_slice %479 {offsets = [8, 0], sizes = [4, 256], strides = [1, 1]} : vector<12x256xf32> to vector<4x256xf32>
    %483 = vector.extract_strided_slice %473 {offsets = [12, 0], sizes = [4, 256], strides = [1, 1]} : vector<16x256xf32> to vector<4x256xf32>
    %484 = math.tanh %483 : vector<4x256xf32>
    %485 = arith.mulf %481, %440 : vector<4x256xf32>
    %486 = arith.mulf %480, %484 : vector<4x256xf32>
    %487 = arith.addf %485, %486 : vector<4x256xf32>
    %488 = math.tanh %487 : vector<4x256xf32>
    %489 = arith.mulf %482, %488 : vector<4x256xf32>
    %c0_164 = arith.constant 0 : index
    %c0_165 = arith.constant 0 : index
    %490 = vector.load %arg14[%c0_164, %c0_165] : memref<8x256xf32, #tpu.memory_space<vmem>>, vector<4x256xf32>
    tpu.vector_store %arg14[%c0_164, %c0_165], %489 {strides = array<i32>} : memref<8x256xf32, #tpu.memory_space<vmem>>, vector<4x256xf32>,
    %c4_166 = arith.constant 4 : index
    %c0_167 = arith.constant 0 : index
    %491 = vector.load %arg14[%c4_166, %c0_167] : memref<8x256xf32, #tpu.memory_space<vmem>>, vector<4x256xf32>
    tpu.vector_store %arg14[%c4_166, %c0_167], %487 {strides = array<i32>} : memref<8x256xf32, #tpu.memory_space<vmem>>, vector<4x256xf32>,
    %c0_168 = arith.constant 0 : index
    %492 = arith.index_cast %c3_i32 : i32 to index
    %c0_169 = arith.constant 0 : index
    %c0_170 = arith.constant 0 : index
    %493 = vector.load %arg12[%c0_168, %492, %c0_169, %c0_170] : memref<1x8x4x256xf32, #tpu.memory_space<vmem>>, vector<1x1x4x256xf32>
    %494 = vector.shape_cast %493 : vector<1x1x4x256xf32> to vector<4x256xf32>
    %495 = vector.shape_cast %489 : vector<4x256xf32> to vector<1x1x4x256xf32>
    tpu.vector_store %arg12[%c0_168, %492, %c0_169, %c0_170], %495 {strides = array<i32>} : memref<1x8x4x256xf32, #tpu.memory_space<vmem>>, vector<1x1x4x256xf32>,
    %c4_i32 = arith.constant 4 : i32
    %c0_171 = arith.constant 0 : index
    %c0_172 = arith.constant 0 : index
    %496 = vector.load %arg13[%c0_171, %c0_172] : memref<8x256xf32, #tpu.memory_space<vmem>>, vector<8x256xf32>
    %c0_173 = arith.constant 0 : index
    %c0_174 = arith.constant 0 : index
    %497 = vector.load %arg4[%c0_173, %c0_174] : memref<8x256xf32, #tpu.memory_space<vmem>>, vector<8x256xf32>
    %498 = arith.mulf %496, %497 : vector<8x256xf32>
    %c0_175 = arith.constant 0 : index
    %c0_176 = arith.constant 0 : index
    %499 = vector.load %arg5[%c0_175, %c0_176] : memref<8x256xf32, #tpu.memory_space<vmem>>, vector<8x256xf32>
    %500 = arith.addf %498, %499 : vector<8x256xf32>
    %501 = vector.extract_strided_slice %500 {offsets = [0, 0], sizes = [4, 256], strides = [1, 1]} : vector<8x256xf32> to vector<4x256xf32>
    %502 = vector.extract_strided_slice %500 {offsets = [4, 0], sizes = [4, 256], strides = [1, 1]} : vector<8x256xf32> to vector<4x256xf32>
    %503 = vector.extract_strided_slice %501 {offsets = [0, 239], sizes = [4, 17], strides = [1, 1]} : vector<4x256xf32> to vector<4x17xf32>
    %504 = vector.extract_strided_slice %501 {offsets = [0, 0], sizes = [4, 239], strides = [1, 1]} : vector<4x256xf32> to vector<4x239xf32>
    %505 = tpu.concatenate %503, %504 in 1 : vector<4x17xf32>, vector<4x239xf32> -> vector<4x256xf32>
    %506 = vector.extract_strided_slice %501 {offsets = [0, 240], sizes = [4, 16], strides = [1, 1]} : vector<4x256xf32> to vector<4x16xf32>
    %507 = vector.extract_strided_slice %501 {offsets = [0, 0], sizes = [4, 240], strides = [1, 1]} : vector<4x256xf32> to vector<4x240xf32>
    %508 = tpu.concatenate %506, %507 in 1 : vector<4x16xf32>, vector<4x240xf32> -> vector<4x256xf32>
    %509 = vector.extract_strided_slice %501 {offsets = [0, 241], sizes = [4, 15], strides = [1, 1]} : vector<4x256xf32> to vector<4x15xf32>
    %510 = vector.extract_strided_slice %501 {offsets = [0, 0], sizes = [4, 241], strides = [1, 1]} : vector<4x256xf32> to vector<4x241xf32>
    %511 = tpu.concatenate %509, %510 in 1 : vector<4x15xf32>, vector<4x241xf32> -> vector<4x256xf32>
    %512 = vector.extract_strided_slice %501 {offsets = [0, 255], sizes = [4, 1], strides = [1, 1]} : vector<4x256xf32> to vector<4x1xf32>
    %513 = vector.extract_strided_slice %501 {offsets = [0, 0], sizes = [4, 255], strides = [1, 1]} : vector<4x256xf32> to vector<4x255xf32>
    %514 = tpu.concatenate %512, %513 in 1 : vector<4x1xf32>, vector<4x255xf32> -> vector<4x256xf32>
    %515 = vector.extract_strided_slice %501 {offsets = [0, 1], sizes = [4, 255], strides = [1, 1]} : vector<4x256xf32> to vector<4x255xf32>
    %516 = vector.extract_strided_slice %501 {offsets = [0, 0], sizes = [4, 1], strides = [1, 1]} : vector<4x256xf32> to vector<4x1xf32>
    %517 = tpu.concatenate %515, %516 in 1 : vector<4x255xf32>, vector<4x1xf32> -> vector<4x256xf32>
    %518 = vector.extract_strided_slice %501 {offsets = [0, 15], sizes = [4, 241], strides = [1, 1]} : vector<4x256xf32> to vector<4x241xf32>
    %519 = vector.extract_strided_slice %501 {offsets = [0, 0], sizes = [4, 15], strides = [1, 1]} : vector<4x256xf32> to vector<4x15xf32>
    %520 = tpu.concatenate %518, %519 in 1 : vector<4x241xf32>, vector<4x15xf32> -> vector<4x256xf32>
    %521 = vector.extract_strided_slice %501 {offsets = [0, 16], sizes = [4, 240], strides = [1, 1]} : vector<4x256xf32> to vector<4x240xf32>
    %522 = vector.extract_strided_slice %501 {offsets = [0, 0], sizes = [4, 16], strides = [1, 1]} : vector<4x256xf32> to vector<4x16xf32>
    %523 = tpu.concatenate %521, %522 in 1 : vector<4x240xf32>, vector<4x16xf32> -> vector<4x256xf32>
    %524 = vector.extract_strided_slice %501 {offsets = [0, 17], sizes = [4, 239], strides = [1, 1]} : vector<4x256xf32> to vector<4x239xf32>
    %525 = vector.extract_strided_slice %501 {offsets = [0, 0], sizes = [4, 17], strides = [1, 1]} : vector<4x256xf32> to vector<4x17xf32>
    %526 = tpu.concatenate %524, %525 in 1 : vector<4x239xf32>, vector<4x17xf32> -> vector<4x256xf32>
    %527 = tpu.concatenate %505, %508, %511, %514, %501, %517, %520, %523, %526 in 0 : vector<4x256xf32>, vector<4x256xf32>, vector<4x256xf32>, vector<4x256xf32>, vector<4x256xf32>, vector<4x256xf32>, vector<4x256xf32>, vector<4x256xf32>, vector<4x256xf32> -> vector<36x256xf32>
    %c0_177 = arith.constant 0 : index
    %c0_178 = arith.constant 0 : index
    %528 = vector.load %arg6[%c0_177, %c0_178] : memref<36x256xf32, #tpu.memory_space<vmem>>, vector<36x256xf32>
    %529 = arith.mulf %527, %528 : vector<36x256xf32>
    %c0_179 = arith.constant 0 : index
    %c0_180 = arith.constant 0 : index
    %530 = vector.load %arg2[%c0_179, %c0_180] : memref<16x36xbf16, #tpu.memory_space<vmem>>, vector<16x36xbf16>
    %531 = arith.truncf %529 : vector<36x256xf32> to vector<36x256xbf16>
    %cst_181 = arith.constant dense<0.000000e+00> : vector<16x256xf32>
    %532 = tpu.matmul %530, %531, %cst_181 {dimension_numbers = #tpu.dot_dimension_numbers<[1], [0], [0], [1], [0, 0, 1, 1], [], []>} : vector<16x36xbf16>, vector<36x256xbf16>, vector<16x256xf32> -> vector<16x256xf32>
    %c0_182 = arith.constant 0 : index
    %c0_183 = arith.constant 0 : index
    %533 = vector.load %arg3[%c0_182, %c0_183] : memref<16x256xf32, #tpu.memory_space<vmem>>, vector<16x256xf32>
    %534 = arith.addf %532, %533 : vector<16x256xf32>
    %c0_184 = arith.constant 0 : index
    %535 = arith.index_cast %c4_i32 : i32 to index
    %c0_185 = arith.constant 0 : index
    %c0_186 = arith.constant 0 : index
    %536 = vector.load %arg1[%c0_184, %535, %c0_185, %c0_186] : memref<1x8x16x256xf32, #tpu.memory_space<vmem>>, vector<1x1x16x256xf32>
    %537 = vector.shape_cast %536 : vector<1x1x16x256xf32> to vector<16x256xf32>
    %538 = arith.addf %534, %537 : vector<16x256xf32>
    %539 = vector.extract_strided_slice %538 {offsets = [0, 0], sizes = [12, 256], strides = [1, 1]} : vector<16x256xf32> to vector<12x256xf32>
    %540 = arith.negf %539 : vector<12x256xf32>
    %541 = math.exp %540 : vector<12x256xf32>
    %cst_187 = arith.constant 1.000000e+00 : f32
    %542 = vector.broadcast %cst_187 : f32 to vector<12x256xf32>
    %543 = arith.addf %542, %541 : vector<12x256xf32>
    %544 = arith.divf %542, %543 : vector<12x256xf32>
    %545 = vector.extract_strided_slice %544 {offsets = [0, 0], sizes = [4, 256], strides = [1, 1]} : vector<12x256xf32> to vector<4x256xf32>
    %546 = vector.extract_strided_slice %544 {offsets = [4, 0], sizes = [4, 256], strides = [1, 1]} : vector<12x256xf32> to vector<4x256xf32>
    %547 = vector.extract_strided_slice %544 {offsets = [8, 0], sizes = [4, 256], strides = [1, 1]} : vector<12x256xf32> to vector<4x256xf32>
    %548 = vector.extract_strided_slice %538 {offsets = [12, 0], sizes = [4, 256], strides = [1, 1]} : vector<16x256xf32> to vector<4x256xf32>
    %549 = math.tanh %548 : vector<4x256xf32>
    %550 = arith.mulf %546, %502 : vector<4x256xf32>
    %551 = arith.mulf %545, %549 : vector<4x256xf32>
    %552 = arith.addf %550, %551 : vector<4x256xf32>
    %553 = math.tanh %552 : vector<4x256xf32>
    %554 = arith.mulf %547, %553 : vector<4x256xf32>
    %c0_188 = arith.constant 0 : index
    %c0_189 = arith.constant 0 : index
    %555 = vector.load %arg13[%c0_188, %c0_189] : memref<8x256xf32, #tpu.memory_space<vmem>>, vector<4x256xf32>
    tpu.vector_store %arg13[%c0_188, %c0_189], %554 {strides = array<i32>} : memref<8x256xf32, #tpu.memory_space<vmem>>, vector<4x256xf32>,
    %c4_190 = arith.constant 4 : index
    %c0_191 = arith.constant 0 : index
    %556 = vector.load %arg13[%c4_190, %c0_191] : memref<8x256xf32, #tpu.memory_space<vmem>>, vector<4x256xf32>
    tpu.vector_store %arg13[%c4_190, %c0_191], %552 {strides = array<i32>} : memref<8x256xf32, #tpu.memory_space<vmem>>, vector<4x256xf32>,
    %c0_192 = arith.constant 0 : index
    %c0_193 = arith.constant 0 : index
    %557 = vector.load %arg14[%c0_192, %c0_193] : memref<8x256xf32, #tpu.memory_space<vmem>>, vector<8x256xf32>
    %c0_194 = arith.constant 0 : index
    %c0_195 = arith.constant 0 : index
    %558 = vector.load %arg9[%c0_194, %c0_195] : memref<8x256xf32, #tpu.memory_space<vmem>>, vector<8x256xf32>
    %559 = arith.mulf %557, %558 : vector<8x256xf32>
    %c0_196 = arith.constant 0 : index
    %c0_197 = arith.constant 0 : index
    %560 = vector.load %arg10[%c0_196, %c0_197] : memref<8x256xf32, #tpu.memory_space<vmem>>, vector<8x256xf32>
    %561 = arith.addf %559, %560 : vector<8x256xf32>
    %562 = vector.extract_strided_slice %561 {offsets = [0, 0], sizes = [4, 256], strides = [1, 1]} : vector<8x256xf32> to vector<4x256xf32>
    %563 = vector.extract_strided_slice %561 {offsets = [4, 0], sizes = [4, 256], strides = [1, 1]} : vector<8x256xf32> to vector<4x256xf32>
    %564 = tpu.concatenate %554, %562 in 0 : vector<4x256xf32>, vector<4x256xf32> -> vector<8x256xf32>
    %565 = vector.extract_strided_slice %564 {offsets = [0, 239], sizes = [8, 17], strides = [1, 1]} : vector<8x256xf32> to vector<8x17xf32>
    %566 = vector.extract_strided_slice %564 {offsets = [0, 0], sizes = [8, 239], strides = [1, 1]} : vector<8x256xf32> to vector<8x239xf32>
    %567 = tpu.concatenate %565, %566 in 1 : vector<8x17xf32>, vector<8x239xf32> -> vector<8x256xf32>
    %568 = vector.extract_strided_slice %564 {offsets = [0, 240], sizes = [8, 16], strides = [1, 1]} : vector<8x256xf32> to vector<8x16xf32>
    %569 = vector.extract_strided_slice %564 {offsets = [0, 0], sizes = [8, 240], strides = [1, 1]} : vector<8x256xf32> to vector<8x240xf32>
    %570 = tpu.concatenate %568, %569 in 1 : vector<8x16xf32>, vector<8x240xf32> -> vector<8x256xf32>
    %571 = vector.extract_strided_slice %564 {offsets = [0, 241], sizes = [8, 15], strides = [1, 1]} : vector<8x256xf32> to vector<8x15xf32>
    %572 = vector.extract_strided_slice %564 {offsets = [0, 0], sizes = [8, 241], strides = [1, 1]} : vector<8x256xf32> to vector<8x241xf32>
    %573 = tpu.concatenate %571, %572 in 1 : vector<8x15xf32>, vector<8x241xf32> -> vector<8x256xf32>
    %574 = vector.extract_strided_slice %564 {offsets = [0, 255], sizes = [8, 1], strides = [1, 1]} : vector<8x256xf32> to vector<8x1xf32>
    %575 = vector.extract_strided_slice %564 {offsets = [0, 0], sizes = [8, 255], strides = [1, 1]} : vector<8x256xf32> to vector<8x255xf32>
    %576 = tpu.concatenate %574, %575 in 1 : vector<8x1xf32>, vector<8x255xf32> -> vector<8x256xf32>
    %577 = vector.extract_strided_slice %564 {offsets = [0, 1], sizes = [8, 255], strides = [1, 1]} : vector<8x256xf32> to vector<8x255xf32>
    %578 = vector.extract_strided_slice %564 {offsets = [0, 0], sizes = [8, 1], strides = [1, 1]} : vector<8x256xf32> to vector<8x1xf32>
    %579 = tpu.concatenate %577, %578 in 1 : vector<8x255xf32>, vector<8x1xf32> -> vector<8x256xf32>
    %580 = vector.extract_strided_slice %564 {offsets = [0, 15], sizes = [8, 241], strides = [1, 1]} : vector<8x256xf32> to vector<8x241xf32>
    %581 = vector.extract_strided_slice %564 {offsets = [0, 0], sizes = [8, 15], strides = [1, 1]} : vector<8x256xf32> to vector<8x15xf32>
    %582 = tpu.concatenate %580, %581 in 1 : vector<8x241xf32>, vector<8x15xf32> -> vector<8x256xf32>
    %583 = vector.extract_strided_slice %564 {offsets = [0, 16], sizes = [8, 240], strides = [1, 1]} : vector<8x256xf32> to vector<8x240xf32>
    %584 = vector.extract_strided_slice %564 {offsets = [0, 0], sizes = [8, 16], strides = [1, 1]} : vector<8x256xf32> to vector<8x16xf32>
    %585 = tpu.concatenate %583, %584 in 1 : vector<8x240xf32>, vector<8x16xf32> -> vector<8x256xf32>
    %586 = vector.extract_strided_slice %564 {offsets = [0, 17], sizes = [8, 239], strides = [1, 1]} : vector<8x256xf32> to vector<8x239xf32>
    %587 = vector.extract_strided_slice %564 {offsets = [0, 0], sizes = [8, 17], strides = [1, 1]} : vector<8x256xf32> to vector<8x17xf32>
    %588 = tpu.concatenate %586, %587 in 1 : vector<8x239xf32>, vector<8x17xf32> -> vector<8x256xf32>
    %589 = tpu.concatenate %567, %570, %573, %576, %564, %579, %582, %585, %588 in 0 : vector<8x256xf32>, vector<8x256xf32>, vector<8x256xf32>, vector<8x256xf32>, vector<8x256xf32>, vector<8x256xf32>, vector<8x256xf32>, vector<8x256xf32>, vector<8x256xf32> -> vector<72x256xf32>
    %c0_198 = arith.constant 0 : index
    %c0_199 = arith.constant 0 : index
    %590 = vector.load %arg11[%c0_198, %c0_199] : memref<72x256xf32, #tpu.memory_space<vmem>>, vector<72x256xf32>
    %591 = arith.mulf %589, %590 : vector<72x256xf32>
    %c0_200 = arith.constant 0 : index
    %c0_201 = arith.constant 0 : index
    %592 = vector.load %arg7[%c0_200, %c0_201] : memref<16x72xbf16, #tpu.memory_space<vmem>>, vector<16x72xbf16>
    %593 = arith.truncf %591 : vector<72x256xf32> to vector<72x256xbf16>
    %cst_202 = arith.constant dense<0.000000e+00> : vector<16x256xf32>
    %594 = tpu.matmul %592, %593, %cst_202 {dimension_numbers = #tpu.dot_dimension_numbers<[1], [0], [0], [1], [0, 0, 1, 1], [], []>} : vector<16x72xbf16>, vector<72x256xbf16>, vector<16x256xf32> -> vector<16x256xf32>
    %c0_203 = arith.constant 0 : index
    %c0_204 = arith.constant 0 : index
    %595 = vector.load %arg8[%c0_203, %c0_204] : memref<16x256xf32, #tpu.memory_space<vmem>>, vector<16x256xf32>
    %596 = arith.addf %594, %595 : vector<16x256xf32>
    %597 = vector.extract_strided_slice %596 {offsets = [0, 0], sizes = [12, 256], strides = [1, 1]} : vector<16x256xf32> to vector<12x256xf32>
    %598 = arith.negf %597 : vector<12x256xf32>
    %599 = math.exp %598 : vector<12x256xf32>
    %cst_205 = arith.constant 1.000000e+00 : f32
    %600 = vector.broadcast %cst_205 : f32 to vector<12x256xf32>
    %601 = arith.addf %600, %599 : vector<12x256xf32>
    %602 = arith.divf %600, %601 : vector<12x256xf32>
    %603 = vector.extract_strided_slice %602 {offsets = [0, 0], sizes = [4, 256], strides = [1, 1]} : vector<12x256xf32> to vector<4x256xf32>
    %604 = vector.extract_strided_slice %602 {offsets = [4, 0], sizes = [4, 256], strides = [1, 1]} : vector<12x256xf32> to vector<4x256xf32>
    %605 = vector.extract_strided_slice %602 {offsets = [8, 0], sizes = [4, 256], strides = [1, 1]} : vector<12x256xf32> to vector<4x256xf32>
    %606 = vector.extract_strided_slice %596 {offsets = [12, 0], sizes = [4, 256], strides = [1, 1]} : vector<16x256xf32> to vector<4x256xf32>
    %607 = math.tanh %606 : vector<4x256xf32>
    %608 = arith.mulf %604, %563 : vector<4x256xf32>
    %609 = arith.mulf %603, %607 : vector<4x256xf32>
    %610 = arith.addf %608, %609 : vector<4x256xf32>
    %611 = math.tanh %610 : vector<4x256xf32>
    %612 = arith.mulf %605, %611 : vector<4x256xf32>
    %c0_206 = arith.constant 0 : index
    %c0_207 = arith.constant 0 : index
    %613 = vector.load %arg14[%c0_206, %c0_207] : memref<8x256xf32, #tpu.memory_space<vmem>>, vector<4x256xf32>
    tpu.vector_store %arg14[%c0_206, %c0_207], %612 {strides = array<i32>} : memref<8x256xf32, #tpu.memory_space<vmem>>, vector<4x256xf32>,
    %c4_208 = arith.constant 4 : index
    %c0_209 = arith.constant 0 : index
    %614 = vector.load %arg14[%c4_208, %c0_209] : memref<8x256xf32, #tpu.memory_space<vmem>>, vector<4x256xf32>
    tpu.vector_store %arg14[%c4_208, %c0_209], %610 {strides = array<i32>} : memref<8x256xf32, #tpu.memory_space<vmem>>, vector<4x256xf32>,
    %c0_210 = arith.constant 0 : index
    %615 = arith.index_cast %c4_i32 : i32 to index
    %c0_211 = arith.constant 0 : index
    %c0_212 = arith.constant 0 : index
    %616 = vector.load %arg12[%c0_210, %615, %c0_211, %c0_212] : memref<1x8x4x256xf32, #tpu.memory_space<vmem>>, vector<1x1x4x256xf32>
    %617 = vector.shape_cast %616 : vector<1x1x4x256xf32> to vector<4x256xf32>
    %618 = vector.shape_cast %612 : vector<4x256xf32> to vector<1x1x4x256xf32>
    tpu.vector_store %arg12[%c0_210, %615, %c0_211, %c0_212], %618 {strides = array<i32>} : memref<1x8x4x256xf32, #tpu.memory_space<vmem>>, vector<1x1x4x256xf32>,
    %c5_i32 = arith.constant 5 : i32
    %c0_213 = arith.constant 0 : index
    %c0_214 = arith.constant 0 : index
    %619 = vector.load %arg13[%c0_213, %c0_214] : memref<8x256xf32, #tpu.memory_space<vmem>>, vector<8x256xf32>
    %c0_215 = arith.constant 0 : index
    %c0_216 = arith.constant 0 : index
    %620 = vector.load %arg4[%c0_215, %c0_216] : memref<8x256xf32, #tpu.memory_space<vmem>>, vector<8x256xf32>
    %621 = arith.mulf %619, %620 : vector<8x256xf32>
    %c0_217 = arith.constant 0 : index
    %c0_218 = arith.constant 0 : index
    %622 = vector.load %arg5[%c0_217, %c0_218] : memref<8x256xf32, #tpu.memory_space<vmem>>, vector<8x256xf32>
    %623 = arith.addf %621, %622 : vector<8x256xf32>
    %624 = vector.extract_strided_slice %623 {offsets = [0, 0], sizes = [4, 256], strides = [1, 1]} : vector<8x256xf32> to vector<4x256xf32>
    %625 = vector.extract_strided_slice %623 {offsets = [4, 0], sizes = [4, 256], strides = [1, 1]} : vector<8x256xf32> to vector<4x256xf32>
    %626 = vector.extract_strided_slice %624 {offsets = [0, 239], sizes = [4, 17], strides = [1, 1]} : vector<4x256xf32> to vector<4x17xf32>
    %627 = vector.extract_strided_slice %624 {offsets = [0, 0], sizes = [4, 239], strides = [1, 1]} : vector<4x256xf32> to vector<4x239xf32>
    %628 = tpu.concatenate %626, %627 in 1 : vector<4x17xf32>, vector<4x239xf32> -> vector<4x256xf32>
    %629 = vector.extract_strided_slice %624 {offsets = [0, 240], sizes = [4, 16], strides = [1, 1]} : vector<4x256xf32> to vector<4x16xf32>
    %630 = vector.extract_strided_slice %624 {offsets = [0, 0], sizes = [4, 240], strides = [1, 1]} : vector<4x256xf32> to vector<4x240xf32>
    %631 = tpu.concatenate %629, %630 in 1 : vector<4x16xf32>, vector<4x240xf32> -> vector<4x256xf32>
    %632 = vector.extract_strided_slice %624 {offsets = [0, 241], sizes = [4, 15], strides = [1, 1]} : vector<4x256xf32> to vector<4x15xf32>
    %633 = vector.extract_strided_slice %624 {offsets = [0, 0], sizes = [4, 241], strides = [1, 1]} : vector<4x256xf32> to vector<4x241xf32>
    %634 = tpu.concatenate %632, %633 in 1 : vector<4x15xf32>, vector<4x241xf32> -> vector<4x256xf32>
    %635 = vector.extract_strided_slice %624 {offsets = [0, 255], sizes = [4, 1], strides = [1, 1]} : vector<4x256xf32> to vector<4x1xf32>
    %636 = vector.extract_strided_slice %624 {offsets = [0, 0], sizes = [4, 255], strides = [1, 1]} : vector<4x256xf32> to vector<4x255xf32>
    %637 = tpu.concatenate %635, %636 in 1 : vector<4x1xf32>, vector<4x255xf32> -> vector<4x256xf32>
    %638 = vector.extract_strided_slice %624 {offsets = [0, 1], sizes = [4, 255], strides = [1, 1]} : vector<4x256xf32> to vector<4x255xf32>
    %639 = vector.extract_strided_slice %624 {offsets = [0, 0], sizes = [4, 1], strides = [1, 1]} : vector<4x256xf32> to vector<4x1xf32>
    %640 = tpu.concatenate %638, %639 in 1 : vector<4x255xf32>, vector<4x1xf32> -> vector<4x256xf32>
    %641 = vector.extract_strided_slice %624 {offsets = [0, 15], sizes = [4, 241], strides = [1, 1]} : vector<4x256xf32> to vector<4x241xf32>
    %642 = vector.extract_strided_slice %624 {offsets = [0, 0], sizes = [4, 15], strides = [1, 1]} : vector<4x256xf32> to vector<4x15xf32>
    %643 = tpu.concatenate %641, %642 in 1 : vector<4x241xf32>, vector<4x15xf32> -> vector<4x256xf32>
    %644 = vector.extract_strided_slice %624 {offsets = [0, 16], sizes = [4, 240], strides = [1, 1]} : vector<4x256xf32> to vector<4x240xf32>
    %645 = vector.extract_strided_slice %624 {offsets = [0, 0], sizes = [4, 16], strides = [1, 1]} : vector<4x256xf32> to vector<4x16xf32>
    %646 = tpu.concatenate %644, %645 in 1 : vector<4x240xf32>, vector<4x16xf32> -> vector<4x256xf32>
    %647 = vector.extract_strided_slice %624 {offsets = [0, 17], sizes = [4, 239], strides = [1, 1]} : vector<4x256xf32> to vector<4x239xf32>
    %648 = vector.extract_strided_slice %624 {offsets = [0, 0], sizes = [4, 17], strides = [1, 1]} : vector<4x256xf32> to vector<4x17xf32>
    %649 = tpu.concatenate %647, %648 in 1 : vector<4x239xf32>, vector<4x17xf32> -> vector<4x256xf32>
    %650 = tpu.concatenate %628, %631, %634, %637, %624, %640, %643, %646, %649 in 0 : vector<4x256xf32>, vector<4x256xf32>, vector<4x256xf32>, vector<4x256xf32>, vector<4x256xf32>, vector<4x256xf32>, vector<4x256xf32>, vector<4x256xf32>, vector<4x256xf32> -> vector<36x256xf32>
    %c0_219 = arith.constant 0 : index
    %c0_220 = arith.constant 0 : index
    %651 = vector.load %arg6[%c0_219, %c0_220] : memref<36x256xf32, #tpu.memory_space<vmem>>, vector<36x256xf32>
    %652 = arith.mulf %650, %651 : vector<36x256xf32>
    %c0_221 = arith.constant 0 : index
    %c0_222 = arith.constant 0 : index
    %653 = vector.load %arg2[%c0_221, %c0_222] : memref<16x36xbf16, #tpu.memory_space<vmem>>, vector<16x36xbf16>
    %654 = arith.truncf %652 : vector<36x256xf32> to vector<36x256xbf16>
    %cst_223 = arith.constant dense<0.000000e+00> : vector<16x256xf32>
    %655 = tpu.matmul %653, %654, %cst_223 {dimension_numbers = #tpu.dot_dimension_numbers<[1], [0], [0], [1], [0, 0, 1, 1], [], []>} : vector<16x36xbf16>, vector<36x256xbf16>, vector<16x256xf32> -> vector<16x256xf32>
    %c0_224 = arith.constant 0 : index
    %c0_225 = arith.constant 0 : index
    %656 = vector.load %arg3[%c0_224, %c0_225] : memref<16x256xf32, #tpu.memory_space<vmem>>, vector<16x256xf32>
    %657 = arith.addf %655, %656 : vector<16x256xf32>
    %c0_226 = arith.constant 0 : index
    %658 = arith.index_cast %c5_i32 : i32 to index
    %c0_227 = arith.constant 0 : index
    %c0_228 = arith.constant 0 : index
    %659 = vector.load %arg1[%c0_226, %658, %c0_227, %c0_228] : memref<1x8x16x256xf32, #tpu.memory_space<vmem>>, vector<1x1x16x256xf32>
    %660 = vector.shape_cast %659 : vector<1x1x16x256xf32> to vector<16x256xf32>
    %661 = arith.addf %657, %660 : vector<16x256xf32>
    %662 = vector.extract_strided_slice %661 {offsets = [0, 0], sizes = [12, 256], strides = [1, 1]} : vector<16x256xf32> to vector<12x256xf32>
    %663 = arith.negf %662 : vector<12x256xf32>
    %664 = math.exp %663 : vector<12x256xf32>
    %cst_229 = arith.constant 1.000000e+00 : f32
    %665 = vector.broadcast %cst_229 : f32 to vector<12x256xf32>
    %666 = arith.addf %665, %664 : vector<12x256xf32>
    %667 = arith.divf %665, %666 : vector<12x256xf32>
    %668 = vector.extract_strided_slice %667 {offsets = [0, 0], sizes = [4, 256], strides = [1, 1]} : vector<12x256xf32> to vector<4x256xf32>
    %669 = vector.extract_strided_slice %667 {offsets = [4, 0], sizes = [4, 256], strides = [1, 1]} : vector<12x256xf32> to vector<4x256xf32>
    %670 = vector.extract_strided_slice %667 {offsets = [8, 0], sizes = [4, 256], strides = [1, 1]} : vector<12x256xf32> to vector<4x256xf32>
    %671 = vector.extract_strided_slice %661 {offsets = [12, 0], sizes = [4, 256], strides = [1, 1]} : vector<16x256xf32> to vector<4x256xf32>
    %672 = math.tanh %671 : vector<4x256xf32>
    %673 = arith.mulf %669, %625 : vector<4x256xf32>
    %674 = arith.mulf %668, %672 : vector<4x256xf32>
    %675 = arith.addf %673, %674 : vector<4x256xf32>
    %676 = math.tanh %675 : vector<4x256xf32>
    %677 = arith.mulf %670, %676 : vector<4x256xf32>
    %c0_230 = arith.constant 0 : index
    %c0_231 = arith.constant 0 : index
    %678 = vector.load %arg13[%c0_230, %c0_231] : memref<8x256xf32, #tpu.memory_space<vmem>>, vector<4x256xf32>
    tpu.vector_store %arg13[%c0_230, %c0_231], %677 {strides = array<i32>} : memref<8x256xf32, #tpu.memory_space<vmem>>, vector<4x256xf32>,
    %c4_232 = arith.constant 4 : index
    %c0_233 = arith.constant 0 : index
    %679 = vector.load %arg13[%c4_232, %c0_233] : memref<8x256xf32, #tpu.memory_space<vmem>>, vector<4x256xf32>
    tpu.vector_store %arg13[%c4_232, %c0_233], %675 {strides = array<i32>} : memref<8x256xf32, #tpu.memory_space<vmem>>, vector<4x256xf32>,
    %c0_234 = arith.constant 0 : index
    %c0_235 = arith.constant 0 : index
    %680 = vector.load %arg14[%c0_234, %c0_235] : memref<8x256xf32, #tpu.memory_space<vmem>>, vector<8x256xf32>
    %c0_236 = arith.constant 0 : index
    %c0_237 = arith.constant 0 : index
    %681 = vector.load %arg9[%c0_236, %c0_237] : memref<8x256xf32, #tpu.memory_space<vmem>>, vector<8x256xf32>
    %682 = arith.mulf %680, %681 : vector<8x256xf32>
    %c0_238 = arith.constant 0 : index
    %c0_239 = arith.constant 0 : index
    %683 = vector.load %arg10[%c0_238, %c0_239] : memref<8x256xf32, #tpu.memory_space<vmem>>, vector<8x256xf32>
    %684 = arith.addf %682, %683 : vector<8x256xf32>
    %685 = vector.extract_strided_slice %684 {offsets = [0, 0], sizes = [4, 256], strides = [1, 1]} : vector<8x256xf32> to vector<4x256xf32>
    %686 = vector.extract_strided_slice %684 {offsets = [4, 0], sizes = [4, 256], strides = [1, 1]} : vector<8x256xf32> to vector<4x256xf32>
    %687 = tpu.concatenate %677, %685 in 0 : vector<4x256xf32>, vector<4x256xf32> -> vector<8x256xf32>
    %688 = vector.extract_strided_slice %687 {offsets = [0, 239], sizes = [8, 17], strides = [1, 1]} : vector<8x256xf32> to vector<8x17xf32>
    %689 = vector.extract_strided_slice %687 {offsets = [0, 0], sizes = [8, 239], strides = [1, 1]} : vector<8x256xf32> to vector<8x239xf32>
    %690 = tpu.concatenate %688, %689 in 1 : vector<8x17xf32>, vector<8x239xf32> -> vector<8x256xf32>
    %691 = vector.extract_strided_slice %687 {offsets = [0, 240], sizes = [8, 16], strides = [1, 1]} : vector<8x256xf32> to vector<8x16xf32>
    %692 = vector.extract_strided_slice %687 {offsets = [0, 0], sizes = [8, 240], strides = [1, 1]} : vector<8x256xf32> to vector<8x240xf32>
    %693 = tpu.concatenate %691, %692 in 1 : vector<8x16xf32>, vector<8x240xf32> -> vector<8x256xf32>
    %694 = vector.extract_strided_slice %687 {offsets = [0, 241], sizes = [8, 15], strides = [1, 1]} : vector<8x256xf32> to vector<8x15xf32>
    %695 = vector.extract_strided_slice %687 {offsets = [0, 0], sizes = [8, 241], strides = [1, 1]} : vector<8x256xf32> to vector<8x241xf32>
    %696 = tpu.concatenate %694, %695 in 1 : vector<8x15xf32>, vector<8x241xf32> -> vector<8x256xf32>
    %697 = vector.extract_strided_slice %687 {offsets = [0, 255], sizes = [8, 1], strides = [1, 1]} : vector<8x256xf32> to vector<8x1xf32>
    %698 = vector.extract_strided_slice %687 {offsets = [0, 0], sizes = [8, 255], strides = [1, 1]} : vector<8x256xf32> to vector<8x255xf32>
    %699 = tpu.concatenate %697, %698 in 1 : vector<8x1xf32>, vector<8x255xf32> -> vector<8x256xf32>
    %700 = vector.extract_strided_slice %687 {offsets = [0, 1], sizes = [8, 255], strides = [1, 1]} : vector<8x256xf32> to vector<8x255xf32>
    %701 = vector.extract_strided_slice %687 {offsets = [0, 0], sizes = [8, 1], strides = [1, 1]} : vector<8x256xf32> to vector<8x1xf32>
    %702 = tpu.concatenate %700, %701 in 1 : vector<8x255xf32>, vector<8x1xf32> -> vector<8x256xf32>
    %703 = vector.extract_strided_slice %687 {offsets = [0, 15], sizes = [8, 241], strides = [1, 1]} : vector<8x256xf32> to vector<8x241xf32>
    %704 = vector.extract_strided_slice %687 {offsets = [0, 0], sizes = [8, 15], strides = [1, 1]} : vector<8x256xf32> to vector<8x15xf32>
    %705 = tpu.concatenate %703, %704 in 1 : vector<8x241xf32>, vector<8x15xf32> -> vector<8x256xf32>
    %706 = vector.extract_strided_slice %687 {offsets = [0, 16], sizes = [8, 240], strides = [1, 1]} : vector<8x256xf32> to vector<8x240xf32>
    %707 = vector.extract_strided_slice %687 {offsets = [0, 0], sizes = [8, 16], strides = [1, 1]} : vector<8x256xf32> to vector<8x16xf32>
    %708 = tpu.concatenate %706, %707 in 1 : vector<8x240xf32>, vector<8x16xf32> -> vector<8x256xf32>
    %709 = vector.extract_strided_slice %687 {offsets = [0, 17], sizes = [8, 239], strides = [1, 1]} : vector<8x256xf32> to vector<8x239xf32>
    %710 = vector.extract_strided_slice %687 {offsets = [0, 0], sizes = [8, 17], strides = [1, 1]} : vector<8x256xf32> to vector<8x17xf32>
    %711 = tpu.concatenate %709, %710 in 1 : vector<8x239xf32>, vector<8x17xf32> -> vector<8x256xf32>
    %712 = tpu.concatenate %690, %693, %696, %699, %687, %702, %705, %708, %711 in 0 : vector<8x256xf32>, vector<8x256xf32>, vector<8x256xf32>, vector<8x256xf32>, vector<8x256xf32>, vector<8x256xf32>, vector<8x256xf32>, vector<8x256xf32>, vector<8x256xf32> -> vector<72x256xf32>
    %c0_240 = arith.constant 0 : index
    %c0_241 = arith.constant 0 : index
    %713 = vector.load %arg11[%c0_240, %c0_241] : memref<72x256xf32, #tpu.memory_space<vmem>>, vector<72x256xf32>
    %714 = arith.mulf %712, %713 : vector<72x256xf32>
    %c0_242 = arith.constant 0 : index
    %c0_243 = arith.constant 0 : index
    %715 = vector.load %arg7[%c0_242, %c0_243] : memref<16x72xbf16, #tpu.memory_space<vmem>>, vector<16x72xbf16>
    %716 = arith.truncf %714 : vector<72x256xf32> to vector<72x256xbf16>
    %cst_244 = arith.constant dense<0.000000e+00> : vector<16x256xf32>
    %717 = tpu.matmul %715, %716, %cst_244 {dimension_numbers = #tpu.dot_dimension_numbers<[1], [0], [0], [1], [0, 0, 1, 1], [], []>} : vector<16x72xbf16>, vector<72x256xbf16>, vector<16x256xf32> -> vector<16x256xf32>
    %c0_245 = arith.constant 0 : index
    %c0_246 = arith.constant 0 : index
    %718 = vector.load %arg8[%c0_245, %c0_246] : memref<16x256xf32, #tpu.memory_space<vmem>>, vector<16x256xf32>
    %719 = arith.addf %717, %718 : vector<16x256xf32>
    %720 = vector.extract_strided_slice %719 {offsets = [0, 0], sizes = [12, 256], strides = [1, 1]} : vector<16x256xf32> to vector<12x256xf32>
    %721 = arith.negf %720 : vector<12x256xf32>
    %722 = math.exp %721 : vector<12x256xf32>
    %cst_247 = arith.constant 1.000000e+00 : f32
    %723 = vector.broadcast %cst_247 : f32 to vector<12x256xf32>
    %724 = arith.addf %723, %722 : vector<12x256xf32>
    %725 = arith.divf %723, %724 : vector<12x256xf32>
    %726 = vector.extract_strided_slice %725 {offsets = [0, 0], sizes = [4, 256], strides = [1, 1]} : vector<12x256xf32> to vector<4x256xf32>
    %727 = vector.extract_strided_slice %725 {offsets = [4, 0], sizes = [4, 256], strides = [1, 1]} : vector<12x256xf32> to vector<4x256xf32>
    %728 = vector.extract_strided_slice %725 {offsets = [8, 0], sizes = [4, 256], strides = [1, 1]} : vector<12x256xf32> to vector<4x256xf32>
    %729 = vector.extract_strided_slice %719 {offsets = [12, 0], sizes = [4, 256], strides = [1, 1]} : vector<16x256xf32> to vector<4x256xf32>
    %730 = math.tanh %729 : vector<4x256xf32>
    %731 = arith.mulf %727, %686 : vector<4x256xf32>
    %732 = arith.mulf %726, %730 : vector<4x256xf32>
    %733 = arith.addf %731, %732 : vector<4x256xf32>
    %734 = math.tanh %733 : vector<4x256xf32>
    %735 = arith.mulf %728, %734 : vector<4x256xf32>
    %c0_248 = arith.constant 0 : index
    %c0_249 = arith.constant 0 : index
    %736 = vector.load %arg14[%c0_248, %c0_249] : memref<8x256xf32, #tpu.memory_space<vmem>>, vector<4x256xf32>
    tpu.vector_store %arg14[%c0_248, %c0_249], %735 {strides = array<i32>} : memref<8x256xf32, #tpu.memory_space<vmem>>, vector<4x256xf32>,
    %c4_250 = arith.constant 4 : index
    %c0_251 = arith.constant 0 : index
    %737 = vector.load %arg14[%c4_250, %c0_251] : memref<8x256xf32, #tpu.memory_space<vmem>>, vector<4x256xf32>
    tpu.vector_store %arg14[%c4_250, %c0_251], %733 {strides = array<i32>} : memref<8x256xf32, #tpu.memory_space<vmem>>, vector<4x256xf32>,
    %c0_252 = arith.constant 0 : index
    %738 = arith.index_cast %c5_i32 : i32 to index
    %c0_253 = arith.constant 0 : index
    %c0_254 = arith.constant 0 : index
    %739 = vector.load %arg12[%c0_252, %738, %c0_253, %c0_254] : memref<1x8x4x256xf32, #tpu.memory_space<vmem>>, vector<1x1x4x256xf32>
    %740 = vector.shape_cast %739 : vector<1x1x4x256xf32> to vector<4x256xf32>
    %741 = vector.shape_cast %735 : vector<4x256xf32> to vector<1x1x4x256xf32>
    tpu.vector_store %arg12[%c0_252, %738, %c0_253, %c0_254], %741 {strides = array<i32>} : memref<1x8x4x256xf32, #tpu.memory_space<vmem>>, vector<1x1x4x256xf32>,
    %c6_i32 = arith.constant 6 : i32
    %c0_255 = arith.constant 0 : index
    %c0_256 = arith.constant 0 : index
    %742 = vector.load %arg13[%c0_255, %c0_256] : memref<8x256xf32, #tpu.memory_space<vmem>>, vector<8x256xf32>
    %c0_257 = arith.constant 0 : index
    %c0_258 = arith.constant 0 : index
    %743 = vector.load %arg4[%c0_257, %c0_258] : memref<8x256xf32, #tpu.memory_space<vmem>>, vector<8x256xf32>
    %744 = arith.mulf %742, %743 : vector<8x256xf32>
    %c0_259 = arith.constant 0 : index
    %c0_260 = arith.constant 0 : index
    %745 = vector.load %arg5[%c0_259, %c0_260] : memref<8x256xf32, #tpu.memory_space<vmem>>, vector<8x256xf32>
    %746 = arith.addf %744, %745 : vector<8x256xf32>
    %747 = vector.extract_strided_slice %746 {offsets = [0, 0], sizes = [4, 256], strides = [1, 1]} : vector<8x256xf32> to vector<4x256xf32>
    %748 = vector.extract_strided_slice %746 {offsets = [4, 0], sizes = [4, 256], strides = [1, 1]} : vector<8x256xf32> to vector<4x256xf32>
    %749 = vector.extract_strided_slice %747 {offsets = [0, 239], sizes = [4, 17], strides = [1, 1]} : vector<4x256xf32> to vector<4x17xf32>
    %750 = vector.extract_strided_slice %747 {offsets = [0, 0], sizes = [4, 239], strides = [1, 1]} : vector<4x256xf32> to vector<4x239xf32>
    %751 = tpu.concatenate %749, %750 in 1 : vector<4x17xf32>, vector<4x239xf32> -> vector<4x256xf32>
    %752 = vector.extract_strided_slice %747 {offsets = [0, 240], sizes = [4, 16], strides = [1, 1]} : vector<4x256xf32> to vector<4x16xf32>
    %753 = vector.extract_strided_slice %747 {offsets = [0, 0], sizes = [4, 240], strides = [1, 1]} : vector<4x256xf32> to vector<4x240xf32>
    %754 = tpu.concatenate %752, %753 in 1 : vector<4x16xf32>, vector<4x240xf32> -> vector<4x256xf32>
    %755 = vector.extract_strided_slice %747 {offsets = [0, 241], sizes = [4, 15], strides = [1, 1]} : vector<4x256xf32> to vector<4x15xf32>
    %756 = vector.extract_strided_slice %747 {offsets = [0, 0], sizes = [4, 241], strides = [1, 1]} : vector<4x256xf32> to vector<4x241xf32>
    %757 = tpu.concatenate %755, %756 in 1 : vector<4x15xf32>, vector<4x241xf32> -> vector<4x256xf32>
    %758 = vector.extract_strided_slice %747 {offsets = [0, 255], sizes = [4, 1], strides = [1, 1]} : vector<4x256xf32> to vector<4x1xf32>
    %759 = vector.extract_strided_slice %747 {offsets = [0, 0], sizes = [4, 255], strides = [1, 1]} : vector<4x256xf32> to vector<4x255xf32>
    %760 = tpu.concatenate %758, %759 in 1 : vector<4x1xf32>, vector<4x255xf32> -> vector<4x256xf32>
    %761 = vector.extract_strided_slice %747 {offsets = [0, 1], sizes = [4, 255], strides = [1, 1]} : vector<4x256xf32> to vector<4x255xf32>
    %762 = vector.extract_strided_slice %747 {offsets = [0, 0], sizes = [4, 1], strides = [1, 1]} : vector<4x256xf32> to vector<4x1xf32>
    %763 = tpu.concatenate %761, %762 in 1 : vector<4x255xf32>, vector<4x1xf32> -> vector<4x256xf32>
    %764 = vector.extract_strided_slice %747 {offsets = [0, 15], sizes = [4, 241], strides = [1, 1]} : vector<4x256xf32> to vector<4x241xf32>
    %765 = vector.extract_strided_slice %747 {offsets = [0, 0], sizes = [4, 15], strides = [1, 1]} : vector<4x256xf32> to vector<4x15xf32>
    %766 = tpu.concatenate %764, %765 in 1 : vector<4x241xf32>, vector<4x15xf32> -> vector<4x256xf32>
    %767 = vector.extract_strided_slice %747 {offsets = [0, 16], sizes = [4, 240], strides = [1, 1]} : vector<4x256xf32> to vector<4x240xf32>
    %768 = vector.extract_strided_slice %747 {offsets = [0, 0], sizes = [4, 16], strides = [1, 1]} : vector<4x256xf32> to vector<4x16xf32>
    %769 = tpu.concatenate %767, %768 in 1 : vector<4x240xf32>, vector<4x16xf32> -> vector<4x256xf32>
    %770 = vector.extract_strided_slice %747 {offsets = [0, 17], sizes = [4, 239], strides = [1, 1]} : vector<4x256xf32> to vector<4x239xf32>
    %771 = vector.extract_strided_slice %747 {offsets = [0, 0], sizes = [4, 17], strides = [1, 1]} : vector<4x256xf32> to vector<4x17xf32>
    %772 = tpu.concatenate %770, %771 in 1 : vector<4x239xf32>, vector<4x17xf32> -> vector<4x256xf32>
    %773 = tpu.concatenate %751, %754, %757, %760, %747, %763, %766, %769, %772 in 0 : vector<4x256xf32>, vector<4x256xf32>, vector<4x256xf32>, vector<4x256xf32>, vector<4x256xf32>, vector<4x256xf32>, vector<4x256xf32>, vector<4x256xf32>, vector<4x256xf32> -> vector<36x256xf32>
    %c0_261 = arith.constant 0 : index
    %c0_262 = arith.constant 0 : index
    %774 = vector.load %arg6[%c0_261, %c0_262] : memref<36x256xf32, #tpu.memory_space<vmem>>, vector<36x256xf32>
    %775 = arith.mulf %773, %774 : vector<36x256xf32>
    %c0_263 = arith.constant 0 : index
    %c0_264 = arith.constant 0 : index
    %776 = vector.load %arg2[%c0_263, %c0_264] : memref<16x36xbf16, #tpu.memory_space<vmem>>, vector<16x36xbf16>
    %777 = arith.truncf %775 : vector<36x256xf32> to vector<36x256xbf16>
    %cst_265 = arith.constant dense<0.000000e+00> : vector<16x256xf32>
    %778 = tpu.matmul %776, %777, %cst_265 {dimension_numbers = #tpu.dot_dimension_numbers<[1], [0], [0], [1], [0, 0, 1, 1], [], []>} : vector<16x36xbf16>, vector<36x256xbf16>, vector<16x256xf32> -> vector<16x256xf32>
    %c0_266 = arith.constant 0 : index
    %c0_267 = arith.constant 0 : index
    %779 = vector.load %arg3[%c0_266, %c0_267] : memref<16x256xf32, #tpu.memory_space<vmem>>, vector<16x256xf32>
    %780 = arith.addf %778, %779 : vector<16x256xf32>
    %c0_268 = arith.constant 0 : index
    %781 = arith.index_cast %c6_i32 : i32 to index
    %c0_269 = arith.constant 0 : index
    %c0_270 = arith.constant 0 : index
    %782 = vector.load %arg1[%c0_268, %781, %c0_269, %c0_270] : memref<1x8x16x256xf32, #tpu.memory_space<vmem>>, vector<1x1x16x256xf32>
    %783 = vector.shape_cast %782 : vector<1x1x16x256xf32> to vector<16x256xf32>
    %784 = arith.addf %780, %783 : vector<16x256xf32>
    %785 = vector.extract_strided_slice %784 {offsets = [0, 0], sizes = [12, 256], strides = [1, 1]} : vector<16x256xf32> to vector<12x256xf32>
    %786 = arith.negf %785 : vector<12x256xf32>
    %787 = math.exp %786 : vector<12x256xf32>
    %cst_271 = arith.constant 1.000000e+00 : f32
    %788 = vector.broadcast %cst_271 : f32 to vector<12x256xf32>
    %789 = arith.addf %788, %787 : vector<12x256xf32>
    %790 = arith.divf %788, %789 : vector<12x256xf32>
    %791 = vector.extract_strided_slice %790 {offsets = [0, 0], sizes = [4, 256], strides = [1, 1]} : vector<12x256xf32> to vector<4x256xf32>
    %792 = vector.extract_strided_slice %790 {offsets = [4, 0], sizes = [4, 256], strides = [1, 1]} : vector<12x256xf32> to vector<4x256xf32>
    %793 = vector.extract_strided_slice %790 {offsets = [8, 0], sizes = [4, 256], strides = [1, 1]} : vector<12x256xf32> to vector<4x256xf32>
    %794 = vector.extract_strided_slice %784 {offsets = [12, 0], sizes = [4, 256], strides = [1, 1]} : vector<16x256xf32> to vector<4x256xf32>
    %795 = math.tanh %794 : vector<4x256xf32>
    %796 = arith.mulf %792, %748 : vector<4x256xf32>
    %797 = arith.mulf %791, %795 : vector<4x256xf32>
    %798 = arith.addf %796, %797 : vector<4x256xf32>
    %799 = math.tanh %798 : vector<4x256xf32>
    %800 = arith.mulf %793, %799 : vector<4x256xf32>
    %c0_272 = arith.constant 0 : index
    %c0_273 = arith.constant 0 : index
    %801 = vector.load %arg13[%c0_272, %c0_273] : memref<8x256xf32, #tpu.memory_space<vmem>>, vector<4x256xf32>
    tpu.vector_store %arg13[%c0_272, %c0_273], %800 {strides = array<i32>} : memref<8x256xf32, #tpu.memory_space<vmem>>, vector<4x256xf32>,
    %c4_274 = arith.constant 4 : index
    %c0_275 = arith.constant 0 : index
    %802 = vector.load %arg13[%c4_274, %c0_275] : memref<8x256xf32, #tpu.memory_space<vmem>>, vector<4x256xf32>
    tpu.vector_store %arg13[%c4_274, %c0_275], %798 {strides = array<i32>} : memref<8x256xf32, #tpu.memory_space<vmem>>, vector<4x256xf32>,
    %c0_276 = arith.constant 0 : index
    %c0_277 = arith.constant 0 : index
    %803 = vector.load %arg14[%c0_276, %c0_277] : memref<8x256xf32, #tpu.memory_space<vmem>>, vector<8x256xf32>
    %c0_278 = arith.constant 0 : index
    %c0_279 = arith.constant 0 : index
    %804 = vector.load %arg9[%c0_278, %c0_279] : memref<8x256xf32, #tpu.memory_space<vmem>>, vector<8x256xf32>
    %805 = arith.mulf %803, %804 : vector<8x256xf32>
    %c0_280 = arith.constant 0 : index
    %c0_281 = arith.constant 0 : index
    %806 = vector.load %arg10[%c0_280, %c0_281] : memref<8x256xf32, #tpu.memory_space<vmem>>, vector<8x256xf32>
    %807 = arith.addf %805, %806 : vector<8x256xf32>
    %808 = vector.extract_strided_slice %807 {offsets = [0, 0], sizes = [4, 256], strides = [1, 1]} : vector<8x256xf32> to vector<4x256xf32>
    %809 = vector.extract_strided_slice %807 {offsets = [4, 0], sizes = [4, 256], strides = [1, 1]} : vector<8x256xf32> to vector<4x256xf32>
    %810 = tpu.concatenate %800, %808 in 0 : vector<4x256xf32>, vector<4x256xf32> -> vector<8x256xf32>
    %811 = vector.extract_strided_slice %810 {offsets = [0, 239], sizes = [8, 17], strides = [1, 1]} : vector<8x256xf32> to vector<8x17xf32>
    %812 = vector.extract_strided_slice %810 {offsets = [0, 0], sizes = [8, 239], strides = [1, 1]} : vector<8x256xf32> to vector<8x239xf32>
    %813 = tpu.concatenate %811, %812 in 1 : vector<8x17xf32>, vector<8x239xf32> -> vector<8x256xf32>
    %814 = vector.extract_strided_slice %810 {offsets = [0, 240], sizes = [8, 16], strides = [1, 1]} : vector<8x256xf32> to vector<8x16xf32>
    %815 = vector.extract_strided_slice %810 {offsets = [0, 0], sizes = [8, 240], strides = [1, 1]} : vector<8x256xf32> to vector<8x240xf32>
    %816 = tpu.concatenate %814, %815 in 1 : vector<8x16xf32>, vector<8x240xf32> -> vector<8x256xf32>
    %817 = vector.extract_strided_slice %810 {offsets = [0, 241], sizes = [8, 15], strides = [1, 1]} : vector<8x256xf32> to vector<8x15xf32>
    %818 = vector.extract_strided_slice %810 {offsets = [0, 0], sizes = [8, 241], strides = [1, 1]} : vector<8x256xf32> to vector<8x241xf32>
    %819 = tpu.concatenate %817, %818 in 1 : vector<8x15xf32>, vector<8x241xf32> -> vector<8x256xf32>
    %820 = vector.extract_strided_slice %810 {offsets = [0, 255], sizes = [8, 1], strides = [1, 1]} : vector<8x256xf32> to vector<8x1xf32>
    %821 = vector.extract_strided_slice %810 {offsets = [0, 0], sizes = [8, 255], strides = [1, 1]} : vector<8x256xf32> to vector<8x255xf32>
    %822 = tpu.concatenate %820, %821 in 1 : vector<8x1xf32>, vector<8x255xf32> -> vector<8x256xf32>
    %823 = vector.extract_strided_slice %810 {offsets = [0, 1], sizes = [8, 255], strides = [1, 1]} : vector<8x256xf32> to vector<8x255xf32>
    %824 = vector.extract_strided_slice %810 {offsets = [0, 0], sizes = [8, 1], strides = [1, 1]} : vector<8x256xf32> to vector<8x1xf32>
    %825 = tpu.concatenate %823, %824 in 1 : vector<8x255xf32>, vector<8x1xf32> -> vector<8x256xf32>
    %826 = vector.extract_strided_slice %810 {offsets = [0, 15], sizes = [8, 241], strides = [1, 1]} : vector<8x256xf32> to vector<8x241xf32>
    %827 = vector.extract_strided_slice %810 {offsets = [0, 0], sizes = [8, 15], strides = [1, 1]} : vector<8x256xf32> to vector<8x15xf32>
    %828 = tpu.concatenate %826, %827 in 1 : vector<8x241xf32>, vector<8x15xf32> -> vector<8x256xf32>
    %829 = vector.extract_strided_slice %810 {offsets = [0, 16], sizes = [8, 240], strides = [1, 1]} : vector<8x256xf32> to vector<8x240xf32>
    %830 = vector.extract_strided_slice %810 {offsets = [0, 0], sizes = [8, 16], strides = [1, 1]} : vector<8x256xf32> to vector<8x16xf32>
    %831 = tpu.concatenate %829, %830 in 1 : vector<8x240xf32>, vector<8x16xf32> -> vector<8x256xf32>
    %832 = vector.extract_strided_slice %810 {offsets = [0, 17], sizes = [8, 239], strides = [1, 1]} : vector<8x256xf32> to vector<8x239xf32>
    %833 = vector.extract_strided_slice %810 {offsets = [0, 0], sizes = [8, 17], strides = [1, 1]} : vector<8x256xf32> to vector<8x17xf32>
    %834 = tpu.concatenate %832, %833 in 1 : vector<8x239xf32>, vector<8x17xf32> -> vector<8x256xf32>
    %835 = tpu.concatenate %813, %816, %819, %822, %810, %825, %828, %831, %834 in 0 : vector<8x256xf32>, vector<8x256xf32>, vector<8x256xf32>, vector<8x256xf32>, vector<8x256xf32>, vector<8x256xf32>, vector<8x256xf32>, vector<8x256xf32>, vector<8x256xf32> -> vector<72x256xf32>
    %c0_282 = arith.constant 0 : index
    %c0_283 = arith.constant 0 : index
    %836 = vector.load %arg11[%c0_282, %c0_283] : memref<72x256xf32, #tpu.memory_space<vmem>>, vector<72x256xf32>
    %837 = arith.mulf %835, %836 : vector<72x256xf32>
    %c0_284 = arith.constant 0 : index
    %c0_285 = arith.constant 0 : index
    %838 = vector.load %arg7[%c0_284, %c0_285] : memref<16x72xbf16, #tpu.memory_space<vmem>>, vector<16x72xbf16>
    %839 = arith.truncf %837 : vector<72x256xf32> to vector<72x256xbf16>
    %cst_286 = arith.constant dense<0.000000e+00> : vector<16x256xf32>
    %840 = tpu.matmul %838, %839, %cst_286 {dimension_numbers = #tpu.dot_dimension_numbers<[1], [0], [0], [1], [0, 0, 1, 1], [], []>} : vector<16x72xbf16>, vector<72x256xbf16>, vector<16x256xf32> -> vector<16x256xf32>
    %c0_287 = arith.constant 0 : index
    %c0_288 = arith.constant 0 : index
    %841 = vector.load %arg8[%c0_287, %c0_288] : memref<16x256xf32, #tpu.memory_space<vmem>>, vector<16x256xf32>
    %842 = arith.addf %840, %841 : vector<16x256xf32>
    %843 = vector.extract_strided_slice %842 {offsets = [0, 0], sizes = [12, 256], strides = [1, 1]} : vector<16x256xf32> to vector<12x256xf32>
    %844 = arith.negf %843 : vector<12x256xf32>
    %845 = math.exp %844 : vector<12x256xf32>
    %cst_289 = arith.constant 1.000000e+00 : f32
    %846 = vector.broadcast %cst_289 : f32 to vector<12x256xf32>
    %847 = arith.addf %846, %845 : vector<12x256xf32>
    %848 = arith.divf %846, %847 : vector<12x256xf32>
    %849 = vector.extract_strided_slice %848 {offsets = [0, 0], sizes = [4, 256], strides = [1, 1]} : vector<12x256xf32> to vector<4x256xf32>
    %850 = vector.extract_strided_slice %848 {offsets = [4, 0], sizes = [4, 256], strides = [1, 1]} : vector<12x256xf32> to vector<4x256xf32>
    %851 = vector.extract_strided_slice %848 {offsets = [8, 0], sizes = [4, 256], strides = [1, 1]} : vector<12x256xf32> to vector<4x256xf32>
    %852 = vector.extract_strided_slice %842 {offsets = [12, 0], sizes = [4, 256], strides = [1, 1]} : vector<16x256xf32> to vector<4x256xf32>
    %853 = math.tanh %852 : vector<4x256xf32>
    %854 = arith.mulf %850, %809 : vector<4x256xf32>
    %855 = arith.mulf %849, %853 : vector<4x256xf32>
    %856 = arith.addf %854, %855 : vector<4x256xf32>
    %857 = math.tanh %856 : vector<4x256xf32>
    %858 = arith.mulf %851, %857 : vector<4x256xf32>
    %c0_290 = arith.constant 0 : index
    %c0_291 = arith.constant 0 : index
    %859 = vector.load %arg14[%c0_290, %c0_291] : memref<8x256xf32, #tpu.memory_space<vmem>>, vector<4x256xf32>
    tpu.vector_store %arg14[%c0_290, %c0_291], %858 {strides = array<i32>} : memref<8x256xf32, #tpu.memory_space<vmem>>, vector<4x256xf32>,
    %c4_292 = arith.constant 4 : index
    %c0_293 = arith.constant 0 : index
    %860 = vector.load %arg14[%c4_292, %c0_293] : memref<8x256xf32, #tpu.memory_space<vmem>>, vector<4x256xf32>
    tpu.vector_store %arg14[%c4_292, %c0_293], %856 {strides = array<i32>} : memref<8x256xf32, #tpu.memory_space<vmem>>, vector<4x256xf32>,
    %c0_294 = arith.constant 0 : index
    %861 = arith.index_cast %c6_i32 : i32 to index
    %c0_295 = arith.constant 0 : index
    %c0_296 = arith.constant 0 : index
    %862 = vector.load %arg12[%c0_294, %861, %c0_295, %c0_296] : memref<1x8x4x256xf32, #tpu.memory_space<vmem>>, vector<1x1x4x256xf32>
    %863 = vector.shape_cast %862 : vector<1x1x4x256xf32> to vector<4x256xf32>
    %864 = vector.shape_cast %858 : vector<4x256xf32> to vector<1x1x4x256xf32>
    tpu.vector_store %arg12[%c0_294, %861, %c0_295, %c0_296], %864 {strides = array<i32>} : memref<1x8x4x256xf32, #tpu.memory_space<vmem>>, vector<1x1x4x256xf32>,
    %c7_i32 = arith.constant 7 : i32
    %c0_297 = arith.constant 0 : index
    %c0_298 = arith.constant 0 : index
    %865 = vector.load %arg13[%c0_297, %c0_298] : memref<8x256xf32, #tpu.memory_space<vmem>>, vector<8x256xf32>
    %c0_299 = arith.constant 0 : index
    %c0_300 = arith.constant 0 : index
    %866 = vector.load %arg4[%c0_299, %c0_300] : memref<8x256xf32, #tpu.memory_space<vmem>>, vector<8x256xf32>
    %867 = arith.mulf %865, %866 : vector<8x256xf32>
    %c0_301 = arith.constant 0 : index
    %c0_302 = arith.constant 0 : index
    %868 = vector.load %arg5[%c0_301, %c0_302] : memref<8x256xf32, #tpu.memory_space<vmem>>, vector<8x256xf32>
    %869 = arith.addf %867, %868 : vector<8x256xf32>
    %870 = vector.extract_strided_slice %869 {offsets = [0, 0], sizes = [4, 256], strides = [1, 1]} : vector<8x256xf32> to vector<4x256xf32>
    %871 = vector.extract_strided_slice %869 {offsets = [4, 0], sizes = [4, 256], strides = [1, 1]} : vector<8x256xf32> to vector<4x256xf32>
    %872 = vector.extract_strided_slice %870 {offsets = [0, 239], sizes = [4, 17], strides = [1, 1]} : vector<4x256xf32> to vector<4x17xf32>
    %873 = vector.extract_strided_slice %870 {offsets = [0, 0], sizes = [4, 239], strides = [1, 1]} : vector<4x256xf32> to vector<4x239xf32>
    %874 = tpu.concatenate %872, %873 in 1 : vector<4x17xf32>, vector<4x239xf32> -> vector<4x256xf32>
    %875 = vector.extract_strided_slice %870 {offsets = [0, 240], sizes = [4, 16], strides = [1, 1]} : vector<4x256xf32> to vector<4x16xf32>
    %876 = vector.extract_strided_slice %870 {offsets = [0, 0], sizes = [4, 240], strides = [1, 1]} : vector<4x256xf32> to vector<4x240xf32>
    %877 = tpu.concatenate %875, %876 in 1 : vector<4x16xf32>, vector<4x240xf32> -> vector<4x256xf32>
    %878 = vector.extract_strided_slice %870 {offsets = [0, 241], sizes = [4, 15], strides = [1, 1]} : vector<4x256xf32> to vector<4x15xf32>
    %879 = vector.extract_strided_slice %870 {offsets = [0, 0], sizes = [4, 241], strides = [1, 1]} : vector<4x256xf32> to vector<4x241xf32>
    %880 = tpu.concatenate %878, %879 in 1 : vector<4x15xf32>, vector<4x241xf32> -> vector<4x256xf32>
    %881 = vector.extract_strided_slice %870 {offsets = [0, 255], sizes = [4, 1], strides = [1, 1]} : vector<4x256xf32> to vector<4x1xf32>
    %882 = vector.extract_strided_slice %870 {offsets = [0, 0], sizes = [4, 255], strides = [1, 1]} : vector<4x256xf32> to vector<4x255xf32>
    %883 = tpu.concatenate %881, %882 in 1 : vector<4x1xf32>, vector<4x255xf32> -> vector<4x256xf32>
    %884 = vector.extract_strided_slice %870 {offsets = [0, 1], sizes = [4, 255], strides = [1, 1]} : vector<4x256xf32> to vector<4x255xf32>
    %885 = vector.extract_strided_slice %870 {offsets = [0, 0], sizes = [4, 1], strides = [1, 1]} : vector<4x256xf32> to vector<4x1xf32>
    %886 = tpu.concatenate %884, %885 in 1 : vector<4x255xf32>, vector<4x1xf32> -> vector<4x256xf32>
    %887 = vector.extract_strided_slice %870 {offsets = [0, 15], sizes = [4, 241], strides = [1, 1]} : vector<4x256xf32> to vector<4x241xf32>
    %888 = vector.extract_strided_slice %870 {offsets = [0, 0], sizes = [4, 15], strides = [1, 1]} : vector<4x256xf32> to vector<4x15xf32>
    %889 = tpu.concatenate %887, %888 in 1 : vector<4x241xf32>, vector<4x15xf32> -> vector<4x256xf32>
    %890 = vector.extract_strided_slice %870 {offsets = [0, 16], sizes = [4, 240], strides = [1, 1]} : vector<4x256xf32> to vector<4x240xf32>
    %891 = vector.extract_strided_slice %870 {offsets = [0, 0], sizes = [4, 16], strides = [1, 1]} : vector<4x256xf32> to vector<4x16xf32>
    %892 = tpu.concatenate %890, %891 in 1 : vector<4x240xf32>, vector<4x16xf32> -> vector<4x256xf32>
    %893 = vector.extract_strided_slice %870 {offsets = [0, 17], sizes = [4, 239], strides = [1, 1]} : vector<4x256xf32> to vector<4x239xf32>
    %894 = vector.extract_strided_slice %870 {offsets = [0, 0], sizes = [4, 17], strides = [1, 1]} : vector<4x256xf32> to vector<4x17xf32>
    %895 = tpu.concatenate %893, %894 in 1 : vector<4x239xf32>, vector<4x17xf32> -> vector<4x256xf32>
    %896 = tpu.concatenate %874, %877, %880, %883, %870, %886, %889, %892, %895 in 0 : vector<4x256xf32>, vector<4x256xf32>, vector<4x256xf32>, vector<4x256xf32>, vector<4x256xf32>, vector<4x256xf32>, vector<4x256xf32>, vector<4x256xf32>, vector<4x256xf32> -> vector<36x256xf32>
    %c0_303 = arith.constant 0 : index
    %c0_304 = arith.constant 0 : index
    %897 = vector.load %arg6[%c0_303, %c0_304] : memref<36x256xf32, #tpu.memory_space<vmem>>, vector<36x256xf32>
    %898 = arith.mulf %896, %897 : vector<36x256xf32>
    %c0_305 = arith.constant 0 : index
    %c0_306 = arith.constant 0 : index
    %899 = vector.load %arg2[%c0_305, %c0_306] : memref<16x36xbf16, #tpu.memory_space<vmem>>, vector<16x36xbf16>
    %900 = arith.truncf %898 : vector<36x256xf32> to vector<36x256xbf16>
    %cst_307 = arith.constant dense<0.000000e+00> : vector<16x256xf32>
    %901 = tpu.matmul %899, %900, %cst_307 {dimension_numbers = #tpu.dot_dimension_numbers<[1], [0], [0], [1], [0, 0, 1, 1], [], []>} : vector<16x36xbf16>, vector<36x256xbf16>, vector<16x256xf32> -> vector<16x256xf32>
    %c0_308 = arith.constant 0 : index
    %c0_309 = arith.constant 0 : index
    %902 = vector.load %arg3[%c0_308, %c0_309] : memref<16x256xf32, #tpu.memory_space<vmem>>, vector<16x256xf32>
    %903 = arith.addf %901, %902 : vector<16x256xf32>
    %c0_310 = arith.constant 0 : index
    %904 = arith.index_cast %c7_i32 : i32 to index
    %c0_311 = arith.constant 0 : index
    %c0_312 = arith.constant 0 : index
    %905 = vector.load %arg1[%c0_310, %904, %c0_311, %c0_312] : memref<1x8x16x256xf32, #tpu.memory_space<vmem>>, vector<1x1x16x256xf32>
    %906 = vector.shape_cast %905 : vector<1x1x16x256xf32> to vector<16x256xf32>
    %907 = arith.addf %903, %906 : vector<16x256xf32>
    %908 = vector.extract_strided_slice %907 {offsets = [0, 0], sizes = [12, 256], strides = [1, 1]} : vector<16x256xf32> to vector<12x256xf32>
    %909 = arith.negf %908 : vector<12x256xf32>
    %910 = math.exp %909 : vector<12x256xf32>
    %cst_313 = arith.constant 1.000000e+00 : f32
    %911 = vector.broadcast %cst_313 : f32 to vector<12x256xf32>
    %912 = arith.addf %911, %910 : vector<12x256xf32>
    %913 = arith.divf %911, %912 : vector<12x256xf32>
    %914 = vector.extract_strided_slice %913 {offsets = [0, 0], sizes = [4, 256], strides = [1, 1]} : vector<12x256xf32> to vector<4x256xf32>
    %915 = vector.extract_strided_slice %913 {offsets = [4, 0], sizes = [4, 256], strides = [1, 1]} : vector<12x256xf32> to vector<4x256xf32>
    %916 = vector.extract_strided_slice %913 {offsets = [8, 0], sizes = [4, 256], strides = [1, 1]} : vector<12x256xf32> to vector<4x256xf32>
    %917 = vector.extract_strided_slice %907 {offsets = [12, 0], sizes = [4, 256], strides = [1, 1]} : vector<16x256xf32> to vector<4x256xf32>
    %918 = math.tanh %917 : vector<4x256xf32>
    %919 = arith.mulf %915, %871 : vector<4x256xf32>
    %920 = arith.mulf %914, %918 : vector<4x256xf32>
    %921 = arith.addf %919, %920 : vector<4x256xf32>
    %922 = math.tanh %921 : vector<4x256xf32>
    %923 = arith.mulf %916, %922 : vector<4x256xf32>
    %c0_314 = arith.constant 0 : index
    %c0_315 = arith.constant 0 : index
    %924 = vector.load %arg13[%c0_314, %c0_315] : memref<8x256xf32, #tpu.memory_space<vmem>>, vector<4x256xf32>
    tpu.vector_store %arg13[%c0_314, %c0_315], %923 {strides = array<i32>} : memref<8x256xf32, #tpu.memory_space<vmem>>, vector<4x256xf32>,
    %c4_316 = arith.constant 4 : index
    %c0_317 = arith.constant 0 : index
    %925 = vector.load %arg13[%c4_316, %c0_317] : memref<8x256xf32, #tpu.memory_space<vmem>>, vector<4x256xf32>
    tpu.vector_store %arg13[%c4_316, %c0_317], %921 {strides = array<i32>} : memref<8x256xf32, #tpu.memory_space<vmem>>, vector<4x256xf32>,
    %c0_318 = arith.constant 0 : index
    %c0_319 = arith.constant 0 : index
    %926 = vector.load %arg14[%c0_318, %c0_319] : memref<8x256xf32, #tpu.memory_space<vmem>>, vector<8x256xf32>
    %c0_320 = arith.constant 0 : index
    %c0_321 = arith.constant 0 : index
    %927 = vector.load %arg9[%c0_320, %c0_321] : memref<8x256xf32, #tpu.memory_space<vmem>>, vector<8x256xf32>
    %928 = arith.mulf %926, %927 : vector<8x256xf32>
    %c0_322 = arith.constant 0 : index
    %c0_323 = arith.constant 0 : index
    %929 = vector.load %arg10[%c0_322, %c0_323] : memref<8x256xf32, #tpu.memory_space<vmem>>, vector<8x256xf32>
    %930 = arith.addf %928, %929 : vector<8x256xf32>
    %931 = vector.extract_strided_slice %930 {offsets = [0, 0], sizes = [4, 256], strides = [1, 1]} : vector<8x256xf32> to vector<4x256xf32>
    %932 = vector.extract_strided_slice %930 {offsets = [4, 0], sizes = [4, 256], strides = [1, 1]} : vector<8x256xf32> to vector<4x256xf32>
    %933 = tpu.concatenate %923, %931 in 0 : vector<4x256xf32>, vector<4x256xf32> -> vector<8x256xf32>
    %934 = vector.extract_strided_slice %933 {offsets = [0, 239], sizes = [8, 17], strides = [1, 1]} : vector<8x256xf32> to vector<8x17xf32>
    %935 = vector.extract_strided_slice %933 {offsets = [0, 0], sizes = [8, 239], strides = [1, 1]} : vector<8x256xf32> to vector<8x239xf32>
    %936 = tpu.concatenate %934, %935 in 1 : vector<8x17xf32>, vector<8x239xf32> -> vector<8x256xf32>
    %937 = vector.extract_strided_slice %933 {offsets = [0, 240], sizes = [8, 16], strides = [1, 1]} : vector<8x256xf32> to vector<8x16xf32>
    %938 = vector.extract_strided_slice %933 {offsets = [0, 0], sizes = [8, 240], strides = [1, 1]} : vector<8x256xf32> to vector<8x240xf32>
    %939 = tpu.concatenate %937, %938 in 1 : vector<8x16xf32>, vector<8x240xf32> -> vector<8x256xf32>
    %940 = vector.extract_strided_slice %933 {offsets = [0, 241], sizes = [8, 15], strides = [1, 1]} : vector<8x256xf32> to vector<8x15xf32>
    %941 = vector.extract_strided_slice %933 {offsets = [0, 0], sizes = [8, 241], strides = [1, 1]} : vector<8x256xf32> to vector<8x241xf32>
    %942 = tpu.concatenate %940, %941 in 1 : vector<8x15xf32>, vector<8x241xf32> -> vector<8x256xf32>
    %943 = vector.extract_strided_slice %933 {offsets = [0, 255], sizes = [8, 1], strides = [1, 1]} : vector<8x256xf32> to vector<8x1xf32>
    %944 = vector.extract_strided_slice %933 {offsets = [0, 0], sizes = [8, 255], strides = [1, 1]} : vector<8x256xf32> to vector<8x255xf32>
    %945 = tpu.concatenate %943, %944 in 1 : vector<8x1xf32>, vector<8x255xf32> -> vector<8x256xf32>
    %946 = vector.extract_strided_slice %933 {offsets = [0, 1], sizes = [8, 255], strides = [1, 1]} : vector<8x256xf32> to vector<8x255xf32>
    %947 = vector.extract_strided_slice %933 {offsets = [0, 0], sizes = [8, 1], strides = [1, 1]} : vector<8x256xf32> to vector<8x1xf32>
    %948 = tpu.concatenate %946, %947 in 1 : vector<8x255xf32>, vector<8x1xf32> -> vector<8x256xf32>
    %949 = vector.extract_strided_slice %933 {offsets = [0, 15], sizes = [8, 241], strides = [1, 1]} : vector<8x256xf32> to vector<8x241xf32>
    %950 = vector.extract_strided_slice %933 {offsets = [0, 0], sizes = [8, 15], strides = [1, 1]} : vector<8x256xf32> to vector<8x15xf32>
    %951 = tpu.concatenate %949, %950 in 1 : vector<8x241xf32>, vector<8x15xf32> -> vector<8x256xf32>
    %952 = vector.extract_strided_slice %933 {offsets = [0, 16], sizes = [8, 240], strides = [1, 1]} : vector<8x256xf32> to vector<8x240xf32>
    %953 = vector.extract_strided_slice %933 {offsets = [0, 0], sizes = [8, 16], strides = [1, 1]} : vector<8x256xf32> to vector<8x16xf32>
    %954 = tpu.concatenate %952, %953 in 1 : vector<8x240xf32>, vector<8x16xf32> -> vector<8x256xf32>
    %955 = vector.extract_strided_slice %933 {offsets = [0, 17], sizes = [8, 239], strides = [1, 1]} : vector<8x256xf32> to vector<8x239xf32>
    %956 = vector.extract_strided_slice %933 {offsets = [0, 0], sizes = [8, 17], strides = [1, 1]} : vector<8x256xf32> to vector<8x17xf32>
    %957 = tpu.concatenate %955, %956 in 1 : vector<8x239xf32>, vector<8x17xf32> -> vector<8x256xf32>
    %958 = tpu.concatenate %936, %939, %942, %945, %933, %948, %951, %954, %957 in 0 : vector<8x256xf32>, vector<8x256xf32>, vector<8x256xf32>, vector<8x256xf32>, vector<8x256xf32>, vector<8x256xf32>, vector<8x256xf32>, vector<8x256xf32>, vector<8x256xf32> -> vector<72x256xf32>
    %c0_324 = arith.constant 0 : index
    %c0_325 = arith.constant 0 : index
    %959 = vector.load %arg11[%c0_324, %c0_325] : memref<72x256xf32, #tpu.memory_space<vmem>>, vector<72x256xf32>
    %960 = arith.mulf %958, %959 : vector<72x256xf32>
    %c0_326 = arith.constant 0 : index
    %c0_327 = arith.constant 0 : index
    %961 = vector.load %arg7[%c0_326, %c0_327] : memref<16x72xbf16, #tpu.memory_space<vmem>>, vector<16x72xbf16>
    %962 = arith.truncf %960 : vector<72x256xf32> to vector<72x256xbf16>
    %cst_328 = arith.constant dense<0.000000e+00> : vector<16x256xf32>
    %963 = tpu.matmul %961, %962, %cst_328 {dimension_numbers = #tpu.dot_dimension_numbers<[1], [0], [0], [1], [0, 0, 1, 1], [], []>} : vector<16x72xbf16>, vector<72x256xbf16>, vector<16x256xf32> -> vector<16x256xf32>
    %c0_329 = arith.constant 0 : index
    %c0_330 = arith.constant 0 : index
    %964 = vector.load %arg8[%c0_329, %c0_330] : memref<16x256xf32, #tpu.memory_space<vmem>>, vector<16x256xf32>
    %965 = arith.addf %963, %964 : vector<16x256xf32>
    %966 = vector.extract_strided_slice %965 {offsets = [0, 0], sizes = [12, 256], strides = [1, 1]} : vector<16x256xf32> to vector<12x256xf32>
    %967 = arith.negf %966 : vector<12x256xf32>
    %968 = math.exp %967 : vector<12x256xf32>
    %cst_331 = arith.constant 1.000000e+00 : f32
    %969 = vector.broadcast %cst_331 : f32 to vector<12x256xf32>
    %970 = arith.addf %969, %968 : vector<12x256xf32>
    %971 = arith.divf %969, %970 : vector<12x256xf32>
    %972 = vector.extract_strided_slice %971 {offsets = [0, 0], sizes = [4, 256], strides = [1, 1]} : vector<12x256xf32> to vector<4x256xf32>
    %973 = vector.extract_strided_slice %971 {offsets = [4, 0], sizes = [4, 256], strides = [1, 1]} : vector<12x256xf32> to vector<4x256xf32>
    %974 = vector.extract_strided_slice %971 {offsets = [8, 0], sizes = [4, 256], strides = [1, 1]} : vector<12x256xf32> to vector<4x256xf32>
    %975 = vector.extract_strided_slice %965 {offsets = [12, 0], sizes = [4, 256], strides = [1, 1]} : vector<16x256xf32> to vector<4x256xf32>
    %976 = math.tanh %975 : vector<4x256xf32>
    %977 = arith.mulf %973, %932 : vector<4x256xf32>
    %978 = arith.mulf %972, %976 : vector<4x256xf32>
    %979 = arith.addf %977, %978 : vector<4x256xf32>
    %980 = math.tanh %979 : vector<4x256xf32>
    %981 = arith.mulf %974, %980 : vector<4x256xf32>
    %c0_332 = arith.constant 0 : index
    %c0_333 = arith.constant 0 : index
    %982 = vector.load %arg14[%c0_332, %c0_333] : memref<8x256xf32, #tpu.memory_space<vmem>>, vector<4x256xf32>
    tpu.vector_store %arg14[%c0_332, %c0_333], %981 {strides = array<i32>} : memref<8x256xf32, #tpu.memory_space<vmem>>, vector<4x256xf32>,
    %c4_334 = arith.constant 4 : index
    %c0_335 = arith.constant 0 : index
    %983 = vector.load %arg14[%c4_334, %c0_335] : memref<8x256xf32, #tpu.memory_space<vmem>>, vector<4x256xf32>
    tpu.vector_store %arg14[%c4_334, %c0_335], %979 {strides = array<i32>} : memref<8x256xf32, #tpu.memory_space<vmem>>, vector<4x256xf32>,
    %c0_336 = arith.constant 0 : index
    %984 = arith.index_cast %c7_i32 : i32 to index
    %c0_337 = arith.constant 0 : index
    %c0_338 = arith.constant 0 : index
    %985 = vector.load %arg12[%c0_336, %984, %c0_337, %c0_338] : memref<1x8x4x256xf32, #tpu.memory_space<vmem>>, vector<1x1x4x256xf32>
    %986 = vector.shape_cast %985 : vector<1x1x4x256xf32> to vector<4x256xf32>
    %987 = vector.shape_cast %981 : vector<4x256xf32> to vector<1x1x4x256xf32>
    tpu.vector_store %arg12[%c0_336, %984, %c0_337, %c0_338], %987 {strides = array<i32>} : memref<1x8x4x256xf32, #tpu.memory_space<vmem>>, vector<1x1x4x256xf32>,
    %c8_i32 = arith.constant 8 : i32
    return
  }
  func.func @transform_0(%arg0: i32) -> (i32, i32, i32, i32) {
    %c0_i32 = arith.constant 0 : i32
    %c0_i32_0 = arith.constant 0 : i32
    %c0_i32_1 = arith.constant 0 : i32
    %c0_i32_2 = arith.constant 0 : i32
    return %arg0, %c0_i32, %c0_i32_0, %c0_i32_1 : i32, i32, i32, i32
  }
  func.func @transform_1(%arg0: i32) -> (i32, i32) {
    %c0_i32 = arith.constant 0 : i32
    %c0_i32_0 = arith.constant 0 : i32
    %c0_i32_1 = arith.constant 0 : i32
    return %c0_i32, %c0_i32_0 : i32, i32
  }
  func.func @transform_2(%arg0: i32) -> (i32, i32) {
    %c0_i32 = arith.constant 0 : i32
    %c0_i32_0 = arith.constant 0 : i32
    %c0_i32_1 = arith.constant 0 : i32
    return %c0_i32, %c0_i32_0 : i32, i32
  }
  func.func @transform_3(%arg0: i32) -> (i32, i32) {
    %c0_i32 = arith.constant 0 : i32
    %c0_i32_0 = arith.constant 0 : i32
    %c0_i32_1 = arith.constant 0 : i32
    return %c0_i32, %c0_i32_0 : i32, i32
  }
  func.func @transform_4(%arg0: i32) -> (i32, i32) {
    %c0_i32 = arith.constant 0 : i32
    %c0_i32_0 = arith.constant 0 : i32
    %c0_i32_1 = arith.constant 0 : i32
    return %c0_i32, %c0_i32_0 : i32, i32
  }
  func.func @transform_5(%arg0: i32) -> (i32, i32) {
    %c0_i32 = arith.constant 0 : i32
    %c0_i32_0 = arith.constant 0 : i32
    %c0_i32_1 = arith.constant 0 : i32
    return %c0_i32, %c0_i32_0 : i32, i32
  }
  func.func @transform_6(%arg0: i32) -> (i32, i32) {
    %c0_i32 = arith.constant 0 : i32
    %c0_i32_0 = arith.constant 0 : i32
    %c0_i32_1 = arith.constant 0 : i32
    return %c0_i32, %c0_i32_0 : i32, i32
  }
  func.func @transform_7(%arg0: i32) -> (i32, i32) {
    %c0_i32 = arith.constant 0 : i32
    %c0_i32_0 = arith.constant 0 : i32
    %c0_i32_1 = arith.constant 0 : i32
    return %c0_i32, %c0_i32_0 : i32, i32
  }
  func.func @transform_8(%arg0: i32) -> (i32, i32) {
    %c0_i32 = arith.constant 0 : i32
    %c0_i32_0 = arith.constant 0 : i32
    %c0_i32_1 = arith.constant 0 : i32
    return %c0_i32, %c0_i32_0 : i32, i32
  }
  func.func @transform_9(%arg0: i32) -> (i32, i32) {
    %c0_i32 = arith.constant 0 : i32
    %c0_i32_0 = arith.constant 0 : i32
    %c0_i32_1 = arith.constant 0 : i32
    return %c0_i32, %c0_i32_0 : i32, i32
  }
  func.func @transform_10(%arg0: i32) -> (i32, i32) {
    %c0_i32 = arith.constant 0 : i32
    %c0_i32_0 = arith.constant 0 : i32
    %c0_i32_1 = arith.constant 0 : i32
    return %c0_i32, %c0_i32_0 : i32, i32
  }
  func.func @transform_11(%arg0: i32) -> (i32, i32, i32, i32) {
    %c0_i32 = arith.constant 0 : i32
    %c0_i32_0 = arith.constant 0 : i32
    %c0_i32_1 = arith.constant 0 : i32
    %c0_i32_2 = arith.constant 0 : i32
    return %arg0, %c0_i32, %c0_i32_0, %c0_i32_1 : i32, i32, i32, i32
  }
}

</mosaic_0001>

<bundles_post_ra>
// kernel: squeeze.2
= control target key start
LH: loop header
LB: loop body
LE: loop exit
PB: predicated region body
PF: predicated region fallthrough
CT: control target
= control target key end

     0   :  { %vm46_vm0 = vcmask 1047557   ;;  %s326_s10 = smov 112   ;;  %s327_s15 = smov 96   ;;  %vm3_vm1 = vcmask 130048   ;;  %s583_s0 = inlined_call_operand.vmem [shape: f32[2,6,256], index: 0, kind: input, shape index: {}]   ;;  %s584_s1 = inlined_call_operand.vmem [shape: f32[2,6,16,16], index: 1, kind: output, shape index: {}]  }
   0x1   :  { %v34_v0 = vld.sshfl [vmem:[%s583_s0] sm:$0xff pattern:$0xb3a29180]   ;;  %v262_v1 = vld.sshfl [vmem:[%s583_s0 + $0x12] sm:$0xff pattern:$0xb3a29180]  }
   0x2   :  { %35 = vrot.lane.b32.xlu0 %v34_v0, %s326_s10  ;;  %57 = vrot.lane.b32.xlu1 %v262_v1, %s326_s10  ;;  %v258_v2 = vld.sshfl [vmem:[%s583_s0 + $0x4] sm:$0xff pattern:$0xcccc9180]   ;;  %v259_v3 = vld.sshfl [vmem:[%s583_s0 + $0x11] sm:$0xff pattern:$0x80777777]  }
   0x3   :  { %v47_v4 = vsel %vm46_vm0, %v259_v3, %v258_v2  ;;  %s328_s16 = smov 80   ;;  %s329_s17 = smov 64   ;;  %v2_v5 = vld [vmem:[%s583_s0] sm:$0x3f]   ;;  %v244_v6 = vld [vmem:[%s583_s0 + $0x8] sm:$0x3f]  }
   0x4   :  { %s330_s18 = smov 48   ;;  %v248_v7 = vld [vmem:[%s583_s0 + $0x10] sm:$0x3f]   ;;  %4 = vst.msk [vmem:[%s584_s1] ss:$16 sm:$0x3] %vm3_vm1, %v2_v5  }
   0x5   :  { %5 = vst.msk [vmem:[%s584_s1] ss:$16 sm:$0xc] %vm3_vm1, %v2_v5   ;;  %6 = vst.msk [vmem:[%s584_s1] ss:$16 sm:$0x30] %vm3_vm1, %v2_v5  }
   0x6   :  { %48 = vrot.lane.b32.xlu0 %v47_v4, %s326_s10  ;;  %65 = vrot.lane.b32.xlu1 %v34_v0, %s327_s15  ;;  %245 = vst.msk [vmem:[%s584_s1 + $0x8] ss:$16 sm:$0x3] %vm3_vm1, %v244_v6   ;;  %246 = vst.msk [vmem:[%s584_s1 + $0x8] ss:$16 sm:$0xc] %vm3_vm1, %v244_v6  }
   0x7   :  { %247 = vst.msk [vmem:[%s584_s1 + $0x8] ss:$16 sm:$0x30] %vm3_vm1, %v244_v6   ;;  %249 = vst.msk [vmem:[%s584_s1 + $0x60] ss:$16 sm:$0x3] %vm3_vm1, %v248_v7  }
   0x8   :  { %250 = vst.msk [vmem:[%s584_s1 + $0x60] ss:$16 sm:$0xc] %vm3_vm1, %v248_v7   ;;  %251 = vst.msk [vmem:[%s584_s1 + $0x60] ss:$16 sm:$0x30] %vm3_vm1, %v248_v7  }
   0x9   :  { %v252_v8 = vld [vmem:[%s583_s0 + $0x18] sm:$0x3f]   ;;  %s331_s0 = smov 32   ;;  %s332_s22 = smov 16  }
   0xa   :  { %78 = vrot.lane.b32.xlu0 %v47_v4, %s327_s15  ;;  %87 = vrot.lane.b32.xlu1 %v262_v1, %s327_s15  ;;  %253 = vst.msk [vmem:[%s584_s1 + $0x68] ss:$16 sm:$0x3] %vm3_vm1, %v252_v8   ;;  %254 = vst.msk [vmem:[%s584_s1 + $0x68] ss:$16 sm:$0xc] %vm3_vm1, %v252_v8  }
   0xb   :  { %255 = vst.msk [vmem:[%s584_s1 + $0x68] ss:$16 sm:$0x30] %vm3_vm1, %v252_v8  }
   0xe   :  { %95 = vrot.lane.b32.xlu0 %v34_v0, %s328_s16  ;;  %108 = vrot.lane.b32.xlu1 %v47_v4, %s328_s16 }
  0x12   :  { %117 = vrot.lane.b32.xlu0 %v262_v1, %s328_s16  ;;  %125 = vrot.lane.b32.xlu1 %v34_v0, %s329_s17 }
  0x16   :  { %138 = vrot.lane.b32.xlu0 %v47_v4, %s329_s17  ;;  %147 = vrot.lane.b32.xlu1 %v262_v1, %s329_s17 }
  0x1a   :  { %155 = vrot.lane.b32.xlu0 %v34_v0, %s330_s18  ;;  %168 = vrot.lane.b32.xlu1 %v47_v4, %s330_s18 }
  0x1e   :  { %177 = vrot.lane.b32.xlu0 %v262_v1, %s330_s18  ;;  %185 = vrot.lane.b32.xlu1 %v34_v0, %s331_s0 }
  0x22   :  { %198 = vrot.lane.b32.xlu0 %v47_v4, %s331_s0  ;;  %207 = vrot.lane.b32.xlu1 %v262_v1, %s331_s0 }
  0x26   :  { %215 = vrot.lane.b32.xlu0 %v34_v0, %s332_s22  ;;  %228 = vrot.lane.b32.xlu1 %v47_v4, %s332_s22 }
  0x2a   :  { %237 = vrot.lane.b32.xlu0 %v262_v1, %s332_s22 }
  0x74   :  { %v36_v9 = vpop.permute.xlu0 %35   ;;  %v58_v10 = vpop.permute.xlu1 %57  }
  0x75   :  { %256 = vst.msk [vmem:[%s584_s1 + $0x1] ss:$8 sm:$0xf] %vm3_vm1, %v36_v9   ;;  %257 = vst.msk [vmem:[%s584_s1 + $0x1] ss:$8 sm:$0xf0] %vm3_vm1, %v36_v9  }
  0x76   :  { %263 = vst.msk [vmem:[%s584_s1 + $0x81] ss:$8 sm:$0xf] %vm3_vm1, %v58_v10   ;;  %264 = vst.msk [vmem:[%s584_s1 + $0x81] ss:$8 sm:$0xf0] %vm3_vm1, %v58_v10  }
  0x78   :  { %v49_v11 = vpop.permute.xlu0 %48   ;;  %v66_v12 = vpop.permute.xlu1 %65  }
  0x79   :  { %260 = vst.msk [vmem:[%s584_s1 + $0x41] ss:$8 sm:$0xf] %vm3_vm1, %v49_v11   ;;  %261 = vst.msk [vmem:[%s584_s1 + $0x41] ss:$8 sm:$0xf0] %vm3_vm1, %v49_v11  }
  0x7a   :  { %265 = vst.msk [vmem:[%s584_s1 + $0x2] ss:$8 sm:$0xf] %vm3_vm1, %v66_v12   ;;  %266 = vst.msk [vmem:[%s584_s1 + $0x2] ss:$8 sm:$0xf0] %vm3_vm1, %v66_v12  }
  0x7c   :  { %v79_v13 = vpop.permute.xlu0 %78   ;;  %v88_v14 = vpop.permute.xlu1 %87  }
  0x7d   :  { %269 = vst.msk [vmem:[%s584_s1 + $0x42] ss:$8 sm:$0xf] %vm3_vm1, %v79_v13   ;;  %270 = vst.msk [vmem:[%s584_s1 + $0x42] ss:$8 sm:$0xf0] %vm3_vm1, %v79_v13  }
  0x7e   :  { %272 = vst.msk [vmem:[%s584_s1 + $0x82] ss:$8 sm:$0xf] %vm3_vm1, %v88_v14   ;;  %273 = vst.msk [vmem:[%s584_s1 + $0x82] ss:$8 sm:$0xf0] %vm3_vm1, %v88_v14  }
  0x80   :  { %v96_v15 = vpop.permute.xlu0 %95   ;;  %v109_v16 = vpop.permute.xlu1 %108  }
  0x81   :  { %274 = vst.msk [vmem:[%s584_s1 + $0x3] ss:$8 sm:$0xf] %vm3_vm1, %v96_v15   ;;  %275 = vst.msk [vmem:[%s584_s1 + $0x3] ss:$8 sm:$0xf0] %vm3_vm1, %v96_v15  }
  0x82   :  { %278 = vst.msk [vmem:[%s584_s1 + $0x43] ss:$8 sm:$0xf] %vm3_vm1, %v109_v16   ;;  %279 = vst.msk [vmem:[%s584_s1 + $0x43] ss:$8 sm:$0xf0] %vm3_vm1, %v109_v16  }
  0x84   :  { %v118_v17 = vpop.permute.xlu0 %117   ;;  %v126_v18 = vpop.permute.xlu1 %125  }
  0x85   :  { %281 = vst.msk [vmem:[%s584_s1 + $0x83] ss:$8 sm:$0xf] %vm3_vm1, %v118_v17   ;;  %282 = vst.msk [vmem:[%s584_s1 + $0x83] ss:$8 sm:$0xf0] %vm3_vm1, %v118_v17  }
  0x86   :  { %283 = vst.msk [vmem:[%s584_s1 + $0x4] ss:$8 sm:$0xf] %vm3_vm1, %v126_v18   ;;  %284 = vst.msk [vmem:[%s584_s1 + $0x4] ss:$8 sm:$0xf0] %vm3_vm1, %v126_v18  }
  0x88   :  { %v139_v19 = vpop.permute.xlu0 %138   ;;  %v148_v20 = vpop.permute.xlu1 %147  }
  0x89   :  { %287 = vst.msk [vmem:[%s584_s1 + $0x44] ss:$8 sm:$0xf] %vm3_vm1, %v139_v19   ;;  %288 = vst.msk [vmem:[%s584_s1 + $0x44] ss:$8 sm:$0xf0] %vm3_vm1, %v139_v19  }
  0x8a   :  { %290 = vst.msk [vmem:[%s584_s1 + $0x84] ss:$8 sm:$0xf] %vm3_vm1, %v148_v20   ;;  %291 = vst.msk [vmem:[%s584_s1 + $0x84] ss:$8 sm:$0xf0] %vm3_vm1, %v148_v20  }
  0x8c   :  { %v156_v21 = vpop.permute.xlu0 %155   ;;  %v169_v22 = vpop.permute.xlu1 %168  }
  0x8d   :  { %292 = vst.msk [vmem:[%s584_s1 + $0x5] ss:$8 sm:$0xf] %vm3_vm1, %v156_v21   ;;  %293 = vst.msk [vmem:[%s584_s1 + $0x5] ss:$8 sm:$0xf0] %vm3_vm1, %v156_v21  }
  0x8e   :  { %296 = vst.msk [vmem:[%s584_s1 + $0x45] ss:$8 sm:$0xf] %vm3_vm1, %v169_v22   ;;  %297 = vst.msk [vmem:[%s584_s1 + $0x45] ss:$8 sm:$0xf0] %vm3_vm1, %v169_v22  }
  0x90   :  { %v178_v23 = vpop.permute.xlu0 %177   ;;  %v186_v24 = vpop.permute.xlu1 %185  }
  0x91   :  { %299 = vst.msk [vmem:[%s584_s1 + $0x85] ss:$8 sm:$0xf] %vm3_vm1, %v178_v23   ;;  %300 = vst.msk [vmem:[%s584_s1 + $0x85] ss:$8 sm:$0xf0] %vm3_vm1, %v178_v23  }
  0x92   :  { %301 = vst.msk [vmem:[%s584_s1 + $0x6] ss:$8 sm:$0xf] %vm3_vm1, %v186_v24   ;;  %302 = vst.msk [vmem:[%s584_s1 + $0x6] ss:$8 sm:$0xf0] %vm3_vm1, %v186_v24  }
  0x94   :  { %v199_v25 = vpop.permute.xlu0 %198   ;;  %v208_v26 = vpop.permute.xlu1 %207  }
  0x95   :  { %305 = vst.msk [vmem:[%s584_s1 + $0x46] ss:$8 sm:$0xf] %vm3_vm1, %v199_v25   ;;  %306 = vst.msk [vmem:[%s584_s1 + $0x46] ss:$8 sm:$0xf0] %vm3_vm1, %v199_v25  }
  0x96   :  { %308 = vst.msk [vmem:[%s584_s1 + $0x86] ss:$8 sm:$0xf] %vm3_vm1, %v208_v26   ;;  %309 = vst.msk [vmem:[%s584_s1 + $0x86] ss:$8 sm:$0xf0] %vm3_vm1, %v208_v26  }
  0x98   :  { %v216_v27 = vpop.permute.xlu0 %215   ;;  %v229_v28 = vpop.permute.xlu1 %228  }
  0x99   :  { %310 = vst.msk [vmem:[%s584_s1 + $0x7] ss:$8 sm:$0xf] %vm3_vm1, %v216_v27   ;;  %311 = vst.msk [vmem:[%s584_s1 + $0x7] ss:$8 sm:$0xf0] %vm3_vm1, %v216_v27  }
  0x9a   :  { %314 = vst.msk [vmem:[%s584_s1 + $0x47] ss:$8 sm:$0xf] %vm3_vm1, %v229_v28   ;;  %315 = vst.msk [vmem:[%s584_s1 + $0x47] ss:$8 sm:$0xf0] %vm3_vm1, %v229_v28  }
  0x9c   :  { %v238_v29 = vpop.permute.xlu0 %237  }
  0x9d   :  { %317 = vst.msk [vmem:[%s584_s1 + $0x87] ss:$8 sm:$0xf] %vm3_vm1, %v238_v29   ;;  %318 = vst.msk [vmem:[%s584_s1 + $0x87] ss:$8 sm:$0xf0] %vm3_vm1, %v238_v29  }

// kernel: convlstm_forward.1
= control target key start
LH: loop header
LB: loop body
LE: loop exit
PB: predicated region body
PF: predicated region fallthrough
CT: control target
= control target key end

     0   :  { %s5345_s17 = smov 0   ;;  %s7852_s0 = inlined_call_operand.vmem [shape: f32[2,8,16,256], index: 0, kind: input, shape index: {}]   ;;  %s7853_s1 = inlined_call_operand.vmem [shape: bf16[16,36], index: 1, kind: input, shape index: {}]   ;;  %s7854_s2 = inlined_call_operand.vmem [shape: f32[16,256], index: 2, kind: input, shape index: {}]   ;;  %s7855_s3 = inlined_call_operand.vmem [shape: f32[8,256], index: 3, kind: input, shape index: {}]   ;;  %s7856_s4 = inlined_call_operand.vmem [shape: f32[8,256], index: 4, kind: input, shape index: {}]   ;;  %s7857_s5 = inlined_call_operand.vmem [shape: f32[36,256], index: 5, kind: input, shape index: {}]   ;;  %s7858_s6 = inlined_call_operand.vmem [shape: bf16[16,72], index: 6, kind: input, shape index: {}]   ;;  %s7859_s7 = inlined_call_operand.vmem [shape: f32[16,256], index: 7, kind: input, shape index: {}]   ;;  %s7860_s8 = inlined_call_operand.vmem [shape: f32[8,256], index: 8, kind: input, shape index: {}]   ;;  %s7861_s9 = inlined_call_operand.vmem [shape: f32[8,256], index: 9, kind: input, shape index: {}]   ;;  %s7862_s10 = inlined_call_operand.vmem [shape: f32[72,256], index: 10, kind: input, shape index: {}]   ;;  %s7863_s11 = inlined_call_operand.vmem [shape: f32[2,8,4,256], index: 11, kind: output, shape index: {}]  }
   0x1 LB: > { %s4689_s18 = sadd.s32 4294967295, %s5273_s17   ;;  %p4693_p0 = scmp.ge.s32.totalorder %s5273_s17, 1  ;;  %s5273_s17 = sphi %s5345_s17, %s21_s17  }
   0x2   : > { %p337_p1 = scmp.lt.s32.totalorder %s5273_s17, 3 }
   0x4   : > { %p338_p2 = pnand %p4693_p0, %p337_p1 }
   0x6   : > { %341 = sbr.rel (%p338_p2) target bundleno = 3943 (0xf67), region = 64 }
   0xb   : > { %v5356_v0 = vld [vmem:[%s7855_s3] sm:$0xff]  ;;  %v5366_v2 = vld [vmem:[%s7855_s3 + $0x8] sm:$0xff]  ;;  %v5275_v3 = vmov 0.0   ;;  %s5276_s27 = smov 127   ;;  %s5277_s28 = smov 111   ;;  %v7864_v9 = vmov 0  }
   0xc   : > { %v5361_v1 = vld [vmem:[%s7856_s4] sm:$0xff]  ;;  %388 = vst [vmem:[#allocation2] sm:$0xff] %v5275_v3  ;;  %v396_v4 = vmul.f32 0.0, %v5356_v0  ;;  %389 = vst [vmem:[#allocation2 + $0x8] sm:$0xff] %v5275_v3  ;;  %v397_v5 = vmul.f32 0.0, %v5366_v2  ;;  %v5373_v6 = vld [vmem:[%s7856_s4 + $0x8] sm:$0xff]  ;;  %589 = vmatprep.mubr.bf16.mxu0 %v7864_v9  ;;  %857 = vmatprep.mubr.bf16.mxu1 %v7864_v9 }
   0xd   : > { %390 = vst [vmem:[#allocation3 + $0x8] sm:$0xff] %v5275_v3  ;;  %391 = vst [vmem:[#allocation3] sm:$0xff] %v5275_v3  ;;  %s5278_s29 = smov 112   ;;  %s5279_s30 = smov 113   ;;  %vm446_vm0 = vcmask 1039360   ;;  %vm474_vm1 = vcmask 908288  }
   0xe   : > { %v5376_v7 = vadd.f32 %v5361_v1, %v396_v4  ;;  %v5383_v8 = vadd.f32 %v5373_v6, %v397_v5  ;;  %s5280_s12 = smov 16   ;;  %s5281_s13 = smov 1   ;;  %v518_v12 = vld [vmem:[%s7857_s5 + $0x48] sm:$0xf]  ;;  %v517_v13 = vld [vmem:[%s7857_s5 + $0x40] sm:$0xf] }
   0xf   : > { %s5283_s14 = smov 17   ;;  %s5284_s15 = smov 15   ;;  %vm465_vm2 = vcmask 916480   ;;  %vm550_vm3 = vcmask 1041408   ;;  %vm500_vm4 = vcmask 1043456   ;;  %vm455_vm5 = vcmask 924672  }
  0x10   : > { %442 = vrot.lane.b32.xlu1 %v5376_v7, %s5276_s27  ;;  %470 = vrot.lane.b32.xlu0 %v5376_v7, %s5277_s28  ;;  %v5432_v31 = vld [vmem:[%s7857_s5 + $0x28] sm:$0xff]  ;;  %v5439_v37 = vld [vmem:[%s7857_s5 + $0x38] sm:$0xff]  ;;  %vm419_vm6 = vcmask 130048   ;;  %vm438_vm7 = vcmask 7168   ;;  %vm409_vm8 = vcmask 138240   ;;  %vm428_vm9 = vcmask 121856  }
  0x11   : > { %v5446_v39 = vld [vmem:[%s7857_s5 + $0x20] sm:$0xff]  ;;  %v5451_v40 = vld [vmem:[%s7857_s5 + $0x30] sm:$0xff]  ;;  %v5470_v4 = vld [vmem:[%s7857_s5 + $0x8] sm:$0xff]  ;;  %vm546_vm10 = vcmask 293888   ;;  %p377_p3 = scmp.lt.s32.totalorder %s4689_s18, 1  ;;  %vm815_vm11 = vcmask 588800  }
  0x13   : > { %s7889_s18 = smov (!%p377_p3, %s4689_s18), 1 }
  0x14   : > { %444 = vrot.lane.b32.xlu1 %v5383_v8, %s5276_s27  ;;  %472 = vrot.lane.b32.xlu0 %v5383_v8, %s5277_s28  ;;  %s4847_s22 = sshll.u32 %s7889_s18, 8  ;;  %s4848_s21 = sshll.u32 %s7889_s18, 6 }
  0x15   : > { %s5512_s25 = scalar_lea.vmem %s7852_s0, %s4847_s22  ;;  %s5882_s24 = scalar_lea.vmem %s7863_s11, %s4848_s21 }
  0x18   : > { %463 = vrot.lane.b32.xlu1 %v5383_v8, %s5278_s29  ;;  %461 = vrot.lane.b32.xlu0 %v5376_v7, %s5278_s29 }
  0x1c   : > { %453 = vrot.lane.b32.xlu1 %v5383_v8, %s5279_s30  ;;  %451 = vrot.lane.b32.xlu0 %v5376_v7, %s5279_s30 }
  0x20   : > { %417 = vrot.lane.b32.xlu1 %v5376_v7, %s5280_s12  ;;  %414 = vrot.lane.b32.xlu0 %v5383_v8, %s5280_s12 }
  0x24   : > { %436 = vrot.lane.b32.xlu1 %v5376_v7, %s5281_s13  ;;  %433 = vrot.lane.b32.xlu0 %v5383_v8, %s5281_s13 }
  0x28   : > { %407 = vrot.lane.b32.xlu1 %v5376_v7, %s5283_s14  ;;  %403 = vrot.lane.b32.xlu0 %v5383_v8, %s5283_s14 }
  0x2c   : > { %426 = vrot.lane.b32.xlu1 %v5376_v7, %s5284_s15  ;;  %423 = vrot.lane.b32.xlu0 %v5383_v8, %s5284_s15 }
  0x82   : > { %v443_v10 = vpop.permute.xlu1 %442  ;;  %v471_v11 = vpop.permute.xlu0 %470 }
  0x86   : > { %v445_v14 = vpop.permute.xlu1 %444  ;;  %v473_v15 = vpop.permute.xlu0 %472 }
  0x87   : > { %v447_v16 = vsel %vm446_vm0, %v443_v10, %v445_v14  ;;  %v450_v17 = vsel %vm446_vm0, %v445_v14, %v443_v10  ;;  %v475_v18 = vsel %vm474_vm1, %v471_v11, %v473_v15  ;;  %v479_v19 = vsel %vm474_vm1, %v473_v15, %v471_v11  ;;  %v5477_v15 = vld [vmem:[%s7857_s5 + $0x18] sm:$0xff] }
  0x88   : > { %v528_v20 = vmul.f32 %v518_v12, %v479_v19  ;;  %v527_v21 = vmul.f32 %v517_v13, %v475_v18  ;;  %v491_v22 = vrot.slane %v447_v16, 4  ;;  %v492_v23 = vrot.slane %v450_v17, 4  ;;  %v5482_v16 = vld [vmem:[%s7857_s5] sm:$0xff]  ;;  %v5487_v17 = vld [vmem:[%s7857_s5 + $0x10] sm:$0xff] }
  0x8a   : > { %v464_v24 = vpop.permute.xlu1 %463  ;;  %v462_v25 = vpop.permute.xlu0 %461  ;;  %v536_v26 = vpack.c.bf16 %v528_v20, %v528_v20  ;;  %v535_v27 = vpack.c.bf16 %v527_v21, %v527_v21  ;;  %v506_v36 = vsel %vm500_vm4, %v5383_v8, %v492_v23  ;;  %v505_v38 = vsel %vm500_vm4, %v5376_v7, %v491_v22 }
  0x8b   : > { %v466_v28 = vsel %vm465_vm2, %v462_v25, %v464_v24  ;;  %v469_v29 = vsel %vm465_vm2, %v464_v24, %v462_v25  ;;  %v524_v45 = vmul.f32 %v5432_v31, %v506_v36  ;;  %v523_v47 = vmul.f32 %v5446_v39, %v505_v38  ;;  %v601_v36 = vld [vmem:[%s5512_s25 + $0x8] sm:$0xff] }
  0x8c   : > { %4699 = vmatprep.subr.msk.bf16.mxu0 %vm550_vm3, %v536_v26  ;;  %v552_v30 = vsel %vm550_vm3, %v535_v27, 0  ;;  %v496_v32 = vrot.slane %v466_v28, 4  ;;  %v497_v33 = vrot.slane %v469_v29, 4  ;;  %v4867_v28 = vld [vmem:[%s7853_s1] sm:$0xff]  }
  0x8d   : > { %568 = vmatpush1.bf16.msra.mxu0 %v552_v30  ;;  %v5517_v29 = vld [vmem:[%s7854_s2] sm:$0xff] }
  0x8e   : > { %v454_v34 = vpop.permute.xlu1 %453  ;;  %v452_v35 = vpop.permute.xlu0 %451 }
  0x8f   : > { %v456_v41 = vsel %vm455_vm5, %v452_v35, %v454_v34  ;;  %v460_v42 = vsel %vm455_vm5, %v454_v34, %v452_v35 }
  0x90   : > { %v507_v43 = vsel %vm500_vm4, %v456_v41, %v496_v32  ;;  %v508_v44 = vsel %vm500_vm4, %v460_v42, %v497_v33  ;;  %v600_v32 = vld [vmem:[%s5512_s25] sm:$0xff]  ;;  %v5523_v33 = vld [vmem:[%s7854_s2 + $0x8] sm:$0xff] }
  0x91   : > { %v526_v46 = vmul.f32 %v5439_v37, %v508_v44  ;;  %v525_v48 = vmul.f32 %v5451_v40, %v507_v43 }
  0x92   : > { %v418_v49 = vpop.permute.xlu1 %417  ;;  %v415_v50 = vpop.permute.xlu0 %414 }
  0x93   : > { %v534_v51 = vpack.c.bf16 %v526_v46, %v524_v45  ;;  %v533_v52 = vpack.c.bf16 %v525_v48, %v523_v47  ;;  %v420_v55 = vsel %vm419_vm6, %v418_v49, %v415_v50  ;;  %v422_v56 = vsel %vm419_vm6, %v415_v50, %v418_v49  ;;  %v5531_v46 = vld [vmem:[%s7854_s2 + $0x10] sm:$0xff]  ;;  %v5536_v47 = vld [vmem:[%s7854_s2 + $0x18] sm:$0xff] }
  0x94   : > { %v481_v63 = vrot.slane %v422_v56, 4  ;;  %v482_v3 = vrot.slane %v420_v55, 4  ;;  %v602_v50 = vld [vmem:[%s5512_s25 + $0x10] sm:$0xff] }
  0x95   : > { %569 = vmatprep.subr.bf16.mxu0 %v534_v51 }
  0x96   : > { %v437_v53 = vpop.permute.xlu1 %436  ;;  %570 = vmatpush1.bf16.msra.mxu0 %v533_v52  ;;  %v434_v54 = vpop.permute.xlu0 %433  ;;  %v603_v52 = vld [vmem:[%s5512_s25 + $0x18] sm:$0xff] }
  0x97   : > { %v439_v59 = vsel %vm438_vm7, %v437_v53, %v434_v54  ;;  %v441_v60 = vsel %vm438_vm7, %v434_v54, %v437_v53 }
  0x98   : > { %v486_v5 = vrot.slane %v441_v60, 4  ;;  %v487_v10 = vrot.slane %v439_v59, 4 }
  0x9a   : > { %v408_v57 = vpop.permute.xlu1 %407  ;;  %v404_v58 = vpop.permute.xlu0 %403 }
  0x9b   : > { %v410_v61 = vsel %vm409_vm8, %v408_v57, %v404_v58  ;;  %v413_v62 = vsel %vm409_vm8, %v404_v58, %v408_v57 }
  0x9c   : > { %v501_v11 = vsel %vm500_vm4, %v413_v62, %v481_v63  ;;  %v502_v12 = vsel %vm500_vm4, %v410_v61, %v482_v3 }
  0x9d   : > { %v520_v22 = vmul.f32 %v5470_v4, %v502_v12  ;;  %v519_v24 = vmul.f32 %v5482_v16, %v501_v11 }
  0x9e   : > { %v427_v13 = vpop.permute.xlu1 %426  ;;  %v424_v14 = vpop.permute.xlu0 %423 }
  0x9f   : > { %v429_v18 = vsel %vm428_vm9, %v427_v13, %v424_v14  ;;  %v432_v19 = vsel %vm428_vm9, %v424_v14, %v427_v13 }
  0xa0   : > { %v503_v20 = vsel %vm500_vm4, %v432_v19, %v486_v5  ;;  %v504_v21 = vsel %vm500_vm4, %v429_v18, %v487_v10 }
  0xa1   : > { %v522_v23 = vmul.f32 %v5477_v15, %v504_v21  ;;  %v521_v25 = vmul.f32 %v5487_v17, %v503_v20 }
  0xa3   : > { %v532_v26 = vpack.c.bf16 %v522_v23, %v520_v22  ;;  %v531_v27 = vpack.c.bf16 %v521_v25, %v519_v24 }
  0xa5   : > { %571 = vmatprep.subr.bf16.mxu0 %v532_v26  ;;  %v5547_v26 = vld [vmem:[%s7860_s8] sm:$0xff] }
  0xa6   : > { %572 = vmatpush1.bf16.msra.mxu0 %v531_v27 }
  0xa9   : > { %4700 = vmatmul.mubr.msk.bf16.vlgmr.msra.gmra.mxu0 %vm546_vm10, %v4867_v28 }
  0xaa   : > { %1117 = vmatprep.mubr.bf16.mxu0 %v7864_v9 }
 0x169   : > { %v591_v30 = vpop.f32.mrf.mxu0 }
 0x16a   : > { %v592_v34 = vadd.f32 %v591_v30, %v5517_v29 }
 0x16b   : > { %v593_v35 = vpop.f32.mrf.mxu0 }
 0x16c   : > { %v604_v38 = vadd.f32 %v600_v32, %v592_v34  ;;  %v594_v41 = vadd.f32 %v593_v35, %v5523_v33 }
 0x16d   : > { %v595_v44 = vpop.f32.mrf.mxu0 }
 0x16e   : > { %v4701_v42 = vmul.f32 -1.442695, %v604_v38  ;;  %v605_v43 = vadd.f32 %v601_v36, %v594_v41  ;;  %v596_v49 = vadd.f32 %v595_v44, %v5531_v46  ;;  %v5569_v44 = vld [vmem:[%s7860_s8 + $0x8] sm:$0xff] }
 0x16f   : > { %v597_v48 = vpop.f32.mrf.mxu0 }
 0x170   : > { %4883 = vpow2.f32 %v4701_v42  ;;  %v4702_v45 = vmul.f32 -1.442695, %v605_v43  ;;  %v598_v51 = vadd.f32 %v597_v48, %v5536_v47  ;;  %v606_v53 = vadd.f32 %v602_v50, %v596_v49  ;;  %v5579_v48 = vld [vmem:[%s7861_s9 + $0x8] sm:$0xff] }
 0x172   : > { %4885 = vpow2.f32 %v4702_v45  ;;  %v607_v54 = vadd.f32 %v603_v52, %v598_v51  ;;  %v4703_v56 = vmul.f32 -1.442695, %v606_v53  ;;  %v671_v45 = vmul.f32 0.0, %v5569_v44 }
 0x173   : > { %4887 = vtanh.f32 %v606_v53 }
 0x174   : > { %4889 = vtanh.f32 %v607_v54  ;;  %v4704_v60 = vmul.f32 -1.442695, %v607_v54  ;;  %v5582_v49 = vadd.f32 %v5579_v48, %v671_v45 }
 0x176   : > { %v679_v50 = vrot.slane %v5582_v49, 4 }
 0x17d   : > { %v4884_v55 = vpop.eup %4883 }
 0x17e   : > { %v620_v57 = vadd.f32 1.0, %v4884_v55 }
 0x17f   : > { %v4886_v58 = vpop.eup %4885 }
 0x180   : > { %4891 = vrcp.f32 %v620_v57  ;;  %v621_v59 = vadd.f32 1.0, %v4886_v58  ;;  %v4888_v61 = vpop.eup %4887 }
 0x181   : > { %4893 = vpow2.f32 %v4703_v56  ;;  %v4890_v62 = vpop.eup %4889  ;;  %v638_v63 = vrot.slane %v4888_v61, 4 }
 0x182   : > { %4895 = vrcp.f32 %v621_v59  ;;  %v639_v11 = vrot.slane %v4890_v62, 4  ;;  %v5661_v62 = vld [vmem:[%s7862_s10 + $0x88] sm:$0xff] }
 0x183   : > { %4897 = vpow2.f32 %v4704_v60 }
 0x18d   : > { %v4892_v3 = vpop.eup %4891 }
 0x18e   : > { %v4894_v5 = vpop.eup %4893  ;;  %v642_v10 = vmul.f32 %v4892_v3, %v638_v63  ;;  %v634_v13 = vmul.f32 %v4892_v3, %v5376_v7  ;;  %v670_v7 = vmul.f32 0.0, %v5547_v26  ;;  %v5666_v63 = vld [vmem:[%s7862_s10 + $0x80] sm:$0xff] }
 0x18f   : > { %v4896_v12 = vpop.eup %4895  ;;  %v622_v20 = vadd.f32 1.0, %v4894_v5 }
 0x190   : > { %v646_v14 = vrot.slane %v642_v10, 4  ;;  %v643_v18 = vmul.f32 %v4896_v12, %v639_v11  ;;  %v4898_v19 = vpop.eup %4897  ;;  %v635_v22 = vmul.f32 %v4896_v12, %v5383_v8  ;;  %v5553_v8 = vld [vmem:[%s7861_s9] sm:$0xff] }
 0x191   : > { %v623_v24 = vadd.f32 1.0, %v4898_v19  ;;  %v5556_v27 = vadd.f32 %v5553_v8, %v670_v7  ;;  %v5689_v7 = vld [vmem:[%s7862_s10 + $0x70] sm:$0xff] }
 0x192   : > { %v650_v21 = vadd.f32 %v646_v14, %v634_v13  ;;  %v647_v23 = vrot.slane %v643_v18, 4 }
 0x193   : > { %v678_v34 = vrot.slane %v5556_v27, 4 }
 0x194   : > { %4899 = vtanh.f32 %v650_v21  ;;  %664 = vst [vmem:[#allocation2] sm:$0xf0] %v650_v21  ;;  %v651_v25 = vadd.f32 %v647_v23, %v635_v22  ;;  %v5675_v21 = vld [vmem:[%s7862_s10 + $0x60] sm:$0xff]  ;;  %v5681_v22 = vld [vmem:[%s7862_s10 + $0x68] sm:$0xff] }
 0x195   : > { %4901 = vrcp.f32 %v622_v20 }
 0x196   : > { %4903 = vtanh.f32 %v651_v25  ;;  %665 = vst [vmem:[#allocation2 + $0x8] sm:$0xf0] %v651_v25 }
 0x197   : > { %4905 = vrcp.f32 %v623_v24 }
 0x1a1   : > { %v4900_v28 = vpop.eup %4899 }
 0x1a2   : > { %v4902_v30 = vpop.eup %4901  ;;  %v656_v32 = vrot.slane %v4900_v28, 4  ;;  %v5694_v28 = vld [vmem:[%s7862_s10 + $0x78] sm:$0xff] }
 0x1a3   : > { %v4904_v35 = vpop.eup %4903 }
 0x1a4   : > { %v660_v36 = vmul.f32 %v4902_v30, %v656_v32  ;;  %v657_v38 = vrot.slane %v4904_v35, 4  ;;  %v4906_v41 = vpop.eup %4905 }
 0x1a6   : > { %662 = vst [vmem:[#allocation2] sm:$0xf] %v660_v36  ;;  %v661_v42 = vmul.f32 %v4906_v41, %v657_v38  ;;  %v5560_v43 = vsel %vm500_vm4, %v660_v36, %v678_v34  ;;  %v5701_v36 = vld [vmem:[%s7862_s10 + $0x40] sm:$0xff] }
 0x1a7   : > { %707 = vrot.lane.b32.xlu1 %v5560_v43, %s5284_s15  ;;  %749 = vrot.lane.b32.xlu0 %v5560_v43, %s5277_s28 }
 0x1a8   : > { %663 = vst [vmem:[#allocation2 + $0x8] sm:$0xf] %v661_v42  ;;  %v5594_v51 = vsel %vm500_vm4, %v661_v42, %v679_v50  ;;  %v5710_v50 = vld [vmem:[%s7862_s10 + $0x48] sm:$0xff] }
 0x1ab   : > { %716 = vrot.lane.b32.xlu1 %v5560_v43, %s5281_s13  ;;  %731 = vrot.lane.b32.xlu0 %v5560_v43, %s5279_s30 }
 0x1ad   : > { %v931_v52 = vld [vmem:[#allocation2] sm:$0xff] }
 0x1ae   : > { %v935_v53 = vmul.f32 %v931_v52, %v5356_v0  ;;  %v5715_v52 = vld [vmem:[%s7862_s10 + $0x38] sm:$0xff] }
 0x1af   : > { %689 = vrot.lane.b32.xlu1 %v5560_v43, %s5283_s14  ;;  %740 = vrot.lane.b32.xlu0 %v5560_v43, %s5278_s29  ;;  %v932_v55 = vld [vmem:[#allocation2 + $0x8] sm:$0xff] }
 0x1b0   : > { %v5614_v54 = vadd.f32 %v935_v53, %v5361_v1  ;;  %v936_v0 = vmul.f32 %v932_v55, %v5366_v2  ;;  %v5721_v55 = vld [vmem:[%s7862_s10 + $0x50] sm:$0xff] }
 0x1b2   : > { %v5630_v1 = vadd.f32 %v936_v0, %v5373_v6  ;;  %v5726_v0 = vld [vmem:[%s7862_s10 + $0x58] sm:$0xff] }
 0x1b3   : > { %698 = vrot.lane.b32.xlu1 %v5560_v43, %s5280_s12  ;;  %722 = vrot.lane.b32.xlu0 %v5560_v43, %s5276_s27 }
 0x1b7   : > { %751 = vrot.lane.b32.xlu1 %v5594_v51, %s5277_s28  ;;  %704 = vrot.lane.b32.xlu0 %v5594_v51, %s5284_s15 }
 0x1bb   : > { %733 = vrot.lane.b32.xlu1 %v5594_v51, %s5279_s30  ;;  %713 = vrot.lane.b32.xlu0 %v5594_v51, %s5281_s13 }
 0x1bf   : > { %742 = vrot.lane.b32.xlu1 %v5594_v51, %s5278_s29  ;;  %685 = vrot.lane.b32.xlu0 %v5594_v51, %s5283_s14 }
 0x1c3   : > { %724 = vrot.lane.b32.xlu1 %v5594_v51, %s5276_s27  ;;  %695 = vrot.lane.b32.xlu0 %v5594_v51, %s5280_s12 }
 0x1c7   : > { %955 = vrot.lane.b32.xlu1 %v5614_v54, %s5280_s12  ;;  %1002 = vrot.lane.b32.xlu0 %v5614_v54, %s5277_s28 }
 0x1cb   : > { %972 = vrot.lane.b32.xlu1 %v5614_v54, %s5281_s13  ;;  %977 = vrot.lane.b32.xlu0 %v5614_v54, %s5276_s27 }
 0x1cf   : > { %946 = vrot.lane.b32.xlu1 %v5614_v54, %s5283_s14  ;;  %994 = vrot.lane.b32.xlu0 %v5614_v54, %s5278_s29 }
 0x1d3   : > { %1004 = vrot.lane.b32.xlu1 %v5630_v1, %s5277_s28  ;;  %985 = vrot.lane.b32.xlu0 %v5614_v54, %s5279_s30 }
 0x1d7   : > { %979 = vrot.lane.b32.xlu1 %v5630_v1, %s5276_s27  ;;  %952 = vrot.lane.b32.xlu0 %v5630_v1, %s5280_s12 }
 0x1db   : > { %996 = vrot.lane.b32.xlu1 %v5630_v1, %s5278_s29  ;;  %969 = vrot.lane.b32.xlu0 %v5630_v1, %s5281_s13 }
 0x1df   : > { %987 = vrot.lane.b32.xlu1 %v5630_v1, %s5279_s30  ;;  %942 = vrot.lane.b32.xlu0 %v5630_v1, %s5283_s14 }
 0x1e3   : > { %963 = vrot.lane.b32.xlu1 %v5614_v54, %s5284_s15  ;;  %960 = vrot.lane.b32.xlu0 %v5630_v1, %s5284_s15 }
 0x219   : > { %v5652_v2 = vpop.permute.xlu1 %707  ;;  %v750_v6 = vpop.permute.xlu0 %749 }
 0x21d   : > { %v717_v56 = vpop.permute.xlu1 %716  ;;  %v732_v57 = vpop.permute.xlu0 %731 }
 0x221   : > { %v5654_v58 = vpop.permute.xlu1 %689  ;;  %v741_v59 = vpop.permute.xlu0 %740 }
 0x225   : > { %v5656_v60 = vpop.permute.xlu1 %698  ;;  %v723_v61 = vpop.permute.xlu0 %722 }
 0x229   : > { %v752_v3 = vpop.permute.xlu1 %751  ;;  %v705_v5 = vpop.permute.xlu0 %704 }
 0x22a   : > { %v753_v10 = vsel %vm474_vm1, %v750_v6, %v752_v3  ;;  %v757_v11 = vsel %vm474_vm1, %v752_v3, %v750_v6 }
 0x22b   : > { %v793_v12 = vmul.f32 %v5661_v62, %v757_v11  ;;  %v792_v13 = vmul.f32 %v5666_v63, %v753_v10  ;;  %v784_v10 = vmul.f32 %v5701_v36, %v5560_v43  ;;  %v5733_v11 = vld [vmem:[%s7862_s10 + $0x28] sm:$0xff] }
 0x22d   : > { %v734_v14 = vpop.permute.xlu1 %733  ;;  %v714_v18 = vpop.permute.xlu0 %713  ;;  %v805_v19 = vpack.c.bf16 %v793_v12, %v793_v12  ;;  %v804_v20 = vpack.c.bf16 %v792_v13, %v792_v13  ;;  %v709_v12 = vsel %vm428_vm9, %v5652_v2, %v705_v5 }
 0x22e   : > { %v735_v23 = vsel %vm455_vm5, %v732_v57, %v734_v14  ;;  %v739_v24 = vsel %vm455_vm5, %v734_v14, %v732_v57  ;;  %v718_v53 = vsel %vm438_vm7, %v717_v56, %v714_v18  ;;  %v721_v43 = vsel %vm438_vm7, %v714_v18, %v717_v56  ;;  %v5760_v56 = vld [vmem:[%s7862_s10 + $0x20] sm:$0xff] }
 0x22f   : > { %4706 = vmatprep.subr.msk.bf16.mxu1 %vm500_vm4, %v805_v19  ;;  %v820_v25 = vsel %vm500_vm4, %v804_v20, 0  ;;  %v788_v38 = vmul.f32 %v5675_v21, %v735_v23  ;;  %v789_v41 = vmul.f32 %v5681_v22, %v739_v24  ;;  %v785_v19 = vmul.f32 %v5710_v50, %v5594_v51  ;;  %v5744_v20 = vld [vmem:[%s7862_s10 + $0x30] sm:$0xff] }
 0x230   : > { %832 = vmatpush1.bf16.msra.mxu1 %v820_v25  ;;  %v783_v23 = vmul.f32 %v5715_v52, %v718_v53  ;;  %v712_v18 = vsel %vm428_vm9, %v705_v5, %v5652_v2  ;;  %v5776_v2 = vld [vmem:[%s7862_s10 + $0x10] sm:$0xff] }
 0x231   : > { %v743_v30 = vpop.permute.xlu1 %742  ;;  %v686_v32 = vpop.permute.xlu0 %685 }
 0x232   : > { %v744_v34 = vsel %vm465_vm2, %v741_v59, %v743_v30  ;;  %v748_v35 = vsel %vm465_vm2, %v743_v30, %v741_v59  ;;  %v781_v30 = vmul.f32 %v5733_v11, %v709_v12  ;;  %v691_v53 = vsel %vm409_vm8, %v5654_v58, %v686_v32 }
 0x233   : > { %v790_v42 = vmul.f32 %v5689_v7, %v744_v34  ;;  %v791_v45 = vmul.f32 %v5694_v28, %v748_v35  ;;  %v694_v12 = vsel %vm409_vm8, %v686_v32, %v5654_v58  ;;  %v4868_v58 = vld [vmem:[%s7858_s6] sm:$0xff]  }
 0x234   : > { %v1047_v32 = vld [vmem:[%s7857_s5 + $0x40] sm:$0xf] }
 0x235   : > { %v725_v6 = vpop.permute.xlu1 %724  ;;  %v696_v57 = vpop.permute.xlu0 %695  ;;  %v803_v59 = vpack.c.bf16 %v791_v45, %v789_v41  ;;  %v802_v3 = vpack.c.bf16 %v790_v42, %v788_v38  ;;  %v782_v42 = vmul.f32 %v5744_v20, %v721_v43  ;;  %v5769_v45 = vld [vmem:[%s7862_s10 + $0x8] sm:$0xff] }
 0x236   : > { %v726_v13 = vsel %vm446_vm0, %v723_v61, %v725_v6  ;;  %v730_v14 = vsel %vm446_vm0, %v725_v6, %v723_v61  ;;  %v5753_v61 = vld [vmem:[%s7862_s10 + $0x18] sm:$0xff]  ;;  %v700_v51 = vsel %vm419_vm6, %v5656_v60, %v696_v57  ;;  %v703_v5 = vsel %vm419_vm6, %v696_v57, %v5656_v60 }
 0x237   : > { %v786_v24 = vmul.f32 %v5721_v55, %v726_v13  ;;  %v787_v25 = vmul.f32 %v5726_v0, %v730_v14  ;;  %833 = vmatprep.subr.bf16.mxu1 %v803_v59  ;;  %v779_v6 = vmul.f32 %v5753_v61, %v700_v51  ;;  %v799_v59 = vpack.c.bf16 %v783_v23, %v781_v30 }
 0x238   : > { %834 = vmatpush1.bf16.msra.mxu1 %v802_v3  ;;  %v780_v3 = vmul.f32 %v5760_v56, %v712_v18  ;;  %v777_v13 = vmul.f32 %v5769_v45, %v691_v53  ;;  %v778_v57 = vmul.f32 %v5776_v2, %v703_v5  ;;  %v1048_v18 = vld [vmem:[%s7857_s5 + $0x48] sm:$0xf] }
 0x239   : > { %v956_v34 = vpop.permute.xlu1 %955  ;;  %v1003_v35 = vpop.permute.xlu0 %1002  ;;  %v801_v38 = vpack.c.bf16 %v787_v25, %v785_v19  ;;  %v800_v41 = vpack.c.bf16 %v786_v24, %v784_v10  ;;  %v5785_v10 = vld [vmem:[%s7862_s10] sm:$0xff] }
 0x23a   : > { %v798_v19 = vpack.c.bf16 %v782_v42, %v780_v3  ;;  %v797_v43 = vpack.c.bf16 %v779_v6, %v777_v13  ;;  %v776_v23 = vmul.f32 %v5785_v10, %v694_v12 }
 0x23b   : > { %835 = vmatprep.subr.bf16.mxu1 %v801_v38 }
 0x23c   : > { %836 = vmatpush1.bf16.msra.mxu1 %v800_v41  ;;  %v796_v51 = vpack.c.bf16 %v778_v57, %v776_v23 }
 0x23d   : > { %837 = vmatprep.subr.bf16.mxu1 %v799_v59  ;;  %v973_v14 = vpop.permute.xlu1 %972  ;;  %v978_v60 = vpop.permute.xlu0 %977 }
 0x240   : > { %838 = vmatpush1.bf16.msra.mxu1 %v798_v19 }
 0x241   : > { %839 = vmatprep.subr.bf16.mxu1 %v797_v43  ;;  %v947_v24 = vpop.permute.xlu1 %946  ;;  %v995_v25 = vpop.permute.xlu0 %994 }
 0x244   : > { %840 = vmatpush1.bf16.msra.mxu1 %v796_v51 }
 0x245   : > { %v1005_v30 = vpop.permute.xlu1 %1004  ;;  %v986_v38 = vpop.permute.xlu0 %985 }
 0x246   : > { %v1006_v41 = vsel %vm474_vm1, %v1003_v35, %v1005_v30  ;;  %v1010_v42 = vsel %vm474_vm1, %v1005_v30, %v1003_v35 }
 0x247   : > { %v1057_v53 = vmul.f32 %v1047_v32, %v1006_v41  ;;  %v1058_v5 = vmul.f32 %v1048_v18, %v1010_v42  ;;  %4707 = vmatmul.mubr.msk.bf16.vlgmr.msra.gmra.mxu1 %vm815_vm11, %v4868_v58 }
 0x248   : > { %1385 = vmatprep.mubr.bf16.mxu1 %v7864_v9 }
 0x249   : > { %v1065_v6 = vpack.c.bf16 %v1057_v53, %v1057_v53  ;;  %v1066_v59 = vpack.c.bf16 %v1058_v5, %v1058_v5  ;;  %v980_v3 = vpop.permute.xlu1 %979  ;;  %v953_v12 = vpop.permute.xlu0 %952 }
 0x24a   : > { %v981_v13 = vsel %vm446_vm0, %v978_v60, %v980_v3  ;;  %v984_v57 = vsel %vm446_vm0, %v980_v3, %v978_v60  ;;  %v957_v30 = vsel %vm419_vm6, %v956_v34, %v953_v12  ;;  %v959_v60 = vsel %vm419_vm6, %v953_v12, %v956_v34 }
 0x24b   : > { %4713 = vmatprep.subr.msk.bf16.mxu0 %vm550_vm3, %v1066_v59  ;;  %v1022_v19 = vrot.slane %v981_v13, 4  ;;  %v1023_v43 = vrot.slane %v984_v57, 4  ;;  %v1080_v35 = vsel %vm550_vm3, %v1065_v6, 0  ;;  %v1012_v34 = vrot.slane %v959_v60, 4 }
 0x24c   : > { %1096 = vmatpush1.bf16.msra.mxu0 %v1080_v35  ;;  %v1013_v12 = vrot.slane %v957_v30, 4 }
 0x24d   : > { %v997_v23 = vpop.permute.xlu1 %996  ;;  %v970_v51 = vpop.permute.xlu0 %969  ;;  %v1035_v18 = vsel %vm500_vm4, %v5614_v54, %v1022_v19  ;;  %v1036_v41 = vsel %vm500_vm4, %v5630_v1, %v1023_v43 }
 0x24e   : > { %v998_v58 = vsel %vm465_vm2, %v995_v25, %v997_v23  ;;  %v1001_v32 = vsel %vm465_vm2, %v997_v23, %v995_v25  ;;  %v974_v5 = vsel %vm438_vm7, %v973_v14, %v970_v51  ;;  %v976_v6 = vsel %vm438_vm7, %v970_v51, %v973_v14 }
 0x24f   : > { %v1027_v42 = vrot.slane %v998_v58, 4  ;;  %v1028_v53 = vrot.slane %v1001_v32, 4  ;;  %v1053_v23 = vmul.f32 %v1035_v18, %v5446_v39  ;;  %v1054_v51 = vmul.f32 %v1036_v41, %v5432_v31 }
 0x250   : > { %v1017_v32 = vrot.slane %v976_v6, 4 }
 0x251   : > { %v988_v59 = vpop.permute.xlu1 %987  ;;  %v943_v3 = vpop.permute.xlu0 %942 }
 0x252   : > { %v989_v25 = vsel %vm455_vm5, %v986_v38, %v988_v59  ;;  %v993_v13 = vsel %vm455_vm5, %v988_v59, %v986_v38  ;;  %v948_v57 = vsel %vm409_vm8, %v947_v24, %v943_v3  ;;  %v951_v19 = vsel %vm409_vm8, %v943_v3, %v947_v24 }
 0x253   : > { %v1037_v43 = vsel %vm500_vm4, %v989_v25, %v1027_v42  ;;  %v1038_v35 = vsel %vm500_vm4, %v993_v13, %v1028_v53  ;;  %v1018_v38 = vrot.slane %v974_v5, 4  ;;  %v1031_v59 = vsel %vm500_vm4, %v951_v19, %v1012_v34  ;;  %v4869_v13 = vld [vmem:[%s7853_s1] sm:$0xff]  }
 0x254   : > { %v1055_v14 = vmul.f32 %v1037_v43, %v5451_v40  ;;  %v1056_v58 = vmul.f32 %v1038_v35, %v5439_v37  ;;  %v1032_v24 = vsel %vm500_vm4, %v948_v57, %v1013_v12  ;;  %v1049_v37 = vmul.f32 %v1031_v59, %v5482_v16  ;;  %v5847_v16 = vld [vmem:[%s7859_s7] sm:$0xff]  ;;  %v5859_v35 = vld [vmem:[%s7859_s7 + $0x10] sm:$0xff] }
 0x255   : > { %v964_v60 = vpop.permute.xlu1 %963  ;;  %v961_v30 = vpop.permute.xlu0 %960  ;;  %v1050_v41 = vmul.f32 %v1032_v24, %v5470_v4 }
 0x256   : > { %v965_v42 = vsel %vm428_vm9, %v964_v60, %v961_v30  ;;  %v968_v53 = vsel %vm428_vm9, %v961_v30, %v964_v60  ;;  %v1064_v3 = vpack.c.bf16 %v1056_v58, %v1054_v51  ;;  %v1063_v39 = vpack.c.bf16 %v1055_v14, %v1053_v23  ;;  %v5864_v23 = vld [vmem:[%s7859_s7 + $0x18] sm:$0xff] }
 0x257   : > { %v1033_v40 = vsel %vm500_vm4, %v968_v53, %v1017_v32  ;;  %v1034_v31 = vsel %vm500_vm4, %v965_v42, %v1018_v38  ;;  %v4715_v53 = vld [vmem:[%s5512_s25 + $0x20] sm:$0xff] }
 0x258   : > { %v1051_v18 = vmul.f32 %v1033_v40, %v5487_v17  ;;  %1097 = vmatprep.subr.bf16.mxu0 %v1064_v3  ;;  %v1052_v5 = vmul.f32 %v1034_v31, %v5477_v15  ;;  %v5852_v15 = vld [vmem:[%s7859_s7 + $0x8] sm:$0xff] }
 0x259   : > { %1098 = vmatpush1.bf16.msra.mxu0 %v1063_v39  ;;  %v4716_v40 = vld [vmem:[%s5512_s25 + $0x28] sm:$0xff] }
 0x25a   : > { %v1062_v6 = vpack.c.bf16 %v1052_v5, %v1050_v41  ;;  %v1061_v25 = vpack.c.bf16 %v1051_v18, %v1049_v37 }
 0x25c   : > { %1099 = vmatprep.subr.bf16.mxu0 %v1062_v6 }
 0x25d   : > { %1100 = vmatpush1.bf16.msra.mxu0 %v1061_v25 }
 0x260   : > { %4714 = vmatmul.mubr.msk.bf16.vlgmr.msra.gmra.mxu0 %vm546_vm10, %v4869_v13 }
 0x261   : > { %1646 = vmatprep.mubr.bf16.mxu0 %v7864_v9 }
 0x307   : > { %v859_v4 = vpop.f32.mrf.mxu1 }
 0x308   : > { %v860_v17 = vadd.f32 %v859_v4, %v5847_v16 }
 0x309   : > { %v861_v57 = vpop.f32.mrf.mxu1 }
 0x30a   : > { %v4708_v19 = vmul.f32 -1.442695, %v860_v17  ;;  %v862_v34 = vadd.f32 %v861_v57, %v5852_v15 }
 0x30b   : > { %v863_v43 = vpop.f32.mrf.mxu1 }
 0x30c   : > { %4907 = vpow2.f32 %v4708_v19  ;;  %v4709_v12 = vmul.f32 -1.442695, %v862_v34  ;;  %v864_v51 = vadd.f32 %v863_v43, %v5859_v35 }
 0x30d   : > { %v865_v14 = vpop.f32.mrf.mxu1 }
 0x30e   : > { %4909 = vpow2.f32 %v4709_v12  ;;  %v866_v58 = vadd.f32 %v865_v14, %v5864_v23  ;;  %v4710_v38 = vmul.f32 -1.442695, %v864_v51 }
 0x30f   : > { %4911 = vtanh.f32 %v864_v51 }
 0x310   : > { %4913 = vtanh.f32 %v866_v58  ;;  %v4711_v30 = vmul.f32 -1.442695, %v866_v58 }
 0x319   : > { %v4908_v32 = vpop.eup %4907 }
 0x31a   : > { %v880_v59 = vadd.f32 1.0, %v4908_v32  ;;  %v4717_v32 = vld [vmem:[%s5512_s25 + $0x30] sm:$0xff] }
 0x31b   : > { %v4910_v24 = vpop.eup %4909 }
 0x31c   : > { %4915 = vrcp.f32 %v880_v59  ;;  %v881_v60 = vadd.f32 1.0, %v4910_v24  ;;  %v4912_v18 = vpop.eup %4911 }
 0x31d   : > { %4917 = vpow2.f32 %v4710_v38  ;;  %v4914_v25 = vpop.eup %4913  ;;  %v898_v4 = vrot.slane %v4912_v18, 4 }
 0x31e   : > { %4919 = vrcp.f32 %v881_v60  ;;  %v899_v34 = vrot.slane %v4914_v25, 4 }
 0x31f   : > { %4921 = vpow2.f32 %v4711_v30 }
 0x320   : > { %v1119_v42 = vpop.f32.mrf.mxu0 }
 0x321   : > { %v1120_v3 = vadd.f32 %v1119_v42, %v5517_v29  ;;  %v4718_v42 = vld [vmem:[%s5512_s25 + $0x38] sm:$0xff] }
 0x322   : > { %v1121_v39 = vpop.f32.mrf.mxu0 }
 0x323   : > { %v1133_v31 = vadd.f32 %v4715_v53, %v1120_v3  ;;  %v1122_v37 = vadd.f32 %v1121_v39, %v5523_v33 }
 0x324   : > { %v1123_v6 = vpop.f32.mrf.mxu0 }
 0x325   : > { %v4719_v41 = vmul.f32 -1.442695, %v1133_v31  ;;  %v1134_v5 = vadd.f32 %v4716_v40, %v1122_v37  ;;  %v1124_v33 = vadd.f32 %v1123_v6, %v5531_v46 }
 0x326   : > { %v1125_v12 = vpop.f32.mrf.mxu0 }
 0x327   : > { %4923 = vpow2.f32 %v4719_v41  ;;  %v4720_v13 = vmul.f32 -1.442695, %v1134_v5  ;;  %v1126_v24 = vadd.f32 %v1125_v12, %v5536_v47  ;;  %v1135_v53 = vadd.f32 %v4717_v32, %v1124_v33 }
 0x329   : > { %v4916_v17 = vpop.eup %4915  ;;  %4925 = vpow2.f32 %v4720_v13  ;;  %v1136_v39 = vadd.f32 %v4718_v42, %v1126_v24 }
 0x32a   : > { %v4918_v57 = vpop.eup %4917  ;;  %v894_v29 = vmul.f32 %v4916_v17, %v5556_v27  ;;  %v902_v19 = vmul.f32 %v4916_v17, %v898_v4 }
 0x32b   : > { %v4920_v43 = vpop.eup %4919  ;;  %v882_v59 = vadd.f32 1.0, %v4918_v57  ;;  %v4722_v37 = vmul.f32 -1.442695, %v1136_v39 }
 0x32c   : > { %v906_v14 = vrot.slane %v902_v19, 4  ;;  %v895_v51 = vmul.f32 %v4920_v43, %v5582_v49  ;;  %v903_v58 = vmul.f32 %v4920_v43, %v899_v34  ;;  %v4922_v38 = vpop.eup %4921  ;;  %v4721_v49 = vmul.f32 -1.442695, %v1135_v53 }
 0x32d   : > { %v883_v27 = vadd.f32 1.0, %v4922_v38 }
 0x32e   : > { %v910_v60 = vadd.f32 %v906_v14, %v894_v29  ;;  %v907_v30 = vrot.slane %v903_v58, 4 }
 0x330   : > { %4927 = vtanh.f32 %v910_v60  ;;  %924 = vst [vmem:[#allocation3 + $0x8] sm:$0xf0] %v910_v60  ;;  %v911_v3 = vadd.f32 %v907_v30, %v895_v51 }
 0x331   : > { %4929 = vrcp.f32 %v882_v59 }
 0x332   : > { %4931 = vtanh.f32 %v911_v3  ;;  %925 = vst [vmem:[#allocation3] sm:$0xf0] %v911_v3 }
 0x333   : > { %4933 = vtanh.f32 %v1135_v53 }
 0x334   : > { %v4924_v46 = vpop.eup %4923  ;;  %4935 = vrcp.f32 %v883_v27 }
 0x335   : > { %v1149_v40 = vadd.f32 1.0, %v4924_v46  ;;  %4937 = vtanh.f32 %v1136_v39 }
 0x336   : > { %v4926_v47 = vpop.eup %4925 }
 0x337   : > { %4939 = vrcp.f32 %v1149_v40  ;;  %v1150_v31 = vadd.f32 1.0, %v4926_v47 }
 0x338   : > { %4941 = vpow2.f32 %v4721_v49 }
 0x339   : > { %4943 = vrcp.f32 %v1150_v31 }
 0x33a   : > { %4945 = vpow2.f32 %v4722_v37 }
 0x33d   : > { %v4928_v18 = vpop.eup %4927 }
 0x33e   : > { %v4930_v41 = vpop.eup %4929  ;;  %v916_v5 = vrot.slane %v4928_v18, 4 }
 0x33f   : > { %v4932_v6 = vpop.eup %4931 }
 0x340   : > { %v4934_v25 = vpop.eup %4933  ;;  %v920_v13 = vmul.f32 %v4930_v41, %v916_v5  ;;  %v917_v4 = vrot.slane %v4932_v6, 4 }
 0x341   : > { %v4936_v17 = vpop.eup %4935  ;;  %v1167_v19 = vrot.slane %v4934_v25, 4 }
 0x342   : > { %v4938_v57 = vpop.eup %4937  ;;  %922 = vst [vmem:[#allocation3 + $0x8] sm:$0xf] %v920_v13  ;;  %v921_v29 = vmul.f32 %v4936_v17, %v917_v4  ;;  %v5940_v17 = vld [vmem:[%s7856_s4] sm:$0xff] }
 0x343   : > { %v1168_v14 = vrot.slane %v4938_v57, 4 }
 0x344   : > { %v4940_v34 = vpop.eup %4939  ;;  %923 = vst [vmem:[#allocation3] sm:$0xf] %v921_v29  ;;  %v928_v12 = vcombine.low %v920_v13, %v921_v29 }
 0x345   : > { %v4942_v43 = vpop.eup %4941  ;;  %v1171_v33 = vmul.f32 %v4940_v34, %v1167_v19  ;;  %v1163_v58 = vmul.f32 %v4940_v34, %v5614_v54  ;;  %v5956_v19 = vld [vmem:[%s7855_s3 + $0x8] sm:$0xff] }
 0x346   : > { %v4944_v51 = vpop.eup %4943  ;;  %930 = vst [vmem:[%s5882_s24] sm:$0xff] %v928_v12  ;;  %v1151_v24 = vadd.f32 1.0, %v4942_v43  ;;  %v5966_v12 = vld [vmem:[%s7856_s4 + $0x8] sm:$0xff] }
 0x347   : > { %v1175_v32 = vrot.slane %v1171_v33, 4  ;;  %v1172_v38 = vmul.f32 %v4944_v51, %v1168_v14  ;;  %v4946_v59 = vpop.eup %4945  ;;  %v1164_v30 = vmul.f32 %v4944_v51, %v5630_v1 }
 0x348   : > { %v1152_v53 = vadd.f32 1.0, %v4946_v59 }
 0x349   : > { %v1179_v60 = vadd.f32 %v1175_v32, %v1163_v58  ;;  %v1176_v42 = vrot.slane %v1172_v38, 4  ;;  %v1195_v3 = vld [vmem:[#allocation3 + $0x8] sm:$0xff] }
 0x34a   : > { %v1199_v39 = vmul.f32 %v1195_v3, %v5547_v26 }
 0x34b   : > { %4947 = vtanh.f32 %v1179_v60  ;;  %1193 = vst [vmem:[#allocation2] sm:$0xf0] %v1179_v60  ;;  %v1180_v27 = vadd.f32 %v1176_v42, %v1164_v30  ;;  %v1196_v26 = vld [vmem:[#allocation3] sm:$0xff] }
 0x34c   : > { %4949 = vrcp.f32 %v1151_v24  ;;  %v5889_v54 = vadd.f32 %v1199_v39, %v5553_v8  ;;  %v1200_v8 = vmul.f32 %v1196_v26, %v5569_v44 }
 0x34d   : > { %4951 = vtanh.f32 %v1180_v27  ;;  %1194 = vst [vmem:[#allocation2 + $0x8] sm:$0xf0] %v1180_v27 }
 0x34e   : > { %4953 = vrcp.f32 %v1152_v53  ;;  %v1207_v37 = vrot.slane %v5889_v54, 4  ;;  %v5909_v6 = vadd.f32 %v1200_v8, %v5579_v48  ;;  %v5930_v48 = vld [vmem:[%s7855_s3] sm:$0xff] }
 0x350   : > { %v1208_v25 = vrot.slane %v5909_v6, 4 }
 0x358   : > { %v4948_v46 = vpop.eup %4947 }
 0x359   : > { %v4950_v49 = vpop.eup %4949  ;;  %v1185_v40 = vrot.slane %v4948_v46, 4 }
 0x35a   : > { %v4952_v47 = vpop.eup %4951 }
 0x35b   : > { %v1189_v1 = vmul.f32 %v4950_v49, %v1185_v40  ;;  %v1186_v31 = vrot.slane %v4952_v47, 4  ;;  %v4954_v18 = vpop.eup %4953 }
 0x35d   : > { %1191 = vst [vmem:[#allocation2] sm:$0xf] %v1189_v1  ;;  %v1190_v41 = vmul.f32 %v4954_v18, %v1186_v31  ;;  %v5893_v5 = vsel %vm500_vm4, %v1189_v1, %v1207_v37 }
 0x35e   : > { %1236 = vrot.lane.b32.xlu1 %v5893_v5, %s5284_s15  ;;  %1278 = vrot.lane.b32.xlu0 %v5893_v5, %s5277_s28 }
 0x35f   : > { %1192 = vst [vmem:[#allocation2 + $0x8] sm:$0xf] %v1190_v41  ;;  %v5917_v13 = vsel %vm500_vm4, %v1190_v41, %v1208_v25 }
 0x362   : > { %1245 = vrot.lane.b32.xlu1 %v5893_v5, %s5281_s13  ;;  %1260 = vrot.lane.b32.xlu0 %v5893_v5, %s5279_s30 }
 0x364   : > { %v1460_v44 = vld [vmem:[#allocation2] sm:$0xff] }
 0x365   : > { %v1464_v4 = vmul.f32 %v5930_v48, %v1460_v44 }
 0x366   : > { %1218 = vrot.lane.b32.xlu1 %v5893_v5, %s5283_s14  ;;  %1269 = vrot.lane.b32.xlu0 %v5893_v5, %s5278_s29  ;;  %v1461_v29 = vld [vmem:[#allocation2 + $0x8] sm:$0xff] }
 0x367   : > { %v5947_v57 = vadd.f32 %v5940_v17, %v1464_v4  ;;  %v1465_v34 = vmul.f32 %v5956_v19, %v1461_v29 }
 0x369   : > { %v5973_v43 = vadd.f32 %v5966_v12, %v1465_v34  ;;  %v1313_v34 = vmul.f32 %v5893_v5, %v5701_v36 }
 0x36a   : > { %1227 = vrot.lane.b32.xlu1 %v5893_v5, %s5280_s12  ;;  %1251 = vrot.lane.b32.xlu0 %v5893_v5, %s5276_s27 }
 0x36e   : > { %1280 = vrot.lane.b32.xlu1 %v5917_v13, %s5277_s28  ;;  %1233 = vrot.lane.b32.xlu0 %v5917_v13, %s5284_s15 }
 0x372   : > { %1262 = vrot.lane.b32.xlu1 %v5917_v13, %s5279_s30  ;;  %1242 = vrot.lane.b32.xlu0 %v5917_v13, %s5281_s13 }
 0x376   : > { %1271 = vrot.lane.b32.xlu1 %v5917_v13, %s5278_s29  ;;  %1214 = vrot.lane.b32.xlu0 %v5917_v13, %s5283_s14 }
 0x37a   : > { %1253 = vrot.lane.b32.xlu1 %v5917_v13, %s5276_s27  ;;  %1224 = vrot.lane.b32.xlu0 %v5917_v13, %s5280_s12 }
 0x37e   : > { %1484 = vrot.lane.b32.xlu1 %v5947_v57, %s5280_s12  ;;  %1531 = vrot.lane.b32.xlu0 %v5947_v57, %s5277_s28 }
 0x382   : > { %1501 = vrot.lane.b32.xlu1 %v5947_v57, %s5281_s13  ;;  %1506 = vrot.lane.b32.xlu0 %v5947_v57, %s5276_s27 }
 0x386   : > { %1475 = vrot.lane.b32.xlu1 %v5947_v57, %s5283_s14  ;;  %1523 = vrot.lane.b32.xlu0 %v5947_v57, %s5278_s29 }
 0x38a   : > { %1533 = vrot.lane.b32.xlu1 %v5973_v43, %s5277_s28  ;;  %1514 = vrot.lane.b32.xlu0 %v5947_v57, %s5279_s30 }
 0x38e   : > { %1508 = vrot.lane.b32.xlu1 %v5973_v43, %s5276_s27  ;;  %1481 = vrot.lane.b32.xlu0 %v5973_v43, %s5280_s12 }
 0x392   : > { %1525 = vrot.lane.b32.xlu1 %v5973_v43, %s5278_s29  ;;  %1498 = vrot.lane.b32.xlu0 %v5973_v43, %s5281_s13 }
 0x396   : > { %1516 = vrot.lane.b32.xlu1 %v5973_v43, %s5279_s30  ;;  %1471 = vrot.lane.b32.xlu0 %v5973_v43, %s5283_s14 }
 0x39a   : > { %1492 = vrot.lane.b32.xlu1 %v5947_v57, %s5284_s15  ;;  %1489 = vrot.lane.b32.xlu0 %v5973_v43, %s5284_s15 }
 0x3d0   : > { %v1237_v33 = vpop.permute.xlu1 %1236  ;;  %v1279_v14 = vpop.permute.xlu0 %1278 }
 0x3d4   : > { %v1246_v51 = vpop.permute.xlu1 %1245  ;;  %v1261_v58 = vpop.permute.xlu0 %1260 }
 0x3d8   : > { %v1219_v32 = vpop.permute.xlu1 %1218  ;;  %v1270_v38 = vpop.permute.xlu0 %1269 }
 0x3dc   : > { %v1228_v59 = vpop.permute.xlu1 %1227  ;;  %v1252_v24 = vpop.permute.xlu0 %1251 }
 0x3e0   : > { %v1281_v60 = vpop.permute.xlu1 %1280  ;;  %v1234_v30 = vpop.permute.xlu0 %1233 }
 0x3e1   : > { %v1282_v42 = vsel %vm474_vm1, %v1279_v14, %v1281_v60  ;;  %v1286_v53 = vsel %vm474_vm1, %v1281_v60, %v1279_v14  ;;  %v1238_v60 = vsel %vm428_vm9, %v1237_v33, %v1234_v30  ;;  %v1241_v5 = vsel %vm428_vm9, %v1234_v30, %v1237_v33 }
 0x3e2   : > { %v1321_v27 = vmul.f32 %v1282_v42, %v5666_v63  ;;  %v1322_v3 = vmul.f32 %v1286_v53, %v5661_v62 }
 0x3e4   : > { %v1333_v39 = vpack.c.bf16 %v1321_v27, %v1321_v27  ;;  %v1334_v46 = vpack.c.bf16 %v1322_v3, %v1322_v3  ;;  %v1263_v49 = vpop.permute.xlu1 %1262  ;;  %v1243_v40 = vpop.permute.xlu0 %1242  ;;  %v1310_v27 = vmul.f32 %v1238_v60, %v5733_v11 }
 0x3e5   : > { %v1264_v47 = vsel %vm455_vm5, %v1261_v58, %v1263_v49  ;;  %v1268_v1 = vsel %vm455_vm5, %v1263_v49, %v1261_v58  ;;  %v1247_v44 = vsel %vm438_vm7, %v1246_v51, %v1243_v40 }
 0x3e6   : > { %4724 = vmatprep.subr.msk.bf16.mxu1 %vm500_vm4, %v1334_v46  ;;  %v1348_v31 = vsel %vm500_vm4, %v1333_v39, 0  ;;  %v1317_v62 = vmul.f32 %v1264_v47, %v5675_v21  ;;  %v1318_v26 = vmul.f32 %v1268_v1, %v5681_v22  ;;  %v1314_v22 = vmul.f32 %v5917_v13, %v5710_v50 }
 0x3e7   : > { %1360 = vmatpush1.bf16.msra.mxu1 %v1348_v31  ;;  %v1309_v46 = vmul.f32 %v1241_v5, %v5760_v56  ;;  %v4870_v56 = vld [vmem:[%s7858_s6] sm:$0xff]  }
 0x3e8   : > { %v1272_v37 = vpop.permute.xlu1 %1271  ;;  %v1215_v18 = vpop.permute.xlu0 %1214 }
 0x3e9   : > { %v1273_v41 = vsel %vm465_vm2, %v1270_v38, %v1272_v37  ;;  %v1277_v63 = vsel %vm465_vm2, %v1272_v37, %v1270_v38  ;;  %v1223_v33 = vsel %vm409_vm8, %v1215_v18, %v1219_v32 }
 0x3ea   : > { %v1319_v8 = vmul.f32 %v1273_v41, %v5689_v7  ;;  %v1320_v25 = vmul.f32 %v1277_v63, %v5694_v28  ;;  %v1250_v7 = vsel %vm438_vm7, %v1243_v40, %v1246_v51  ;;  %v1312_v28 = vmul.f32 %v1247_v44, %v5715_v52 }
 0x3eb   : > { %v1311_v13 = vmul.f32 %v1250_v7, %v5744_v20  ;;  %v1220_v52 = vsel %vm409_vm8, %v1219_v32, %v1215_v18 }
 0x3ec   : > { %v1331_v4 = vpack.c.bf16 %v1319_v8, %v1317_v62  ;;  %v1254_v29 = vpop.permute.xlu1 %1253  ;;  %v1225_v14 = vpop.permute.xlu0 %1224  ;;  %v1332_v58 = vpack.c.bf16 %v1320_v25, %v1318_v26  ;;  %v1328_v51 = vpack.c.bf16 %v1312_v28, %v1310_v27  ;;  %v1306_v11 = vmul.f32 %v1220_v52, %v5769_v45  ;;  %v1576_v45 = vld [vmem:[%s7857_s5 + $0x40] sm:$0xf]  ;;  %v6078_v52 = vld [vmem:[%s7857_s5 + $0x38] sm:$0xff] }
 0x3ed   : > { %v1255_v38 = vsel %vm446_vm0, %v1252_v24, %v1254_v29  ;;  %v1259_v21 = vsel %vm446_vm0, %v1254_v29, %v1252_v24  ;;  %v1229_v36 = vsel %vm419_vm6, %v1228_v59, %v1225_v14  ;;  %v1327_v40 = vpack.c.bf16 %v1311_v13, %v1309_v46 }
 0x3ee   : > { %v1315_v42 = vmul.f32 %v1255_v38, %v5721_v55  ;;  %v1316_v53 = vmul.f32 %v1259_v21, %v5726_v0  ;;  %1361 = vmatprep.subr.bf16.mxu1 %v1332_v58  ;;  %v1232_v55 = vsel %vm419_vm6, %v1225_v14, %v1228_v59  ;;  %v1308_v0 = vmul.f32 %v1229_v36, %v5753_v61 }
 0x3ef   : > { %1362 = vmatpush1.bf16.msra.mxu1 %v1331_v4  ;;  %v1307_v20 = vmul.f32 %v1232_v55, %v5776_v2  ;;  %v1305_v59 = vmul.f32 %v1223_v33, %v5785_v10  ;;  %v1577_v2 = vld [vmem:[%s7857_s5 + $0x48] sm:$0xf] }
 0x3f0   : > { %v1329_v24 = vpack.c.bf16 %v1315_v42, %v1313_v34  ;;  %v1485_v3 = vpop.permute.xlu1 %1484  ;;  %v1532_v39 = vpop.permute.xlu0 %1531  ;;  %v1330_v50 = vpack.c.bf16 %v1316_v53, %v1314_v22  ;;  %v1326_v47 = vpack.c.bf16 %v1308_v0, %v1306_v11  ;;  %v6055_v22 = vld [vmem:[%s7857_s5 + $0x20] sm:$0xff] }
 0x3f1   : > { %v1325_v31 = vpack.c.bf16 %v1307_v20, %v1305_v59 }
 0x3f2   : > { %1363 = vmatprep.subr.bf16.mxu1 %v1330_v50 }
 0x3f3   : > { %1364 = vmatpush1.bf16.msra.mxu1 %v1329_v24 }
 0x3f4   : > { %1365 = vmatprep.subr.bf16.mxu1 %v1328_v51  ;;  %v1502_v30 = vpop.permute.xlu1 %1501  ;;  %v1507_v49 = vpop.permute.xlu0 %1506 }
 0x3f7   : > { %1366 = vmatpush1.bf16.msra.mxu1 %v1327_v40 }
 0x3f8   : > { %1367 = vmatprep.subr.bf16.mxu1 %v1326_v47  ;;  %v1476_v61 = vpop.permute.xlu1 %1475  ;;  %v1524_v1 = vpop.permute.xlu0 %1523  ;;  %v6091_v47 = vld [vmem:[%s7857_s5] sm:$0xff] }
 0x3fb   : > { %1368 = vmatpush1.bf16.msra.mxu1 %v1325_v31 }
 0x3fc   : > { %v1534_v32 = vpop.permute.xlu1 %1533  ;;  %v1515_v10 = vpop.permute.xlu0 %1514 }
 0x3fd   : > { %v1535_v37 = vsel %vm474_vm1, %v1532_v39, %v1534_v32  ;;  %v1539_v18 = vsel %vm474_vm1, %v1534_v32, %v1532_v39  ;;  %v6068_v39 = vld [vmem:[%s7857_s5 + $0x30] sm:$0xff] }
 0x3fe   : > { %v1586_v41 = vmul.f32 %v1576_v45, %v1535_v37  ;;  %v1587_v63 = vmul.f32 %v1577_v2, %v1539_v18  ;;  %4725 = vmatmul.mubr.msk.bf16.vlgmr.msra.gmra.mxu1 %vm815_vm11, %v4870_v56  ;;  %v6100_v32 = vld [vmem:[%s7857_s5 + $0x10] sm:$0xff]  ;;  %v6105_v37 = vld [vmem:[%s7857_s5 + $0x8] sm:$0xff]  ;;  %v6110_v18 = vld [vmem:[%s7857_s5 + $0x18] sm:$0xff] }
 0x3ff   : > { %2443 = vmatprep.mubr.bf16.mxu1 %v7864_v9 }
 0x400   : > { %v1594_v62 = vpack.c.bf16 %v1586_v41, %v1586_v41  ;;  %v1595_v26 = vpack.c.bf16 %v1587_v63, %v1587_v63  ;;  %v1509_v8 = vpop.permute.xlu1 %1508  ;;  %v1482_v25 = vpop.permute.xlu0 %1481 }
 0x401   : > { %v1510_v44 = vsel %vm446_vm0, %v1507_v49, %v1509_v8  ;;  %v1513_v4 = vsel %vm446_vm0, %v1509_v8, %v1507_v49  ;;  %v1486_v28 = vsel %vm419_vm6, %v1485_v3, %v1482_v25  ;;  %v1488_v42 = vsel %vm419_vm6, %v1482_v25, %v1485_v3  ;;  %v6073_v3 = vld [vmem:[%s7857_s5 + $0x28] sm:$0xff] }
 0x402   : > { %4732 = vmatprep.subr.msk.bf16.mxu0 %vm550_vm3, %v1595_v26  ;;  %v1551_v29 = vrot.slane %v1510_v44, 4  ;;  %v1552_v34 = vrot.slane %v1513_v4, 4  ;;  %v1609_v14 = vsel %vm550_vm3, %v1594_v62, 0  ;;  %v1541_v33 = vrot.slane %v1488_v42, 4 }
 0x403   : > { %1625 = vmatpush1.bf16.msra.mxu0 %v1609_v14  ;;  %v1542_v11 = vrot.slane %v1486_v28, 4 }
 0x404   : > { %v1526_v58 = vpop.permute.xlu1 %1525  ;;  %v1499_v60 = vpop.permute.xlu0 %1498  ;;  %v1564_v7 = vsel %vm500_vm4, %v5947_v57, %v1551_v29  ;;  %v1565_v53 = vsel %vm500_vm4, %v5973_v43, %v1552_v34 }
 0x405   : > { %v1527_v38 = vsel %vm465_vm2, %v1524_v1, %v1526_v58  ;;  %v1530_v21 = vsel %vm465_vm2, %v1526_v58, %v1524_v1  ;;  %v1503_v27 = vsel %vm438_vm7, %v1502_v30, %v1499_v60  ;;  %v1505_v24 = vsel %vm438_vm7, %v1499_v60, %v1502_v30  ;;  %v4871_v60 = vld [vmem:[%s7853_s1] sm:$0xff]  }
 0x406   : > { %v1556_v36 = vrot.slane %v1527_v38, 4  ;;  %v1557_v5 = vrot.slane %v1530_v21, 4  ;;  %v1582_v40 = vmul.f32 %v6055_v22, %v1564_v7  ;;  %v1583_v59 = vmul.f32 %v6073_v3, %v1565_v53 }
 0x407   : > { %v1547_v31 = vrot.slane %v1503_v27, 4 }
 0x408   : > { %v1517_v50 = vpop.permute.xlu1 %1516  ;;  %v1472_v13 = vpop.permute.xlu0 %1471 }
 0x409   : > { %v1518_v55 = vsel %vm455_vm5, %v1515_v10, %v1517_v50  ;;  %v1522_v0 = vsel %vm455_vm5, %v1517_v50, %v1515_v10  ;;  %v1477_v51 = vsel %vm409_vm8, %v1476_v61, %v1472_v13  ;;  %v1480_v46 = vsel %vm409_vm8, %v1472_v13, %v1476_v61 }
 0x40a   : > { %v1566_v30 = vsel %vm500_vm4, %v1518_v55, %v1556_v36  ;;  %v1567_v49 = vsel %vm500_vm4, %v1522_v0, %v1557_v5  ;;  %v1546_v61 = vrot.slane %v1505_v24, 4  ;;  %v1560_v56 = vsel %vm500_vm4, %v1480_v46, %v1541_v33  ;;  %v6138_v46 = vld [vmem:[%s7854_s2 + $0x8] sm:$0xff] }
 0x40b   : > { %v1584_v20 = vmul.f32 %v6068_v39, %v1566_v30  ;;  %v1585_v1 = vmul.f32 %v6078_v52, %v1567_v49  ;;  %v1561_v45 = vsel %vm500_vm4, %v1477_v51, %v1542_v11  ;;  %v1578_v44 = vmul.f32 %v6091_v47, %v1560_v56  ;;  %v4735_v30 = vld [vmem:[%s5512_s25 + $0x48] sm:$0xff] }
 0x40c   : > { %v1493_v2 = vpop.permute.xlu1 %1492  ;;  %v1490_v10 = vpop.permute.xlu0 %1489  ;;  %v1579_v29 = vmul.f32 %v6105_v37, %v1561_v45 }
 0x40d   : > { %v1494_v41 = vsel %vm428_vm9, %v1493_v2, %v1490_v10  ;;  %v1497_v63 = vsel %vm428_vm9, %v1490_v10, %v1493_v2  ;;  %v1593_v62 = vpack.c.bf16 %v1585_v1, %v1583_v59  ;;  %v1592_v26 = vpack.c.bf16 %v1584_v20, %v1582_v40 }
 0x40e   : > { %v1562_v8 = vsel %vm500_vm4, %v1497_v63, %v1546_v61  ;;  %v1563_v25 = vsel %vm500_vm4, %v1494_v41, %v1547_v31  ;;  %v6146_v41 = vld [vmem:[%s7854_s2 + $0x10] sm:$0xff] }
 0x40f   : > { %v1580_v4 = vmul.f32 %v6100_v32, %v1562_v8  ;;  %1626 = vmatprep.subr.bf16.mxu0 %v1593_v62  ;;  %v1581_v34 = vmul.f32 %v6110_v18, %v1563_v25  ;;  %v6151_v8 = vld [vmem:[%s7854_s2 + $0x18] sm:$0xff] }
 0x410   : > { %1627 = vmatpush1.bf16.msra.mxu0 %v1592_v26 }
 0x411   : > { %v1591_v14 = vpack.c.bf16 %v1581_v34, %v1579_v29  ;;  %v1590_v58 = vpack.c.bf16 %v1580_v4, %v1578_v44 }
 0x413   : > { %1628 = vmatprep.subr.bf16.mxu0 %v1591_v14 }
 0x414   : > { %1629 = vmatpush1.bf16.msra.mxu0 %v1590_v58 }
 0x417   : > { %4733 = vmatmul.mubr.msk.bf16.vlgmr.msra.gmra.mxu0 %vm546_vm10, %v4871_v60  ;;  %v4736_v60 = vld [vmem:[%s5512_s25 + $0x50] sm:$0xff] }
 0x418   : > { %1914 = vmatprep.mubr.bf16.mxu0 %v7864_v9 }
 0x4be   : > { %v1387_v38 = vpop.f32.mrf.mxu1 }
 0x4bf   : > { %v1388_v21 = vadd.f32 %v1387_v38, %v5847_v16 }
 0x4c0   : > { %v1389_v7 = vpop.f32.mrf.mxu1 }
 0x4c1   : > { %v4726_v28 = vmul.f32 -1.442695, %v1388_v21  ;;  %v1390_v42 = vadd.f32 %v1389_v7, %v5852_v15 }
 0x4c2   : > { %v1391_v36 = vpop.f32.mrf.mxu1 }
 0x4c3   : > { %4955 = vpow2.f32 %v4726_v28  ;;  %v4727_v53 = vmul.f32 -1.442695, %v1390_v42  ;;  %v1392_v27 = vadd.f32 %v1391_v36, %v5859_v35  ;;  %v6132_v35 = vld [vmem:[%s7854_s2] sm:$0xff] }
 0x4c4   : > { %v1393_v5 = vpop.f32.mrf.mxu1 }
 0x4c5   : > { %4957 = vpow2.f32 %v4727_v53  ;;  %v1394_v24 = vadd.f32 %v1393_v5, %v5864_v23  ;;  %v4728_v50 = vmul.f32 -1.442695, %v1392_v27  ;;  %v4734_v23 = vld [vmem:[%s5512_s25 + $0x40] sm:$0xff]  ;;  %v4737_v53 = vld [vmem:[%s5512_s25 + $0x58] sm:$0xff] }
 0x4c6   : > { %4959 = vtanh.f32 %v1392_v27 }
 0x4c7   : > { %4961 = vtanh.f32 %v1394_v24  ;;  %v4729_v16 = vmul.f32 -1.442695, %v1394_v24 }
 0x4c8   : > { %4963 = vpow2.f32 %v4728_v50 }
 0x4d0   : > { %v4956_v13 = vpop.eup %4955 }
 0x4d1   : > { %v1408_v55 = vadd.f32 1.0, %v4956_v13 }
 0x4d2   : > { %v4958_v0 = vpop.eup %4957 }
 0x4d3   : > { %4965 = vrcp.f32 %v1408_v55  ;;  %v1409_v15 = vadd.f32 1.0, %v4958_v0  ;;  %v4960_v49 = vpop.eup %4959 }
 0x4d4   : > { %4967 = vpow2.f32 %v4729_v16  ;;  %v4962_v59 = vpop.eup %4961  ;;  %v1426_v31 = vrot.slane %v4960_v49, 4 }
 0x4d5   : > { %4969 = vrcp.f32 %v1409_v15  ;;  %v4964_v2 = vpop.eup %4963  ;;  %v1427_v10 = vrot.slane %v4962_v59, 4 }
 0x4d6   : > { %v1410_v4 = vadd.f32 1.0, %v4964_v2 }
 0x4d7   : > { %v1648_v51 = vpop.f32.mrf.mxu0 }
 0x4d8   : > { %v1649_v33 = vadd.f32 %v1648_v51, %v6132_v35 }
 0x4d9   : > { %v1650_v11 = vpop.f32.mrf.mxu0 }
 0x4da   : > { %v1662_v40 = vadd.f32 %v4734_v23, %v1649_v33  ;;  %v1651_v20 = vadd.f32 %v1650_v11, %v6138_v46 }
 0x4db   : > { %v1652_v56 = vpop.f32.mrf.mxu0 }
 0x4dc   : > { %v4738_v1 = vmul.f32 -1.442695, %v1662_v40  ;;  %v1663_v61 = vadd.f32 %v4735_v30, %v1651_v20  ;;  %v1653_v29 = vadd.f32 %v1652_v56, %v6146_v41 }
 0x4dd   : > { %v1654_v25 = vpop.f32.mrf.mxu0 }
 0x4de   : > { %4971 = vpow2.f32 %v4738_v1  ;;  %v4739_v45 = vmul.f32 -1.442695, %v1663_v61  ;;  %v1655_v21 = vadd.f32 %v1654_v25, %v6151_v8  ;;  %v1664_v36 = vadd.f32 %v4736_v60, %v1653_v29 }
 0x4e0   : > { %v4966_v63 = vpop.eup %4965  ;;  %4973 = vpow2.f32 %v4739_v45  ;;  %v1665_v27 = vadd.f32 %v4737_v53, %v1655_v21  ;;  %v4740_v24 = vmul.f32 -1.442695, %v1664_v36 }
 0x4e1   : > { %v4968_v62 = vpop.eup %4967  ;;  %v1430_v26 = vmul.f32 %v4966_v63, %v1426_v31  ;;  %v1422_v34 = vmul.f32 %v4966_v63, %v5889_v54  ;;  %4975 = vrcp.f32 %v1410_v4 }
 0x4e2   : > { %v4970_v44 = vpop.eup %4969  ;;  %v1411_v38 = vadd.f32 1.0, %v4968_v62 }
 0x4e3   : > { %v1434_v14 = vrot.slane %v1430_v26, 4  ;;  %v1431_v58 = vmul.f32 %v4970_v44, %v1427_v10  ;;  %v1423_v28 = vmul.f32 %v4970_v44, %v5909_v6  ;;  %v4741_v6 = vmul.f32 -1.442695, %v1665_v27 }
 0x4e5   : > { %v1438_v7 = vadd.f32 %v1434_v14, %v1422_v34  ;;  %v1435_v42 = vrot.slane %v1431_v58, 4 }
 0x4e7   : > { %4977 = vtanh.f32 %v1438_v7  ;;  %1452 = vst [vmem:[#allocation3 + $0x8] sm:$0xf0] %v1438_v7  ;;  %v1439_v5 = vadd.f32 %v1435_v42, %v1423_v28 }
 0x4e8   : > { %4979 = vrcp.f32 %v1411_v38 }
 0x4e9   : > { %4981 = vtanh.f32 %v1439_v5  ;;  %1453 = vst [vmem:[#allocation3] sm:$0xf0] %v1439_v5 }
 0x4ea   : > { %4983 = vtanh.f32 %v1664_v36 }
 0x4eb   : > { %v4972_v54 = vpop.eup %4971  ;;  %4985 = vtanh.f32 %v1665_v27 }
 0x4ec   : > { %v1678_v50 = vadd.f32 1.0, %v4972_v54 }
 0x4ed   : > { %v4974_v13 = vpop.eup %4973 }
 0x4ee   : > { %4987 = vrcp.f32 %v1678_v50  ;;  %v1679_v16 = vadd.f32 1.0, %v4974_v13  ;;  %v4976_v55 = vpop.eup %4975 }
 0x4ef   : > { %4989 = vpow2.f32 %v4740_v24  ;;  %v6175_v24 = vld [vmem:[%s7860_s8] sm:$0xff] }
 0x4f0   : > { %4991 = vrcp.f32 %v1679_v16  ;;  %v6209_v16 = vld [vmem:[%s7860_s8 + $0x8] sm:$0xff] }
 0x4f1   : > { %4993 = vpow2.f32 %v4741_v6 }
 0x4f4   : > { %v4978_v0 = vpop.eup %4977 }
 0x4f5   : > { %v4980_v15 = vpop.eup %4979  ;;  %v1444_v51 = vrot.slane %v4978_v0, 4 }
 0x4f6   : > { %v4982_v23 = vpop.eup %4981 }
 0x4f7   : > { %v4984_v33 = vpop.eup %4983  ;;  %v1448_v11 = vmul.f32 %v4976_v55, %v1444_v51  ;;  %v1445_v30 = vrot.slane %v4982_v23, 4  ;;  %v6219_v55 = vld [vmem:[%s7861_s9 + $0x8] sm:$0xff] }
 0x4f8   : > { %v4986_v49 = vpop.eup %4985  ;;  %v1696_v20 = vrot.slane %v4984_v33, 4 }
 0x4f9   : > { %1450 = vst [vmem:[#allocation3 + $0x8] sm:$0xf] %v1448_v11  ;;  %v1449_v40 = vmul.f32 %v4980_v15, %v1445_v30  ;;  %v1697_v56 = vrot.slane %v4986_v49, 4 }
 0x4fb   : > { %v4988_v59 = vpop.eup %4987  ;;  %1451 = vst [vmem:[#allocation3] sm:$0xf] %v1449_v40  ;;  %v1456_v1 = vcombine.low %v1448_v11, %v1449_v40 }
 0x4fc   : > { %v4990_v61 = vpop.eup %4989  ;;  %v1700_v31 = vmul.f32 %v4988_v59, %v1696_v20  ;;  %v1692_v2 = vmul.f32 %v4988_v59, %v5947_v57 }
 0x4fd   : > { %v4992_v45 = vpop.eup %4991  ;;  %4730 = vst [vmem:[%s5882_s24 + $0x8] sm:$0xff] %v1456_v1  ;;  %v1680_v26 = vadd.f32 1.0, %v4990_v61 }
 0x4fe   : > { %v1704_v10 = vrot.slane %v1700_v31, 4  ;;  %v1701_v63 = vmul.f32 %v4992_v45, %v1697_v56  ;;  %v4994_v62 = vpop.eup %4993  ;;  %v1693_v44 = vmul.f32 %v4992_v45, %v5973_v43 }
 0x4ff   : > { %v1681_v29 = vadd.f32 1.0, %v4994_v62  ;;  %v6296_v62 = vld [vmem:[%s7862_s10 + $0x88] sm:$0xff] }
 0x500   : > { %v1708_v25 = vadd.f32 %v1704_v10, %v1692_v2  ;;  %v1705_v4 = vrot.slane %v1701_v63, 4  ;;  %v1724_v27 = vld [vmem:[#allocation3 + $0x8] sm:$0xff]  ;;  %v6291_v63 = vld [vmem:[%s7862_s10 + $0x80] sm:$0xff] }
 0x502   : > { %4995 = vtanh.f32 %v1708_v25  ;;  %1722 = vst [vmem:[#allocation2] sm:$0xf0] %v1708_v25  ;;  %v1709_v34 = vadd.f32 %v1705_v4, %v1693_v44  ;;  %v1725_v13 = vld [vmem:[#allocation3] sm:$0xff] }
 0x503   : > { %4997 = vrcp.f32 %v1680_v26  ;;  %v1729_v6 = vmul.f32 %v6209_v16, %v1725_v13 }
 0x504   : > { %4999 = vtanh.f32 %v1709_v34  ;;  %1723 = vst [vmem:[#allocation2 + $0x8] sm:$0xf0] %v1709_v34 }
 0x505   : > { %5001 = vrcp.f32 %v1681_v29  ;;  %v6224_v0 = vadd.f32 %v6219_v55, %v1729_v6 }
 0x507   : > { %v1737_v15 = vrot.slane %v6224_v0, 4 }
 0x50f   : > { %v4996_v14 = vpop.eup %4995 }
 0x510   : > { %v4998_v58 = vpop.eup %4997  ;;  %v1714_v60 = vrot.slane %v4996_v14, 4 }
 0x511   : > { %v5000_v57 = vpop.eup %4999 }
 0x512   : > { %v1718_v38 = vmul.f32 %v4998_v58, %v1714_v60  ;;  %v1715_v21 = vrot.slane %v5000_v57, 4  ;;  %v5002_v7 = vpop.eup %5001  ;;  %v6307_v57 = vld [vmem:[%s7862_s10 + $0x60] sm:$0xff] }
 0x514   : > { %1720 = vst [vmem:[#allocation2] sm:$0xf] %v1718_v38  ;;  %v1719_v28 = vmul.f32 %v5002_v7, %v1715_v21  ;;  %v6314_v7 = vld [vmem:[%s7862_s10 + $0x68] sm:$0xff] }
 0x516   : > { %1721 = vst [vmem:[#allocation2 + $0x8] sm:$0xf] %v1719_v28  ;;  %v6234_v51 = vsel %vm500_vm4, %v1719_v28, %v1737_v15 }
 0x51b   : > { %v1989_v43 = vld [vmem:[#allocation2] sm:$0xff] }
 0x51c   : > { %v1993_v42 = vmul.f32 %v1989_v43, %v5930_v48  ;;  %v1728_v48 = vmul.f32 %v6175_v24, %v1724_v27 }
 0x51d   : > { %v1990_v53 = vld [vmem:[#allocation2 + $0x8] sm:$0xff] }
 0x51e   : > { %v6164_v36 = vadd.f32 %v1993_v42, %v5940_v17  ;;  %v1994_v5 = vmul.f32 %v1990_v53, %v5956_v19  ;;  %v6185_v17 = vld [vmem:[%s7861_s9] sm:$0xff]  ;;  %v6321_v42 = vld [vmem:[%s7862_s10 + $0x70] sm:$0xff]  ;;  %v6326_v53 = vld [vmem:[%s7862_s10 + $0x78] sm:$0xff] }
 0x51f   : > { %v6190_v19 = vadd.f32 %v6185_v17, %v1728_v48 }
 0x520   : > { %2060 = vrot.lane.b32.xlu0 %v6164_v36, %s5277_s28  ;;  %v6170_v54 = vadd.f32 %v1994_v5, %v5966_v12 }
 0x521   : > { %v1736_v12 = vrot.slane %v6190_v19, 4 }
 0x522   : > { %2062 = vrot.lane.b32.xlu1 %v6170_v54, %s5277_s28 }
 0x523   : > { %v6200_v50 = vsel %vm500_vm4, %v1718_v38, %v1736_v12  ;;  %v6333_v12 = vld [vmem:[%s7862_s10 + $0x40] sm:$0xff] }
 0x524   : > { %2035 = vrot.lane.b32.xlu0 %v6164_v36, %s5276_s27 }
 0x526   : > { %2037 = vrot.lane.b32.xlu1 %v6170_v54, %s5276_s27 }
 0x528   : > { %2052 = vrot.lane.b32.xlu0 %v6164_v36, %s5278_s29 }
 0x52a   : > { %2054 = vrot.lane.b32.xlu1 %v6170_v54, %s5278_s29 }
 0x52c   : > { %2043 = vrot.lane.b32.xlu0 %v6164_v36, %s5279_s30 }
 0x52e   : > { %1765 = vrot.lane.b32.xlu1 %v6200_v50, %s5284_s15 }
 0x530   : > { %1807 = vrot.lane.b32.xlu0 %v6200_v50, %s5277_s28 }
 0x532   : > { %1774 = vrot.lane.b32.xlu1 %v6200_v50, %s5281_s13 }
 0x534   : > { %1789 = vrot.lane.b32.xlu0 %v6200_v50, %s5279_s30 }
 0x536   : > { %1747 = vrot.lane.b32.xlu1 %v6200_v50, %s5283_s14 }
 0x538   : > { %1798 = vrot.lane.b32.xlu0 %v6200_v50, %s5278_s29 }
 0x53a   : > { %1756 = vrot.lane.b32.xlu1 %v6200_v50, %s5280_s12 }
 0x53c   : > { %1780 = vrot.lane.b32.xlu0 %v6200_v50, %s5276_s27 }
 0x53e   : > { %1809 = vrot.lane.b32.xlu1 %v6234_v51, %s5277_s28 }
 0x540   : > { %2010 = vrot.lane.b32.xlu0 %v6170_v54, %s5280_s12 }
 0x542   : > { %1791 = vrot.lane.b32.xlu1 %v6234_v51, %s5279_s30 }
 0x544   : > { %1762 = vrot.lane.b32.xlu0 %v6234_v51, %s5284_s15 }
 0x546   : > { %1800 = vrot.lane.b32.xlu1 %v6234_v51, %s5278_s29 }
 0x548   : > { %1771 = vrot.lane.b32.xlu0 %v6234_v51, %s5281_s13 }
 0x54a   : > { %1782 = vrot.lane.b32.xlu1 %v6234_v51, %s5276_s27 }
 0x54c   : > { %1743 = vrot.lane.b32.xlu0 %v6234_v51, %s5283_s14 }
 0x54e   : > { %2045 = vrot.lane.b32.xlu1 %v6170_v54, %s5279_s30 }
 0x550   : > { %1753 = vrot.lane.b32.xlu0 %v6234_v51, %s5280_s12 }
 0x552   : > { %2013 = vrot.lane.b32.xlu1 %v6164_v36, %s5280_s12 }
 0x554   : > { %2027 = vrot.lane.b32.xlu0 %v6170_v54, %s5281_s13 }
 0x556   : > { %2030 = vrot.lane.b32.xlu1 %v6164_v36, %s5281_s13 }
 0x558   : > { %2000 = vrot.lane.b32.xlu0 %v6170_v54, %s5283_s14 }
 0x55a   : > { %2004 = vrot.lane.b32.xlu1 %v6164_v36, %s5283_s14 }
 0x55c   : > { %2018 = vrot.lane.b32.xlu0 %v6170_v54, %s5284_s15 }
 0x55e   : > { %2021 = vrot.lane.b32.xlu1 %v6164_v36, %s5284_s15 }
 0x592   : > { %v6270_v23 = vpop.permute.xlu0 %2060 }
 0x594   : > { %v6272_v33 = vpop.permute.xlu1 %2062 }
 0x596   : > { %v6274_v11 = vpop.permute.xlu0 %2035 }
 0x598   : > { %v6276_v30 = vpop.permute.xlu1 %2037 }
 0x59a   : > { %v6278_v49 = vpop.permute.xlu0 %2052 }
 0x59c   : > { %v6280_v40 = vpop.permute.xlu1 %2054 }
 0x59e   : > { %v6282_v20 = vpop.permute.xlu0 %2043 }
 0x5a0   : > { %v1766_v59 = vpop.permute.xlu1 %1765 }
 0x5a2   : > { %v1808_v1 = vpop.permute.xlu0 %1807 }
 0x5a4   : > { %v1775_v61 = vpop.permute.xlu1 %1774 }
 0x5a6   : > { %v1790_v31 = vpop.permute.xlu0 %1789 }
 0x5a8   : > { %v6284_v56 = vpop.permute.xlu1 %1747 }
 0x5aa   : > { %v1799_v45 = vpop.permute.xlu0 %1798 }
 0x5ac   : > { %v6286_v2 = vpop.permute.xlu1 %1756 }
 0x5ae   : > { %v1781_v10 = vpop.permute.xlu0 %1780 }
 0x5b0   : > { %v1810_v26 = vpop.permute.xlu1 %1809 }
 0x5b1   : > { %v1811_v25 = vsel %vm474_vm1, %v1808_v1, %v1810_v26  ;;  %v1815_v44 = vsel %vm474_vm1, %v1810_v26, %v1808_v1  ;;  %v6342_v26 = vld [vmem:[%s7862_s10 + $0x48] sm:$0xff] }
 0x5b2   : > { %v1850_v4 = vmul.f32 %v6291_v63, %v1811_v25  ;;  %v1851_v29 = vmul.f32 %v6296_v62, %v1815_v44  ;;  %v6302_v34 = vpop.permute.xlu0 %2010  ;;  %v6353_v44 = vld [vmem:[%s7862_s10 + $0x50] sm:$0xff] }
 0x5b3   : > { %7874 = vst [vmem:[#allocation5_spill] sm:$0xff] %v6353_v44 }
 0x5b4   : > { %v1862_v14 = vpack.c.bf16 %v1850_v4, %v1850_v4  ;;  %v1863_v58 = vpack.c.bf16 %v1851_v29, %v1851_v29  ;;  %v1792_v60 = vpop.permute.xlu1 %1791  ;;  %v6358_v4 = vld [vmem:[%s7862_s10 + $0x58] sm:$0xff] }
 0x5b5   : > { %v1793_v28 = vsel %vm455_vm5, %v1790_v31, %v1792_v60  ;;  %v1797_v43 = vsel %vm455_vm5, %v1792_v60, %v1790_v31  ;;  %7875 = vst [vmem:[#allocation6_spill] sm:$0xff] %v6358_v4 }
 0x5b6   : > { %4743 = vmatprep.subr.msk.bf16.mxu0 %vm500_vm4, %v1863_v58  ;;  %v1763_v38 = vpop.permute.xlu0 %1762  ;;  %v1877_v21 = vsel %vm500_vm4, %v1862_v14, 0  ;;  %v1846_v13 = vmul.f32 %v6307_v57, %v1793_v28  ;;  %v1847_v6 = vmul.f32 %v6314_v7, %v1797_v43  ;;  %v1842_v58 = vmul.f32 %v6333_v12, %v6200_v50 }
 0x5b7   : > { %1889 = vmatpush1.bf16.msra.mxu0 %v1877_v21  ;;  %v6365_v21 = vld [vmem:[%s7862_s10 + $0x28] sm:$0xff]  ;;  %v1767_v28 = vsel %vm428_vm9, %v1766_v59, %v1763_v38 }
 0x5b8   : > { %v1801_v5 = vpop.permute.xlu1 %1800  ;;  %7876 = vst [vmem:[#allocation7_spill] sm:$0xff] %v6365_v21 }
 0x5b9   : > { %v1802_v27 = vsel %vm465_vm2, %v1799_v45, %v1801_v5  ;;  %v1806_v48 = vsel %vm465_vm2, %v1801_v5, %v1799_v45  ;;  %v6347_v45 = vld [vmem:[%s7862_s10 + $0x38] sm:$0xff] }
 0x5ba   : > { %v1848_v15 = vmul.f32 %v6321_v42, %v1802_v27  ;;  %v1849_v1 = vmul.f32 %v6326_v53, %v1806_v48  ;;  %v1772_v31 = vpop.permute.xlu0 %1771  ;;  %7873 = vst [vmem:[#allocation4_spill] sm:$0xff] %v6347_v45  ;;  %v1843_v27 = vmul.f32 %v6342_v26, %v6234_v51  ;;  %v6375_v48 = vld [vmem:[%s7862_s10 + $0x30] sm:$0xff]  ;;  %v6384_v51 = vld [vmem:[%s7862_s10 + $0x20] sm:$0xff] }
 0x5bb   : > { %v1776_v25 = vsel %vm438_vm7, %v1775_v61, %v1772_v31  ;;  %7877 = vst [vmem:[#allocation8_spill] sm:$0xff] %v6375_v48  ;;  %v1779_v50 = vsel %vm438_vm7, %v1772_v31, %v1775_v61  ;;  %7878 = vst [vmem:[#allocation9_spill] sm:$0xff] %v6384_v51 }
 0x5bc   : > { %v1860_v29 = vpack.c.bf16 %v1848_v15, %v1846_v13  ;;  %v1783_v14 = vpop.permute.xlu1 %1782  ;;  %v1861_v60 = vpack.c.bf16 %v1849_v1, %v1847_v6  ;;  %v1841_v13 = vmul.f32 %v6347_v45, %v1776_v25  ;;  %v2064_v25 = vsel %vm474_vm1, %v6270_v23, %v6272_v33 }
 0x5bd   : > { %v1784_v43 = vsel %vm446_vm0, %v1781_v10, %v1783_v14  ;;  %v1788_v5 = vsel %vm446_vm0, %v1783_v14, %v1781_v10  ;;  %v1770_v10 = vsel %vm428_vm9, %v1763_v38, %v1766_v59  ;;  %v1839_v14 = vmul.f32 %v6365_v21, %v1767_v28  ;;  %v6405_v38 = vld [vmem:[%s7862_s10 + $0x18] sm:$0xff]  ;;  %v6419_v28 = vld [vmem:[%s7862_s10 + $0x10] sm:$0xff] }
 0x5be   : > { %v1844_v6 = vmul.f32 %v6353_v44, %v1784_v43  ;;  %v1845_v15 = vmul.f32 %v6358_v4, %v1788_v5  ;;  %1890 = vmatprep.subr.bf16.mxu0 %v1861_v60  ;;  %v1744_v1 = vpop.permute.xlu0 %1743  ;;  %v1840_v60 = vmul.f32 %v6375_v48, %v1779_v50  ;;  %v6398_v43 = vld [vmem:[%s7862_s10 + $0x8] sm:$0xff]  ;;  %v2105_v50 = vld [vmem:[%s7857_s5 + $0x40] sm:$0xf] }
 0x5bf   : > { %1891 = vmatpush1.bf16.msra.mxu0 %v1860_v29  ;;  %v2068_v29 = vsel %vm474_vm1, %v6272_v33, %v6270_v23  ;;  %7879 = vst [vmem:[#allocation10_spill] sm:$0xff] %v6398_v43  ;;  %v1749_v59 = vsel %vm409_vm8, %v6284_v56, %v1744_v1  ;;  %v2042_v23 = vsel %vm446_vm0, %v6276_v30, %v6274_v11 }
 0x5c0   : > { %v1858_v9 = vpack.c.bf16 %v1844_v6, %v1842_v58  ;;  %v2046_v61 = vpop.permute.xlu1 %2045  ;;  %v1859_v31 = vpack.c.bf16 %v1845_v15, %v1843_v27  ;;  %v2039_v58 = vsel %vm446_vm0, %v6274_v11, %v6276_v30  ;;  %v2059_v33 = vsel %vm465_vm2, %v6280_v40, %v6278_v49  ;;  %v2106_v11 = vld [vmem:[%s7857_s5 + $0x48] sm:$0xf] }
 0x5c1   : > { %v1857_v27 = vpack.c.bf16 %v1841_v13, %v1839_v14  ;;  %v2056_v30 = vsel %vm465_vm2, %v6278_v49, %v6280_v40  ;;  %v1838_v6 = vmul.f32 %v6384_v51, %v1770_v10  ;;  %v6438_v14 = vld [vmem:[%s7862_s10] sm:$0xff]  ;;  %v1835_v48 = vmul.f32 %v6398_v43, %v1749_v59 }
 0x5c2   : > { %1892 = vmatprep.subr.bf16.mxu0 %v1859_v31  ;;  %v1754_v5 = vpop.permute.xlu0 %1753  ;;  %v1752_v31 = vsel %vm409_vm8, %v1744_v1, %v6284_v56  ;;  %v2051_v49 = vsel %vm455_vm5, %v2046_v61, %v6282_v20  ;;  %v2081_v51 = vrot.slane %v2042_v23, 4  ;;  %v2115_v21 = vmul.f32 %v2105_v50, %v2064_v25 }
 0x5c3   : > { %v1758_v15 = vsel %vm419_vm6, %v6286_v2, %v1754_v5  ;;  %v1761_v13 = vsel %vm419_vm6, %v1754_v5, %v6286_v2  ;;  %1893 = vmatpush1.bf16.msra.mxu0 %v1858_v9  ;;  %v2086_v2 = vrot.slane %v2059_v33, 4  ;;  %v1856_v9 = vpack.c.bf16 %v1840_v60, %v1838_v6 }
 0x5c4   : > { %v1837_v40 = vmul.f32 %v6405_v38, %v1758_v15  ;;  %v2014_v10 = vpop.permute.xlu1 %2013  ;;  %1894 = vmatprep.subr.bf16.mxu0 %v1857_v27  ;;  %v1836_v5 = vmul.f32 %v6419_v28, %v1761_v13  ;;  %v2116_v4 = vmul.f32 %v2106_v11, %v2068_v29  ;;  %v2047_v44 = vsel %vm455_vm5, %v6282_v20, %v2046_v61 }
 0x5c5   : > { %v2085_v59 = vrot.slane %v2056_v30, 4  ;;  %v1834_v43 = vmul.f32 %v6438_v14, %v1752_v31  ;;  %v2096_v45 = vsel %vm500_vm4, %v2051_v49, %v2086_v2  ;;  %v2080_v15 = vrot.slane %v2039_v58, 4 }
 0x5c6   : > { %v2028_v56 = vpop.permute.xlu0 %2027  ;;  %v1855_v1 = vpack.c.bf16 %v1837_v40, %v1835_v48  ;;  %v2094_v25 = vsel %vm500_vm4, %v6170_v54, %v2081_v51  ;;  %v2123_v29 = vpack.c.bf16 %v2115_v21, %v2115_v21  ;;  %v2124_v33 = vpack.c.bf16 %v2116_v4, %v2116_v4  ;;  %v4872_v48 = vld [vmem:[%s7858_s6] sm:$0xff]  }
 0x5c7   : > { %1895 = vmatpush1.bf16.msra.mxu0 %v1856_v9  ;;  %v2095_v60 = vsel %vm500_vm4, %v2047_v44, %v2085_v59  ;;  %v1854_v23 = vpack.c.bf16 %v1836_v5, %v1834_v43  ;;  %v2114_v61 = vmul.f32 %v2096_v45, %v6078_v52  ;;  %v2015_v58 = vsel %vm419_vm6, %v2014_v10, %v6302_v34 }
 0x5c8   : > { %v2031_v27 = vpop.permute.xlu1 %2030  ;;  %1896 = vmatprep.subr.bf16.mxu0 %v1855_v1  ;;  %v2017_v50 = vsel %vm419_vm6, %v6302_v34, %v2014_v10  ;;  %v2093_v44 = vsel %vm500_vm4, %v6164_v36, %v2080_v15  ;;  %v2113_v21 = vmul.f32 %v2095_v60, %v6068_v39  ;;  %v2112_v51 = vmul.f32 %v2094_v25, %v6073_v3 }
 0x5c9   : > { %v2032_v43 = vsel %vm438_vm7, %v2031_v27, %v2028_v56  ;;  %v2034_v52 = vsel %vm438_vm7, %v2028_v56, %v2031_v27  ;;  %v2070_v34 = vrot.slane %v2017_v50, 4  ;;  %v2071_v30 = vrot.slane %v2015_v58, 4  ;;  %v6505_v50 = vld [vmem:[%s7859_s7 + $0x10] sm:$0xff] }
 0x5ca   : > { %v2001_v20 = vpop.permute.xlu0 %2000  ;;  %v2138_v6 = vsel %vm550_vm3, %v2123_v29, 0  ;;  %v2122_v39 = vpack.c.bf16 %v2114_v61, %v2112_v51  ;;  %v2111_v13 = vmul.f32 %v2093_v44, %v6055_v22  ;;  %v7880_v31 = vmov 0   ;;  %v6511_v51 = vld [vmem:[%s7859_s7 + $0x18] sm:$0xff] }
 0x5cb   : > { %1897 = vmatpush1.bf16.msra.mxu0 %v1854_v23  ;;  %v2075_v3 = vrot.slane %v2034_v52, 4  ;;  %v2076_v49 = vrot.slane %v2032_v43, 4  ;;  %v4753_v52 = vld [vmem:[%s5512_s25 + $0x60] sm:$0xff] }
 0x5cc   : > { %v2005_v4 = vpop.permute.xlu1 %2004  ;;  %4751 = vmatprep.subr.msk.bf16.mxu0 %vm550_vm3, %v2124_v33  ;;  %v2121_v1 = vpack.c.bf16 %v2113_v21, %v2111_v13  ;;  %v4873_v33 = vld [vmem:[%s7853_s1] sm:$0xff]  }
 0x5cd   : > { %v2006_v45 = vsel %vm409_vm8, %v2005_v4, %v2001_v20  ;;  %v2009_v11 = vsel %vm409_vm8, %v2001_v20, %v2005_v4 }
 0x5ce   : > { %4744 = vmatmul.mubr.msk.bf16.vlgmr.msra.gmra.mxu0 %vm815_vm11, %v4872_v48  ;;  %v2089_v40 = vsel %vm500_vm4, %v2009_v11, %v2070_v34  ;;  %v2090_v10 = vsel %vm500_vm4, %v2006_v45, %v2071_v30  ;;  %v2019_v2 = vpop.permute.xlu0 %2018 }
 0x5cf   : > { %2154 = vmatpush1.bf16.msra.mxu0 %v2138_v6  ;;  %2175 = vmatprep.mubr.bf16.mxu0 %v7880_v31  ;;  %v2107_v15 = vmul.f32 %v2089_v40, %v6091_v47  ;;  %v2108_v60 = vmul.f32 %v2090_v10, %v6105_v37  ;;  %v6493_v47 = vld [vmem:[%s7859_s7] sm:$0xff]  ;;  %v6498_v37 = vld [vmem:[%s7859_s7 + $0x8] sm:$0xff] }
 0x5d0   : > { %v2022_v9 = vpop.permute.xlu1 %2021  ;;  %2155 = vmatprep.subr.bf16.mxu0 %v2122_v39  ;;  %v4754_v6 = vld [vmem:[%s5512_s25 + $0x68] sm:$0xff] }
 0x5d1   : > { %v2023_v5 = vsel %vm428_vm9, %v2022_v9, %v2019_v2  ;;  %v2026_v56 = vsel %vm428_vm9, %v2019_v2, %v2022_v9 }
 0x5d2   : > { %v2091_v59 = vsel %vm500_vm4, %v2026_v56, %v2075_v3  ;;  %v2092_v22 = vsel %vm500_vm4, %v2023_v5, %v2076_v49 }
 0x5d3   : > { %v2109_v27 = vmul.f32 %v2091_v59, %v6100_v32  ;;  %2156 = vmatpush1.bf16.msra.mxu0 %v2121_v1  ;;  %v2110_v23 = vmul.f32 %v2092_v22, %v6110_v18  ;;  %v4755_v59 = vld [vmem:[%s5512_s25 + $0x70] sm:$0xff] }
 0x5d5   : > { %v2120_v25 = vpack.c.bf16 %v2110_v23, %v2108_v60  ;;  %v2119_v29 = vpack.c.bf16 %v2109_v27, %v2107_v15  ;;  %v4756_v15 = vld [vmem:[%s5512_s25 + $0x78] sm:$0xff] }
 0x5d7   : > { %2157 = vmatprep.subr.bf16.mxu0 %v2120_v25 }
 0x5d8   : > { %2158 = vmatpush1.bf16.msra.mxu0 %v2119_v29 }
 0x5db   : > { %4752 = vmatmul.mubr.msk.bf16.vlgmr.msra.gmra.mxu0 %vm546_vm10, %v4873_v33 }
 0x5dc   : > { %2704 = vmatprep.mubr.bf16.mxu0 %v7880_v31 }
 0x68e   : > { %v1916_v32 = vpop.f32.mrf.mxu0 }
 0x68f   : > { %v1917_v18 = vadd.f32 %v1916_v32, %v6493_v47 }
 0x690   : > { %v1918_v20 = vpop.f32.mrf.mxu0 }
 0x691   : > { %v4745_v48 = vmul.f32 -1.442695, %v1917_v18  ;;  %v1919_v61 = vadd.f32 %v1918_v20, %v6498_v37 }
 0x692   : > { %v1920_v44 = vpop.f32.mrf.mxu0 }
 0x693   : > { %5003 = vpow2.f32 %v4745_v48  ;;  %v4746_v58 = vmul.f32 -1.442695, %v1919_v61  ;;  %v1921_v21 = vadd.f32 %v1920_v44, %v6505_v50 }
 0x694   : > { %v1922_v4 = vpop.f32.mrf.mxu0 }
 0x695   : > { %5005 = vpow2.f32 %v4746_v58  ;;  %v4747_v45 = vmul.f32 -1.442695, %v1921_v21  ;;  %v1923_v34 = vadd.f32 %v1922_v4, %v6511_v51 }
 0x696   : > { %5007 = vtanh.f32 %v1921_v21 }
 0x697   : > { %5009 = vpow2.f32 %v4747_v45  ;;  %v4748_v56 = vmul.f32 -1.442695, %v1923_v34 }
 0x698   : > { %5011 = vtanh.f32 %v1923_v34 }
 0x69b   : > { %v2177_v43 = vpop.f32.mrf.mxu0 }
 0x69c   : > { %v2178_v11 = vadd.f32 %v2177_v43, %v6132_v35 }
 0x69d   : > { %v2179_v30 = vpop.f32.mrf.mxu0 }
 0x69e   : > { %v2191_v39 = vadd.f32 %v4753_v52, %v2178_v11  ;;  %v2180_v13 = vadd.f32 %v2179_v30, %v6138_v46 }
 0x69f   : > { %v2181_v2 = vpop.f32.mrf.mxu0 }
 0x6a0   : > { %v5004_v3 = vpop.eup %5003  ;;  %v4757_v49 = vmul.f32 -1.442695, %v2191_v39  ;;  %v2192_v40 = vadd.f32 %v4754_v6, %v2180_v13  ;;  %v2182_v46 = vadd.f32 %v2181_v2, %v6146_v41 }
 0x6a1   : > { %v1937_v10 = vadd.f32 1.0, %v5004_v3  ;;  %v2183_v1 = vpop.f32.mrf.mxu0 }
 0x6a2   : > { %v5006_v9 = vpop.eup %5005  ;;  %5013 = vpow2.f32 %v4757_v49  ;;  %v4758_v35 = vmul.f32 -1.442695, %v2192_v40  ;;  %v2184_v22 = vadd.f32 %v2183_v1, %v6151_v8  ;;  %v2193_v27 = vadd.f32 %v4755_v59, %v2182_v46 }
 0x6a3   : > { %5015 = vrcp.f32 %v1937_v10  ;;  %v1938_v5 = vadd.f32 1.0, %v5006_v9  ;;  %v5008_v60 = vpop.eup %5007 }
 0x6a4   : > { %5017 = vpow2.f32 %v4758_v35  ;;  %v2194_v23 = vadd.f32 %v4756_v15, %v2184_v22  ;;  %v5010_v25 = vpop.eup %5009  ;;  %v1955_v32 = vrot.slane %v5008_v60, 4  ;;  %v4759_v18 = vmul.f32 -1.442695, %v2193_v27 }
 0x6a5   : > { %5019 = vrcp.f32 %v1938_v5  ;;  %v5012_v29 = vpop.eup %5011  ;;  %v1939_v11 = vadd.f32 1.0, %v5010_v25 }
 0x6a6   : > { %5021 = vpow2.f32 %v4748_v56  ;;  %v1956_v41 = vrot.slane %v5012_v29, 4  ;;  %v4760_v8 = vmul.f32 -1.442695, %v2194_v23 }
 0x6a7   : > { %5023 = vtanh.f32 %v2193_v27 }
 0x6a8   : > { %5025 = vtanh.f32 %v2194_v23 }
 0x6af   : > { %v5014_v33 = vpop.eup %5013 }
 0x6b0   : > { %v5016_v20 = vpop.eup %5015  ;;  %v2207_v48 = vadd.f32 1.0, %v5014_v33 }
 0x6b1   : > { %v5018_v61 = vpop.eup %5017  ;;  %v1959_v58 = vmul.f32 %v5016_v20, %v1955_v32  ;;  %v1951_v4 = vmul.f32 %v5016_v20, %v6190_v19 }
 0x6b2   : > { %v5020_v44 = vpop.eup %5019  ;;  %5027 = vrcp.f32 %v2207_v48  ;;  %v2208_v21 = vadd.f32 1.0, %v5018_v61 }
 0x6b3   : > { %v1963_v43 = vrot.slane %v1959_v58, 4  ;;  %v1960_v52 = vmul.f32 %v5020_v44, %v1956_v41  ;;  %5029 = vpow2.f32 %v4759_v18  ;;  %v5022_v45 = vpop.eup %5021  ;;  %v1952_v30 = vmul.f32 %v5020_v44, %v6224_v0 }
 0x6b4   : > { %5031 = vrcp.f32 %v2208_v21  ;;  %v1940_v39 = vadd.f32 1.0, %v5022_v45  ;;  %v5024_v3 = vpop.eup %5023 }
 0x6b5   : > { %v1967_v34 = vadd.f32 %v1963_v43, %v1951_v4  ;;  %v1964_v6 = vrot.slane %v1960_v52, 4  ;;  %5033 = vpow2.f32 %v4760_v8  ;;  %v5026_v19 = vpop.eup %5025  ;;  %v2225_v49 = vrot.slane %v5024_v3, 4  ;;  %v6580_v3 = vld [vmem:[%s7856_s4] sm:$0xff] }
 0x6b6   : > { %v2226_v9 = vrot.slane %v5026_v19, 4 }
 0x6b7   : > { %5035 = vtanh.f32 %v1967_v34  ;;  %1981 = vst [vmem:[#allocation3 + $0x8] sm:$0xf0] %v1967_v34  ;;  %v1968_v13 = vadd.f32 %v1964_v6, %v1952_v30 }
 0x6b8   : > { %5037 = vrcp.f32 %v1939_v11 }
 0x6b9   : > { %5039 = vtanh.f32 %v1968_v13  ;;  %1982 = vst [vmem:[#allocation3] sm:$0xf0] %v1968_v13 }
 0x6ba   : > { %5041 = vrcp.f32 %v1940_v39  ;;  %v6570_v39 = vld [vmem:[%s7855_s3] sm:$0xff] }
 0x6bf   : > { %v5028_v40 = vpop.eup %5027 }
 0x6c0   : > { %v5030_v10 = vpop.eup %5029  ;;  %v2229_v2 = vmul.f32 %v5028_v40, %v2225_v49  ;;  %v2221_v0 = vmul.f32 %v5028_v40, %v6164_v36  ;;  %v6596_v40 = vld [vmem:[%s7855_s3 + $0x8] sm:$0xff] }
 0x6c1   : > { %v5032_v35 = vpop.eup %5031  ;;  %v2209_v46 = vadd.f32 1.0, %v5030_v10 }
 0x6c2   : > { %v2233_v5 = vrot.slane %v2229_v2, 4  ;;  %v2230_v56 = vmul.f32 %v5032_v35, %v2226_v9  ;;  %v5034_v1 = vpop.eup %5033  ;;  %v2222_v15 = vmul.f32 %v5032_v35, %v6170_v54  ;;  %v6606_v2 = vld [vmem:[%s7856_s4 + $0x8] sm:$0xff] }
 0x6c3   : > { %v2210_v29 = vadd.f32 1.0, %v5034_v1 }
 0x6c4   : > { %v5036_v59 = vpop.eup %5035  ;;  %v2237_v22 = vadd.f32 %v2233_v5, %v2221_v0  ;;  %v2234_v27 = vrot.slane %v2230_v56, 4 }
 0x6c5   : > { %v5038_v60 = vpop.eup %5037  ;;  %v1973_v23 = vrot.slane %v5036_v59, 4 }
 0x6c6   : > { %v5040_v25 = vpop.eup %5039  ;;  %5043 = vtanh.f32 %v2237_v22  ;;  %2251 = vst [vmem:[#allocation2] sm:$0xf0] %v2237_v22  ;;  %v2238_v33 = vadd.f32 %v2234_v27, %v2222_v15 }
 0x6c7   : > { %v1977_v32 = vmul.f32 %v5038_v60, %v1973_v23  ;;  %v1974_v18 = vrot.slane %v5040_v25, 4  ;;  %5045 = vrcp.f32 %v2209_v46  ;;  %v5042_v36 = vpop.eup %5041 }
 0x6c8   : > { %5047 = vtanh.f32 %v2238_v33  ;;  %2252 = vst [vmem:[#allocation2 + $0x8] sm:$0xf0] %v2238_v33 }
 0x6c9   : > { %1979 = vst [vmem:[#allocation3 + $0x8] sm:$0xf] %v1977_v32  ;;  %v1978_v20 = vmul.f32 %v5042_v36, %v1974_v18  ;;  %5049 = vrcp.f32 %v2210_v29 }
 0x6cb   : > { %1980 = vst [vmem:[#allocation3] sm:$0xf] %v1978_v20  ;;  %v1985_v54 = vcombine.low %v1977_v32, %v1978_v20 }
 0x6cd   : > { %4749 = vst [vmem:[%s5882_s24 + $0x10] sm:$0xff] %v1985_v54 }
 0x6d0   : > { %v2253_v48 = vld [vmem:[#allocation3 + $0x8] sm:$0xff] }
 0x6d1   : > { %v2257_v61 = vmul.f32 %v2253_v48, %v6175_v24 }
 0x6d2   : > { %v2254_v30 = vld [vmem:[#allocation3] sm:$0xff] }
 0x6d3   : > { %v5044_v58 = vpop.eup %5043  ;;  %v6529_v41 = vadd.f32 %v2257_v61, %v6185_v17  ;;  %v2258_v24 = vmul.f32 %v2254_v30, %v6209_v16 }
 0x6d4   : > { %v5046_v44 = vpop.eup %5045  ;;  %v2243_v21 = vrot.slane %v5044_v58, 4 }
 0x6d5   : > { %v5048_v8 = vpop.eup %5047  ;;  %v2265_v4 = vrot.slane %v6529_v41, 4  ;;  %v6545_v17 = vadd.f32 %v2258_v24, %v6219_v55 }
 0x6d6   : > { %v2247_v43 = vmul.f32 %v5046_v44, %v2243_v21  ;;  %v2244_v52 = vrot.slane %v5048_v8, 4  ;;  %v5050_v45 = vpop.eup %5049 }
 0x6d7   : > { %v2266_v6 = vrot.slane %v6545_v17, 4 }
 0x6d8   : > { %2249 = vst [vmem:[#allocation2] sm:$0xf] %v2247_v43  ;;  %v2248_v11 = vmul.f32 %v5050_v45, %v2244_v52  ;;  %v6533_v34 = vsel %vm500_vm4, %v2247_v43, %v2265_v4 }
 0x6d9   : > { %2294 = vrot.lane.b32.xlu1 %v6533_v34, %s5284_s15  ;;  %2336 = vrot.lane.b32.xlu0 %v6533_v34, %s5277_s28 }
 0x6da   : > { %2250 = vst [vmem:[#allocation2 + $0x8] sm:$0xf] %v2248_v11  ;;  %v6557_v16 = vsel %vm500_vm4, %v2248_v11, %v2266_v6  ;;  %v2371_v11 = vmul.f32 %v6533_v34, %v6333_v12 }
 0x6dd   : > { %2303 = vrot.lane.b32.xlu1 %v6533_v34, %s5281_s13  ;;  %2318 = vrot.lane.b32.xlu0 %v6533_v34, %s5279_s30 }
 0x6df   : > { %v2518_v55 = vld [vmem:[#allocation2] sm:$0xff] }
 0x6e0   : > { %v2522_v13 = vmul.f32 %v6570_v39, %v2518_v55 }
 0x6e1   : > { %2276 = vrot.lane.b32.xlu1 %v6533_v34, %s5283_s14  ;;  %2327 = vrot.lane.b32.xlu0 %v6533_v34, %s5278_s29  ;;  %v2519_v49 = vld [vmem:[#allocation2 + $0x8] sm:$0xff] }
 0x6e2   : > { %v6587_v19 = vadd.f32 %v6580_v3, %v2522_v13  ;;  %v2523_v10 = vmul.f32 %v6596_v40, %v2519_v49  ;;  %v7882_v49 = vld [vmem:[#allocation5_spill] sm:$0xff] }
 0x6e4   : > { %v6613_v9 = vadd.f32 %v6606_v2, %v2523_v10 }
 0x6e5   : > { %2285 = vrot.lane.b32.xlu1 %v6533_v34, %s5280_s12  ;;  %2309 = vrot.lane.b32.xlu0 %v6533_v34, %s5276_s27 }
 0x6e9   : > { %2338 = vrot.lane.b32.xlu1 %v6557_v16, %s5277_s28  ;;  %2291 = vrot.lane.b32.xlu0 %v6557_v16, %s5284_s15 }
 0x6ed   : > { %2320 = vrot.lane.b32.xlu1 %v6557_v16, %s5279_s30  ;;  %2300 = vrot.lane.b32.xlu0 %v6557_v16, %s5281_s13 }
 0x6f1   : > { %2329 = vrot.lane.b32.xlu1 %v6557_v16, %s5278_s29  ;;  %2272 = vrot.lane.b32.xlu0 %v6557_v16, %s5283_s14 }
 0x6f5   : > { %2311 = vrot.lane.b32.xlu1 %v6557_v16, %s5276_s27  ;;  %2282 = vrot.lane.b32.xlu0 %v6557_v16, %s5280_s12 }
 0x6f9   : > { %2542 = vrot.lane.b32.xlu1 %v6587_v19, %s5280_s12  ;;  %2589 = vrot.lane.b32.xlu0 %v6587_v19, %s5277_s28 }
 0x6fd   : > { %2559 = vrot.lane.b32.xlu1 %v6587_v19, %s5281_s13  ;;  %2564 = vrot.lane.b32.xlu0 %v6587_v19, %s5276_s27 }
 0x701   : > { %2533 = vrot.lane.b32.xlu1 %v6587_v19, %s5283_s14  ;;  %2581 = vrot.lane.b32.xlu0 %v6587_v19, %s5278_s29 }
 0x705   : > { %2591 = vrot.lane.b32.xlu1 %v6613_v9, %s5277_s28  ;;  %2572 = vrot.lane.b32.xlu0 %v6587_v19, %s5279_s30 }
 0x709   : > { %2566 = vrot.lane.b32.xlu1 %v6613_v9, %s5276_s27  ;;  %2539 = vrot.lane.b32.xlu0 %v6613_v9, %s5280_s12 }
 0x70d   : > { %2583 = vrot.lane.b32.xlu1 %v6613_v9, %s5278_s29  ;;  %2556 = vrot.lane.b32.xlu0 %v6613_v9, %s5281_s13 }
 0x711   : > { %2574 = vrot.lane.b32.xlu1 %v6613_v9, %s5279_s30  ;;  %2529 = vrot.lane.b32.xlu0 %v6613_v9, %s5283_s14 }
 0x715   : > { %2550 = vrot.lane.b32.xlu1 %v6587_v19, %s5284_s15  ;;  %2547 = vrot.lane.b32.xlu0 %v6613_v9, %s5284_s15 }
 0x74b   : > { %v2295_v35 = vpop.permute.xlu1 %2294  ;;  %v2337_v0 = vpop.permute.xlu0 %2336 }
 0x74f   : > { %v2304_v5 = vpop.permute.xlu1 %2303  ;;  %v2319_v56 = vpop.permute.xlu0 %2318 }
 0x753   : > { %v2277_v1 = vpop.permute.xlu1 %2276  ;;  %v2328_v46 = vpop.permute.xlu0 %2327 }
 0x757   : > { %v2286_v59 = vpop.permute.xlu1 %2285  ;;  %v2310_v22 = vpop.permute.xlu0 %2309 }
 0x75b   : > { %v2339_v15 = vpop.permute.xlu1 %2338  ;;  %v2292_v27 = vpop.permute.xlu0 %2291 }
 0x75c   : > { %v2340_v60 = vsel %vm474_vm1, %v2337_v0, %v2339_v15  ;;  %v2344_v23 = vsel %vm474_vm1, %v2339_v15, %v2337_v0  ;;  %v2296_v6 = vsel %vm428_vm9, %v2295_v35, %v2292_v27  ;;  %v7883_v0 = vld [vmem:[#allocation6_spill] sm:$0xff]  ;;  %v2299_v34 = vsel %vm428_vm9, %v2292_v27, %v2295_v35 }
 0x75d   : > { %v2379_v25 = vmul.f32 %v2340_v60, %v6291_v63  ;;  %v2380_v29 = vmul.f32 %v2344_v23, %v6296_v62  ;;  %v7887_v27 = vld [vmem:[#allocation10_spill] sm:$0xff] }
 0x75f   : > { %v2391_v33 = vpack.c.bf16 %v2379_v25, %v2379_v25  ;;  %v2392_v32 = vpack.c.bf16 %v2380_v29, %v2380_v29  ;;  %v2321_v18 = vpop.permute.xlu1 %2320  ;;  %v2301_v36 = vpop.permute.xlu0 %2300 }
 0x760   : > { %v2322_v20 = vsel %vm455_vm5, %v2319_v56, %v2321_v18  ;;  %v2326_v54 = vsel %vm455_vm5, %v2321_v18, %v2319_v56  ;;  %v2305_v43 = vsel %vm438_vm7, %v2304_v5, %v2301_v36  ;;  %v7886_v18 = vld [vmem:[#allocation9_spill] sm:$0xff] }
 0x761   : > { %4762 = vmatprep.subr.msk.bf16.mxu1 %vm500_vm4, %v2392_v32  ;;  %v2406_v48 = vsel %vm500_vm4, %v2391_v33, 0  ;;  %v2375_v62 = vmul.f32 %v2322_v20, %v6307_v57  ;;  %v2376_v21 = vmul.f32 %v2326_v54, %v6314_v7  ;;  %v2372_v7 = vmul.f32 %v6557_v16, %v6342_v26  ;;  %v7885_v16 = vld [vmem:[#allocation8_spill] sm:$0xff] }
 0x762   : > { %2418 = vmatpush1.bf16.msra.mxu1 %v2406_v48 }
 0x763   : > { %v2330_v61 = vpop.permute.xlu1 %2329  ;;  %v2273_v58 = vpop.permute.xlu0 %2272 }
 0x764   : > { %v2331_v44 = vsel %vm465_vm2, %v2328_v46, %v2330_v61  ;;  %v2335_v63 = vsel %vm465_vm2, %v2330_v61, %v2328_v46  ;;  %v7884_v46 = vld [vmem:[#allocation7_spill] sm:$0xff]  ;;  %v2278_v25 = vsel %vm409_vm8, %v2277_v1, %v2273_v58  ;;  %v2281_v35 = vsel %vm409_vm8, %v2273_v58, %v2277_v1  ;;  %v4874_v1 = vld [vmem:[%s7858_s6] sm:$0xff]  }
 0x765   : > { %v2377_v8 = vmul.f32 %v2331_v44, %v6321_v42  ;;  %v2378_v4 = vmul.f32 %v2335_v63, %v6326_v53  ;;  %v2308_v42 = vsel %vm438_vm7, %v2301_v36, %v2304_v5  ;;  %v7881_v53 = vld [vmem:[#allocation4_spill] sm:$0xff]  ;;  %v2368_v15 = vmul.f32 %v2296_v6, %v7884_v46 }
 0x766   : > { %v2370_v13 = vmul.f32 %v2305_v43, %v7881_v53  ;;  %v2369_v5 = vmul.f32 %v2308_v42, %v7885_v16  ;;  %v2367_v36 = vmul.f32 %v2299_v34, %v7886_v18  ;;  %v2364_v20 = vmul.f32 %v2278_v25, %v7887_v27  ;;  %v2634_v58 = vld [vmem:[%s7857_s5 + $0x40] sm:$0xf] }
 0x767   : > { %v2389_v52 = vpack.c.bf16 %v2377_v8, %v2375_v62  ;;  %v2312_v45 = vpop.permute.xlu1 %2311  ;;  %v2283_v30 = vpop.permute.xlu0 %2282  ;;  %v2390_v24 = vpack.c.bf16 %v2378_v4, %v2376_v21 }
 0x768   : > { %v2313_v55 = vsel %vm446_vm0, %v2310_v22, %v2312_v45  ;;  %v2317_v57 = vsel %vm446_vm0, %v2312_v45, %v2310_v22  ;;  %v2287_v12 = vsel %vm419_vm6, %v2286_v59, %v2283_v30  ;;  %v2290_v29 = vsel %vm419_vm6, %v2283_v30, %v2286_v59 }
 0x769   : > { %v2373_v10 = vmul.f32 %v2313_v55, %v7882_v49  ;;  %v2374_v56 = vmul.f32 %v2317_v57, %v7883_v0  ;;  %2419 = vmatprep.subr.bf16.mxu1 %v2390_v24  ;;  %v2366_v33 = vmul.f32 %v2287_v12, %v6405_v38  ;;  %v2386_v32 = vpack.c.bf16 %v2370_v13, %v2368_v15 }
 0x76a   : > { %2420 = vmatpush1.bf16.msra.mxu1 %v2389_v52  ;;  %v2385_v61 = vpack.c.bf16 %v2369_v5, %v2367_v36  ;;  %v2365_v44 = vmul.f32 %v2290_v29, %v6419_v28  ;;  %v2363_v59 = vmul.f32 %v2281_v35, %v6438_v14  ;;  %v2635_v28 = vld [vmem:[%s7857_s5 + $0x48] sm:$0xf]  ;;  %v6708_v5 = vld [vmem:[%s7857_s5 + $0x30] sm:$0xff] }
 0x76b   : > { %v2387_v22 = vpack.c.bf16 %v2373_v10, %v2371_v11  ;;  %v2543_v60 = vpop.permute.xlu1 %2542  ;;  %v2590_v23 = vpop.permute.xlu0 %2589  ;;  %v2388_v26 = vpack.c.bf16 %v2374_v56, %v2372_v7  ;;  %v2384_v63 = vpack.c.bf16 %v2366_v33, %v2364_v20  ;;  %v6695_v56 = vld [vmem:[%s7857_s5 + $0x20] sm:$0xff]  ;;  %v6718_v33 = vld [vmem:[%s7857_s5 + $0x38] sm:$0xff] }
 0x76c   : > { %v2383_v21 = vpack.c.bf16 %v2365_v44, %v2363_v59 }
 0x76d   : > { %2421 = vmatprep.subr.bf16.mxu1 %v2388_v26 }
 0x76e   : > { %2422 = vmatpush1.bf16.msra.mxu1 %v2387_v22 }
 0x76f   : > { %2423 = vmatprep.subr.bf16.mxu1 %v2386_v32  ;;  %v2560_v54 = vpop.permute.xlu1 %2559  ;;  %v2565_v48 = vpop.permute.xlu0 %2564 }
 0x772   : > { %2424 = vmatpush1.bf16.msra.mxu1 %v2385_v61 }
 0x773   : > { %2425 = vmatprep.subr.bf16.mxu1 %v2384_v63  ;;  %v2534_v38 = vpop.permute.xlu1 %2533  ;;  %v2582_v62 = vpop.permute.xlu0 %2581  ;;  %v6731_v63 = vld [vmem:[%s7857_s5] sm:$0xff] }
 0x776   : > { %2426 = vmatpush1.bf16.msra.mxu1 %v2383_v21 }
 0x777   : > { %v2592_v8 = vpop.permute.xlu1 %2591  ;;  %v2573_v14 = vpop.permute.xlu0 %2572 }
 0x778   : > { %v2593_v4 = vsel %vm474_vm1, %v2590_v23, %v2592_v8  ;;  %v2597_v43 = vsel %vm474_vm1, %v2592_v8, %v2590_v23  ;;  %v6740_v8 = vld [vmem:[%s7857_s5 + $0x10] sm:$0xff] }
 0x779   : > { %v2644_v52 = vmul.f32 %v2634_v58, %v2593_v4  ;;  %v2645_v45 = vmul.f32 %v2635_v28, %v2597_v43  ;;  %4763 = vmatmul.mubr.msk.bf16.vlgmr.msra.gmra.mxu1 %vm815_vm11, %v4874_v1  ;;  %v6745_v4 = vld [vmem:[%s7857_s5 + $0x8] sm:$0xff]  ;;  %v6750_v43 = vld [vmem:[%s7857_s5 + $0x18] sm:$0xff] }
 0x77a   : > { %3233 = vmatprep.mubr.bf16.mxu1 %v7880_v31 }
 0x77b   : > { %v2652_v11 = vpack.c.bf16 %v2644_v52, %v2644_v52  ;;  %v2653_v30 = vpack.c.bf16 %v2645_v45, %v2645_v45  ;;  %v2567_v24 = vpop.permute.xlu1 %2566  ;;  %v2540_v6 = vpop.permute.xlu0 %2539 }
 0x77c   : > { %v2568_v55 = vsel %vm446_vm0, %v2565_v48, %v2567_v24  ;;  %v2571_v57 = vsel %vm446_vm0, %v2567_v24, %v2565_v48  ;;  %v2544_v34 = vsel %vm419_vm6, %v2543_v60, %v2540_v6  ;;  %v2546_v46 = vsel %vm419_vm6, %v2540_v6, %v2543_v60  ;;  %v6713_v60 = vld [vmem:[%s7857_s5 + $0x28] sm:$0xff] }
 0x77d   : > { %4770 = vmatprep.subr.msk.bf16.mxu0 %vm550_vm3, %v2653_v30  ;;  %v2609_v7 = vrot.slane %v2568_v55, 4  ;;  %v2610_v42 = vrot.slane %v2571_v57, 4  ;;  %v2667_v53 = vsel %vm550_vm3, %v2652_v11, 0  ;;  %v2599_v27 = vrot.slane %v2546_v46, 4 }
 0x77e   : > { %2683 = vmatpush1.bf16.msra.mxu0 %v2667_v53  ;;  %v2600_v20 = vrot.slane %v2544_v34, 4 }
 0x77f   : > { %v2584_v13 = vpop.permute.xlu1 %2583  ;;  %v2557_v49 = vpop.permute.xlu0 %2556  ;;  %v2622_v12 = vsel %vm500_vm4, %v6587_v19, %v2609_v7  ;;  %v2623_v15 = vsel %vm500_vm4, %v6613_v9, %v2610_v42 }
 0x780   : > { %v2585_v10 = vsel %vm465_vm2, %v2582_v62, %v2584_v13  ;;  %v2588_v0 = vsel %vm465_vm2, %v2584_v13, %v2582_v62  ;;  %v2561_v26 = vsel %vm438_vm7, %v2560_v54, %v2557_v49  ;;  %v2563_v16 = vsel %vm438_vm7, %v2557_v49, %v2560_v54  ;;  %v4875_v49 = vld [vmem:[%s7853_s1] sm:$0xff]  }
 0x781   : > { %v2614_v22 = vrot.slane %v2585_v10, 4  ;;  %v2615_v23 = vrot.slane %v2588_v0, 4  ;;  %v2640_v61 = vmul.f32 %v6695_v56, %v2622_v12  ;;  %v2641_v59 = vmul.f32 %v6713_v60, %v2623_v15 }
 0x782   : > { %v2605_v21 = vrot.slane %v2561_v26, 4 }
 0x783   : > { %v2575_v25 = vpop.permute.xlu1 %2574  ;;  %v2530_v29 = vpop.permute.xlu0 %2529 }
 0x784   : > { %v2576_v32 = vsel %vm455_vm5, %v2573_v14, %v2575_v25  ;;  %v2580_v18 = vsel %vm455_vm5, %v2575_v25, %v2573_v14  ;;  %v2535_v36 = vsel %vm409_vm8, %v2534_v38, %v2530_v29  ;;  %v2538_v35 = vsel %vm409_vm8, %v2530_v29, %v2534_v38 }
 0x785   : > { %v2624_v54 = vsel %vm500_vm4, %v2576_v32, %v2614_v22  ;;  %v2625_v48 = vsel %vm500_vm4, %v2580_v18, %v2615_v23  ;;  %v2604_v38 = vrot.slane %v2563_v16, 4  ;;  %v2618_v1 = vsel %vm500_vm4, %v2538_v35, %v2599_v27  ;;  %v6778_v35 = vld [vmem:[%s7854_s2 + $0x8] sm:$0xff] }
 0x786   : > { %v2642_v44 = vmul.f32 %v6708_v5, %v2624_v54  ;;  %v2643_v62 = vmul.f32 %v6718_v33, %v2625_v48  ;;  %v2619_v58 = vsel %vm500_vm4, %v2535_v36, %v2600_v20  ;;  %v2636_v55 = vmul.f32 %v6731_v63, %v2618_v1  ;;  %v6772_v36 = vld [vmem:[%s7854_s2] sm:$0xff]  ;;  %v4773_v54 = vld [vmem:[%s5512_s25 + $0x88] sm:$0xff] }
 0x787   : > { %v2551_v28 = vpop.permute.xlu1 %2550  ;;  %v2548_v14 = vpop.permute.xlu0 %2547  ;;  %v2637_v7 = vmul.f32 %v6745_v4, %v2619_v58 }
 0x788   : > { %v2552_v52 = vsel %vm428_vm9, %v2551_v28, %v2548_v14  ;;  %v2555_v45 = vsel %vm428_vm9, %v2548_v14, %v2551_v28  ;;  %v2651_v11 = vpack.c.bf16 %v2643_v62, %v2641_v59  ;;  %v2650_v30 = vpack.c.bf16 %v2642_v44, %v2640_v61  ;;  %v6786_v28 = vld [vmem:[%s7854_s2 + $0x10] sm:$0xff] }
 0x789   : > { %v2620_v24 = vsel %vm500_vm4, %v2555_v45, %v2604_v38  ;;  %v2621_v6 = vsel %vm500_vm4, %v2552_v52, %v2605_v21 }
 0x78a   : > { %v2638_v57 = vmul.f32 %v6740_v8, %v2620_v24  ;;  %2684 = vmatprep.subr.bf16.mxu0 %v2651_v11  ;;  %v2639_v42 = vmul.f32 %v6750_v43, %v2621_v6 }
 0x78b   : > { %2685 = vmatpush1.bf16.msra.mxu0 %v2650_v30  ;;  %v6791_v30 = vld [vmem:[%s7854_s2 + $0x18] sm:$0xff] }
 0x78c   : > { %v2649_v53 = vpack.c.bf16 %v2639_v42, %v2637_v7  ;;  %v2648_v13 = vpack.c.bf16 %v2638_v57, %v2636_v55 }
 0x78e   : > { %2686 = vmatprep.subr.bf16.mxu0 %v2649_v53  ;;  %v4774_v53 = vld [vmem:[%s5512_s25 + $0x90] sm:$0xff] }
 0x78f   : > { %2687 = vmatpush1.bf16.msra.mxu0 %v2648_v13 }
 0x792   : > { %4771 = vmatmul.mubr.msk.bf16.vlgmr.msra.gmra.mxu0 %vm546_vm10, %v4875_v49 }
 0x793   : > { %2972 = vmatprep.mubr.bf16.mxu0 %v7880_v31 }
 0x839   : > { %v2445_v10 = vpop.f32.mrf.mxu1 }
 0x83a   : > { %v2446_v0 = vadd.f32 %v2445_v10, %v6493_v47 }
 0x83b   : > { %v2447_v12 = vpop.f32.mrf.mxu1 }
 0x83c   : > { %v4764_v34 = vmul.f32 -1.442695, %v2446_v0  ;;  %v2448_v46 = vadd.f32 %v2447_v12, %v6498_v37 }
 0x83d   : > { %v2449_v22 = vpop.f32.mrf.mxu1 }
 0x83e   : > { %5051 = vpow2.f32 %v4764_v34  ;;  %v4765_v15 = vmul.f32 -1.442695, %v2448_v46  ;;  %v2450_v26 = vadd.f32 %v2449_v22, %v6505_v50  ;;  %v4775_v46 = vld [vmem:[%s5512_s25 + $0x98] sm:$0xff] }
 0x83f   : > { %v2451_v23 = vpop.f32.mrf.mxu1 }
 0x840   : > { %5053 = vpow2.f32 %v4765_v15  ;;  %v2452_v16 = vadd.f32 %v2451_v23, %v6511_v51  ;;  %v4766_v29 = vmul.f32 -1.442695, %v2450_v26  ;;  %v4772_v51 = vld [vmem:[%s5512_s25 + $0x80] sm:$0xff] }
 0x841   : > { %5055 = vtanh.f32 %v2450_v26 }
 0x842   : > { %5057 = vtanh.f32 %v2452_v16  ;;  %v4767_v37 = vmul.f32 -1.442695, %v2452_v16 }
 0x84b   : > { %v5052_v25 = vpop.eup %5051 }
 0x84c   : > { %v2466_v32 = vadd.f32 1.0, %v5052_v25 }
 0x84d   : > { %v5054_v47 = vpop.eup %5053 }
 0x84e   : > { %5059 = vrcp.f32 %v2466_v32  ;;  %v2467_v18 = vadd.f32 1.0, %v5054_v47  ;;  %v5056_v44 = vpop.eup %5055 }
 0x84f   : > { %5061 = vpow2.f32 %v4766_v29  ;;  %v5058_v21 = vpop.eup %5057  ;;  %v2484_v58 = vrot.slane %v5056_v44, 4 }
 0x850   : > { %5063 = vrcp.f32 %v2467_v18  ;;  %v2485_v11 = vrot.slane %v5058_v21, 4 }
 0x851   : > { %5065 = vpow2.f32 %v4767_v37 }
 0x852   : > { %v2706_v50 = vpop.f32.mrf.mxu0 }
 0x853   : > { %v2707_v27 = vadd.f32 %v2706_v50, %v6772_v36 }
 0x854   : > { %v2708_v20 = vpop.f32.mrf.mxu0 }
 0x855   : > { %v2720_v48 = vadd.f32 %v4772_v51, %v2707_v27  ;;  %v2709_v61 = vadd.f32 %v2708_v20, %v6778_v35 }
 0x856   : > { %v2710_v38 = vpop.f32.mrf.mxu0 }
 0x857   : > { %v4776_v59 = vmul.f32 -1.442695, %v2720_v48  ;;  %v2721_v62 = vadd.f32 %v4773_v54, %v2709_v61  ;;  %v2711_v55 = vadd.f32 %v2710_v38, %v6786_v28 }
 0x858   : > { %v2712_v24 = vpop.f32.mrf.mxu0 }
 0x859   : > { %5067 = vpow2.f32 %v4776_v59  ;;  %v4777_v1 = vmul.f32 -1.442695, %v2721_v62  ;;  %v2713_v10 = vadd.f32 %v2712_v24, %v6791_v30  ;;  %v2722_v15 = vadd.f32 %v4774_v53, %v2711_v55 }
 0x85b   : > { %v5060_v14 = vpop.eup %5059  ;;  %5069 = vpow2.f32 %v4777_v1  ;;  %v2723_v26 = vadd.f32 %v4775_v46, %v2713_v10  ;;  %v4778_v16 = vmul.f32 -1.442695, %v2722_v15 }
 0x85c   : > { %v5062_v52 = vpop.eup %5061  ;;  %v2488_v45 = vmul.f32 %v5060_v14, %v2484_v58  ;;  %v2480_v57 = vmul.f32 %v5060_v14, %v6529_v41 }
 0x85d   : > { %v5064_v6 = vpop.eup %5063  ;;  %v2468_v49 = vadd.f32 1.0, %v5062_v52  ;;  %v4779_v32 = vmul.f32 -1.442695, %v2723_v26 }
 0x85e   : > { %v2492_v7 = vrot.slane %v2488_v45, 4  ;;  %v2489_v42 = vmul.f32 %v5064_v6, %v2485_v11  ;;  %v5066_v13 = vpop.eup %5065  ;;  %v2481_v12 = vmul.f32 %v5064_v6, %v6545_v17 }
 0x85f   : > { %v2469_v22 = vadd.f32 1.0, %v5066_v13 }
 0x860   : > { %v2496_v0 = vadd.f32 %v2492_v7, %v2480_v57  ;;  %v2493_v34 = vrot.slane %v2489_v42, 4 }
 0x862   : > { %5071 = vtanh.f32 %v2496_v0  ;;  %2510 = vst [vmem:[#allocation3 + $0x8] sm:$0xf0] %v2496_v0  ;;  %v2497_v23 = vadd.f32 %v2493_v34, %v2481_v12 }
 0x863   : > { %5073 = vrcp.f32 %v2468_v49 }
 0x864   : > { %5075 = vtanh.f32 %v2497_v23  ;;  %2511 = vst [vmem:[#allocation3] sm:$0xf0] %v2497_v23 }
 0x865   : > { %5077 = vtanh.f32 %v2722_v15 }
 0x866   : > { %v5068_v41 = vpop.eup %5067  ;;  %5079 = vrcp.f32 %v2469_v22 }
 0x867   : > { %v2736_v25 = vadd.f32 1.0, %v5068_v41  ;;  %5081 = vtanh.f32 %v2723_v26 }
 0x868   : > { %v5070_v29 = vpop.eup %5069 }
 0x869   : > { %5083 = vrcp.f32 %v2736_v25  ;;  %v2737_v17 = vadd.f32 1.0, %v5070_v29  ;;  %v6827_v25 = vld [vmem:[%s7860_s8 + $0x8] sm:$0xff] }
 0x86a   : > { %5085 = vpow2.f32 %v4778_v16 }
 0x86b   : > { %5087 = vrcp.f32 %v2737_v17  ;;  %v6837_v17 = vld [vmem:[%s7861_s9 + $0x8] sm:$0xff] }
 0x86c   : > { %5089 = vpow2.f32 %v4779_v32 }
 0x86f   : > { %v5072_v47 = vpop.eup %5071 }
 0x870   : > { %v5074_v18 = vpop.eup %5073  ;;  %v2502_v37 = vrot.slane %v5072_v47, 4 }
 0x871   : > { %v5076_v50 = vpop.eup %5075 }
 0x872   : > { %v5078_v51 = vpop.eup %5077  ;;  %v2506_v27 = vmul.f32 %v5074_v18, %v2502_v37  ;;  %v2503_v20 = vrot.slane %v5076_v50, 4 }
 0x873   : > { %v5080_v54 = vpop.eup %5079  ;;  %v2754_v44 = vrot.slane %v5078_v51, 4 }
 0x874   : > { %v5082_v48 = vpop.eup %5081  ;;  %2508 = vst [vmem:[#allocation3 + $0x8] sm:$0xf] %v2506_v27  ;;  %v2507_v61 = vmul.f32 %v5080_v54, %v2503_v20 }
 0x875   : > { %v2755_v1 = vrot.slane %v5082_v48, 4 }
 0x876   : > { %v5084_v59 = vpop.eup %5083  ;;  %2509 = vst [vmem:[#allocation3] sm:$0xf] %v2507_v61  ;;  %v2514_v62 = vcombine.low %v2506_v27, %v2507_v61 }
 0x877   : > { %v5086_v38 = vpop.eup %5085  ;;  %v2758_v21 = vmul.f32 %v5084_v59, %v2754_v44  ;;  %v2750_v14 = vmul.f32 %v5084_v59, %v6587_v19  ;;  %v6805_v19 = vld [vmem:[%s7860_s8] sm:$0xff] }
 0x878   : > { %v5088_v58 = vpop.eup %5087  ;;  %4768 = vst [vmem:[%s5882_s24 + $0x18] sm:$0xff] %v2514_v62  ;;  %v2738_v24 = vadd.f32 1.0, %v5086_v38  ;;  %v6919_v62 = vld [vmem:[%s7862_s10 + $0x80] sm:$0xff]  ;;  %v6924_v38 = vld [vmem:[%s7862_s10 + $0x88] sm:$0xff] }
 0x879   : > { %v2762_v52 = vrot.slane %v2758_v21, 4  ;;  %v2759_v45 = vmul.f32 %v5088_v58, %v2755_v1  ;;  %v5090_v11 = vpop.eup %5089  ;;  %v2751_v55 = vmul.f32 %v5088_v58, %v6613_v9  ;;  %v6811_v9 = vld [vmem:[%s7861_s9] sm:$0xff] }
 0x87a   : > { %v2739_v7 = vadd.f32 1.0, %v5090_v11 }
 0x87b   : > { %v2766_v6 = vadd.f32 %v2762_v52, %v2750_v14  ;;  %v2763_v57 = vrot.slane %v2759_v45, 4  ;;  %v2782_v53 = vld [vmem:[#allocation3 + $0x8] sm:$0xff] }
 0x87c   : > { %v2786_v13 = vmul.f32 %v6805_v19, %v2782_v53 }
 0x87d   : > { %5091 = vtanh.f32 %v2766_v6  ;;  %2780 = vst [vmem:[#allocation2] sm:$0xf0] %v2766_v6  ;;  %v2767_v42 = vadd.f32 %v2763_v57, %v2751_v55  ;;  %v2783_v16 = vld [vmem:[#allocation3] sm:$0xff]  ;;  %v6933_v57 = vld [vmem:[%s7862_s10 + $0x60] sm:$0xff] }
 0x87e   : > { %5093 = vrcp.f32 %v2738_v24  ;;  %v6814_v49 = vadd.f32 %v6811_v9, %v2786_v13  ;;  %v2787_v29 = vmul.f32 %v6827_v25, %v2783_v16 }
 0x87f   : > { %5095 = vtanh.f32 %v2767_v42  ;;  %2781 = vst [vmem:[#allocation2 + $0x8] sm:$0xf0] %v2767_v42 }
 0x880   : > { %5097 = vrcp.f32 %v2739_v7  ;;  %v2794_v22 = vrot.slane %v6814_v49, 4  ;;  %v6844_v32 = vadd.f32 %v6837_v17, %v2787_v29  ;;  %v6939_v7 = vld [vmem:[%s7862_s10 + $0x68] sm:$0xff] }
 0x882   : > { %v2795_v47 = vrot.slane %v6844_v32, 4 }
 0x88a   : > { %v5092_v10 = vpop.eup %5091 }
 0x88b   : > { %v5094_v0 = vpop.eup %5093  ;;  %v2772_v12 = vrot.slane %v5092_v10, 4  ;;  %v6947_v10 = vld [vmem:[%s7862_s10 + $0x70] sm:$0xff] }
 0x88c   : > { %v5096_v34 = vpop.eup %5095 }
 0x88d   : > { %v2776_v46 = vmul.f32 %v5094_v0, %v2772_v12  ;;  %v2773_v15 = vrot.slane %v5096_v34, 4  ;;  %v5098_v23 = vpop.eup %5097  ;;  %v6952_v0 = vld [vmem:[%s7862_s10 + $0x78] sm:$0xff] }
 0x88f   : > { %2778 = vst [vmem:[#allocation2] sm:$0xf] %v2776_v46  ;;  %v2777_v26 = vmul.f32 %v5098_v23, %v2773_v15  ;;  %v6818_v41 = vsel %vm500_vm4, %v2776_v46, %v2794_v22  ;;  %v6959_v22 = vld [vmem:[%s7862_s10 + $0x40] sm:$0xff] }
 0x890   : > { %2823 = vrot.lane.b32.xlu1 %v6818_v41, %s5284_s15  ;;  %2865 = vrot.lane.b32.xlu0 %v6818_v41, %s5277_s28 }
 0x891   : > { %2779 = vst [vmem:[#allocation2 + $0x8] sm:$0xf] %v2777_v26  ;;  %v6852_v18 = vsel %vm500_vm4, %v2777_v26, %v2795_v47  ;;  %v6968_v47 = vld [vmem:[%s7862_s10 + $0x48] sm:$0xff] }
 0x894   : > { %2832 = vrot.lane.b32.xlu1 %v6818_v41, %s5281_s13  ;;  %2847 = vrot.lane.b32.xlu0 %v6818_v41, %s5279_s30 }
 0x896   : > { %v3047_v37 = vld [vmem:[#allocation2] sm:$0xff] }
 0x897   : > { %v3051_v50 = vmul.f32 %v3047_v37, %v6570_v39  ;;  %v6973_v37 = vld [vmem:[%s7862_s10 + $0x38] sm:$0xff] }
 0x898   : > { %2805 = vrot.lane.b32.xlu1 %v6818_v41, %s5283_s14  ;;  %2856 = vrot.lane.b32.xlu0 %v6818_v41, %s5278_s29  ;;  %v3048_v27 = vld [vmem:[#allocation2 + $0x8] sm:$0xff] }
 0x899   : > { %v6872_v51 = vadd.f32 %v3051_v50, %v6580_v3  ;;  %v3052_v39 = vmul.f32 %v3048_v27, %v6596_v40  ;;  %v6979_v27 = vld [vmem:[%s7862_s10 + $0x50] sm:$0xff] }
 0x89b   : > { %v6888_v3 = vadd.f32 %v3052_v39, %v6606_v2  ;;  %v6984_v39 = vld [vmem:[%s7862_s10 + $0x58] sm:$0xff] }
 0x89c   : > { %2814 = vrot.lane.b32.xlu1 %v6818_v41, %s5280_s12  ;;  %2838 = vrot.lane.b32.xlu0 %v6818_v41, %s5276_s27 }
 0x8a0   : > { %2867 = vrot.lane.b32.xlu1 %v6852_v18, %s5277_s28  ;;  %2820 = vrot.lane.b32.xlu0 %v6852_v18, %s5284_s15 }
 0x8a4   : > { %2849 = vrot.lane.b32.xlu1 %v6852_v18, %s5279_s30  ;;  %2829 = vrot.lane.b32.xlu0 %v6852_v18, %s5281_s13 }
 0x8a8   : > { %2858 = vrot.lane.b32.xlu1 %v6852_v18, %s5278_s29  ;;  %2801 = vrot.lane.b32.xlu0 %v6852_v18, %s5283_s14 }
 0x8ac   : > { %2840 = vrot.lane.b32.xlu1 %v6852_v18, %s5276_s27  ;;  %2811 = vrot.lane.b32.xlu0 %v6852_v18, %s5280_s12 }
 0x8b0   : > { %3071 = vrot.lane.b32.xlu1 %v6872_v51, %s5280_s12  ;;  %3118 = vrot.lane.b32.xlu0 %v6872_v51, %s5277_s28 }
 0x8b4   : > { %3088 = vrot.lane.b32.xlu1 %v6872_v51, %s5281_s13  ;;  %3093 = vrot.lane.b32.xlu0 %v6872_v51, %s5276_s27 }
 0x8b8   : > { %3062 = vrot.lane.b32.xlu1 %v6872_v51, %s5283_s14  ;;  %3110 = vrot.lane.b32.xlu0 %v6872_v51, %s5278_s29 }
 0x8bc   : > { %3120 = vrot.lane.b32.xlu1 %v6888_v3, %s5277_s28  ;;  %3101 = vrot.lane.b32.xlu0 %v6872_v51, %s5279_s30 }
 0x8c0   : > { %3095 = vrot.lane.b32.xlu1 %v6888_v3, %s5276_s27  ;;  %3068 = vrot.lane.b32.xlu0 %v6888_v3, %s5280_s12 }
 0x8c4   : > { %3112 = vrot.lane.b32.xlu1 %v6888_v3, %s5278_s29  ;;  %3085 = vrot.lane.b32.xlu0 %v6888_v3, %s5281_s13 }
 0x8c8   : > { %3103 = vrot.lane.b32.xlu1 %v6888_v3, %s5279_s30  ;;  %3058 = vrot.lane.b32.xlu0 %v6888_v3, %s5283_s14 }
 0x8cc   : > { %3079 = vrot.lane.b32.xlu1 %v6872_v51, %s5284_s15  ;;  %3076 = vrot.lane.b32.xlu0 %v6888_v3, %s5284_s15 }
 0x902   : > { %v6910_v40 = vpop.permute.xlu1 %2823  ;;  %v2866_v2 = vpop.permute.xlu0 %2865 }
 0x906   : > { %v2833_v20 = vpop.permute.xlu1 %2832  ;;  %v2848_v54 = vpop.permute.xlu0 %2847 }
 0x90a   : > { %v6912_v48 = vpop.permute.xlu1 %2805  ;;  %v2857_v61 = vpop.permute.xlu0 %2856 }
 0x90e   : > { %v6914_v44 = vpop.permute.xlu1 %2814  ;;  %v2839_v59 = vpop.permute.xlu0 %2838 }
 0x912   : > { %v2868_v21 = vpop.permute.xlu1 %2867  ;;  %v2821_v1 = vpop.permute.xlu0 %2820 }
 0x913   : > { %v2869_v58 = vsel %vm474_vm1, %v2866_v2, %v2868_v21  ;;  %v2873_v14 = vsel %vm474_vm1, %v2868_v21, %v2866_v2 }
 0x914   : > { %v2908_v52 = vmul.f32 %v6919_v62, %v2869_v58  ;;  %v2909_v45 = vmul.f32 %v6924_v38, %v2873_v14  ;;  %v6991_v14 = vld [vmem:[%s7862_s10 + $0x28] sm:$0xff] }
 0x916   : > { %v2920_v11 = vpack.c.bf16 %v2908_v52, %v2908_v52  ;;  %v2921_v24 = vpack.c.bf16 %v2909_v45, %v2909_v45  ;;  %v2850_v6 = vpop.permute.xlu1 %2849  ;;  %v2830_v55 = vpop.permute.xlu0 %2829  ;;  %v2825_v52 = vsel %vm428_vm9, %v6910_v40, %v2821_v1 }
 0x917   : > { %v2851_v42 = vsel %vm455_vm5, %v2848_v54, %v2850_v6  ;;  %v2855_v53 = vsel %vm455_vm5, %v2850_v6, %v2848_v54  ;;  %v2834_v50 = vsel %vm438_vm7, %v2833_v20, %v2830_v55  ;;  %v2837_v6 = vsel %vm438_vm7, %v2830_v55, %v2833_v20  ;;  %v7018_v20 = vld [vmem:[%s7862_s10 + $0x20] sm:$0xff] }
 0x918   : > { %4781 = vmatprep.subr.msk.bf16.mxu0 %vm500_vm4, %v2921_v24  ;;  %v2935_v13 = vsel %vm500_vm4, %v2920_v11, 0  ;;  %v2904_v23 = vmul.f32 %v6933_v57, %v2851_v42  ;;  %v2905_v26 = vmul.f32 %v6939_v7, %v2855_v53  ;;  %v2901_v24 = vmul.f32 %v6968_v47, %v6852_v18 }
 0x919   : > { %2947 = vmatpush1.bf16.msra.mxu0 %v2935_v13  ;;  %v2899_v42 = vmul.f32 %v6973_v37, %v2834_v50  ;;  %v2828_v55 = vsel %vm428_vm9, %v2821_v1, %v6910_v40  ;;  %v7034_v40 = vld [vmem:[%s7862_s10 + $0x10] sm:$0xff] }
 0x91a   : > { %v2859_v12 = vpop.permute.xlu1 %2858  ;;  %v2802_v34 = vpop.permute.xlu0 %2801 }
 0x91b   : > { %v2860_v46 = vsel %vm465_vm2, %v2857_v61, %v2859_v12  ;;  %v2864_v15 = vsel %vm465_vm2, %v2859_v12, %v2857_v61  ;;  %v2900_v61 = vmul.f32 %v6959_v22, %v6818_v41  ;;  %v7002_v41 = vld [vmem:[%s7862_s10 + $0x30] sm:$0xff]  ;;  %v2897_v12 = vmul.f32 %v6991_v14, %v2825_v52 }
 0x91c   : > { %v2906_v16 = vmul.f32 %v6947_v10, %v2860_v46  ;;  %v2907_v29 = vmul.f32 %v6952_v0, %v2864_v15  ;;  %v2807_v50 = vsel %vm409_vm8, %v6912_v48, %v2802_v34  ;;  %v2810_v52 = vsel %vm409_vm8, %v2802_v34, %v6912_v48  ;;  %v4876_v48 = vld [vmem:[%s7858_s6] sm:$0xff]  }
 0x91d   : > { %v3163_v34 = vld [vmem:[%s7857_s5 + $0x40] sm:$0xf] }
 0x91e   : > { %v2918_v2 = vpack.c.bf16 %v2906_v16, %v2904_v23  ;;  %v2841_v54 = vpop.permute.xlu1 %2840  ;;  %v2812_v21 = vpop.permute.xlu0 %2811  ;;  %v2919_v58 = vpack.c.bf16 %v2907_v29, %v2905_v26  ;;  %v2898_v16 = vmul.f32 %v7002_v41, %v2837_v6  ;;  %v7027_v29 = vld [vmem:[%s7862_s10 + $0x8] sm:$0xff] }
 0x91f   : > { %v2842_v45 = vsel %vm446_vm0, %v2839_v59, %v2841_v54  ;;  %v2846_v11 = vsel %vm446_vm0, %v2841_v54, %v2839_v59  ;;  %v7011_v59 = vld [vmem:[%s7862_s10 + $0x18] sm:$0xff]  ;;  %v2816_v18 = vsel %vm419_vm6, %v6914_v44, %v2812_v21  ;;  %v2819_v1 = vsel %vm419_vm6, %v2812_v21, %v6914_v44 }
 0x920   : > { %v2902_v53 = vmul.f32 %v6979_v27, %v2842_v45  ;;  %v2903_v13 = vmul.f32 %v6984_v39, %v2846_v11  ;;  %2948 = vmatprep.subr.bf16.mxu0 %v2919_v58  ;;  %v2915_v54 = vpack.c.bf16 %v2899_v42, %v2897_v12  ;;  %v7043_v58 = vld [vmem:[%s7862_s10] sm:$0xff]  ;;  %v2893_v45 = vmul.f32 %v7027_v29, %v2807_v50 }
 0x921   : > { %2949 = vmatpush1.bf16.msra.mxu0 %v2918_v2  ;;  %v2895_v2 = vmul.f32 %v7011_v59, %v2816_v18  ;;  %v2892_v42 = vmul.f32 %v7043_v58, %v2810_v52 }
 0x922   : > { %v2916_v46 = vpack.c.bf16 %v2902_v53, %v2900_v61  ;;  %v3072_v15 = vpop.permute.xlu1 %3071  ;;  %v3119_v23 = vpop.permute.xlu0 %3118  ;;  %v2917_v26 = vpack.c.bf16 %v2903_v13, %v2901_v24  ;;  %v2896_v61 = vmul.f32 %v7018_v20, %v2828_v55  ;;  %v2894_v24 = vmul.f32 %v7034_v40, %v2819_v1  ;;  %v3164_v55 = vld [vmem:[%s7857_s5 + $0x48] sm:$0xf] }
 0x923   : > { %v2913_v6 = vpack.c.bf16 %v2895_v2, %v2893_v45 }
 0x924   : > { %2950 = vmatprep.subr.bf16.mxu0 %v2917_v26  ;;  %v2914_v21 = vpack.c.bf16 %v2898_v16, %v2896_v61  ;;  %v2912_v18 = vpack.c.bf16 %v2894_v24, %v2892_v42 }
 0x925   : > { %2951 = vmatpush1.bf16.msra.mxu0 %v2916_v46 }
 0x926   : > { %2952 = vmatprep.subr.bf16.mxu0 %v2915_v54  ;;  %v3089_v11 = vpop.permute.xlu1 %3088  ;;  %v3094_v44 = vpop.permute.xlu0 %3093 }
 0x929   : > { %2953 = vmatpush1.bf16.msra.mxu0 %v2914_v21 }
 0x92a   : > { %2954 = vmatprep.subr.bf16.mxu0 %v2913_v6  ;;  %v3063_v53 = vpop.permute.xlu1 %3062  ;;  %v3111_v13 = vpop.permute.xlu0 %3110 }
 0x92d   : > { %2955 = vmatpush1.bf16.msra.mxu0 %v2912_v18 }
 0x92e   : > { %v3121_v12 = vpop.permute.xlu1 %3120  ;;  %v3102_v46 = vpop.permute.xlu0 %3101 }
 0x92f   : > { %v3122_v26 = vsel %vm474_vm1, %v3119_v23, %v3121_v12  ;;  %v3126_v16 = vsel %vm474_vm1, %v3121_v12, %v3119_v23 }
 0x930   : > { %v3173_v50 = vmul.f32 %v3163_v34, %v3122_v26  ;;  %v3174_v1 = vmul.f32 %v3164_v55, %v3126_v16  ;;  %4782 = vmatmul.mubr.msk.bf16.vlgmr.msra.gmra.mxu0 %vm815_vm11, %v4876_v48 }
 0x931   : > { %3762 = vmatprep.mubr.bf16.mxu0 %v7880_v31 }
 0x932   : > { %v3181_v2 = vpack.c.bf16 %v3173_v50, %v3173_v50  ;;  %v3182_v54 = vpack.c.bf16 %v3174_v1, %v3174_v1  ;;  %v3096_v61 = vpop.permute.xlu1 %3095  ;;  %v3069_v52 = vpop.permute.xlu0 %3068 }
 0x933   : > { %v3097_v45 = vsel %vm446_vm0, %v3094_v44, %v3096_v61  ;;  %v3100_v21 = vsel %vm446_vm0, %v3096_v61, %v3094_v44  ;;  %v3073_v44 = vsel %vm419_vm6, %v3072_v15, %v3069_v52  ;;  %v3075_v26 = vsel %vm419_vm6, %v3069_v52, %v3072_v15 }
 0x934   : > { %4789 = vmatprep.subr.msk.bf16.mxu1 %vm550_vm3, %v3182_v54  ;;  %v3138_v24 = vrot.slane %v3097_v45, 4  ;;  %v3139_v6 = vrot.slane %v3100_v21, 4  ;;  %v3196_v23 = vsel %vm550_vm3, %v3181_v2, 0 }
 0x935   : > { %3212 = vmatpush1.bf16.msra.mxu1 %v3196_v23  ;;  %v3129_v23 = vrot.slane %v3073_v44, 4 }
 0x936   : > { %v3113_v42 = vpop.permute.xlu1 %3112  ;;  %v3086_v18 = vpop.permute.xlu0 %3085  ;;  %v3151_v55 = vsel %vm500_vm4, %v6872_v51, %v3138_v24  ;;  %v3152_v12 = vsel %vm500_vm4, %v6888_v3, %v3139_v6  ;;  %v3128_v6 = vrot.slane %v3075_v26, 4 }
 0x937   : > { %v3114_v48 = vsel %vm465_vm2, %v3111_v13, %v3113_v42  ;;  %v3117_v34 = vsel %vm465_vm2, %v3113_v42, %v3111_v13  ;;  %v3090_v1 = vsel %vm438_vm7, %v3089_v11, %v3086_v18  ;;  %v3092_v2 = vsel %vm438_vm7, %v3086_v18, %v3089_v11 }
 0x938   : > { %v3143_v16 = vrot.slane %v3114_v48, 4  ;;  %v3144_v50 = vrot.slane %v3117_v34, 4  ;;  %v3169_v42 = vmul.f32 %v3151_v55, %v6695_v56  ;;  %v3170_v48 = vmul.f32 %v3152_v12, %v6713_v60 }
 0x939   : > { %v3133_v34 = vrot.slane %v3092_v2, 4 }
 0x93a   : > { %v3104_v54 = vpop.permute.xlu1 %3103  ;;  %v3059_v61 = vpop.permute.xlu0 %3058 }
 0x93b   : > { %v3105_v13 = vsel %vm455_vm5, %v3102_v46, %v3104_v54  ;;  %v3109_v45 = vsel %vm455_vm5, %v3104_v54, %v3102_v46  ;;  %v3064_v21 = vsel %vm409_vm8, %v3063_v53, %v3059_v61  ;;  %v3067_v24 = vsel %vm409_vm8, %v3059_v61, %v3063_v53 }
 0x93c   : > { %v3153_v15 = vsel %vm500_vm4, %v3105_v13, %v3143_v16  ;;  %v3154_v52 = vsel %vm500_vm4, %v3109_v45, %v3144_v50  ;;  %v3134_v46 = vrot.slane %v3090_v1, 4  ;;  %v3147_v54 = vsel %vm500_vm4, %v3067_v24, %v3128_v6  ;;  %v4877_v45 = vld [vmem:[%s7853_s1] sm:$0xff]  }
 0x93d   : > { %v3171_v11 = vmul.f32 %v3153_v15, %v6708_v5  ;;  %v3172_v18 = vmul.f32 %v3154_v52, %v6718_v33  ;;  %v3148_v53 = vsel %vm500_vm4, %v3064_v21, %v3129_v23  ;;  %v3165_v60 = vmul.f32 %v3147_v54, %v6731_v63  ;;  %v7105_v63 = vld [vmem:[%s7859_s7] sm:$0xff]  ;;  %v7117_v52 = vld [vmem:[%s7859_s7 + $0x10] sm:$0xff] }
 0x93e   : > { %v3080_v26 = vpop.permute.xlu1 %3079  ;;  %v3077_v44 = vpop.permute.xlu0 %3076  ;;  %v3166_v55 = vmul.f32 %v3148_v53, %v6745_v4  ;;  %v7110_v4 = vld [vmem:[%s7859_s7 + $0x8] sm:$0xff] }
 0x93f   : > { %v3179_v61 = vpack.c.bf16 %v3171_v11, %v3169_v42  ;;  %v3081_v16 = vsel %vm428_vm9, %v3080_v26, %v3077_v44  ;;  %v3084_v50 = vsel %vm428_vm9, %v3077_v44, %v3080_v26  ;;  %v3180_v56 = vpack.c.bf16 %v3172_v18, %v3170_v48  ;;  %v7122_v42 = vld [vmem:[%s7859_s7 + $0x18] sm:$0xff] }
 0x940   : > { %v3149_v5 = vsel %vm500_vm4, %v3084_v50, %v3133_v34  ;;  %v3150_v33 = vsel %vm500_vm4, %v3081_v16, %v3134_v46  ;;  %v4791_v16 = vld [vmem:[%s5512_s25 + $0xa0] sm:$0xff] }
 0x941   : > { %v3167_v12 = vmul.f32 %v3149_v5, %v6740_v8  ;;  %v3168_v1 = vmul.f32 %v3150_v33, %v6750_v43  ;;  %3213 = vmatprep.subr.bf16.mxu1 %v3180_v56  ;;  %v4792_v5 = vld [vmem:[%s5512_s25 + $0xa8] sm:$0xff] }
 0x942   : > { %3214 = vmatpush1.bf16.msra.mxu1 %v3179_v61 }
 0x943   : > { %v3177_v2 = vpack.c.bf16 %v3167_v12, %v3165_v60  ;;  %v3178_v13 = vpack.c.bf16 %v3168_v1, %v3166_v55 }
 0x945   : > { %3215 = vmatprep.subr.bf16.mxu1 %v3178_v13 }
 0x946   : > { %3216 = vmatpush1.bf16.msra.mxu1 %v3177_v2 }
 0x949   : > { %4790 = vmatmul.mubr.msk.bf16.vlgmr.msra.gmra.mxu1 %vm546_vm10, %v4877_v45 }
 0x94a   : > { %3501 = vmatprep.mubr.bf16.mxu1 %v7880_v31 }
 0x9f0   : > { %v2974_v8 = vpop.f32.mrf.mxu0 }
 0x9f1   : > { %v2975_v43 = vadd.f32 %v2974_v8, %v7105_v63 }
 0x9f2   : > { %v2976_v21 = vpop.f32.mrf.mxu0 }
 0x9f3   : > { %v4783_v24 = vmul.f32 -1.442695, %v2975_v43  ;;  %v2977_v6 = vadd.f32 %v2976_v21, %v7110_v4 }
 0x9f4   : > { %v2978_v15 = vpop.f32.mrf.mxu0 }
 0x9f5   : > { %5099 = vpow2.f32 %v4783_v24  ;;  %v4784_v23 = vmul.f32 -1.442695, %v2977_v6  ;;  %v2979_v18 = vadd.f32 %v2978_v15, %v7117_v52 }
 0x9f6   : > { %v2980_v11 = vpop.f32.mrf.mxu0 }
 0x9f7   : > { %5101 = vpow2.f32 %v4784_v23  ;;  %v2981_v48 = vadd.f32 %v2980_v11, %v7122_v42  ;;  %v4785_v34 = vmul.f32 -1.442695, %v2979_v18 }
 0x9f8   : > { %5103 = vtanh.f32 %v2979_v18 }
 0x9f9   : > { %5105 = vtanh.f32 %v2981_v48  ;;  %v4786_v54 = vmul.f32 -1.442695, %v2981_v48 }
 0x9fa   : > { %5107 = vpow2.f32 %v4785_v34 }
 0xa02   : > { %v5100_v46 = vpop.eup %5099 }
 0xa03   : > { %v2995_v53 = vadd.f32 1.0, %v5100_v46  ;;  %v4793_v46 = vld [vmem:[%s5512_s25 + $0xb0] sm:$0xff] }
 0xa04   : > { %v5102_v26 = vpop.eup %5101 }
 0xa05   : > { %5109 = vrcp.f32 %v2995_v53  ;;  %v2996_v44 = vadd.f32 1.0, %v5102_v26  ;;  %v5104_v33 = vpop.eup %5103 }
 0xa06   : > { %5111 = vpow2.f32 %v4786_v54  ;;  %v5106_v12 = vpop.eup %5105  ;;  %v3013_v13 = vrot.slane %v5104_v33, 4 }
 0xa07   : > { %5113 = vrcp.f32 %v2996_v44  ;;  %v5108_v43 = vpop.eup %5107  ;;  %v3014_v21 = vrot.slane %v5106_v12, 4 }
 0xa08   : > { %v2997_v11 = vadd.f32 1.0, %v5108_v43 }
 0xa09   : > { %v3235_v61 = vpop.f32.mrf.mxu1 }
 0xa0a   : > { %v3236_v50 = vadd.f32 %v3235_v61, %v6772_v36 }
 0xa0b   : > { %v3237_v56 = vpop.f32.mrf.mxu1 }
 0xa0c   : > { %v3249_v60 = vadd.f32 %v4791_v16, %v3236_v50  ;;  %v3238_v55 = vadd.f32 %v3237_v56, %v6778_v35  ;;  %v4794_v16 = vld [vmem:[%s5512_s25 + $0xb8] sm:$0xff] }
 0xa0d   : > { %v3239_v45 = vpop.f32.mrf.mxu1 }
 0xa0e   : > { %v4795_v1 = vmul.f32 -1.442695, %v3249_v60  ;;  %v3250_v2 = vadd.f32 %v4792_v5, %v3238_v55  ;;  %v3240_v35 = vadd.f32 %v3239_v45, %v6786_v28 }
 0xa0f   : > { %v3241_v23 = vpop.f32.mrf.mxu1 }
 0xa10   : > { %5115 = vpow2.f32 %v4795_v1  ;;  %v4796_v8 = vmul.f32 -1.442695, %v3250_v2  ;;  %v3242_v53 = vadd.f32 %v3241_v23, %v6791_v30  ;;  %v3251_v50 = vadd.f32 %v4793_v46, %v3240_v35 }
 0xa12   : > { %v5110_v24 = vpop.eup %5109  ;;  %5117 = vpow2.f32 %v4796_v8  ;;  %v3252_v28 = vadd.f32 %v4794_v16, %v3242_v53  ;;  %v4797_v5 = vmul.f32 -1.442695, %v3251_v50 }
 0xa13   : > { %v5112_v36 = vpop.eup %5111  ;;  %v3017_v6 = vmul.f32 %v5110_v24, %v3013_v13  ;;  %v3009_v18 = vmul.f32 %v5110_v24, %v6814_v49  ;;  %5119 = vrcp.f32 %v2997_v11 }
 0xa14   : > { %v5114_v15 = vpop.eup %5113  ;;  %v2998_v54 = vadd.f32 1.0, %v5112_v36 }
 0xa15   : > { %v3021_v48 = vrot.slane %v3017_v6, 4  ;;  %v3018_v34 = vmul.f32 %v5114_v15, %v3014_v21  ;;  %v3010_v44 = vmul.f32 %v5114_v15, %v6844_v32  ;;  %v4798_v32 = vmul.f32 -1.442695, %v3252_v28 }
 0xa17   : > { %v3025_v26 = vadd.f32 %v3021_v48, %v3009_v18  ;;  %v3022_v61 = vrot.slane %v3018_v34, 4 }
 0xa19   : > { %5121 = vtanh.f32 %v3025_v26  ;;  %3039 = vst [vmem:[#allocation3 + $0x8] sm:$0xf0] %v3025_v26  ;;  %v3026_v56 = vadd.f32 %v3022_v61, %v3010_v44 }
 0xa1a   : > { %5123 = vrcp.f32 %v2998_v54 }
 0xa1b   : > { %5125 = vtanh.f32 %v3026_v56  ;;  %3040 = vst [vmem:[#allocation3] sm:$0xf0] %v3026_v56 }
 0xa1c   : > { %5127 = vtanh.f32 %v3251_v50 }
 0xa1d   : > { %v5116_v49 = vpop.eup %5115  ;;  %5129 = vtanh.f32 %v3252_v28 }
 0xa1e   : > { %v3265_v33 = vadd.f32 1.0, %v5116_v49 }
 0xa1f   : > { %v5118_v30 = vpop.eup %5117 }
 0xa20   : > { %5131 = vrcp.f32 %v3265_v33  ;;  %v3266_v60 = vadd.f32 1.0, %v5118_v30  ;;  %v5120_v55 = vpop.eup %5119 }
 0xa21   : > { %5133 = vpow2.f32 %v4797_v5 }
 0xa22   : > { %5135 = vrcp.f32 %v3266_v60 }
 0xa23   : > { %5137 = vpow2.f32 %v4798_v32 }
 0xa26   : > { %v5122_v12 = vpop.eup %5121 }
 0xa27   : > { %v5124_v1 = vpop.eup %5123  ;;  %v3031_v2 = vrot.slane %v5122_v12, 4  ;;  %v7152_v12 = vld [vmem:[%s7855_s3 + $0x8] sm:$0xff] }
 0xa28   : > { %v5126_v13 = vpop.eup %5125 }
 0xa29   : > { %v5128_v45 = vpop.eup %5127  ;;  %v3035_v8 = vmul.f32 %v5120_v55, %v3031_v2  ;;  %v3032_v43 = vrot.slane %v5126_v13, 4  ;;  %v7147_v55 = vld [vmem:[%s7856_s4] sm:$0xff]  ;;  %v7158_v13 = vld [vmem:[%s7856_s4 + $0x8] sm:$0xff] }
 0xa2a   : > { %v5130_v21 = vpop.eup %5129  ;;  %v3283_v36 = vrot.slane %v5128_v45, 4 }
 0xa2b   : > { %3037 = vst [vmem:[#allocation3 + $0x8] sm:$0xf] %v3035_v8  ;;  %v3036_v24 = vmul.f32 %v5124_v1, %v3032_v43  ;;  %v3284_v35 = vrot.slane %v5130_v21, 4 }
 0xa2d   : > { %v5132_v6 = vpop.eup %5131  ;;  %3038 = vst [vmem:[#allocation3] sm:$0xf] %v3036_v24  ;;  %v3043_v23 = vcombine.low %v3035_v8, %v3036_v24 }
 0xa2e   : > { %v5134_v15 = vpop.eup %5133  ;;  %v3287_v11 = vmul.f32 %v5132_v6, %v3283_v36  ;;  %v3279_v48 = vmul.f32 %v5132_v6, %v6872_v51 }
 0xa2f   : > { %v5136_v18 = vpop.eup %5135  ;;  %4787 = vst [vmem:[%s5882_s24 + $0x20] sm:$0xff] %v3043_v23  ;;  %v3267_v53 = vadd.f32 1.0, %v5134_v15 }
 0xa30   : > { %v3291_v34 = vrot.slane %v3287_v11, 4  ;;  %v3288_v46 = vmul.f32 %v5136_v18, %v3284_v35  ;;  %v5138_v54 = vpop.eup %5137  ;;  %v3280_v44 = vmul.f32 %v5136_v18, %v6888_v3  ;;  %v7142_v3 = vld [vmem:[%s7855_s3] sm:$0xff]  ;;  %v3693_v18 = vld [vmem:[%s7857_s5 + $0x48] sm:$0xf] }
 0xa31   : > { %v3268_v16 = vadd.f32 1.0, %v5138_v54  ;;  %v3692_v35 = vld [vmem:[%s7857_s5 + $0x40] sm:$0xf] }
 0xa32   : > { %v3295_v26 = vadd.f32 %v3291_v34, %v3279_v48  ;;  %v3292_v61 = vrot.slane %v3288_v46, 4  ;;  %v3311_v21 = vld [vmem:[#allocation3 + $0x8] sm:$0xff] }
 0xa33   : > { %v3315_v24 = vmul.f32 %v3311_v21, %v6805_v19 }
 0xa34   : > { %5139 = vtanh.f32 %v3295_v26  ;;  %3309 = vst [vmem:[#allocation2] sm:$0xf0] %v3295_v26  ;;  %v3296_v50 = vadd.f32 %v3292_v61, %v3280_v44 }
 0xa35   : > { %5141 = vrcp.f32 %v3267_v53  ;;  %v7177_v36 = vadd.f32 %v3315_v24, %v6811_v9  ;;  %v3312_v9 = vld [vmem:[#allocation3] sm:$0xff] }
 0xa36   : > { %5143 = vtanh.f32 %v3296_v50  ;;  %3310 = vst [vmem:[#allocation2 + $0x8] sm:$0xf0] %v3296_v50  ;;  %v3316_v23 = vmul.f32 %v3312_v9, %v6827_v25 }
 0xa37   : > { %5145 = vrcp.f32 %v3268_v16  ;;  %v3323_v6 = vrot.slane %v7177_v36, 4 }
 0xa38   : > { %v7201_v15 = vadd.f32 %v3316_v23, %v6837_v17 }
 0xa3a   : > { %v3324_v11 = vrot.slane %v7201_v15, 4 }
 0xa41   : > { %v5140_v56 = vpop.eup %5139 }
 0xa42   : > { %v5142_v28 = vpop.eup %5141  ;;  %v3301_v49 = vrot.slane %v5140_v56, 4 }
 0xa43   : > { %v5144_v51 = vpop.eup %5143 }
 0xa44   : > { %v3305_v5 = vmul.f32 %v5142_v28, %v3301_v49  ;;  %v3302_v33 = vrot.slane %v5144_v51, 4  ;;  %v5146_v30 = vpop.eup %5145 }
 0xa46   : > { %3307 = vst [vmem:[#allocation2] sm:$0xf] %v3305_v5  ;;  %v3306_v60 = vmul.f32 %v5146_v30, %v3302_v33  ;;  %v7187_v19 = vsel %vm500_vm4, %v3305_v5, %v3323_v6 }
 0xa48   : > { %3308 = vst [vmem:[#allocation2 + $0x8] sm:$0xf] %v3306_v60  ;;  %v7211_v25 = vsel %vm500_vm4, %v3306_v60, %v3324_v11 }
 0xa4d   : > { %v3576_v32 = vld [vmem:[#allocation2] sm:$0xff] }
 0xa4e   : > { %v3580_v1 = vmul.f32 %v7142_v3, %v3576_v32 }
 0xa4f   : > { %v3577_v2 = vld [vmem:[#allocation2 + $0x8] sm:$0xff] }
 0xa50   : > { %v7161_v45 = vadd.f32 %v7147_v55, %v3580_v1  ;;  %v3581_v8 = vmul.f32 %v7152_v12, %v3577_v2 }
 0xa52   : > { %3647 = vrot.lane.b32.xlu0 %v7161_v45, %s5277_s28  ;;  %v7167_v43 = vadd.f32 %v7158_v13, %v3581_v8 }
 0xa54   : > { %3649 = vrot.lane.b32.xlu1 %v7167_v43, %s5277_s28 }
 0xa56   : > { %3622 = vrot.lane.b32.xlu0 %v7161_v45, %s5276_s27 }
 0xa58   : > { %3624 = vrot.lane.b32.xlu1 %v7167_v43, %s5276_s27 }
 0xa5a   : > { %3639 = vrot.lane.b32.xlu0 %v7161_v45, %s5278_s29 }
 0xa5c   : > { %3641 = vrot.lane.b32.xlu1 %v7167_v43, %s5278_s29 }
 0xa5e   : > { %3630 = vrot.lane.b32.xlu0 %v7161_v45, %s5279_s30 }
 0xa60   : > { %3352 = vrot.lane.b32.xlu1 %v7187_v19, %s5284_s15 }
 0xa62   : > { %3394 = vrot.lane.b32.xlu0 %v7187_v19, %s5277_s28 }
 0xa64   : > { %3361 = vrot.lane.b32.xlu1 %v7187_v19, %s5281_s13 }
 0xa66   : > { %3376 = vrot.lane.b32.xlu0 %v7187_v19, %s5279_s30 }
 0xa68   : > { %3334 = vrot.lane.b32.xlu1 %v7187_v19, %s5283_s14 }
 0xa6a   : > { %3385 = vrot.lane.b32.xlu0 %v7187_v19, %s5278_s29 }
 0xa6c   : > { %3343 = vrot.lane.b32.xlu1 %v7187_v19, %s5280_s12 }
 0xa6e   : > { %3367 = vrot.lane.b32.xlu0 %v7187_v19, %s5276_s27 }
 0xa70   : > { %3396 = vrot.lane.b32.xlu1 %v7211_v25, %s5277_s28 }
 0xa72   : > { %3597 = vrot.lane.b32.xlu0 %v7167_v43, %s5280_s12 }
 0xa74   : > { %3378 = vrot.lane.b32.xlu1 %v7211_v25, %s5279_s30 }
 0xa76   : > { %3349 = vrot.lane.b32.xlu0 %v7211_v25, %s5284_s15 }
 0xa78   : > { %3387 = vrot.lane.b32.xlu1 %v7211_v25, %s5278_s29 }
 0xa7a   : > { %3358 = vrot.lane.b32.xlu0 %v7211_v25, %s5281_s13 }
 0xa7c   : > { %3369 = vrot.lane.b32.xlu1 %v7211_v25, %s5276_s27 }
 0xa7e   : > { %3330 = vrot.lane.b32.xlu0 %v7211_v25, %s5283_s14 }
 0xa80   : > { %3632 = vrot.lane.b32.xlu1 %v7167_v43, %s5279_s30 }
 0xa82   : > { %3340 = vrot.lane.b32.xlu0 %v7211_v25, %s5280_s12 }
 0xa84   : > { %3600 = vrot.lane.b32.xlu1 %v7161_v45, %s5280_s12 }
 0xa86   : > { %3614 = vrot.lane.b32.xlu0 %v7167_v43, %s5281_s13 }
 0xa88   : > { %3617 = vrot.lane.b32.xlu1 %v7161_v45, %s5281_s13 }
 0xa8a   : > { %3587 = vrot.lane.b32.xlu0 %v7167_v43, %s5283_s14 }
 0xa8c   : > { %3591 = vrot.lane.b32.xlu1 %v7161_v45, %s5283_s14 }
 0xa8e   : > { %3605 = vrot.lane.b32.xlu0 %v7167_v43, %s5284_s15 }
 0xa90   : > { %3608 = vrot.lane.b32.xlu1 %v7161_v45, %s5284_s15 }
 0xac4   : > { %v3648_v17 = vpop.permute.xlu0 %3647 }
 0xac6   : > { %v3650_v48 = vpop.permute.xlu1 %3649 }
 0xac7   : > { %v3651_v34 = vsel %vm474_vm1, %v3648_v17, %v3650_v48  ;;  %v3655_v46 = vsel %vm474_vm1, %v3650_v48, %v3648_v17 }
 0xac8   : > { %v3702_v54 = vmul.f32 %v3692_v35, %v3651_v34  ;;  %v3703_v53 = vmul.f32 %v3693_v18, %v3655_v46  ;;  %v3623_v26 = vpop.permute.xlu0 %3622 }
 0xaca   : > { %v3710_v44 = vpack.c.bf16 %v3702_v54, %v3702_v54  ;;  %v3711_v61 = vpack.c.bf16 %v3703_v53, %v3703_v53  ;;  %v3625_v16 = vpop.permute.xlu1 %3624 }
 0xacb   : > { %v3626_v11 = vsel %vm446_vm0, %v3623_v26, %v3625_v16  ;;  %v3629_v48 = vsel %vm446_vm0, %v3625_v16, %v3623_v26 }
 0xacc   : > { %4808 = vmatprep.subr.msk.bf16.mxu0 %vm550_vm3, %v3711_v61  ;;  %v3640_v50 = vpop.permute.xlu0 %3639  ;;  %v3725_v56 = vsel %vm550_vm3, %v3710_v44, 0  ;;  %v3667_v54 = vrot.slane %v3626_v11, 4 }
 0xacd   : > { %3741 = vmatpush1.bf16.msra.mxu0 %v3725_v56 }
 0xace   : > { %v3642_v28 = vpop.permute.xlu1 %3641 }
 0xad0   : > { %v7257_v49 = vpop.permute.xlu0 %3630 }
 0xad2   : > { %v3353_v51 = vpop.permute.xlu1 %3352 }
 0xad4   : > { %v3395_v5 = vpop.permute.xlu0 %3394 }
 0xad6   : > { %v3362_v33 = vpop.permute.xlu1 %3361 }
 0xad8   : > { %v3377_v30 = vpop.permute.xlu0 %3376 }
 0xada   : > { %v7259_v60 = vpop.permute.xlu1 %3334 }
 0xadc   : > { %v3386_v32 = vpop.permute.xlu0 %3385 }
 0xade   : > { %v7261_v1 = vpop.permute.xlu1 %3343 }
 0xae0   : > { %v3368_v2 = vpop.permute.xlu0 %3367 }
 0xae2   : > { %v3397_v8 = vpop.permute.xlu1 %3396 }
 0xae3   : > { %v3398_v21 = vsel %vm474_vm1, %v3395_v5, %v3397_v8  ;;  %v3402_v24 = vsel %vm474_vm1, %v3397_v8, %v3395_v5 }
 0xae4   : > { %v3437_v6 = vmul.f32 %v3398_v21, %v6919_v62  ;;  %v3438_v9 = vmul.f32 %v3402_v24, %v6924_v38  ;;  %v7267_v23 = vpop.permute.xlu0 %3597  ;;  %v3668_v38 = vrot.slane %v3629_v48, 4  ;;  %v3680_v24 = vsel %vm500_vm4, %v7161_v45, %v3667_v54 }
 0xae6   : > { %v3449_v17 = vpack.c.bf16 %v3437_v6, %v3437_v6  ;;  %v3450_v35 = vpack.c.bf16 %v3438_v9, %v3438_v9  ;;  %v3379_v18 = vpop.permute.xlu1 %3378  ;;  %v3429_v6 = vmul.f32 %v7187_v19, %v6959_v22  ;;  %v7299_v22 = vld [vmem:[%s7857_s5 + $0x28] sm:$0xff] }
 0xae7   : > { %v3380_v53 = vsel %vm455_vm5, %v3377_v30, %v3379_v18  ;;  %v3384_v62 = vsel %vm455_vm5, %v3379_v18, %v3377_v30 }
 0xae8   : > { %4800 = vmatprep.subr.msk.bf16.mxu1 %vm500_vm4, %v3450_v35  ;;  %v3350_v34 = vpop.permute.xlu0 %3349  ;;  %v3464_v46 = vsel %vm500_vm4, %v3449_v17, 0  ;;  %v3433_v5 = vmul.f32 %v3380_v53, %v6933_v57  ;;  %v3434_v26 = vmul.f32 %v3384_v62, %v6939_v7  ;;  %v7291_v57 = vld [vmem:[%s7857_s5 + $0x20] sm:$0xff]  ;;  %v3681_v7 = vsel %vm500_vm4, %v7167_v43, %v3668_v38 }
 0xae9   : > { %3476 = vmatpush1.bf16.msra.mxu1 %v3464_v46  ;;  %v3354_v19 = vsel %vm428_vm9, %v3353_v51, %v3350_v34  ;;  %v3698_v53 = vmul.f32 %v7291_v57, %v3680_v24 }
 0xaea   : > { %v3388_v44 = vpop.permute.xlu1 %3387 }
 0xaeb   : > { %v3389_v61 = vsel %vm465_vm2, %v3386_v32, %v3388_v44  ;;  %v3393_v56 = vsel %vm465_vm2, %v3388_v44, %v3386_v32  ;;  %v3430_v32 = vmul.f32 %v7211_v25, %v6968_v47  ;;  %v3646_v47 = vsel %vm465_vm2, %v3642_v28, %v3640_v50 }
 0xaec   : > { %v3435_v16 = vmul.f32 %v3389_v61, %v6947_v10  ;;  %v3436_v8 = vmul.f32 %v3393_v56, %v6952_v0  ;;  %v3359_v21 = vpop.permute.xlu0 %3358  ;;  %v3643_v10 = vsel %vm465_vm2, %v3640_v50, %v3642_v28  ;;  %v3357_v50 = vsel %vm428_vm9, %v3350_v34, %v3353_v51 }
 0xaed   : > { %v3363_v30 = vsel %vm438_vm7, %v3362_v33, %v3359_v21  ;;  %v3366_v35 = vsel %vm438_vm7, %v3359_v21, %v3362_v33  ;;  %v3672_v62 = vrot.slane %v3643_v10, 4  ;;  %v3699_v28 = vmul.f32 %v7299_v22, %v3681_v7 }
 0xaee   : > { %v3447_v0 = vpack.c.bf16 %v3435_v16, %v3433_v5  ;;  %v3370_v9 = vpop.permute.xlu1 %3369  ;;  %v3448_v11 = vpack.c.bf16 %v3436_v8, %v3434_v26  ;;  %v3428_v18 = vmul.f32 %v3363_v30, %v6973_v37  ;;  %v3673_v38 = vrot.slane %v3646_v47, 4  ;;  %v7316_v37 = vld [vmem:[%s7857_s5 + $0x30] sm:$0xff] }
 0xaef   : > { %v3371_v25 = vsel %vm446_vm0, %v3368_v2, %v3370_v9  ;;  %v3375_v17 = vsel %vm446_vm0, %v3370_v9, %v3368_v2  ;;  %v3426_v2 = vmul.f32 %v3354_v19, %v6991_v14  ;;  %v3427_v51 = vmul.f32 %v3366_v35, %v7002_v41 }
 0xaf0   : > { %v3431_v48 = vmul.f32 %v3371_v25, %v6979_v27  ;;  %v3432_v46 = vmul.f32 %v3375_v17, %v6984_v39  ;;  %3477 = vmatprep.subr.bf16.mxu1 %v3448_v11  ;;  %v3331_v54 = vpop.permute.xlu0 %3330  ;;  %v7321_v27 = vld [vmem:[%s7857_s5 + $0x38] sm:$0xff]  ;;  %v3425_v56 = vmul.f32 %v3357_v50, %v7018_v20  ;;  %v7366_v50 = vld [vmem:[%s7857_s5 + $0x8] sm:$0xff] }
 0xaf1   : > { %3478 = vmatpush1.bf16.msra.mxu1 %v3447_v0  ;;  %v3336_v34 = vsel %vm409_vm8, %v7259_v60, %v3331_v54  ;;  %v3444_v8 = vpack.c.bf16 %v3428_v18, %v3426_v2  ;;  %v3339_v20 = vsel %vm409_vm8, %v3331_v54, %v7259_v60 }
 0xaf2   : > { %v3445_v33 = vpack.c.bf16 %v3431_v48, %v3429_v6  ;;  %v3633_v39 = vpop.permute.xlu1 %3632  ;;  %v3446_v44 = vpack.c.bf16 %v3432_v46, %v3430_v32  ;;  %v3443_v7 = vpack.c.bf16 %v3427_v51, %v3425_v56  ;;  %v3421_v19 = vmul.f32 %v3339_v20, %v7043_v58 }
 0xaf3   : > { %v3634_v14 = vsel %vm455_vm5, %v7257_v49, %v3633_v39  ;;  %v3638_v61 = vsel %vm455_vm5, %v3633_v39, %v7257_v49  ;;  %v3422_v49 = vmul.f32 %v3336_v34, %v7027_v29  ;;  %v7378_v39 = vld [vmem:[%s7857_s5 + $0x18] sm:$0xff] }
 0xaf4   : > { %v3682_v5 = vsel %vm500_vm4, %v3634_v14, %v3672_v62  ;;  %v3683_v26 = vsel %vm500_vm4, %v3638_v61, %v3673_v38  ;;  %3479 = vmatprep.subr.bf16.mxu1 %v3446_v44  ;;  %v3341_v16 = vpop.permute.xlu0 %3340 }
 0xaf5   : > { %v3700_v41 = vmul.f32 %v7316_v37, %v3682_v5  ;;  %v3701_v21 = vmul.f32 %v7321_v27, %v3683_v26  ;;  %v3345_v24 = vsel %vm419_vm6, %v7261_v1, %v3341_v16  ;;  %v3348_v30 = vsel %vm419_vm6, %v3341_v16, %v7261_v1  ;;  %3480 = vmatpush1.bf16.msra.mxu1 %v3445_v33  ;;  %v7373_v33 = vld [vmem:[%s7857_s5 + $0x10] sm:$0xff] }
 0xaf6   : > { %v3424_v6 = vmul.f32 %v3345_v24, %v7011_v59  ;;  %v3601_v32 = vpop.permute.xlu1 %3600  ;;  %3481 = vmatprep.subr.bf16.mxu1 %v3444_v8  ;;  %v3423_v0 = vmul.f32 %v3348_v30, %v7034_v40  ;;  %v4878_v59 = vld [vmem:[%s7858_s6] sm:$0xff]  }
 0xaf7   : > { %v3708_v10 = vpack.c.bf16 %v3700_v41, %v3698_v53  ;;  %v3709_v9 = vpack.c.bf16 %v3701_v21, %v3699_v28  ;;  %v3602_v25 = vsel %vm419_vm6, %v3601_v32, %v7267_v23  ;;  %v3604_v40 = vsel %vm419_vm6, %v7267_v23, %v3601_v32  ;;  %v7360_v53 = vld [vmem:[%s7857_s5] sm:$0xff] }
 0xaf8   : > { %v3615_v11 = vpop.permute.xlu0 %3614  ;;  %v3442_v47 = vpack.c.bf16 %v3424_v6, %v3422_v49  ;;  %v3441_v60 = vpack.c.bf16 %v3423_v0, %v3421_v19  ;;  %v3657_v46 = vrot.slane %v3604_v40, 4  ;;  %v3658_v54 = vrot.slane %v3602_v25, 4  ;;  %v4879_v21 = vld [vmem:[%s7853_s1] sm:$0xff]  }
 0xaf9   : > { %3482 = vmatpush1.bf16.msra.mxu1 %v3443_v7  ;;  %3742 = vmatprep.subr.bf16.mxu0 %v3709_v9  ;;  %v7398_v0 = vld [vmem:[%s7854_s2] sm:$0xff] }
 0xafa   : > { %v3618_v1 = vpop.permute.xlu1 %3617  ;;  %3483 = vmatprep.subr.bf16.mxu1 %v3442_v47  ;;  %3743 = vmatpush1.bf16.msra.mxu0 %v3708_v10  ;;  %v4810_v47 = vld [vmem:[%s5512_s25 + $0xc0] sm:$0xff] }
 0xafb   : > { %v3619_v58 = vsel %vm438_vm7, %v3618_v1, %v3615_v11  ;;  %v3621_v35 = vsel %vm438_vm7, %v3615_v11, %v3618_v1 }
 0xafc   : > { %v3588_v29 = vpop.permute.xlu0 %3587  ;;  %v3662_v23 = vrot.slane %v3621_v35, 4  ;;  %v3663_v62 = vrot.slane %v3619_v58, 4 }
 0xafd   : > { %3484 = vmatpush1.bf16.msra.mxu1 %v3441_v60 }
 0xafe   : > { %v3592_v17 = vpop.permute.xlu1 %3591 }
 0xaff   : > { %v3593_v18 = vsel %vm409_vm8, %v3592_v17, %v3588_v29  ;;  %v3596_v48 = vsel %vm409_vm8, %v3588_v29, %v3592_v17  ;;  %v4811_v29 = vld [vmem:[%s5512_s25 + $0xc8] sm:$0xff] }
 0xb00   : > { %4801 = vmatmul.mubr.msk.bf16.vlgmr.msra.gmra.mxu1 %vm815_vm11, %v4878_v59  ;;  %v3676_v28 = vsel %vm500_vm4, %v3596_v48, %v3657_v46  ;;  %v3677_v38 = vsel %vm500_vm4, %v3593_v18, %v3658_v54  ;;  %v3606_v2 = vpop.permute.xlu0 %3605  ;;  %v7414_v54 = vld [vmem:[%s7854_s2 + $0x10] sm:$0xff] }
 0xb01   : > { %4291 = vmatprep.mubr.bf16.mxu1 %v7880_v31  ;;  %v3694_v56 = vmul.f32 %v7360_v53, %v3676_v28  ;;  %v3695_v5 = vmul.f32 %v7366_v50, %v3677_v38  ;;  %v4812_v38 = vld [vmem:[%s5512_s25 + $0xd0] sm:$0xff] }
 0xb02   : > { %v3609_v44 = vpop.permute.xlu1 %3608 }
 0xb03   : > { %v3610_v51 = vsel %vm428_vm9, %v3609_v44, %v3606_v2  ;;  %v3613_v34 = vsel %vm428_vm9, %v3606_v2, %v3609_v44  ;;  %v4813_v44 = vld [vmem:[%s5512_s25 + $0xd8] sm:$0xff] }
 0xb04   : > { %v3678_v14 = vsel %vm500_vm4, %v3613_v34, %v3662_v23  ;;  %v3679_v61 = vsel %vm500_vm4, %v3610_v51, %v3663_v62  ;;  %v7419_v23 = vld [vmem:[%s7854_s2 + $0x18] sm:$0xff] }
 0xb05   : > { %v3696_v26 = vmul.f32 %v7373_v33, %v3678_v14  ;;  %v3697_v16 = vmul.f32 %v7378_v39, %v3679_v61 }
 0xb07   : > { %v3706_v8 = vpack.c.bf16 %v3696_v26, %v3694_v56  ;;  %v3707_v41 = vpack.c.bf16 %v3697_v16, %v3695_v5 }
 0xb09   : > { %3744 = vmatprep.subr.bf16.mxu0 %v3707_v41 }
 0xb0a   : > { %3745 = vmatpush1.bf16.msra.mxu0 %v3706_v8 }
 0xb0d   : > { %4809 = vmatmul.mubr.msk.bf16.vlgmr.msra.gmra.mxu0 %vm546_vm10, %v4879_v21 }
 0xb0e   : > { %4030 = vmatprep.mubr.bf16.mxu0 %v7880_v31 }
 0xbc0   : > { %v3503_v24 = vpop.f32.mrf.mxu1 }
 0xbc1   : > { %v3504_v30 = vadd.f32 %v3503_v24, %v7105_v63  ;;  %v7405_v63 = vld [vmem:[%s7854_s2 + $0x8] sm:$0xff] }
 0xbc2   : > { %v3505_v20 = vpop.f32.mrf.mxu1 }
 0xbc3   : > { %v4802_v49 = vmul.f32 -1.442695, %v3504_v30  ;;  %v3506_v6 = vadd.f32 %v3505_v20, %v7110_v4 }
 0xbc4   : > { %v3507_v7 = vpop.f32.mrf.mxu1 }
 0xbc5   : > { %5147 = vpow2.f32 %v4802_v49  ;;  %v4803_v32 = vmul.f32 -1.442695, %v3506_v6  ;;  %v3508_v9 = vadd.f32 %v3507_v7, %v7117_v52 }
 0xbc6   : > { %v3509_v10 = vpop.f32.mrf.mxu1 }
 0xbc7   : > { %5149 = vpow2.f32 %v4803_v32  ;;  %v3510_v4 = vadd.f32 %v3509_v10, %v7122_v42  ;;  %v4804_v1 = vmul.f32 -1.442695, %v3508_v9 }
 0xbc8   : > { %5151 = vtanh.f32 %v3508_v9 }
 0xbc9   : > { %v4805_v59 = vmul.f32 -1.442695, %v3510_v4  ;;  %5153 = vtanh.f32 %v3510_v4 }
 0xbca   : > { %5155 = vpow2.f32 %v4804_v1 }
 0xbcb   : > { %5157 = vpow2.f32 %v4805_v59 }
 0xbcd   : > { %v3764_v11 = vpop.f32.mrf.mxu0 }
 0xbce   : > { %v3765_v19 = vadd.f32 %v3764_v11, %v7398_v0 }
 0xbcf   : > { %v3766_v60 = vpop.f32.mrf.mxu0 }
 0xbd0   : > { %v3778_v25 = vadd.f32 %v4810_v47, %v3765_v19  ;;  %v3767_v40 = vadd.f32 %v3766_v60, %v7405_v63 }
 0xbd1   : > { %v3768_v18 = vpop.f32.mrf.mxu0 }
 0xbd2   : > { %v5148_v52 = vpop.eup %5147  ;;  %v4814_v17 = vmul.f32 -1.442695, %v3778_v25  ;;  %v3779_v58 = vadd.f32 %v4811_v29, %v3767_v40  ;;  %v3769_v28 = vadd.f32 %v3768_v18, %v7414_v54 }
 0xbd3   : > { %v3524_v35 = vadd.f32 1.0, %v5148_v52  ;;  %v3770_v62 = vpop.f32.mrf.mxu0 }
 0xbd4   : > { %v5150_v42 = vpop.eup %5149  ;;  %5159 = vpow2.f32 %v4814_v17  ;;  %v4815_v48 = vmul.f32 -1.442695, %v3779_v58  ;;  %v3771_v2 = vadd.f32 %v3770_v62, %v7419_v23  ;;  %v3780_v34 = vadd.f32 %v4812_v38, %v3769_v28 }
 0xbd5   : > { %5161 = vrcp.f32 %v3524_v35  ;;  %v3525_v46 = vadd.f32 1.0, %v5150_v42  ;;  %v5152_v51 = vpop.eup %5151 }
 0xbd6   : > { %5163 = vpow2.f32 %v4815_v48  ;;  %v5154_v14 = vpop.eup %5153  ;;  %v3781_v61 = vadd.f32 %v4813_v44, %v3771_v2  ;;  %v3542_v5 = vrot.slane %v5152_v51, 4  ;;  %v4816_v8 = vmul.f32 -1.442695, %v3780_v34 }
 0xbd7   : > { %5165 = vrcp.f32 %v3525_v46  ;;  %v5156_v56 = vpop.eup %5155  ;;  %v3543_v41 = vrot.slane %v5154_v14, 4 }
 0xbd8   : > { %v5158_v26 = vpop.eup %5157  ;;  %5167 = vtanh.f32 %v3780_v34  ;;  %v3526_v20 = vadd.f32 1.0, %v5156_v56  ;;  %v4817_v7 = vmul.f32 -1.442695, %v3781_v61 }
 0xbd9   : > { %5169 = vtanh.f32 %v3781_v61  ;;  %v3527_v47 = vadd.f32 1.0, %v5158_v26 }
 0xbe1   : > { %v5160_v16 = vpop.eup %5159 }
 0xbe2   : > { %v5162_v21 = vpop.eup %5161  ;;  %v3794_v24 = vadd.f32 1.0, %v5160_v16 }
 0xbe3   : > { %v5164_v30 = vpop.eup %5163  ;;  %v3546_v49 = vmul.f32 %v5162_v21, %v3542_v5  ;;  %v3538_v10 = vmul.f32 %v5162_v21, %v7177_v36 }
 0xbe4   : > { %v5166_v6 = vpop.eup %5165  ;;  %5171 = vrcp.f32 %v3794_v24  ;;  %v3795_v32 = vadd.f32 1.0, %v5164_v30 }
 0xbe5   : > { %v3550_v9 = vrot.slane %v3546_v49, 4  ;;  %5173 = vpow2.f32 %v4816_v8  ;;  %v3547_v11 = vmul.f32 %v5166_v6, %v3543_v41  ;;  %v3539_v19 = vmul.f32 %v5166_v6, %v7201_v15  ;;  %v5168_v29 = vpop.eup %5167 }
 0xbe6   : > { %5175 = vrcp.f32 %v3795_v32  ;;  %v5170_v59 = vpop.eup %5169  ;;  %v3812_v36 = vrot.slane %v5168_v29, 4  ;;  %v7485_v29 = vld [vmem:[%s7861_s9 + $0x8] sm:$0xff] }
 0xbe7   : > { %5177 = vrcp.f32 %v3526_v20  ;;  %v3554_v4 = vadd.f32 %v3550_v9, %v3538_v10  ;;  %v3551_v1 = vrot.slane %v3547_v11, 4  ;;  %v3813_v17 = vrot.slane %v5170_v59, 4  ;;  %v7438_v11 = vld [vmem:[%s7860_s8] sm:$0xff] }
 0xbe8   : > { %5179 = vpow2.f32 %v4817_v7 }
 0xbe9   : > { %5181 = vtanh.f32 %v3554_v4  ;;  %3568 = vst [vmem:[#allocation3 + $0x8] sm:$0xf0] %v3554_v4  ;;  %v3555_v60 = vadd.f32 %v3551_v1, %v3539_v19  ;;  %v7475_v1 = vld [vmem:[%s7860_s8 + $0x8] sm:$0xff] }
 0xbea   : > { %5183 = vrcp.f32 %v3527_v47 }
 0xbeb   : > { %5185 = vtanh.f32 %v3555_v60  ;;  %3569 = vst [vmem:[#allocation3] sm:$0xf0] %v3555_v60 }
 0xbf1   : > { %v5172_v25 = vpop.eup %5171 }
 0xbf2   : > { %v5174_v40 = vpop.eup %5173  ;;  %v3816_v52 = vmul.f32 %v5172_v25, %v3812_v36  ;;  %v3808_v18 = vmul.f32 %v5172_v25, %v7161_v45 }
 0xbf3   : > { %v5176_v58 = vpop.eup %5175  ;;  %v3796_v46 = vadd.f32 1.0, %v5174_v40 }
 0xbf4   : > { %v5178_v35 = vpop.eup %5177  ;;  %v3820_v15 = vrot.slane %v3816_v52, 4  ;;  %v3817_v42 = vmul.f32 %v5176_v58, %v3813_v17  ;;  %v3809_v38 = vmul.f32 %v5176_v58, %v7167_v43  ;;  %v4221_v52 = vld [vmem:[%s7857_s5 + $0x40] sm:$0xf]  ;;  %v4222_v17 = vld [vmem:[%s7857_s5 + $0x48] sm:$0xf] }
 0xbf5   : > { %v5180_v48 = vpop.eup %5179 }
 0xbf6   : > { %v5182_v62 = vpop.eup %5181  ;;  %v3824_v28 = vadd.f32 %v3820_v15, %v3808_v18  ;;  %v3821_v2 = vrot.slane %v3817_v42, 4  ;;  %v3797_v14 = vadd.f32 1.0, %v5180_v48 }
 0xbf7   : > { %v5184_v44 = vpop.eup %5183  ;;  %v3560_v51 = vrot.slane %v5182_v62, 4 }
 0xbf8   : > { %v5186_v34 = vpop.eup %5185  ;;  %5187 = vtanh.f32 %v3824_v28  ;;  %3838 = vst [vmem:[#allocation2] sm:$0xf0] %v3824_v28  ;;  %v3825_v61 = vadd.f32 %v3821_v2, %v3809_v38 }
 0xbf9   : > { %v3564_v56 = vmul.f32 %v5178_v35, %v3560_v51  ;;  %5189 = vrcp.f32 %v3796_v46  ;;  %v3561_v45 = vrot.slane %v5186_v34, 4 }
 0xbfa   : > { %5191 = vtanh.f32 %v3825_v61  ;;  %3839 = vst [vmem:[#allocation2 + $0x8] sm:$0xf0] %v3825_v61 }
 0xbfb   : > { %3566 = vst [vmem:[#allocation3 + $0x8] sm:$0xf] %v3564_v56  ;;  %v3565_v5 = vmul.f32 %v5184_v44, %v3561_v45  ;;  %5193 = vrcp.f32 %v3797_v14 }
 0xbfd   : > { %3567 = vst [vmem:[#allocation3] sm:$0xf] %v3565_v5  ;;  %v3572_v26 = vcombine.low %v3564_v56, %v3565_v5 }
 0xbff   : > { %4806 = vst [vmem:[%s5882_s24 + $0x28] sm:$0xff] %v3572_v26 }
 0xc02   : > { %v3840_v9 = vld [vmem:[#allocation3 + $0x8] sm:$0xff] }
 0xc04   : > { %v3841_v19 = vld [vmem:[#allocation3] sm:$0xff] }
 0xc05   : > { %v5188_v43 = vpop.eup %5187  ;;  %v3845_v60 = vmul.f32 %v7475_v1, %v3841_v19 }
 0xc06   : > { %v5190_v16 = vpop.eup %5189  ;;  %v3830_v8 = vrot.slane %v5188_v43, 4 }
 0xc07   : > { %v5192_v41 = vpop.eup %5191  ;;  %v7490_v59 = vadd.f32 %v7485_v29, %v3845_v60 }
 0xc08   : > { %v3834_v21 = vmul.f32 %v5190_v16, %v3830_v8  ;;  %v3831_v24 = vrot.slane %v5192_v41, 4  ;;  %v5194_v30 = vpop.eup %5193  ;;  %v7559_v16 = vld [vmem:[%s7862_s10 + $0x80] sm:$0xff]  ;;  %v7564_v8 = vld [vmem:[%s7862_s10 + $0x88] sm:$0xff] }
 0xc09   : > { %v3853_v36 = vrot.slane %v7490_v59, 4 }
 0xc0a   : > { %3836 = vst [vmem:[#allocation2] sm:$0xf] %v3834_v21  ;;  %v3835_v20 = vmul.f32 %v5194_v30, %v3831_v24 }
 0xc0c   : > { %3837 = vst [vmem:[#allocation2 + $0x8] sm:$0xf] %v3835_v20  ;;  %v7502_v25 = vsel %vm500_vm4, %v3835_v20, %v3853_v36 }
 0xc11   : > { %v4105_v49 = vld [vmem:[#allocation2] sm:$0xff] }
 0xc12   : > { %v4109_v6 = vmul.f32 %v4105_v49, %v7142_v3  ;;  %v3844_v3 = vmul.f32 %v7438_v11, %v3840_v9 }
 0xc13   : > { %v4106_v32 = vld [vmem:[#allocation2 + $0x8] sm:$0xff] }
 0xc14   : > { %v7432_v7 = vadd.f32 %v4109_v6, %v7147_v55  ;;  %v4110_v10 = vmul.f32 %v4106_v32, %v7152_v12  ;;  %v7451_v55 = vld [vmem:[%s7861_s9] sm:$0xff] }
 0xc15   : > { %v7456_v12 = vadd.f32 %v7451_v55, %v3844_v3 }
 0xc16   : > { %4176 = vrot.lane.b32.xlu0 %v7432_v7, %s5277_s28  ;;  %v7443_v47 = vadd.f32 %v4110_v10, %v7158_v13 }
 0xc17   : > { %v3852_v13 = vrot.slane %v7456_v12, 4 }
 0xc18   : > { %4178 = vrot.lane.b32.xlu1 %v7443_v47, %s5277_s28 }
 0xc19   : > { %v7468_v4 = vsel %vm500_vm4, %v3834_v21, %v3852_v13  ;;  %v7577_v13 = vld [vmem:[%s7862_s10 + $0x60] sm:$0xff] }
 0xc1a   : > { %4151 = vrot.lane.b32.xlu0 %v7432_v7, %s5276_s27 }
 0xc1c   : > { %4153 = vrot.lane.b32.xlu1 %v7443_v47, %s5276_s27 }
 0xc1e   : > { %4168 = vrot.lane.b32.xlu0 %v7432_v7, %s5278_s29 }
 0xc20   : > { %4170 = vrot.lane.b32.xlu1 %v7443_v47, %s5278_s29 }
 0xc22   : > { %4159 = vrot.lane.b32.xlu0 %v7432_v7, %s5279_s30 }
 0xc24   : > { %3881 = vrot.lane.b32.xlu1 %v7468_v4, %s5284_s15 }
 0xc26   : > { %3923 = vrot.lane.b32.xlu0 %v7468_v4, %s5277_s28 }
 0xc28   : > { %3890 = vrot.lane.b32.xlu1 %v7468_v4, %s5281_s13 }
 0xc2a   : > { %3905 = vrot.lane.b32.xlu0 %v7468_v4, %s5279_s30 }
 0xc2c   : > { %3863 = vrot.lane.b32.xlu1 %v7468_v4, %s5283_s14 }
 0xc2e   : > { %3914 = vrot.lane.b32.xlu0 %v7468_v4, %s5278_s29 }
 0xc30   : > { %3872 = vrot.lane.b32.xlu1 %v7468_v4, %s5280_s12 }
 0xc32   : > { %3896 = vrot.lane.b32.xlu0 %v7468_v4, %s5276_s27 }
 0xc34   : > { %3925 = vrot.lane.b32.xlu1 %v7502_v25, %s5277_s28 }
 0xc36   : > { %4126 = vrot.lane.b32.xlu0 %v7443_v47, %s5280_s12 }
 0xc38   : > { %3907 = vrot.lane.b32.xlu1 %v7502_v25, %s5279_s30 }
 0xc3a   : > { %3878 = vrot.lane.b32.xlu0 %v7502_v25, %s5284_s15 }
 0xc3c   : > { %3916 = vrot.lane.b32.xlu1 %v7502_v25, %s5278_s29 }
 0xc3e   : > { %3887 = vrot.lane.b32.xlu0 %v7502_v25, %s5281_s13 }
 0xc40   : > { %3898 = vrot.lane.b32.xlu1 %v7502_v25, %s5276_s27 }
 0xc42   : > { %3859 = vrot.lane.b32.xlu0 %v7502_v25, %s5283_s14 }
 0xc44   : > { %4161 = vrot.lane.b32.xlu1 %v7443_v47, %s5279_s30 }
 0xc46   : > { %3869 = vrot.lane.b32.xlu0 %v7502_v25, %s5280_s12 }
 0xc48   : > { %4129 = vrot.lane.b32.xlu1 %v7432_v7, %s5280_s12 }
 0xc4a   : > { %4143 = vrot.lane.b32.xlu0 %v7443_v47, %s5281_s13 }
 0xc4c   : > { %4146 = vrot.lane.b32.xlu1 %v7432_v7, %s5281_s13 }
 0xc4e   : > { %4116 = vrot.lane.b32.xlu0 %v7443_v47, %s5283_s14 }
 0xc50   : > { %4120 = vrot.lane.b32.xlu1 %v7432_v7, %s5283_s14 }
 0xc52   : > { %4134 = vrot.lane.b32.xlu0 %v7443_v47, %s5284_s15 }
 0xc54   : > { %4137 = vrot.lane.b32.xlu1 %v7432_v7, %s5284_s15 }
 0xc88   : > { %v4177_v40 = vpop.permute.xlu0 %4176 }
 0xc8a   : > { %v4179_v58 = vpop.permute.xlu1 %4178 }
 0xc8b   : > { %v4180_v35 = vsel %vm474_vm1, %v4177_v40, %v4179_v58  ;;  %v4184_v18 = vsel %vm474_vm1, %v4179_v58, %v4177_v40  ;;  %v7584_v40 = vld [vmem:[%s7862_s10 + $0x68] sm:$0xff]  ;;  %v7591_v58 = vld [vmem:[%s7862_s10 + $0x70] sm:$0xff] }
 0xc8c   : > { %v4231_v15 = vmul.f32 %v4221_v52, %v4180_v35  ;;  %v4232_v42 = vmul.f32 %v4222_v17, %v4184_v18  ;;  %v4152_v48 = vpop.permute.xlu0 %4151  ;;  %v7596_v35 = vld [vmem:[%s7862_s10 + $0x78] sm:$0xff] }
 0xc8e   : > { %v4239_v46 = vpack.c.bf16 %v4231_v15, %v4231_v15  ;;  %v4240_v62 = vpack.c.bf16 %v4232_v42, %v4232_v42  ;;  %v4154_v28 = vpop.permute.xlu1 %4153  ;;  %v7601_v42 = vld [vmem:[%s7862_s10 + $0x40] sm:$0xff] }
 0xc8f   : > { %v4155_v6 = vsel %vm446_vm0, %v4152_v48, %v4154_v28  ;;  %v4158_v3 = vsel %vm446_vm0, %v4154_v28, %v4152_v48  ;;  %v7606_v48 = vld [vmem:[%s7862_s10 + $0x48] sm:$0xff] }
 0xc90   : > { %4827 = vmatprep.subr.msk.bf16.mxu1 %vm550_vm3, %v4240_v62  ;;  %v4169_v38 = vpop.permute.xlu0 %4168  ;;  %v4254_v2 = vsel %vm550_vm3, %v4239_v46, 0  ;;  %v4196_v36 = vrot.slane %v4155_v6, 4  ;;  %v4197_v18 = vrot.slane %v4158_v3, 4  ;;  %v3958_v6 = vmul.f32 %v7601_v42, %v7468_v4 }
 0xc91   : > { %4270 = vmatpush1.bf16.msra.mxu1 %v4254_v2 }
 0xc92   : > { %v4171_v44 = vpop.permute.xlu1 %4170 }
 0xc94   : > { %v7548_v51 = vpop.permute.xlu0 %4159 }
 0xc96   : > { %v7550_v34 = vpop.permute.xlu1 %3881 }
 0xc98   : > { %v3924_v14 = vpop.permute.xlu0 %3923 }
 0xc9a   : > { %v3891_v61 = vpop.permute.xlu1 %3890 }
 0xc9c   : > { %v3906_v56 = vpop.permute.xlu0 %3905 }
 0xc9e   : > { %v7552_v45 = vpop.permute.xlu1 %3863 }
 0xca0   : > { %v3915_v5 = vpop.permute.xlu0 %3914 }
 0xca2   : > { %v7554_v26 = vpop.permute.xlu1 %3872 }
 0xca4   : > { %v3897_v43 = vpop.permute.xlu0 %3896 }
 0xca6   : > { %v3926_v41 = vpop.permute.xlu1 %3925 }
 0xca7   : > { %v3927_v21 = vsel %vm474_vm1, %v3924_v14, %v3926_v41  ;;  %v3931_v24 = vsel %vm474_vm1, %v3926_v41, %v3924_v14 }
 0xca8   : > { %v3966_v30 = vmul.f32 %v7559_v16, %v3927_v21  ;;  %v3967_v20 = vmul.f32 %v7564_v8, %v3931_v24  ;;  %v7570_v49 = vpop.permute.xlu0 %4126  ;;  %v4209_v21 = vsel %vm500_vm4, %v7432_v7, %v4196_v36  ;;  %v7619_v24 = vld [vmem:[%s7862_s10 + $0x38] sm:$0xff] }
 0xcaa   : > { %v3978_v32 = vpack.c.bf16 %v3966_v30, %v3966_v30  ;;  %v3979_v10 = vpack.c.bf16 %v3967_v20, %v3967_v20  ;;  %v3908_v9 = vpop.permute.xlu1 %3907  ;;  %v7630_v20 = vld [vmem:[%s7862_s10 + $0x58] sm:$0xff] }
 0xcab   : > { %v3909_v52 = vsel %vm455_vm5, %v3906_v56, %v3908_v9  ;;  %v3913_v17 = vsel %vm455_vm5, %v3908_v9, %v3906_v56  ;;  %v4172_v9 = vsel %vm465_vm2, %v4169_v38, %v4171_v44 }
 0xcac   : > { %4819 = vmatprep.subr.msk.bf16.mxu0 %vm500_vm4, %v3979_v10  ;;  %v3879_v19 = vpop.permute.xlu0 %3878  ;;  %v3993_v60 = vsel %vm500_vm4, %v3978_v32, 0  ;;  %v3962_v28 = vmul.f32 %v7577_v13, %v3909_v52  ;;  %v3963_v2 = vmul.f32 %v7584_v40, %v3913_v17  ;;  %v3959_v32 = vmul.f32 %v7606_v48, %v7502_v25  ;;  %v7643_v17 = vld [vmem:[%s7862_s10 + $0x28] sm:$0xff] }
 0xcad   : > { %4005 = vmatpush1.bf16.msra.mxu0 %v3993_v60  ;;  %v4210_v10 = vsel %vm500_vm4, %v7443_v47, %v4197_v18  ;;  %v4175_v52 = vsel %vm465_vm2, %v4171_v44, %v4169_v38  ;;  %v3883_v4 = vsel %vm428_vm9, %v7550_v34, %v3879_v19  ;;  %v7652_v18 = vld [vmem:[%s7862_s10 + $0x30] sm:$0xff] }
 0xcae   : > { %v3917_v15 = vpop.permute.xlu1 %3916 }
 0xcaf   : > { %v3918_v46 = vsel %vm465_vm2, %v3915_v5, %v3917_v15  ;;  %v3922_v62 = vsel %vm465_vm2, %v3917_v15, %v3915_v5  ;;  %v7625_v5 = vld [vmem:[%s7862_s10 + $0x50] sm:$0xff] }
 0xcb0   : > { %v3964_v14 = vmul.f32 %v7591_v58, %v3918_v46  ;;  %v3965_v56 = vmul.f32 %v7596_v35, %v3922_v62  ;;  %v3888_v41 = vpop.permute.xlu0 %3887 }
 0xcb1   : > { %v3892_v30 = vsel %vm438_vm7, %v3891_v61, %v3888_v41  ;;  %v3895_v46 = vsel %vm438_vm7, %v3888_v41, %v3891_v61  ;;  %v4228_v61 = vmul.f32 %v4210_v10, %v7299_v22  ;;  %v4202_v41 = vrot.slane %v4175_v52, 4 }
 0xcb2   : > { %v3976_v3 = vpack.c.bf16 %v3964_v14, %v3962_v28  ;;  %v3899_v60 = vpop.permute.xlu1 %3898  ;;  %v3977_v36 = vpack.c.bf16 %v3965_v56, %v3963_v2  ;;  %v3957_v38 = vmul.f32 %v7619_v24, %v3892_v30  ;;  %v4227_v2 = vmul.f32 %v4209_v21, %v7291_v57  ;;  %v7672_v21 = vld [vmem:[%s7862_s10 + $0x8] sm:$0xff] }
 0xcb3   : > { %v3900_v25 = vsel %vm446_vm0, %v3897_v43, %v3899_v60  ;;  %v3904_v15 = vsel %vm446_vm0, %v3899_v60, %v3897_v43  ;;  %v4201_v14 = vrot.slane %v4172_v9, 4  ;;  %v7662_v43 = vld [vmem:[%s7862_s10 + $0x20] sm:$0xff]  ;;  %v3886_v56 = vsel %vm428_vm9, %v3879_v19, %v7550_v34  ;;  %v7683_v19 = vld [vmem:[%s7862_s10 + $0x18] sm:$0xff] }
 0xcb4   : > { %v3960_v44 = vmul.f32 %v7625_v5, %v3900_v25  ;;  %v3961_v62 = vmul.f32 %v7630_v20, %v3904_v15  ;;  %4006 = vmatprep.subr.bf16.mxu0 %v3977_v36  ;;  %v3860_v28 = vpop.permute.xlu0 %3859  ;;  %v3955_v30 = vmul.f32 %v7643_v17, %v3883_v4  ;;  %v3956_v57 = vmul.f32 %v7652_v18, %v3895_v46 }
 0xcb5   : > { %4007 = vmatpush1.bf16.msra.mxu0 %v3976_v3  ;;  %v3865_v9 = vsel %vm409_vm8, %v7552_v45, %v3860_v28  ;;  %v7691_v3 = vld [vmem:[%s7862_s10 + $0x10] sm:$0xff] }
 0xcb6   : > { %v3974_v60 = vpack.c.bf16 %v3960_v44, %v3958_v6  ;;  %v4162_v36 = vpop.permute.xlu1 %4161  ;;  %v3975_v25 = vpack.c.bf16 %v3961_v62, %v3959_v32  ;;  %v3954_v6 = vmul.f32 %v7662_v43, %v3886_v56  ;;  %v3973_v4 = vpack.c.bf16 %v3957_v38, %v3955_v30  ;;  %v7702_v62 = vld [vmem:[%s7862_s10] sm:$0xff] }
 0xcb7   : > { %v4163_v34 = vsel %vm455_vm5, %v7548_v51, %v4162_v36  ;;  %v4167_v22 = vsel %vm455_vm5, %v4162_v36, %v7548_v51  ;;  %v3951_v38 = vmul.f32 %v7672_v21, %v3865_v9  ;;  %v4880_v9 = vld [vmem:[%s7858_s6] sm:$0xff]  }
 0xcb8   : > { %v4211_v32 = vsel %vm500_vm4, %v4163_v34, %v4201_v14  ;;  %v4212_v10 = vsel %vm500_vm4, %v4167_v22, %v4202_v41  ;;  %4008 = vmatprep.subr.bf16.mxu0 %v3975_v25  ;;  %v3870_v52 = vpop.permute.xlu0 %3869  ;;  %v3868_v14 = vsel %vm409_vm8, %v3860_v28, %v7552_v45  ;;  %v3972_v56 = vpack.c.bf16 %v3956_v57, %v3954_v6 }
 0xcb9   : > { %v4229_v51 = vmul.f32 %v4211_v32, %v7316_v37  ;;  %v4230_v15 = vmul.f32 %v4212_v10, %v7321_v27  ;;  %v3874_v46 = vsel %vm419_vm6, %v7554_v26, %v3870_v52  ;;  %v3877_v44 = vsel %vm419_vm6, %v3870_v52, %v7554_v26  ;;  %4009 = vmatpush1.bf16.msra.mxu0 %v3974_v60 }
 0xcba   : > { %v3953_v37 = vmul.f32 %v7683_v19, %v3874_v46  ;;  %v4130_v27 = vpop.permute.xlu1 %4129  ;;  %4010 = vmatprep.subr.bf16.mxu0 %v3973_v4  ;;  %v3952_v30 = vmul.f32 %v7691_v3, %v3877_v44  ;;  %v3950_v25 = vmul.f32 %v7702_v62, %v3868_v14 }
 0xcbb   : > { %v4237_v41 = vpack.c.bf16 %v4229_v51, %v4227_v2  ;;  %v4238_v26 = vpack.c.bf16 %v4230_v15, %v4228_v61  ;;  %v4131_v2 = vsel %vm419_vm6, %v4130_v27, %v7570_v49  ;;  %v4133_v61 = vsel %vm419_vm6, %v7570_v49, %v4130_v27 }
 0xcbc   : > { %v4144_v60 = vpop.permute.xlu0 %4143  ;;  %v3971_v36 = vpack.c.bf16 %v3953_v37, %v3951_v38  ;;  %v3970_v45 = vpack.c.bf16 %v3952_v30, %v3950_v25  ;;  %v4186_v52 = vrot.slane %v4133_v61, 4  ;;  %v4187_v4 = vrot.slane %v4131_v2, 4  ;;  %v7752_v2 = vld [vmem:[%s7859_s7 + $0x10] sm:$0xff] }
 0xcbd   : > { %4011 = vmatpush1.bf16.msra.mxu0 %v3972_v56  ;;  %4271 = vmatprep.subr.bf16.mxu1 %v4238_v26 }
 0xcbe   : > { %v4147_v34 = vpop.permute.xlu1 %4146  ;;  %4012 = vmatprep.subr.bf16.mxu0 %v3971_v36  ;;  %4272 = vmatpush1.bf16.msra.mxu1 %v4237_v41 }
 0xcbf   : > { %v4148_v22 = vsel %vm438_vm7, %v4147_v34, %v4144_v60  ;;  %v4150_v6 = vsel %vm438_vm7, %v4144_v60, %v4147_v34  ;;  %v4881_v34 = vld [vmem:[%s7853_s1] sm:$0xff]  }
 0xcc0   : > { %v4117_v28 = vpop.permute.xlu0 %4116  ;;  %v4191_v51 = vrot.slane %v4150_v6, 4  ;;  %v4192_v15 = vrot.slane %v4148_v22, 4  ;;  %v7758_v22 = vld [vmem:[%s7859_s7 + $0x18] sm:$0xff] }
 0xcc1   : > { %4013 = vmatpush1.bf16.msra.mxu0 %v3970_v45 }
 0xcc2   : > { %v4121_v57 = vpop.permute.xlu1 %4120 }
 0xcc3   : > { %v4122_v32 = vsel %vm409_vm8, %v4121_v57, %v4117_v28  ;;  %v4125_v10 = vsel %vm409_vm8, %v4117_v28, %v4121_v57 }
 0xcc4   : > { %4820 = vmatmul.mubr.msk.bf16.vlgmr.msra.gmra.mxu0 %vm815_vm11, %v4880_v9  ;;  %v4205_v46 = vsel %vm500_vm4, %v4125_v10, %v4186_v52  ;;  %v4206_v49 = vsel %vm500_vm4, %v4122_v32, %v4187_v4  ;;  %v4135_v44 = vpop.permute.xlu0 %4134  ;;  %v4829_v10 = vld [vmem:[%s5512_s25 + $0xe0] sm:$0xff] }
 0xcc5   : > { %v4223_v41 = vmul.f32 %v4205_v46, %v7360_v53  ;;  %v4224_v30 = vmul.f32 %v4206_v49, %v7366_v50  ;;  %v7740_v53 = vld [vmem:[%s7859_s7] sm:$0xff]  ;;  %v4830_v46 = vld [vmem:[%s5512_s25 + $0xe8] sm:$0xff] }
 0xcc6   : > { %v4138_v14 = vpop.permute.xlu1 %4137 }
 0xcc7   : > { %v4139_v38 = vsel %vm428_vm9, %v4138_v14, %v4135_v44  ;;  %v4142_v37 = vsel %vm428_vm9, %v4135_v44, %v4138_v14 }
 0xcc8   : > { %v4207_v27 = vsel %vm500_vm4, %v4142_v37, %v4191_v51  ;;  %v4208_v56 = vsel %vm500_vm4, %v4139_v38, %v4192_v15 }
 0xcc9   : > { %v4225_v26 = vmul.f32 %v4207_v27, %v7373_v33  ;;  %v4226_v60 = vmul.f32 %v4208_v56, %v7378_v39  ;;  %v7745_v33 = vld [vmem:[%s7859_s7 + $0x8] sm:$0xff] }
 0xccb   : > { %v4235_v36 = vpack.c.bf16 %v4225_v26, %v4223_v41  ;;  %v4236_v25 = vpack.c.bf16 %v4226_v60, %v4224_v30 }
 0xccd   : > { %4273 = vmatprep.subr.bf16.mxu1 %v4236_v25 }
 0xcce   : > { %4274 = vmatpush1.bf16.msra.mxu1 %v4235_v36  ;;  %v4831_v36 = vld [vmem:[%s5512_s25 + $0xf0] sm:$0xff] }
 0xcd1   : > { %4828 = vmatmul.mubr.msk.bf16.vlgmr.msra.gmra.mxu1 %vm546_vm10, %v4881_v34  ;;  %v4832_v34 = vld [vmem:[%s5512_s25 + $0xf8] sm:$0xff] }
 0xcd2   : > { %4559 = vmatprep.mubr.bf16.mxu1 %v7880_v31 }
 0xd84   : > { %v4032_v50 = vpop.f32.mrf.mxu0 }
 0xd85   : > { %v4033_v39 = vadd.f32 %v4032_v50, %v7740_v53 }
 0xd86   : > { %v4034_v45 = vpop.f32.mrf.mxu0 }
 0xd87   : > { %v4821_v28 = vmul.f32 -1.442695, %v4033_v39  ;;  %v4035_v9 = vadd.f32 %v4034_v45, %v7745_v33 }
 0xd88   : > { %v4036_v61 = vpop.f32.mrf.mxu0 }
 0xd89   : > { %5195 = vpow2.f32 %v4821_v28  ;;  %v4822_v31 = vmul.f32 -1.442695, %v4035_v9  ;;  %v4037_v57 = vadd.f32 %v4036_v61, %v7752_v2 }
 0xd8a   : > { %v4038_v6 = vpop.f32.mrf.mxu0 }
 0xd8b   : > { %5197 = vpow2.f32 %v4822_v31  ;;  %v4823_v52 = vmul.f32 -1.442695, %v4037_v57  ;;  %v4039_v51 = vadd.f32 %v4038_v6, %v7758_v22 }
 0xd8c   : > { %5199 = vtanh.f32 %v4037_v57 }
 0xd8d   : > { %5201 = vpow2.f32 %v4823_v52  ;;  %v4824_v26 = vmul.f32 -1.442695, %v4039_v51 }
 0xd8e   : > { %5203 = vtanh.f32 %v4039_v51 }
 0xd91   : > { %v4293_v32 = vpop.f32.mrf.mxu1 }
 0xd92   : > { %v4294_v4 = vadd.f32 %v4293_v32, %v7398_v0 }
 0xd93   : > { %v4295_v15 = vpop.f32.mrf.mxu1 }
 0xd94   : > { %v4307_v49 = vadd.f32 %v4829_v10, %v4294_v4  ;;  %v4296_v44 = vadd.f32 %v4295_v15, %v7405_v63 }
 0xd95   : > { %v4297_v56 = vpop.f32.mrf.mxu1 }
 0xd96   : > { %v5196_v14 = vpop.eup %5195  ;;  %v4833_v38 = vmul.f32 -1.442695, %v4307_v49  ;;  %v4308_v37 = vadd.f32 %v4830_v46, %v4296_v44  ;;  %v4298_v63 = vadd.f32 %v4297_v56, %v7414_v54 }
 0xd97   : > { %v4053_v27 = vadd.f32 1.0, %v5196_v14  ;;  %v4299_v60 = vpop.f32.mrf.mxu1 }
 0xd98   : > { %v5198_v41 = vpop.eup %5197  ;;  %5205 = vpow2.f32 %v4833_v38  ;;  %v4834_v0 = vmul.f32 -1.442695, %v4308_v37  ;;  %v4300_v25 = vadd.f32 %v4299_v60, %v7419_v23  ;;  %v4309_v50 = vadd.f32 %v4831_v36, %v4298_v63 }
 0xd99   : > { %5207 = vrcp.f32 %v4053_v27  ;;  %v4054_v30 = vadd.f32 1.0, %v5198_v41  ;;  %v5200_v39 = vpop.eup %5199 }
 0xd9a   : > { %5209 = vpow2.f32 %v4834_v0  ;;  %v4310_v45 = vadd.f32 %v4832_v34, %v4300_v25  ;;  %v5202_v28 = vpop.eup %5201  ;;  %v4071_v61 = vrot.slane %v5200_v39, 4  ;;  %v4835_v57 = vmul.f32 -1.442695, %v4309_v50 }
 0xd9b   : > { %5211 = vrcp.f32 %v4054_v30  ;;  %v5204_v9 = vpop.eup %5203  ;;  %v4055_v14 = vadd.f32 1.0, %v5202_v28 }
 0xd9c   : > { %5213 = vpow2.f32 %v4824_v26  ;;  %v4072_v54 = vrot.slane %v5204_v9, 4  ;;  %v4836_v23 = vmul.f32 -1.442695, %v4310_v45 }
 0xd9d   : > { %5215 = vtanh.f32 %v4309_v50 }
 0xd9e   : > { %5217 = vtanh.f32 %v4310_v45 }
 0xda5   : > { %v5206_v31 = vpop.eup %5205 }
 0xda6   : > { %v5208_v6 = vpop.eup %5207  ;;  %v4323_v32 = vadd.f32 1.0, %v5206_v31 }
 0xda7   : > { %v5210_v10 = vpop.eup %5209  ;;  %v4075_v52 = vmul.f32 %v5208_v6, %v4071_v61  ;;  %v4067_v15 = vmul.f32 %v5208_v6, %v7456_v12 }
 0xda8   : > { %v5212_v4 = vpop.eup %5211  ;;  %5219 = vrcp.f32 %v4323_v32  ;;  %v4324_v51 = vadd.f32 1.0, %v5210_v10 }
 0xda9   : > { %v4079_v46 = vrot.slane %v4075_v52, 4  ;;  %v4076_v49 = vmul.f32 %v5212_v4, %v4072_v54  ;;  %5221 = vpow2.f32 %v4835_v57  ;;  %v5214_v44 = vpop.eup %5213  ;;  %v4068_v37 = vmul.f32 %v5212_v4, %v7490_v59 }
 0xdaa   : > { %5223 = vrcp.f32 %v4324_v51  ;;  %v4056_v56 = vadd.f32 1.0, %v5214_v44  ;;  %v5216_v0 = vpop.eup %5215 }
 0xdab   : > { %v4083_v38 = vadd.f32 %v4079_v46, %v4067_v15  ;;  %v4080_v27 = vrot.slane %v4076_v49, 4  ;;  %5225 = vpow2.f32 %v4836_v23  ;;  %v5218_v12 = vpop.eup %5217  ;;  %v4341_v30 = vrot.slane %v5216_v0, 4 }
 0xdac   : > { %v4342_v36 = vrot.slane %v5218_v12, 4 }
 0xdad   : > { %5227 = vtanh.f32 %v4083_v38  ;;  %4097 = vst [vmem:[#allocation3 + $0x8] sm:$0xf0] %v4083_v38  ;;  %v4084_v41 = vadd.f32 %v4080_v27, %v4068_v37 }
 0xdae   : > { %5229 = vrcp.f32 %v4055_v14 }
 0xdaf   : > { %5231 = vtanh.f32 %v4084_v41  ;;  %4098 = vst [vmem:[#allocation3] sm:$0xf0] %v4084_v41 }
 0xdb0   : > { %5233 = vrcp.f32 %v4056_v56 }
 0xdb5   : > { %v5220_v26 = vpop.eup %5219 }
 0xdb6   : > { %v5222_v60 = vpop.eup %5221  ;;  %v4345_v63 = vmul.f32 %v5220_v26, %v4341_v30  ;;  %v4337_v59 = vmul.f32 %v5220_v26, %v7432_v7 }
 0xdb7   : > { %v5224_v25 = vpop.eup %5223  ;;  %v4325_v45 = vadd.f32 1.0, %v5222_v60 }
 0xdb8   : > { %v4349_v34 = vrot.slane %v4345_v63, 4  ;;  %v4346_v50 = vmul.f32 %v5224_v25, %v4342_v36  ;;  %v5226_v39 = vpop.eup %5225  ;;  %v4338_v31 = vmul.f32 %v5224_v25, %v7443_v47 }
 0xdb9   : > { %v4326_v10 = vadd.f32 1.0, %v5226_v39 }
 0xdba   : > { %v5228_v28 = vpop.eup %5227  ;;  %v4353_v9 = vadd.f32 %v4349_v34, %v4337_v59  ;;  %v4350_v61 = vrot.slane %v4346_v50, 4 }
 0xdbb   : > { %v5230_v57 = vpop.eup %5229  ;;  %v4089_v6 = vrot.slane %v5228_v28, 4 }
 0xdbc   : > { %v5232_v32 = vpop.eup %5231  ;;  %5235 = vtanh.f32 %v4353_v9  ;;  %4367 = vst [vmem:[#allocation2] sm:$0xf0] %v4353_v9  ;;  %v4354_v52 = vadd.f32 %v4350_v61, %v4338_v31 }
 0xdbd   : > { %v4093_v54 = vmul.f32 %v5230_v57, %v4089_v6  ;;  %v4090_v4 = vrot.slane %v5232_v32, 4  ;;  %5237 = vrcp.f32 %v4325_v45  ;;  %v5234_v7 = vpop.eup %5233 }
 0xdbe   : > { %5239 = vtanh.f32 %v4354_v52  ;;  %4368 = vst [vmem:[#allocation2 + $0x8] sm:$0xf0] %v4354_v52 }
 0xdbf   : > { %4095 = vst [vmem:[#allocation3 + $0x8] sm:$0xf] %v4093_v54  ;;  %v4094_v51 = vmul.f32 %v5234_v7, %v4090_v4  ;;  %5241 = vrcp.f32 %v4326_v10 }
 0xdc1   : > { %4096 = vst [vmem:[#allocation3] sm:$0xf] %v4094_v51  ;;  %v4101_v47 = vcombine.low %v4093_v54, %v4094_v51 }
 0xdc3   : > { %4825 = vst [vmem:[%s5882_s24 + $0x30] sm:$0xff] %v4101_v47 }
 0xdc6   : > { %v4369_v23 = vld [vmem:[#allocation3 + $0x8] sm:$0xff] }
 0xdc7   : > { %v4373_v15 = vmul.f32 %v4369_v23, %v7438_v11 }
 0xdc8   : > { %v4370_v46 = vld [vmem:[#allocation3] sm:$0xff] }
 0xdc9   : > { %v5236_v49 = vpop.eup %5235  ;;  %v7776_v44 = vadd.f32 %v4373_v15, %v7451_v55  ;;  %v4374_v37 = vmul.f32 %v4370_v46, %v7475_v1 }
 0xdca   : > { %v5238_v14 = vpop.eup %5237  ;;  %v4359_v38 = vrot.slane %v5236_v49, 4 }
 0xdcb   : > { %v5240_v27 = vpop.eup %5239  ;;  %v4381_v56 = vrot.slane %v7776_v44, 4  ;;  %v7782_v11 = vadd.f32 %v4374_v37, %v7485_v29 }
 0xdcc   : > { %v4363_v41 = vmul.f32 %v5238_v14, %v4359_v38  ;;  %v4360_v0 = vrot.slane %v5240_v27, 4  ;;  %v5242_v12 = vpop.eup %5241 }
 0xdcd   : > { %v4382_v55 = vrot.slane %v7782_v11, 4 }
 0xdce   : > { %4365 = vst [vmem:[#allocation2] sm:$0xf] %v4363_v41  ;;  %v4364_v30 = vmul.f32 %v5242_v12, %v4360_v0  ;;  %v4385_v26 = vsel %vm500_vm4, %v4363_v41, %v4381_v56 }
 0xdcf   : > { %4410 = vrot.lane.b32.xlu1 %v4385_v26, %s5284_s15  ;;  %4452 = vrot.lane.b32.xlu0 %v4385_v26, %s5277_s28  ;;  %v4487_v15 = vmul.f32 %v4385_v26, %v7601_v42 }
 0xdd0   : > { %4366 = vst [vmem:[#allocation2 + $0x8] sm:$0xf] %v4364_v30  ;;  %v4386_v1 = vsel %vm500_vm4, %v4364_v30, %v4382_v55 }
 0xdd1   : > { %v4488_v14 = vmul.f32 %v4386_v1, %v7606_v48 }
 0xdd3   : > { %4419 = vrot.lane.b32.xlu1 %v4385_v26, %s5281_s13  ;;  %4434 = vrot.lane.b32.xlu0 %v4385_v26, %s5279_s30 }
 0xdd7   : > { %4454 = vrot.lane.b32.xlu1 %v4386_v1, %s5277_s28  ;;  %4443 = vrot.lane.b32.xlu0 %v4385_v26, %s5278_s29 }
 0xddb   : > { %4436 = vrot.lane.b32.xlu1 %v4386_v1, %s5279_s30  ;;  %4425 = vrot.lane.b32.xlu0 %v4385_v26, %s5276_s27 }
 0xddf   : > { %4445 = vrot.lane.b32.xlu1 %v4386_v1, %s5278_s29  ;;  %4407 = vrot.lane.b32.xlu0 %v4386_v1, %s5284_s15 }
 0xde3   : > { %4427 = vrot.lane.b32.xlu1 %v4386_v1, %s5276_s27  ;;  %4416 = vrot.lane.b32.xlu0 %v4386_v1, %s5281_s13 }
 0xde7   : > { %4392 = vrot.lane.b32.xlu1 %v4385_v26, %s5283_s14  ;;  %4388 = vrot.lane.b32.xlu0 %v4386_v1, %s5283_s14 }
 0xdeb   : > { %4401 = vrot.lane.b32.xlu1 %v4385_v26, %s5280_s12  ;;  %4398 = vrot.lane.b32.xlu0 %v4386_v1, %s5280_s12 }
 0xe41   : > { %v4411_v29 = vpop.permute.xlu1 %4410  ;;  %v4453_v60 = vpop.permute.xlu0 %4452 }
 0xe45   : > { %v4420_v63 = vpop.permute.xlu1 %4419  ;;  %v4435_v36 = vpop.permute.xlu0 %4434 }
 0xe49   : > { %v4455_v25 = vpop.permute.xlu1 %4454  ;;  %v4444_v59 = vpop.permute.xlu0 %4443 }
 0xe4a   : > { %v4456_v34 = vsel %vm474_vm1, %v4453_v60, %v4455_v25  ;;  %v4460_v50 = vsel %vm474_vm1, %v4455_v25, %v4453_v60 }
 0xe4b   : > { %v4495_v39 = vmul.f32 %v4456_v34, %v7559_v16  ;;  %v4496_v45 = vmul.f32 %v4460_v50, %v7564_v8  ;;  %v4882_v50 = vld [vmem:[%s7858_s6] sm:$0xff]  }
 0xe4d   : > { %v4507_v28 = vpack.c.bf16 %v4495_v39, %v4495_v39  ;;  %v4508_v9 = vpack.c.bf16 %v4496_v45, %v4496_v45  ;;  %v4437_v31 = vpop.permute.xlu1 %4436  ;;  %v4426_v61 = vpop.permute.xlu0 %4425 }
 0xe4e   : > { %v4438_v6 = vsel %vm455_vm5, %v4435_v36, %v4437_v31  ;;  %v4442_v32 = vsel %vm455_vm5, %v4437_v31, %v4435_v36 }
 0xe4f   : > { %4838 = vmatprep.subr.msk.bf16.mxu1 %vm500_vm4, %v4508_v9  ;;  %v4522_v57 = vsel %vm500_vm4, %v4507_v28, 0  ;;  %v4491_v8 = vmul.f32 %v4438_v6, %v7577_v13  ;;  %v4492_v4 = vmul.f32 %v4442_v32, %v7584_v40 }
 0xe50   : > { %4534 = vmatpush1.bf16.msra.mxu1 %v4522_v57 }
 0xe51   : > { %v4446_v10 = vpop.permute.xlu1 %4445  ;;  %v4408_v52 = vpop.permute.xlu0 %4407 }
 0xe52   : > { %v4447_v54 = vsel %vm465_vm2, %v4444_v59, %v4446_v10  ;;  %v4451_v16 = vsel %vm465_vm2, %v4446_v10, %v4444_v59  ;;  %v4412_v38 = vsel %vm428_vm9, %v4411_v29, %v4408_v52  ;;  %v4415_v48 = vsel %vm428_vm9, %v4408_v52, %v4411_v29 }
 0xe53   : > { %v4493_v7 = vmul.f32 %v4447_v54, %v7591_v58  ;;  %v4494_v51 = vmul.f32 %v4451_v16, %v7596_v35  ;;  %v4484_v56 = vmul.f32 %v4412_v38, %v7643_v17 }
 0xe55   : > { %v4505_v47 = vpack.c.bf16 %v4493_v7, %v4491_v8  ;;  %v4428_v23 = vpop.permute.xlu1 %4427  ;;  %v4417_v46 = vpop.permute.xlu0 %4416  ;;  %v4506_v49 = vpack.c.bf16 %v4494_v51, %v4492_v4 }
 0xe56   : > { %v4429_v37 = vsel %vm446_vm0, %v4426_v61, %v4428_v23  ;;  %v4433_v13 = vsel %vm446_vm0, %v4428_v23, %v4426_v61  ;;  %v4421_v40 = vsel %vm438_vm7, %v4420_v63, %v4417_v46  ;;  %v4424_v27 = vsel %vm438_vm7, %v4417_v46, %v4420_v63 }
 0xe57   : > { %v4489_v58 = vmul.f32 %v4429_v37, %v7625_v5  ;;  %v4490_v35 = vmul.f32 %v4433_v13, %v7630_v20  ;;  %v4486_v42 = vmul.f32 %v4421_v40, %v7619_v24  ;;  %4535 = vmatprep.subr.bf16.mxu1 %v4506_v49  ;;  %v4485_v26 = vmul.f32 %v4424_v27, %v7652_v18 }
 0xe58   : > { %4536 = vmatpush1.bf16.msra.mxu1 %v4505_v47  ;;  %v4483_v20 = vmul.f32 %v4415_v48, %v7662_v43 }
 0xe59   : > { %v4503_v41 = vpack.c.bf16 %v4489_v58, %v4487_v15  ;;  %v4393_v0 = vpop.permute.xlu1 %4392  ;;  %v4389_v12 = vpop.permute.xlu0 %4388  ;;  %v4504_v30 = vpack.c.bf16 %v4490_v35, %v4488_v14  ;;  %v4502_v5 = vpack.c.bf16 %v4486_v42, %v4484_v56 }
 0xe5a   : > { %v4394_v55 = vsel %vm409_vm8, %v4393_v0, %v4389_v12  ;;  %v4397_v24 = vsel %vm409_vm8, %v4389_v12, %v4393_v0  ;;  %v4501_v29 = vpack.c.bf16 %v4485_v26, %v4483_v20 }
 0xe5b   : > { %4537 = vmatprep.subr.bf16.mxu1 %v4504_v30  ;;  %v4479_v36 = vmul.f32 %v4397_v24, %v7702_v62  ;;  %v4480_v18 = vmul.f32 %v4394_v55, %v7672_v21 }
 0xe5c   : > { %4538 = vmatpush1.bf16.msra.mxu1 %v4503_v41 }
 0xe5d   : > { %v4402_v1 = vpop.permute.xlu1 %4401  ;;  %v4399_v60 = vpop.permute.xlu0 %4398  ;;  %4539 = vmatprep.subr.bf16.mxu1 %v4502_v5 }
 0xe5e   : > { %v4403_v17 = vsel %vm419_vm6, %v4402_v1, %v4399_v60  ;;  %v4406_v63 = vsel %vm419_vm6, %v4399_v60, %v4402_v1 }
 0xe5f   : > { %v4481_v25 = vmul.f32 %v4406_v63, %v7691_v3  ;;  %v4482_v43 = vmul.f32 %v4403_v17, %v7683_v19 }
 0xe60   : > { %4540 = vmatpush1.bf16.msra.mxu1 %v4501_v29 }
 0xe61   : > { %v4499_v59 = vpack.c.bf16 %v4481_v25, %v4479_v36  ;;  %v4500_v34 = vpack.c.bf16 %v4482_v43, %v4480_v18 }
 0xe63   : > { %4541 = vmatprep.subr.bf16.mxu1 %v4500_v34 }
 0xe64   : > { %4542 = vmatpush1.bf16.msra.mxu1 %v4499_v59 }
 0xe67   : > { %4839 = vmatmul.mubr.msk.bf16.vlgmr.msra.gmra.mxu1 %vm815_vm11, %v4882_v50 }
 0xf27   : > { %v4561_v39 = vpop.f32.mrf.mxu1 }
 0xf28   : > { %v4562_v62 = vadd.f32 %v4561_v39, %v7740_v53 }
 0xf29   : > { %v4563_v45 = vpop.f32.mrf.mxu1 }
 0xf2a   : > { %v4840_v21 = vmul.f32 -1.442695, %v4562_v62  ;;  %v4564_v3 = vadd.f32 %v4563_v45, %v7745_v33 }
 0xf2b   : > { %v4565_v28 = vpop.f32.mrf.mxu1 }
 0xf2c   : > { %5243 = vpow2.f32 %v4840_v21  ;;  %v4841_v19 = vmul.f32 -1.442695, %v4564_v3  ;;  %v4566_v31 = vadd.f32 %v4565_v28, %v7752_v2 }
 0xf2d   : > { %v4567_v9 = vpop.f32.mrf.mxu1 }
 0xf2e   : > { %5245 = vpow2.f32 %v4841_v19  ;;  %v4568_v61 = vadd.f32 %v4567_v9, %v7758_v22  ;;  %v4842_v6 = vmul.f32 -1.442695, %v4566_v31 }
 0xf2f   : > { %5247 = vtanh.f32 %v4566_v31 }
 0xf30   : > { %5249 = vtanh.f32 %v4568_v61  ;;  %v4843_v52 = vmul.f32 -1.442695, %v4568_v61 }
 0xf39   : > { %v5244_v57 = vpop.eup %5243 }
 0xf3a   : > { %v4582_v32 = vadd.f32 1.0, %v5244_v57 }
 0xf3b   : > { %v5246_v10 = vpop.eup %5245 }
 0xf3c   : > { %5251 = vrcp.f32 %v4582_v32  ;;  %v4583_v53 = vadd.f32 1.0, %v5246_v10  ;;  %v5248_v33 = vpop.eup %5247 }
 0xf3d   : > { %5253 = vpow2.f32 %v4842_v6  ;;  %v5250_v54 = vpop.eup %5249  ;;  %v4600_v16 = vrot.slane %v5248_v33, 4 }
 0xf3e   : > { %5255 = vrcp.f32 %v4583_v53  ;;  %v4601_v7 = vrot.slane %v5250_v54, 4 }
 0xf3f   : > { %5257 = vpow2.f32 %v4843_v52 }
 0xf49   : > { %v5252_v8 = vpop.eup %5251 }
 0xf4a   : > { %v5254_v4 = vpop.eup %5253  ;;  %v4604_v2 = vmul.f32 %v5252_v8, %v4600_v16  ;;  %v4596_v51 = vmul.f32 %v5252_v8, %v7776_v44 }
 0xf4b   : > { %v5256_v22 = vpop.eup %5255  ;;  %v4584_v46 = vadd.f32 1.0, %v5254_v4 }
 0xf4c   : > { %v4608_v47 = vrot.slane %v4604_v2, 4  ;;  %v4605_v23 = vmul.f32 %v5256_v22, %v4601_v7  ;;  %v5258_v15 = vpop.eup %5257  ;;  %v4597_v14 = vmul.f32 %v5256_v22, %v7782_v11 }
 0xf4d   : > { %v4585_v37 = vadd.f32 1.0, %v5258_v15 }
 0xf4e   : > { %v4612_v49 = vadd.f32 %v4608_v47, %v4596_v51  ;;  %v4609_v38 = vrot.slane %v4605_v23, 4 }
 0xf50   : > { %5259 = vtanh.f32 %v4612_v49  ;;  %4626 = vst [vmem:[#allocation3 + $0x8] sm:$0xf0] %v4612_v49  ;;  %v4613_v13 = vadd.f32 %v4609_v38, %v4597_v14 }
 0xf51   : > { %5261 = vrcp.f32 %v4584_v46 }
 0xf52   : > { %5263 = vtanh.f32 %v4613_v13  ;;  %4627 = vst [vmem:[#allocation3] sm:$0xf0] %v4613_v13 }
 0xf53   : > { %5265 = vrcp.f32 %v4585_v37 }
 0xf5d   : > { %v5260_v40 = vpop.eup %5259 }
 0xf5e   : > { %v5262_v58 = vpop.eup %5261  ;;  %v4618_v44 = vrot.slane %v5260_v40, 4 }
 0xf5f   : > { %v5264_v35 = vpop.eup %5263 }
 0xf60   : > { %v4622_v27 = vmul.f32 %v5262_v58, %v4618_v44  ;;  %v4619_v42 = vrot.slane %v5264_v35, 4  ;;  %v5266_v48 = vpop.eup %5265 }
 0xf62   : > { %4624 = vst [vmem:[#allocation3 + $0x8] sm:$0xf] %v4622_v27  ;;  %v4623_v56 = vmul.f32 %v5266_v48, %v4619_v42 }
 0xf64   : > { %4625 = vst [vmem:[#allocation3] sm:$0xf] %v4623_v56  ;;  %v4630_v11 = vcombine.low %v4622_v27, %v4623_v56 }
 0xf66   : > { %4844 = vst [vmem:[%s5882_s24 + $0x38] sm:$0xff] %v4630_v11 }
 0xf67 PF: > { %s21_s17 = sadd.s32 1, %s5273_s17  }
 0xf68   : > { %p18_p4 = scmp.ge.s32.totalorder %s21_s17, 4  }
 0xf6a   :  { %20 = sbr.rel (!%p18_p4) target bundleno = 1 (0x1), region = 108 }

</bundles_post_ra>
